<compile_context>
chip_gen: v6e
topology: v6e:2x2x1
jax: 0.10.0
libtpu: 0.0.40
codegen_flags: <defaults>
</compile_context>

<pallas_src>
import jax
import jax.numpy as jnp
from jax.experimental import pallas as pl
from jax.experimental.pallas import tpu as pltpu

LOG_2PI = 1.8378770664093453  # log(2*pi)


def _mish(x):
    # mish(x) = x * tanh(softplus(x)); with w = 1 + e^x,
    # tanh(softplus(x)) = (w^2 - 1) / (w^2 + 1).
    # One exp + one approx EUP reciprocal instead of exp -> log -> tanh.
    # Clamping the exp argument keeps w^2 finite; for x >= 20 the ratio is
    # already 1.0 in f32, so the clamp is exact.
    w = 1.0 + jnp.exp(jnp.minimum(x, 20.0))
    w2 = w * w
    return x * (w2 - 1.0) * pl.reciprocal(w2 + 1.0, approx=True)


def _empowerment_kernel(obs_ref, act_ref, w1o_ref, w1a_ref, b1_ref,
                        w2_ref, b2_ref, w3_ref, b3_ref, out_ref):
    g_tile, d_obs = obs_ref.shape
    n_samples = act_ref.shape[0]
    cdt = w2_ref.dtype                       # matmul operand dtype (f32 / bf16)

    # ---------------- shared-parameter MLP (Ptrans), layer 1 decomposed ----
    # h1[g*S+s] = mish(obs[g] @ W1_obs + act[s] @ W1_act + b1): obs part once
    # per group, action part once per sample -> no S-fold duplicated input.
    obs_h = jnp.dot(obs_ref[...], w1o_ref[...],
                    preferred_element_type=jnp.float32)                 # (G, H)
    act_h = jnp.dot(act_ref[...], w1a_ref[...],
                    preferred_element_type=jnp.float32) + b1_ref[...]   # (S, H)
    h = _mish((obs_h[:, None, :] + act_h[None, :, :])
              .reshape(g_tile * n_samples, -1))                         # (G*S, H)
    h = _mish(jnp.dot(h.astype(cdt), w2_ref[...],
                      preferred_element_type=jnp.float32) + b2_ref[...])
    # fused (mu | log-var) head: single K=H, N=2*D matmul
    o3 = jnp.dot(h.astype(cdt), w3_ref[...],
                 preferred_element_type=jnp.float32) + b3_ref[...]      # (G*S, 2D)
    mu = o3[:, :d_obs].reshape(g_tile, n_samples, d_obs)
    lv = o3[:, d_obs:].reshape(g_tile, n_samples, d_obs)

    # ---- H(x|a) = -E_s[ log N(mu_s | mu_s, diag exp(lv_s)) ] --------------
    # (log_prob evaluated at the mean, exactly as the PyTorch reference does)
    sum_lv = jnp.sum(lv, axis=-1)                                       # (G, S)
    hxa = jnp.mean(0.5 * (d_obs * LOG_2PI + sum_lv),
                   axis=-1, keepdims=True)                              # (G, 1)

    # ---- H(x) = -E_i[ log (1/S) sum_j N(mu_i | mu_j, diag exp(lv_j)) ] ----
    inv_var = jnp.exp(-lv)
    mu2 = mu * mu
    # quad[g,i,j] = sum_d (mu[g,i,d] - mu[g,j,d])^2 * inv_var[g,j,d]
    # as ONE contraction over 2*D plus a j-only correction term.
    lhs = jnp.concatenate([mu2, -2.0 * mu], axis=-1)                    # (G, S, 2D)
    rhs = jnp.concatenate([inv_var, mu * inv_var], axis=-1)             # (G, S, 2D)
    quad = jnp.einsum('gid,gjd->gij', lhs, rhs,
                      preferred_element_type=jnp.float32)               # (G, S, S)
    t_jj = jnp.sum(mu2 * inv_var, axis=-1)                              # (G, S)
    quad = quad + t_jj[:, None, :]

    logp = -0.5 * (d_obs * LOG_2PI + sum_lv[:, None, :] + quad)         # (G, S, S)
    m = jnp.max(logp, axis=-1, keepdims=True)                           # (G, S, 1)
    lse = m[..., 0] + jnp.log(jnp.sum(jnp.exp(logp - m), axis=-1))      # (G, S)
    log_mix = lse - jnp.log(float(n_samples))
    hx = -jnp.mean(log_mix, axis=-1, keepdims=True)                     # (G, 1)

    ixa = hx - hxa                                                      # (G, 1)

    # Lane-dense store: turn the per-group column into a (1, G) row via a
    # one-hot mask + sublane reduction (only well-supported ops).
    rows = jax.lax.broadcasted_iota(jnp.int32, (g_tile, g_tile), 0)
    cols = jax.lax.broadcasted_iota(jnp.int32, (g_tile, g_tile), 1)
    eye = (rows == cols).astype(jnp.float32)                            # (G, G)
    ixa_row = jnp.sum(eye * ixa, axis=0, keepdims=True)                 # (1, G)
    out_ref[...] = ixa_row.reshape(1, 1, g_tile)


def _round_up(x, m):
    return ((x + m - 1) // m) * m


def empowerment_forward(obs, action_samples, params, *,
                        g_tile_max=64, matmul_dtype=jnp.float32):
    """JAX/Pallas equivalent of EmpowermentCuriosity.forward -> (B, A)."""
    B, A, d_obs = obs.shape
    S, act_dim = action_samples.shape
    G = B * A

    w1, b1, w2, b2, w3, b3 = params
    H = w1.shape[1]

    # `.view(..., D_obs, 2)`: even output columns -> means, odd -> log-vars.
    # Reorder the head weights once so the kernel takes contiguous slices of
    # a single fused matmul.
    w3r = jnp.concatenate([w3[:, 0::2], w3[:, 1::2]], axis=1)
    b3r = jnp.concatenate([b3[0::2], b3[1::2]], axis=0)

    # Layer-1 split: rows [:d_obs] multiply obs, rows [d_obs:] the action.
    w1_obs, w1_act = w1[:d_obs], w1[d_obs:]

    g_tile = min(g_tile_max, _round_up(G, 8))
    g_pad = _round_up(G, g_tile)
    num_tiles = g_pad // g_tile

    obs_flat = obs.reshape(G, d_obs).astype(jnp.float32)
    if g_pad != G:
        obs_flat = jnp.pad(obs_flat, ((0, g_pad - G), (0, 0)))

    # matmul_dtype=jnp.bfloat16 halves DMA/VMEM for the MLP operands on
    # v6e/v7x (f32 accumulation is kept inside the kernel); default is f32
    # for exact parity with the PyTorch reference.
    f32 = jnp.float32
    operands = (
        obs_flat.astype(matmul_dtype),
        action_samples.astype(matmul_dtype),
        w1_obs.astype(matmul_dtype),
        w1_act.astype(matmul_dtype),
        b1.reshape(1, H).astype(f32),
        w2.astype(matmul_dtype),
        b2.reshape(1, H).astype(f32),
        w3r.astype(matmul_dtype),
        b3r.reshape(1, 2 * d_obs).astype(f32),
    )

    out = pl.pallas_call(
        _empowerment_kernel,
        out_shape=jax.ShapeDtypeStruct((num_tiles, 1, g_tile), jnp.float32),
        grid=(num_tiles,),
        in_specs=[
            pl.BlockSpec((g_tile, d_obs), lambda i: (i, 0)),       # obs tile
            pl.BlockSpec((S, act_dim), lambda i: (0, 0)),          # action samples
            pl.BlockSpec((d_obs, H), lambda i: (0, 0)),            # W1[:d_obs]
            pl.BlockSpec((act_dim, H), lambda i: (0, 0)),          # W1[d_obs:]
            pl.BlockSpec((1, H), lambda i: (0, 0)),                # b1
            pl.BlockSpec((H, H), lambda i: (0, 0)),                # W2
            pl.BlockSpec((1, H), lambda i: (0, 0)),                # b2
            pl.BlockSpec((H, 2 * d_obs), lambda i: (0, 0)),        # W3 (mu|lv)
            pl.BlockSpec((1, 2 * d_obs), lambda i: (0, 0)),        # b3 (mu|lv)
        ],
        out_specs=pl.BlockSpec((1, 1, g_tile), lambda i: (i, 0, 0)),
        compiler_params=pltpu.CompilerParams(
            dimension_semantics=("parallel",)),
    )(*operands)

    # --- BatchNorm1d(1, eps=1e-7), training mode (batch statistics,
    #     gamma=1, beta=0): a reduction over G scalars -> plain JAX. ---
    ixa = out.reshape(g_pad)[:G]
    mean = jnp.mean(ixa)
    var = jnp.mean(jnp.square(ixa - mean))
    mi = (ixa - mean) / jnp.sqrt(var + 1e-7)
    return mi.reshape(B, A)


def init_params(key, d_in, hidden, d_out):
    """Deterministic synthetic init (PyTorch-Linear-style uniform ranges)."""
    ks = jax.random.split(key, 6)

    def lin(kw, kb, fi, fo):
        lim = 1.0 / jnp.sqrt(float(fi))
        w = jax.random.uniform(kw, (fi, fo), jnp.float32, -lim, lim)
        b = jax.random.uniform(kb, (fo,), jnp.float32, -lim, lim)
        return w, b

    w1, b1 = lin(ks[0], ks[1], d_in, hidden)
    w2, b2 = lin(ks[2], ks[3], hidden, hidden)
    w3, b3 = lin(ks[4], ks[5], hidden, d_out)
    return w1, b1, w2, b2, w3, b3


if __name__ == "__main__":
    B, A, D_OBS, N_SAMPLES, HIDDEN = 2, 4, 8, 16, 32

    key = jax.random.PRNGKey(0)
    k_obs, k_par = jax.random.split(key)

    obs = jax.random.normal(k_obs, (B, A, D_OBS), jnp.float32)

    # action_samples: points on the unit circle, every other sample halved.
    t = jnp.arange(N_SAMPLES, dtype=jnp.float32) * (2.0 * jnp.pi) / N_SAMPLES
    action_samples = jnp.stack([jnp.cos(t), jnp.sin(t)], axis=-1)
    action_samples = action_samples.at[1::2].multiply(0.5)

    params = init_params(k_par, D_OBS + 2, HIDDEN, 2 * D_OBS)

    mi = jax.jit(empowerment_forward)(obs, action_samples, params)
    mi = jax.block_until_ready(mi)

    assert mi.shape == (B, A)
    assert bool(jnp.all(jnp.isfinite(mi)))
    print("KERNEL_OK")
</pallas_src>

<mosaic_0001>
module attributes {stable_mosaic.version = 11 : i64} {
  func.func @_empowerment_kernel(%arg0: i32, %arg1: memref<8x8xf32, #tpu.memory_space<vmem>>, %arg2: memref<16x2xf32, #tpu.memory_space<vmem>>, %arg3: memref<8x32xf32, #tpu.memory_space<vmem>>, %arg4: memref<2x32xf32, #tpu.memory_space<vmem>>, %arg5: memref<1x32xf32, #tpu.memory_space<vmem>>, %arg6: memref<32x32xf32, #tpu.memory_space<vmem>>, %arg7: memref<1x32xf32, #tpu.memory_space<vmem>>, %arg8: memref<32x16xf32, #tpu.memory_space<vmem>>, %arg9: memref<1x16xf32, #tpu.memory_space<vmem>>, %arg10: memref<1x1x8xf32, #tpu.memory_space<vmem>>) attributes {dimension_semantics = [#tpu.dimension_semantics<parallel>], iteration_bounds = array<i64: 1>, scalar_prefetch = 0 : i64, scratch_operands = 0 : i64, tpu.core_type = #tpu.core_type<tc>, window_params = [{transform_indices = @transform_0, window_bounds = array<i64: 8, 8>}, {pipeline_mode = #tpu.pipeline_mode<synchronous>, transform_indices = @transform_1, window_bounds = array<i64: 16, 2>}, {pipeline_mode = #tpu.pipeline_mode<synchronous>, transform_indices = @transform_2, window_bounds = array<i64: 8, 32>}, {pipeline_mode = #tpu.pipeline_mode<synchronous>, transform_indices = @transform_3, window_bounds = array<i64: 2, 32>}, {pipeline_mode = #tpu.pipeline_mode<synchronous>, transform_indices = @transform_4, window_bounds = array<i64: 1, 32>}, {pipeline_mode = #tpu.pipeline_mode<synchronous>, transform_indices = @transform_5, window_bounds = array<i64: 32, 32>}, {pipeline_mode = #tpu.pipeline_mode<synchronous>, transform_indices = @transform_6, window_bounds = array<i64: 1, 32>}, {pipeline_mode = #tpu.pipeline_mode<synchronous>, transform_indices = @transform_7, window_bounds = array<i64: 32, 16>}, {pipeline_mode = #tpu.pipeline_mode<synchronous>, transform_indices = @transform_8, window_bounds = array<i64: 1, 16>}, {transform_indices = @transform_9, window_bounds = array<i64: 1, 1, 8>}]} {
    %c0 = arith.constant 0 : index
    %c0_0 = arith.constant 0 : index
    %0 = vector.load %arg1[%c0, %c0_0] : memref<8x8xf32, #tpu.memory_space<vmem>>, vector<8x8xf32>
    %c0_1 = arith.constant 0 : index
    %c0_2 = arith.constant 0 : index
    %1 = vector.load %arg3[%c0_1, %c0_2] : memref<8x32xf32, #tpu.memory_space<vmem>>, vector<8x32xf32>
    %cst = arith.constant dense<0.000000e+00> : vector<8x32xf32>
    %2 = tpu.matmul %0, %1, %cst {dimension_numbers = #tpu.dot_dimension_numbers<[1], [0], [0], [1], [0, 0, 1, 1], [], []>} : vector<8x8xf32>, vector<8x32xf32>, vector<8x32xf32> -> vector<8x32xf32>
    %c0_3 = arith.constant 0 : index
    %c0_4 = arith.constant 0 : index
    %3 = vector.load %arg2[%c0_3, %c0_4] : memref<16x2xf32, #tpu.memory_space<vmem>>, vector<16x2xf32>
    %c0_5 = arith.constant 0 : index
    %c0_6 = arith.constant 0 : index
    %4 = vector.load %arg4[%c0_5, %c0_6] : memref<2x32xf32, #tpu.memory_space<vmem>>, vector<2x32xf32>
    %cst_7 = arith.constant dense<0.000000e+00> : vector<16x32xf32>
    %5 = tpu.matmul %3, %4, %cst_7 {dimension_numbers = #tpu.dot_dimension_numbers<[1], [0], [0], [1], [0, 0, 1, 1], [], []>} : vector<16x2xf32>, vector<2x32xf32>, vector<16x32xf32> -> vector<16x32xf32>
    %c0_8 = arith.constant 0 : index
    %c0_9 = arith.constant 0 : index
    %6 = vector.load %arg5[%c0_8, %c0_9] : memref<1x32xf32, #tpu.memory_space<vmem>>, vector<1x32xf32>
    %7 = vector.broadcast %6 : vector<1x32xf32> to vector<16x32xf32>
    %8 = arith.addf %5, %7 : vector<16x32xf32>
    %9 = vector.shape_cast %2 : vector<8x32xf32> to vector<8x1x32xf32>
    %10 = vector.shape_cast %8 : vector<16x32xf32> to vector<1x16x32xf32>
    %11 = vector.broadcast %9 : vector<8x1x32xf32> to vector<8x16x32xf32>
    %12 = vector.broadcast %10 : vector<1x16x32xf32> to vector<8x16x32xf32>
    %13 = arith.addf %11, %12 : vector<8x16x32xf32>
    %14 = vector.shape_cast %13 : vector<8x16x32xf32> to vector<128x32xf32>
    %cst_10 = arith.constant 2.000000e+01 : f32
    %15 = vector.broadcast %cst_10 : f32 to vector<128x32xf32>
    %16 = arith.minimumf %14, %15 : vector<128x32xf32>
    %17 = math.exp %16 : vector<128x32xf32>
    %cst_11 = arith.constant 1.000000e+00 : f32
    %18 = vector.broadcast %cst_11 : f32 to vector<128x32xf32>
    %19 = arith.addf %18, %17 : vector<128x32xf32>
    %20 = arith.mulf %19, %19 : vector<128x32xf32>
    %cst_12 = arith.constant 1.000000e+00 : f32
    %21 = vector.broadcast %cst_12 : f32 to vector<128x32xf32>
    %22 = arith.subf %20, %21 : vector<128x32xf32>
    %23 = arith.mulf %14, %22 : vector<128x32xf32>
    %cst_13 = arith.constant 1.000000e+00 : f32
    %24 = vector.broadcast %cst_13 : f32 to vector<128x32xf32>
    %25 = arith.addf %20, %24 : vector<128x32xf32>
    %26 = tpu.reciprocal %25 {approx = true} : vector<128x32xf32> -> vector<128x32xf32>
    %27 = arith.mulf %23, %26 : vector<128x32xf32>
    %c0_14 = arith.constant 0 : index
    %c0_15 = arith.constant 0 : index
    %28 = vector.load %arg6[%c0_14, %c0_15] : memref<32x32xf32, #tpu.memory_space<vmem>>, vector<32x32xf32>
    %cst_16 = arith.constant dense<0.000000e+00> : vector<128x32xf32>
    %29 = tpu.matmul %27, %28, %cst_16 {dimension_numbers = #tpu.dot_dimension_numbers<[1], [0], [0], [1], [0, 0, 1, 1], [], []>} : vector<128x32xf32>, vector<32x32xf32>, vector<128x32xf32> -> vector<128x32xf32>
    %c0_17 = arith.constant 0 : index
    %c0_18 = arith.constant 0 : index
    %30 = vector.load %arg7[%c0_17, %c0_18] : memref<1x32xf32, #tpu.memory_space<vmem>>, vector<1x32xf32>
    %31 = vector.broadcast %30 : vector<1x32xf32> to vector<128x32xf32>
    %32 = arith.addf %29, %31 : vector<128x32xf32>
    %cst_19 = arith.constant 2.000000e+01 : f32
    %33 = vector.broadcast %cst_19 : f32 to vector<128x32xf32>
    %34 = arith.minimumf %32, %33 : vector<128x32xf32>
    %35 = math.exp %34 : vector<128x32xf32>
    %cst_20 = arith.constant 1.000000e+00 : f32
    %36 = vector.broadcast %cst_20 : f32 to vector<128x32xf32>
    %37 = arith.addf %36, %35 : vector<128x32xf32>
    %38 = arith.mulf %37, %37 : vector<128x32xf32>
    %cst_21 = arith.constant 1.000000e+00 : f32
    %39 = vector.broadcast %cst_21 : f32 to vector<128x32xf32>
    %40 = arith.subf %38, %39 : vector<128x32xf32>
    %41 = arith.mulf %32, %40 : vector<128x32xf32>
    %cst_22 = arith.constant 1.000000e+00 : f32
    %42 = vector.broadcast %cst_22 : f32 to vector<128x32xf32>
    %43 = arith.addf %38, %42 : vector<128x32xf32>
    %44 = tpu.reciprocal %43 {approx = true} : vector<128x32xf32> -> vector<128x32xf32>
    %45 = arith.mulf %41, %44 : vector<128x32xf32>
    %c0_23 = arith.constant 0 : index
    %c0_24 = arith.constant 0 : index
    %46 = vector.load %arg8[%c0_23, %c0_24] : memref<32x16xf32, #tpu.memory_space<vmem>>, vector<32x16xf32>
    %cst_25 = arith.constant dense<0.000000e+00> : vector<128x16xf32>
    %47 = tpu.matmul %45, %46, %cst_25 {dimension_numbers = #tpu.dot_dimension_numbers<[1], [0], [0], [1], [0, 0, 1, 1], [], []>} : vector<128x32xf32>, vector<32x16xf32>, vector<128x16xf32> -> vector<128x16xf32>
    %c0_26 = arith.constant 0 : index
    %c0_27 = arith.constant 0 : index
    %48 = vector.load %arg9[%c0_26, %c0_27] : memref<1x16xf32, #tpu.memory_space<vmem>>, vector<1x16xf32>
    %49 = vector.broadcast %48 : vector<1x16xf32> to vector<128x16xf32>
    %50 = arith.addf %47, %49 : vector<128x16xf32>
    %51 = vector.extract_strided_slice %50 {offsets = [0, 0], sizes = [128, 8], strides = [1, 1]} : vector<128x16xf32> to vector<128x8xf32>
    %52 = vector.shape_cast %51 : vector<128x8xf32> to vector<8x16x8xf32>
    %53 = vector.extract_strided_slice %50 {offsets = [0, 8], sizes = [128, 8], strides = [1, 1]} : vector<128x16xf32> to vector<128x8xf32>
    %54 = vector.shape_cast %53 : vector<128x8xf32> to vector<8x16x8xf32>
    %cst_28 = arith.constant dense<0.000000e+00> : vector<8x16xf32>
    %55 = vector.multi_reduction <add>, %54, %cst_28 [2] : vector<8x16x8xf32> to vector<8x16xf32>
    %cst_29 = arith.constant 14.7030163 : f32
    %56 = vector.broadcast %cst_29 : f32 to vector<8x16xf32>
    %57 = arith.addf %56, %55 : vector<8x16xf32>
    %cst_30 = arith.constant 5.000000e-01 : f32
    %58 = vector.broadcast %cst_30 : f32 to vector<8x16xf32>
    %59 = arith.mulf %58, %57 : vector<8x16xf32>
    %cst_31 = arith.constant dense<0.000000e+00> : vector<8xf32>
    %60 = vector.multi_reduction <add>, %59, %cst_31 [1] : vector<8x16xf32> to vector<8xf32>
    %61 = vector.shape_cast %60 : vector<8xf32> to vector<8x1xf32>
    %cst_32 = arith.constant 1.600000e+01 : f32
    %62 = vector.broadcast %cst_32 : f32 to vector<8x1xf32>
    %63 = arith.divf %61, %62 : vector<8x1xf32>
    %cst_33 = arith.constant 0.000000e+00 : f32
    %64 = vector.broadcast %cst_33 : f32 to vector<8x16x8xf32>
    %65 = arith.subf %64, %54 : vector<8x16x8xf32>
    %66 = math.exp %65 : vector<8x16x8xf32>
    %67 = arith.mulf %52, %52 : vector<8x16x8xf32>
    %cst_34 = arith.constant -2.000000e+00 : f32
    %68 = vector.broadcast %cst_34 : f32 to vector<8x16x8xf32>
    %69 = arith.mulf %68, %52 : vector<8x16x8xf32>
    %70 = tpu.concatenate %67, %69 in 2 : vector<8x16x8xf32>, vector<8x16x8xf32> -> vector<8x16x16xf32>
    %71 = arith.mulf %52, %66 : vector<8x16x8xf32>
    %72 = tpu.concatenate %66, %71 in 2 : vector<8x16x8xf32>, vector<8x16x8xf32> -> vector<8x16x16xf32>
    "tpu.trace_start"() <{level = 10 : i32, message = "gid,gjd->gij"}> : () -> ()
    %cst_35 = arith.constant dense<0.000000e+00> : vector<8x16x16xf32>
    %73 = tpu.matmul %70, %72, %cst_35 {dimension_numbers = #tpu.dot_dimension_numbers<[2], [2], [1], [1], [0, 0, 0, 1, 1, 1], [0], [0]>} : vector<8x16x16xf32>, vector<8x16x16xf32>, vector<8x16x16xf32> -> vector<8x16x16xf32>
    "tpu.trace_stop"() : () -> ()
    %74 = arith.mulf %67, %66 : vector<8x16x8xf32>
    %cst_36 = arith.constant dense<0.000000e+00> : vector<8x16xf32>
    %75 = vector.multi_reduction <add>, %74, %cst_36 [2] : vector<8x16x8xf32> to vector<8x16xf32>
    %76 = vector.shape_cast %75 : vector<8x16xf32> to vector<8x1x16xf32>
    %77 = vector.broadcast %76 : vector<8x1x16xf32> to vector<8x16x16xf32>
    %78 = arith.addf %73, %77 : vector<8x16x16xf32>
    %79 = vector.shape_cast %55 : vector<8x16xf32> to vector<8x1x16xf32>
    %cst_37 = arith.constant 14.7030163 : f32
    %80 = vector.broadcast %cst_37 : f32 to vector<8x1x16xf32>
    %81 = arith.addf %80, %79 : vector<8x1x16xf32>
    %82 = vector.broadcast %81 : vector<8x1x16xf32> to vector<8x16x16xf32>
    %83 = arith.addf %82, %78 : vector<8x16x16xf32>
    %cst_38 = arith.constant -5.000000e-01 : f32
    %84 = vector.broadcast %cst_38 : f32 to vector<8x16x16xf32>
    %85 = arith.mulf %84, %83 : vector<8x16x16xf32>
    %cst_39 = arith.constant dense<0xFF800000> : vector<8x16xf32>
    %86 = vector.multi_reduction <maximumf>, %85, %cst_39 [2] : vector<8x16x16xf32> to vector<8x16xf32>
    %87 = vector.shape_cast %86 : vector<8x16xf32> to vector<8x16x1xf32>
    %88 = vector.shape_cast %87 : vector<8x16x1xf32> to vector<8x16xf32>
    %89 = vector.broadcast %87 : vector<8x16x1xf32> to vector<8x16x16xf32>
    %90 = arith.subf %85, %89 : vector<8x16x16xf32>
    %91 = math.exp %90 : vector<8x16x16xf32>
    %cst_40 = arith.constant dense<0.000000e+00> : vector<8x16xf32>
    %92 = vector.multi_reduction <add>, %91, %cst_40 [2] : vector<8x16x16xf32> to vector<8x16xf32>
    %93 = math.log %92 : vector<8x16xf32>
    %94 = arith.addf %88, %93 : vector<8x16xf32>
    %cst_41 = arith.constant 1.600000e+01 : f32
    %95 = math.log %cst_41 : f32
    %96 = vector.broadcast %95 : f32 to vector<8x16xf32>
    %97 = arith.subf %94, %96 : vector<8x16xf32>
    %cst_42 = arith.constant dense<0.000000e+00> : vector<8xf32>
    %98 = vector.multi_reduction <add>, %97, %cst_42 [1] : vector<8x16xf32> to vector<8xf32>
    %99 = vector.shape_cast %98 : vector<8xf32> to vector<8x1xf32>
    %cst_43 = arith.constant 1.600000e+01 : f32
    %100 = vector.broadcast %cst_43 : f32 to vector<8x1xf32>
    %101 = arith.divf %99, %100 : vector<8x1xf32>
    %cst_44 = arith.constant 0.000000e+00 : f32
    %102 = vector.broadcast %cst_44 : f32 to vector<8x1xf32>
    %103 = arith.subf %102, %101 : vector<8x1xf32>
    %104 = arith.subf %103, %63 : vector<8x1xf32>
    %105 = tpu.iota {dimensions = array<i32: 0>} : vector<8x8xi32>
    %106 = tpu.iota {dimensions = array<i32: 1>} : vector<8x8xi32>
    %107 = arith.cmpi eq, %105, %106 : vector<8x8xi32>
    %108 = arith.extui %107 : vector<8x8xi1> to vector<8x8xi32>
    %109 = arith.sitofp %108 : vector<8x8xi32> to vector<8x8xf32>
    %110 = vector.broadcast %104 : vector<8x1xf32> to vector<8x8xf32>
    %111 = arith.mulf %109, %110 : vector<8x8xf32>
    %cst_45 = arith.constant dense<0.000000e+00> : vector<8xf32>
    %112 = vector.multi_reduction <add>, %111, %cst_45 [0] : vector<8x8xf32> to vector<8xf32>
    %113 = vector.shape_cast %112 : vector<8xf32> to vector<1x8xf32>
    %114 = vector.shape_cast %113 : vector<1x8xf32> to vector<1x1x8xf32>
    %c0_46 = arith.constant 0 : index
    %c0_47 = arith.constant 0 : index
    %c0_48 = arith.constant 0 : index
    %115 = vector.load %arg10[%c0_46, %c0_47, %c0_48] : memref<1x1x8xf32, #tpu.memory_space<vmem>>, vector<1x1x8xf32>
    tpu.vector_store %arg10[%c0_46, %c0_47, %c0_48], %114 {strides = array<i32>} : memref<1x1x8xf32, #tpu.memory_space<vmem>>, vector<1x1x8xf32>,
    return
  }
  func.func @transform_0(%arg0: i32) -> (i32, i32) {
    %c0_i32 = arith.constant 0 : i32
    %c0_i32_0 = arith.constant 0 : i32
    return %arg0, %c0_i32 : i32, i32
  }
  func.func @transform_1(%arg0: i32) -> (i32, i32) {
    %c0_i32 = arith.constant 0 : i32
    %c0_i32_0 = arith.constant 0 : i32
    %c0_i32_1 = arith.constant 0 : i32
    return %c0_i32, %c0_i32_0 : i32, i32
  }
  func.func @transform_2(%arg0: i32) -> (i32, i32) {
    %c0_i32 = arith.constant 0 : i32
    %c0_i32_0 = arith.constant 0 : i32
    %c0_i32_1 = arith.constant 0 : i32
    return %c0_i32, %c0_i32_0 : i32, i32
  }
  func.func @transform_3(%arg0: i32) -> (i32, i32) {
    %c0_i32 = arith.constant 0 : i32
    %c0_i32_0 = arith.constant 0 : i32
    %c0_i32_1 = arith.constant 0 : i32
    return %c0_i32, %c0_i32_0 : i32, i32
  }
  func.func @transform_4(%arg0: i32) -> (i32, i32) {
    %c0_i32 = arith.constant 0 : i32
    %c0_i32_0 = arith.constant 0 : i32
    %c0_i32_1 = arith.constant 0 : i32
    return %c0_i32, %c0_i32_0 : i32, i32
  }
  func.func @transform_5(%arg0: i32) -> (i32, i32) {
    %c0_i32 = arith.constant 0 : i32
    %c0_i32_0 = arith.constant 0 : i32
    %c0_i32_1 = arith.constant 0 : i32
    return %c0_i32, %c0_i32_0 : i32, i32
  }
  func.func @transform_6(%arg0: i32) -> (i32, i32) {
    %c0_i32 = arith.constant 0 : i32
    %c0_i32_0 = arith.constant 0 : i32
    %c0_i32_1 = arith.constant 0 : i32
    return %c0_i32, %c0_i32_0 : i32, i32
  }
  func.func @transform_7(%arg0: i32) -> (i32, i32) {
    %c0_i32 = arith.constant 0 : i32
    %c0_i32_0 = arith.constant 0 : i32
    %c0_i32_1 = arith.constant 0 : i32
    return %c0_i32, %c0_i32_0 : i32, i32
  }
  func.func @transform_8(%arg0: i32) -> (i32, i32) {
    %c0_i32 = arith.constant 0 : i32
    %c0_i32_0 = arith.constant 0 : i32
    %c0_i32_1 = arith.constant 0 : i32
    return %c0_i32, %c0_i32_0 : i32, i32
  }
  func.func @transform_9(%arg0: i32) -> (i32, i32, i32) {
    %c0_i32 = arith.constant 0 : i32
    %c0_i32_0 = arith.constant 0 : i32
    %c0_i32_1 = arith.constant 0 : i32
    return %arg0, %c0_i32, %c0_i32_0 : i32, i32, i32
  }
}

</mosaic_0001>

<bundles_post_ra>
// kernel: empowerment_forward.1
= control target key start
LH: loop header
LB: loop body
LE: loop exit
PB: predicated region body
PF: predicated region fallthrough
CT: control target
= control target key end

     0   :  { %v209_v0 = vlaneseq  ;;  %vm125_vm0 = vcmask 1041408   ;;  %v12064_v1 = vmov 0.0   ;;  %vm12065_vm1 = vmmov 0   ;;  %s12067_s12 = smov 120   ;;  %s12068_s13 = smov 8   ;;  %s18183_s2 = inlined_call_operand.vmem [shape: f32[8,32], index: 2, kind: input, shape index: {}]   ;;  %s18184_s3 = inlined_call_operand.vmem [shape: f32[2,32], index: 3, kind: input, shape index: {}]   ;;  %s18185_s0 = inlined_call_operand.vmem [shape: f32[8,8], index: 0, kind: input, shape index: {}]   ;;  %s18186_s1 = inlined_call_operand.vmem [shape: f32[16,2], index: 1, kind: input, shape index: {}]   ;;  %s18187_s5 = inlined_call_operand.vmem [shape: f32[32,32], index: 5, kind: input, shape index: {}]   ;;  %s18188_s4 = inlined_call_operand.vmem [shape: f32[1,32], index: 4, kind: input, shape index: {}]   ;;  %s18189_s7 = inlined_call_operand.vmem [shape: f32[32,16], index: 7, kind: input, shape index: {}]   ;;  %s18190_s6 = inlined_call_operand.vmem [shape: f32[1,32], index: 6, kind: input, shape index: {}]   ;;  %s18191_s8 = inlined_call_operand.vmem [shape: f32[1,16], index: 8, kind: input, shape index: {}]   ;;  %s18192_s9 = inlined_call_operand.vmem [shape: f32[1,1,8], index: 9, kind: output, shape index: {}]  }
   0x1   :  { %11222 = vmatprep.subr.mxu0 %v12064_v1  ;;  %v33_v2 = vld [vmem:[%s18183_s2] sm:$0xff]  ;;  %11224 = vmatprep.mubr.msk.f32.mxu0 %vm12065_vm1, %v12064_v1  ;;  %vm34_vm2 = vcmask 64512   ;;  %vm118_vm3 = vcmask 15360   ;;  %v109_v8 = vld [vmem:[%s18186_s1 + $0x8] sm:$0xff]  ;;  %v473_v13 = vld [vmem:[%s18187_s5 + $0x18] sm:$0xff]  ;;  %vm481_vm5 = vcmask 261120  }
   0x2   :  { %v110_v3 = vld [vmem:[%s18184_s3] sm:$0x3]  ;;  %v12129_v5 = vshrl.u32 %v209_v0, 7  ;;  %v1200_v6 = vand.u32 127, %v209_v0  ;;  %11223 = vmatpush3.msra.mxu0 %v33_v2  ;;  %v472_v14 = vld [vmem:[%s18187_s5 + $0x10] sm:$0xff]  ;;  %v471_v15 = vld [vmem:[%s18187_s5 + $0x8] sm:$0xff] }
   0x3   :  { %v32_v4 = vld [vmem:[%s18185_s0] sm:$0xff]  ;;  %11227 = vmatprep.subr.msk.mxu1 %vm125_vm0, %v110_v3  ;;  %11232 = vmatprep.subr.mxu0 %v473_v13  ;;  %v12066_v17 = vmov 1966171168   ;;  %vm1290_vm6 = vcmask 130048   ;;  %vm1210_vm7 = vcmask 130112   ;;  %vm1275_vm8 = vcmask 1041409  }
   0x4   :  { %v108_v7 = vld [vmem:[%s18186_s1] sm:$0xff]  ;;  %11225 = vmatmul.mubr.msk.f32.vlgmr.msra.gmra.mxu0 %vm34_vm2, %v32_v4  ;;  %11228 = vmatpush3.msk.msra.mxu1 %vm125_vm0, %v110_v3  ;;  %v12141_v9 = vsub.s32 %v1200_v6, %v12129_v5  ;;  %v1205_v10 = vadd.s32 4294967288, %v1200_v6  ;;  %vm11008_vm4 = vcmp.eq.s32.totalorder %v12129_v5, %v1200_v6  ;;  %v207_v18 = vunpack.c.l.s4 %v12066_v17 }
   0x5   :  { %11229 = vmatprep.mubr.msk.f32.mxu1 %vm118_vm3, %v108_v7  ;;  %v12147_v12 = vsel %vm11008_vm4, 1.0, %v12064_v1  ;;  %11233 = vmatpush3.msra.mxu0 %v473_v13  ;;  %v470_v16 = vld [vmem:[%s18187_s5] sm:$0xff]  ;;  %v12163_v24 = vsub.s32 0, %v12129_v5  ;;  %vm1277_vm9 = vcmask 1042434   ;;  %vm1279_vm10 = vcmask 1043459  }
   0x6   :  { %18512 = vst [vmem:[#allocation2_spill] sm:$0xff] %v12141_v9  ;;  %11230 = vmatmul.mubr.msk.f32.vlgmr.msra.gmra.mxu1 %vm118_vm3, %v109_v8  ;;  %v12144_v11 = vsub.s32 %v1205_v10, %v12129_v5  ;;  %18514 = vst [vmem:[#allocation4_spill] sm:$0xff] %v12147_v12  ;;  %11234 = vmatprep.subr.mxu0 %v472_v14  ;;  %v208_v19 = vunpack.c.0.s8 %v207_v18  ;;  %v11026_v30 = vld [vmem:[%s18188_s4] ss:$0 sm:$0xff]  ;;  %vm1281_vm11 = vcmask 1044484   ;;  %vm1283_vm12 = vcmask 1045509  }
   0x7   :  { %11235 = vmatpush3.msra.mxu0 %v472_v14  ;;  %18515 = vst [vmem:[#allocation5_spill] sm:$0xff] %v12163_v24  ;;  %vm1285_vm13 = vcmask 1046534   ;;  %vm1287_vm14 = vcmask 1047559   ;;  %vm11019_vm15 = vcmask 57344  }
   0x8   :  { %18513 = vst [vmem:[#allocation3_spill] sm:$0xff] %v12144_v11  ;;  %11236 = vmatprep.subr.mxu0 %v471_v15  ;;  %v211_v20 = vsub.s32 %v208_v19, %v12129_v5 }
   0x9   :  { %11237 = vmatpush3.msra.mxu0 %v471_v15 }
   0xa   :  { %11238 = vmatprep.subr.mxu0 %v470_v16 }
   0xb   :  { %11239 = vmatpush3.msra.mxu0 %v470_v16 }
  0xc4   :  { %v104_v21 = vpop.f32.mrf.mxu0 }
  0xc5   :  { %v205_v22 = vcombine.high %v104_v21, %v104_v21  ;;  %v212_v23 = vrot.slane %v104_v21, %v211_v20 }
  0xc6   :  { %v11231_v25 = vpop.f32.mrf.mxu1  ;;  %v11226_v26 = vpop.f32.mrf.mxu0 }
  0xc7   :  { %v219_v27 = vrot.slane %v205_v22, %v211_v20  ;;  %v220_v28 = vcombine.high %v212_v23, %v212_v23  ;;  %v228_v29 = vrot.slane %v212_v23, %v211_v20  ;;  %v201_v37 = vadd.f32 %v11231_v25, %v11026_v30 }
  0xc8   :  { %v195_v31 = vpop.f32.mrf.mxu1 }
  0xc9   :  { %v221_v32 = vcombine.high %v219_v27, %v219_v27  ;;  %v235_v33 = vrot.slane %v219_v27, %v211_v20  ;;  %v242_v34 = vrot.slane %v220_v28, %v211_v20  ;;  %v250_v35 = vcombine.high %v228_v29, %v228_v29 }
  0xca   :  { %v257_v36 = vrot.slane %v228_v29, %v12163_v24  ;;  %v196_v38 = vadd.f32 %v11026_v30, %v195_v31 }
  0xcb   :  { %v249_v39 = vrot.slane %v221_v32, %v211_v20  ;;  %v251_v40 = vcombine.high %v235_v33, %v235_v33  ;;  %v252_v41 = vcombine.high %v242_v34, %v242_v34  ;;  %v261_v42 = vrot.slane %v242_v34, %v12163_v24 }
  0xcc   :  { %v265_v43 = vrot.slane %v250_v35, %v12163_v24  ;;  %v273_v44 = vrot.slane %v235_v33, %v12163_v24  ;;  %v12172_v45 = vadd.f32 %v257_v36, %v196_v38  ;;  %v12174_v46 = vadd.f32 %v257_v36, %v201_v37 }
  0xcd   :  { %v253_v47 = vcombine.high %v249_v39, %v249_v39  ;;  %v269_v48 = vrot.slane %v252_v41, %v12163_v24  ;;  %v277_v49 = vrot.slane %v249_v39, %v12163_v24  ;;  %v281_v50 = vrot.slane %v251_v40, %v12163_v24 }
  0xce   :  { %v310_v51 = vmin.f32 %v12172_v45, 20.0  ;;  %v311_v52 = vmin.f32 %v12174_v46, 20.0  ;;  %v12181_v53 = vadd.f32 %v261_v42, %v196_v38  ;;  %v12183_v54 = vadd.f32 %v261_v42, %v201_v37 }
  0xcf   :  { %v285_v55 = vrot.slane %v253_v47, %v12163_v24  ;;  %v12186_v56 = vadd.f32 %v265_v43, %v196_v38  ;;  %v12188_v57 = vadd.f32 %v265_v43, %v201_v37  ;;  %v12190_v58 = vadd.f32 %v269_v48, %v196_v38 }
  0xd0   :  { %v326_v59 = vmul.f32 1.442695, %v310_v51  ;;  %v328_v60 = vmul.f32 1.442695, %v311_v52  ;;  %v312_v61 = vmin.f32 %v12181_v53, 20.0  ;;  %v313_v62 = vmin.f32 %v12183_v54, 20.0 }
  0xd1   :  { %v314_v63 = vmin.f32 %v12186_v56, 20.0  ;;  %v315_v0 = vmin.f32 %v12188_v57, 20.0  ;;  %v316_v1 = vmin.f32 %v12190_v58, 20.0  ;;  %v12197_v2 = vadd.f32 %v269_v48, %v201_v37 }
  0xd2   :  { %11360 = vpow2.f32 %v326_v59  ;;  %v330_v3 = vmul.f32 1.442695, %v312_v61  ;;  %v332_v4 = vmul.f32 1.442695, %v313_v62  ;;  %v12199_v6 = vadd.f32 %v273_v44, %v196_v38 }
  0xd3   :  { %11362 = vpow2.f32 %v328_v60  ;;  %v334_v7 = vmul.f32 1.442695, %v314_v63  ;;  %v336_v8 = vmul.f32 1.442695, %v315_v0  ;;  %v338_v10 = vmul.f32 1.442695, %v316_v1 }
  0xd4   :  { %11364 = vpow2.f32 %v330_v3  ;;  %v317_v13 = vmin.f32 %v12197_v2, 20.0  ;;  %v318_v14 = vmin.f32 %v12199_v6, 20.0  ;;  %v12203_v15 = vadd.f32 %v273_v44, %v201_v37 }
  0xd5   :  { %11366 = vpow2.f32 %v332_v4  ;;  %v12205_v16 = vadd.f32 %v277_v49, %v196_v38  ;;  %v12207_v17 = vadd.f32 %v277_v49, %v201_v37  ;;  %v12209_v18 = vadd.f32 %v281_v50, %v196_v38 }
  0xd6   :  { %11368 = vpow2.f32 %v334_v7  ;;  %v340_v19 = vmul.f32 1.442695, %v317_v13  ;;  %v342_v20 = vmul.f32 1.442695, %v318_v14  ;;  %v319_v21 = vmin.f32 %v12203_v15, 20.0 }
  0xd7   :  { %11370 = vpow2.f32 %v336_v8  ;;  %v320_v22 = vmin.f32 %v12205_v16, 20.0  ;;  %v321_v23 = vmin.f32 %v12207_v17, 20.0  ;;  %v12214_v26 = vadd.f32 %v281_v50, %v201_v37 }
  0xd8   :  { %11372 = vpow2.f32 %v338_v10  ;;  %v344_v25 = vmul.f32 1.442695, %v319_v21  ;;  %v12216_v27 = vadd.f32 %v285_v55, %v196_v38  ;;  %v322_v29 = vmin.f32 %v12209_v18, 20.0 }
  0xd9   :  { %11374 = vpow2.f32 %v340_v19  ;;  %v346_v28 = vmul.f32 1.442695, %v320_v22  ;;  %v12219_v30 = vadd.f32 %v285_v55, %v201_v37  ;;  %v348_v31 = vmul.f32 1.442695, %v321_v23 }
  0xda   :  { %11376 = vpow2.f32 %v342_v20  ;;  %v323_v32 = vmin.f32 %v12214_v26, 20.0  ;;  %v324_v33 = vmin.f32 %v12216_v27, 20.0  ;;  %v350_v35 = vmul.f32 1.442695, %v322_v29 }
  0xdb   :  { %11378 = vpow2.f32 %v344_v25  ;;  %v325_v34 = vmin.f32 %v12219_v30, 20.0 }
  0xdc   :  { %11380 = vpow2.f32 %v346_v28  ;;  %v352_v38 = vmul.f32 1.442695, %v323_v32  ;;  %v354_v41 = vmul.f32 1.442695, %v324_v33 }
  0xdd   :  { %11382 = vpow2.f32 %v348_v31  ;;  %v356_v37 = vmul.f32 1.442695, %v325_v34 }
  0xde   :  { %11384 = vpow2.f32 %v350_v35 }
  0xdf   :  { %v11361_v36 = vpop.eup %11360  ;;  %11386 = vpow2.f32 %v352_v38 }
  0xe0   :  { %v11363_v39 = vpop.eup %11362  ;;  %v358_v40 = vadd.f32 1.0, %v11361_v36  ;;  %11388 = vpow2.f32 %v354_v41 }
  0xe1   :  { %v11365_v42 = vpop.eup %11364  ;;  %v359_v43 = vadd.f32 1.0, %v11363_v39  ;;  %11390 = vpow2.f32 %v356_v37 }
  0xe2   :  { %v11367_v44 = vpop.eup %11366  ;;  %v374_v47 = vmul.f32 %v358_v40, %v358_v40  ;;  %v360_v48 = vadd.f32 1.0, %v11365_v42 }
  0xe3   :  { %v11369_v49 = vpop.eup %11368  ;;  %v375_v50 = vmul.f32 %v359_v43, %v359_v43  ;;  %v361_v51 = vadd.f32 1.0, %v11367_v44 }
  0xe4   :  { %v11371_v52 = vpop.eup %11370  ;;  %v422_v55 = vadd.f32 1.0, %v374_v47  ;;  %v376_v59 = vmul.f32 %v360_v48, %v360_v48  ;;  %v362_v60 = vadd.f32 1.0, %v11369_v49  ;;  %v11030_v33 = vadd.f32 -1.0, %v374_v47 }
  0xe5   :  { %v11373_v61 = vpop.eup %11372  ;;  %v423_v62 = vadd.f32 1.0, %v375_v50  ;;  %v377_v63 = vmul.f32 %v361_v51, %v361_v51  ;;  %v363_v0 = vadd.f32 1.0, %v11371_v52  ;;  %v11031_v41 = vadd.f32 -1.0, %v375_v50 }
  0xe6   :  { %v11375_v1 = vpop.eup %11374  ;;  %11392 = vrcp.f32 %v422_v55  ;;  %v424_v3 = vadd.f32 1.0, %v376_v59  ;;  %v378_v10 = vmul.f32 %v362_v60, %v362_v60  ;;  %v364_v19 = vadd.f32 1.0, %v11373_v61 }
  0xe7   :  { %v11377_v4 = vpop.eup %11376  ;;  %11394 = vrcp.f32 %v423_v62  ;;  %v425_v7 = vadd.f32 1.0, %v377_v63  ;;  %v379_v13 = vmul.f32 %v363_v0, %v363_v0  ;;  %v365_v20 = vadd.f32 1.0, %v11375_v1 }
  0xe8   :  { %v11379_v8 = vpop.eup %11378  ;;  %11396 = vrcp.f32 %v424_v3  ;;  %v426_v21 = vadd.f32 1.0, %v378_v10  ;;  %v380_v23 = vmul.f32 %v364_v19, %v364_v19  ;;  %v366_v28 = vadd.f32 1.0, %v11377_v4 }
  0xe9   :  { %v11381_v14 = vpop.eup %11380  ;;  %11398 = vrcp.f32 %v425_v7  ;;  %v427_v22 = vadd.f32 1.0, %v379_v13  ;;  %v12224_v25 = vmul.f32 %v365_v20, %v365_v20  ;;  %v367_v29 = vadd.f32 1.0, %v11379_v8 }
  0xea   :  { %v11383_v31 = vpop.eup %11382  ;;  %11400 = vrcp.f32 %v426_v21  ;;  %v368_v32 = vadd.f32 1.0, %v11381_v14  ;;  %v428_v34 = vadd.f32 1.0, %v380_v23  ;;  %v12227_v36 = vmul.f32 %v366_v28, %v366_v28 }
  0xeb   :  { %11402 = vrcp.f32 %v427_v22  ;;  %v429_v35 = vadd.f32 1.0, %v12224_v25  ;;  %v12229_v38 = vmul.f32 %v367_v29, %v367_v29  ;;  %v11385_v40 = vpop.eup %11384  ;;  %v11032_v42 = vadd.f32 -1.0, %v376_v59 }
  0xec   :  { %v12231_v39 = vmul.f32 %v368_v32, %v368_v32  ;;  %11404 = vrcp.f32 %v428_v34  ;;  %v369_v43 = vadd.f32 1.0, %v11383_v31  ;;  %v11387_v37 = vpop.eup %11386  ;;  %v430_v44 = vadd.f32 1.0, %v12227_v36 }
  0xed   :  { %v11389_v48 = vpop.eup %11388  ;;  %11406 = vrcp.f32 %v429_v35  ;;  %v431_v47 = vadd.f32 1.0, %v12229_v38  ;;  %v406_v52 = vmul.f32 %v11030_v33, %v12172_v45  ;;  %v370_v60 = vadd.f32 1.0, %v11385_v40 }
  0xee   :  { %v12235_v49 = vmul.f32 %v369_v43, %v369_v43  ;;  %v11391_v51 = vpop.eup %11390  ;;  %11408 = vrcp.f32 %v430_v44  ;;  %v432_v55 = vadd.f32 1.0, %v12231_v39  ;;  %v407_v59 = vmul.f32 %v11031_v41, %v12174_v46 }
  0xef   :  { %v408_v61 = vmul.f32 %v11032_v42, %v12181_v53  ;;  %v11033_v62 = vadd.f32 -1.0, %v377_v63  ;;  %v11034_v3 = vadd.f32 -1.0, %v378_v10  ;;  %v386_v4 = vmul.f32 %v370_v60, %v370_v60 }
  0xf0   :  { %v371_v7 = vadd.f32 1.0, %v11387_v37  ;;  %11410 = vrcp.f32 %v431_v47  ;;  %v433_v45 = vadd.f32 1.0, %v12235_v49  ;;  %v372_v19 = vadd.f32 1.0, %v11389_v48 }
  0xf1   :  { %11412 = vrcp.f32 %v432_v55  ;;  %v434_v46 = vadd.f32 1.0, %v386_v4  ;;  %v409_v53 = vmul.f32 %v11033_v62, %v12183_v54  ;;  %v11035_v63 = vadd.f32 -1.0, %v379_v13 }
  0xf2   :  { %v387_v22 = vmul.f32 %v371_v7, %v371_v7  ;;  %v388_v10 = vmul.f32 %v372_v19, %v372_v19  ;;  %v373_v28 = vadd.f32 1.0, %v11391_v51  ;;  %v410_v29 = vmul.f32 %v11034_v3, %v12186_v56 }
  0xf3   :  { %v11393_v50 = vpop.eup %11392  ;;  %v11036_v31 = vadd.f32 -1.0, %v380_v23  ;;  %11414 = vrcp.f32 %v433_v45  ;;  %v411_v54 = vmul.f32 %v11035_v63, %v12188_v57  ;;  %v11037_v13 = vadd.f32 -1.0, %v12224_v25 }
  0xf4   :  { %v11395_v0 = vpop.eup %11394  ;;  %v454_v1 = vmul.f32 %v11393_v50, %v406_v52  ;;  %v435_v34 = vadd.f32 1.0, %v387_v22  ;;  %v389_v35 = vmul.f32 %v373_v28, %v373_v28  ;;  %11416 = vrcp.f32 %v434_v46 }
  0xf5   :  { %v11397_v8 = vpop.eup %11396  ;;  %v455_v14 = vmul.f32 %v11395_v0, %v407_v59  ;;  %v436_v42 = vadd.f32 1.0, %v388_v10  ;;  %v412_v56 = vmul.f32 %v11036_v31, %v12190_v58  ;;  %v11038_v23 = vadd.f32 -1.0, %v12227_v36 }
  0xf6   :  { %v11399_v20 = vpop.eup %11398  ;;  %11240 = vmatprep.mubr.msk.f32.mxu0 %vm481_vm5, %v454_v1  ;;  %v456_v21 = vmul.f32 %v11397_v8, %v408_v61  ;;  %11418 = vrcp.f32 %v435_v34  ;;  %v437_v44 = vadd.f32 1.0, %v389_v35  ;;  %v413_v57 = vmul.f32 %v11037_v13, %v12197_v2 }
  0xf7   :  { %11241 = vmatmul.mubr.msk.f32.vlgmr.msra.gmra.mxu0 %vm481_vm5, %v455_v14  ;;  %v11401_v32 = vpop.eup %11400  ;;  %v457_v33 = vmul.f32 %v11399_v20, %v409_v53  ;;  %11420 = vrcp.f32 %v436_v42  ;;  %v11039_v25 = vadd.f32 -1.0, %v12229_v38  ;;  %v414_v52 = vmul.f32 %v11038_v23, %v12199_v6  ;;  %v12291_v53 = vld [vmem:[%s18190_s6] ss:$0 sm:$0xff] }
  0xf8   :  { %11243 = vmatprep.mubr.msk.f32.mxu0 %vm481_vm5, %v456_v21  ;;  %v11403_v40 = vpop.eup %11402  ;;  %v458_v41 = vmul.f32 %v11401_v32, %v410_v29  ;;  %v11040_v58 = vadd.f32 -1.0, %v12231_v39  ;;  %11422 = vrcp.f32 %v437_v44  ;;  %v11041_v61 = vadd.f32 -1.0, %v12235_v49 }
  0xf9   :  { %v11405_v43 = vpop.eup %11404  ;;  %v459_v37 = vmul.f32 %v11403_v40, %v411_v54  ;;  %v415_v59 = vmul.f32 %v11039_v25, %v12203_v15  ;;  %v11042_v38 = vadd.f32 -1.0, %v386_v4  ;;  %v11043_v3 = vadd.f32 -1.0, %v387_v22  ;;  %v835_v22 = vld [vmem:[%s18189_s7] sm:$0xff] }
  0xfa   :  { %v11407_v48 = vpop.eup %11406  ;;  %v460_v47 = vmul.f32 %v11405_v43, %v412_v56  ;;  %v416_v2 = vmul.f32 %v11040_v58, %v12205_v16  ;;  %v417_v1 = vmul.f32 %v11041_v61, %v12207_v17  ;;  %v11044_v7 = vadd.f32 -1.0, %v388_v10 }
  0xfb   :  { %11244 = vmatmul.mubr.msk.f32.gmra.mxu0 %vm481_vm5, %v457_v33  ;;  %v11409_v51 = vpop.eup %11408  ;;  %v461_v36 = vmul.f32 %v11407_v48, %v413_v57  ;;  %v418_v15 = vmul.f32 %v11042_v38, %v12209_v18  ;;  %v419_v16 = vmul.f32 %v11043_v3, %v12214_v26  ;;  %v11045_v4 = vadd.f32 -1.0, %v389_v35  ;;  %v838_v26 = vld [vmem:[%s18189_s7 + $0x18] sm:$0xff] }
  0xfc   :  { %11246 = vmatprep.mubr.msk.f32.mxu0 %vm481_vm5, %v458_v41  ;;  %v462_v60 = vmul.f32 %v11409_v51, %v414_v52  ;;  %v420_v19 = vmul.f32 %v11044_v7, %v12216_v27  ;;  %11264 = vmatprep.subr.mxu1 %v838_v26  ;;  %v837_v27 = vld [vmem:[%s18189_s7 + $0x10] sm:$0xff] }
  0xfd   :  { %v11411_v55 = vpop.eup %11410  ;;  %v421_v18 = vmul.f32 %v11045_v4, %v12219_v30  ;;  %11265 = vmatpush3.msra.mxu1 %v838_v26  ;;  %v836_v30 = vld [vmem:[%s18189_s7 + $0x8] sm:$0xff] }
  0xfe   :  { %v11413_v50 = vpop.eup %11412  ;;  %v463_v62 = vmul.f32 %v11411_v55, %v415_v59  ;;  %11266 = vmatprep.subr.mxu1 %v837_v27 }
  0xff   :  { %11247 = vmatmul.mubr.msk.f32.gmra.mxu0 %vm481_vm5, %v459_v37  ;;  %v464_v0 = vmul.f32 %v11413_v50, %v416_v2  ;;  %11267 = vmatpush3.msra.mxu1 %v837_v27 }
 0x100   :  { %11249 = vmatprep.mubr.msk.f32.mxu0 %vm481_vm5, %v460_v47  ;;  %v11415_v6 = vpop.eup %11414  ;;  %11268 = vmatprep.subr.mxu1 %v836_v30 }
 0x101   :  { %v11417_v39 = vpop.eup %11416  ;;  %v465_v49 = vmul.f32 %v11415_v6, %v417_v1  ;;  %11269 = vmatpush3.msra.mxu1 %v836_v30 }
 0x102   :  { %v466_v14 = vmul.f32 %v11417_v39, %v418_v15  ;;  %11270 = vmatprep.subr.mxu1 %v835_v22 }
 0x103   :  { %11250 = vmatmul.mubr.msk.f32.gmra.mxu0 %vm481_vm5, %v461_v36  ;;  %v11419_v8 = vpop.eup %11418  ;;  %11271 = vmatpush3.msra.mxu1 %v835_v22 }
 0x104   :  { %11252 = vmatprep.mubr.msk.f32.mxu0 %vm481_vm5, %v462_v60  ;;  %v11421_v45 = vpop.eup %11420  ;;  %v467_v17 = vmul.f32 %v11419_v8, %v419_v16 }
 0x105   :  { %v11423_v20 = vpop.eup %11422  ;;  %v468_v21 = vmul.f32 %v11421_v45, %v420_v19 }
 0x106   :  { %v469_v46 = vmul.f32 %v11423_v20, %v421_v18 }
 0x107   :  { %11253 = vmatmul.mubr.msk.f32.gmra.mxu0 %vm481_vm5, %v463_v62 }
 0x108   :  { %11255 = vmatprep.mubr.msk.f32.mxu0 %vm481_vm5, %v464_v0 }
 0x10b   :  { %11256 = vmatmul.mubr.msk.f32.gmra.mxu0 %vm481_vm5, %v465_v49 }
 0x10c   :  { %11258 = vmatprep.mubr.msk.f32.mxu0 %vm481_vm5, %v466_v14 }
 0x10f   :  { %11259 = vmatmul.mubr.msk.f32.gmra.mxu0 %vm481_vm5, %v467_v17 }
 0x110   :  { %11261 = vmatprep.mubr.msk.f32.mxu0 %vm481_vm5, %v468_v21 }
 0x113   :  { %11262 = vmatmul.mubr.msk.f32.gmra.mxu0 %vm481_vm5, %v469_v46 }
 0x1b7   :  { %v11242_v63 = vpop.f32.mrf.mxu0 }
 0x1b8   :  { %v12294_v10 = vadd.f32 %v11242_v63, %v12291_v53 }
 0x1b9   :  { %v596_v28 = vpop.f32.mrf.mxu0 }
 0x1ba   :  { %v676_v29 = vmin.f32 %v12294_v10, 20.0  ;;  %v12298_v31 = vadd.f32 %v12291_v53, %v596_v28 }
 0x1bb   :  { %v11245_v32 = vpop.f32.mrf.mxu0 }
 0x1bc   :  { %v693_v33 = vmul.f32 1.442695, %v676_v29  ;;  %v675_v34 = vmin.f32 %v12298_v31, 20.0  ;;  %v12302_v35 = vadd.f32 %v11245_v32, %v12291_v53 }
 0x1bd   :  { %v606_v40 = vpop.f32.mrf.mxu0 }
 0x1be   :  { %11424 = vpow2.f32 %v693_v33  ;;  %v691_v41 = vmul.f32 1.442695, %v675_v34  ;;  %v678_v42 = vmin.f32 %v12302_v35, 20.0  ;;  %v12306_v54 = vadd.f32 %v12291_v53, %v606_v40 }
 0x1bf   :  { %v11248_v13 = vpop.f32.mrf.mxu0 }
 0x1c0   :  { %11426 = vpow2.f32 %v691_v41  ;;  %v697_v43 = vmul.f32 1.442695, %v678_v42  ;;  %v677_v56 = vmin.f32 %v12306_v54, 20.0  ;;  %v12310_v23 = vadd.f32 %v11248_v13, %v12291_v53 }
 0x1c1   :  { %v616_v37 = vpop.f32.mrf.mxu0 }
 0x1c2   :  { %11428 = vpow2.f32 %v697_v43  ;;  %v695_v44 = vmul.f32 1.442695, %v677_v56  ;;  %v680_v48 = vmin.f32 %v12310_v23, 20.0  ;;  %v12314_v47 = vadd.f32 %v12291_v53, %v616_v37 }
 0x1c3   :  { %v11251_v51 = vpop.f32.mrf.mxu0 }
 0x1c4   :  { %11430 = vpow2.f32 %v695_v44  ;;  %v701_v57 = vmul.f32 1.442695, %v680_v48  ;;  %v679_v25 = vmin.f32 %v12314_v47, 20.0  ;;  %v12318_v52 = vadd.f32 %v11251_v51, %v12291_v53 }
 0x1c5   :  { %v626_v58 = vpop.f32.mrf.mxu0 }
 0x1c6   :  { %11432 = vpow2.f32 %v701_v57  ;;  %v699_v36 = vmul.f32 1.442695, %v679_v25  ;;  %v682_v55 = vmin.f32 %v12318_v52, 20.0  ;;  %v12322_v60 = vadd.f32 %v12291_v53, %v626_v58 }
 0x1c7   :  { %v11254_v50 = vpop.f32.mrf.mxu0 }
 0x1c8   :  { %11434 = vpow2.f32 %v699_v36  ;;  %v705_v59 = vmul.f32 1.442695, %v682_v55  ;;  %v681_v61 = vmin.f32 %v12322_v60, 20.0  ;;  %v12326_v2 = vadd.f32 %v11254_v50, %v12291_v53 }
 0x1c9   :  { %v636_v38 = vpop.f32.mrf.mxu0 }
 0x1ca   :  { %11436 = vpow2.f32 %v705_v59  ;;  %v703_v62 = vmul.f32 1.442695, %v681_v61  ;;  %v684_v6 = vmin.f32 %v12326_v2, 20.0  ;;  %v12330_v0 = vadd.f32 %v12291_v53, %v636_v38 }
 0x1cb   :  { %v11425_v39 = vpop.eup %11424  ;;  %v11257_v1 = vpop.f32.mrf.mxu0 }
 0x1cc   :  { %v724_v3 = vadd.f32 1.0, %v11425_v39  ;;  %11438 = vpow2.f32 %v703_v62  ;;  %v709_v15 = vmul.f32 1.442695, %v684_v6  ;;  %v683_v7 = vmin.f32 %v12330_v0, 20.0 }
 0x1cd   :  { %v11427_v49 = vpop.eup %11426  ;;  %v12334_v8 = vadd.f32 %v11257_v1, %v12291_v53  ;;  %v646_v14 = vpop.f32.mrf.mxu0 }
 0x1ce   :  { %v740_v45 = vmul.f32 %v724_v3, %v724_v3  ;;  %v723_v16 = vadd.f32 1.0, %v11427_v49  ;;  %11440 = vpow2.f32 %v709_v15  ;;  %v707_v4 = vmul.f32 1.442695, %v683_v7 }
 0x1cf   :  { %v11429_v19 = vpop.eup %11428  ;;  %v686_v17 = vmin.f32 %v12334_v8, 20.0  ;;  %v12338_v20 = vadd.f32 %v12291_v53, %v646_v14  ;;  %v11260_v21 = vpop.f32.mrf.mxu0 }
 0x1d0   :  { %v788_v18 = vadd.f32 1.0, %v740_v45  ;;  %v739_v46 = vmul.f32 %v723_v16, %v723_v16  ;;  %v726_v26 = vadd.f32 1.0, %v11429_v19  ;;  %11442 = vpow2.f32 %v707_v4 }
 0x1d1   :  { %v11431_v27 = vpop.eup %11430  ;;  %v713_v30 = vmul.f32 1.442695, %v686_v17  ;;  %v685_v22 = vmin.f32 %v12338_v20, 20.0  ;;  %v12342_v63 = vadd.f32 %v11260_v21, %v12291_v53  ;;  %v656_v29 = vpop.f32.mrf.mxu0  ;;  %v11064_v62 = vadd.f32 -1.0, %v740_v45 }
 0x1d2   :  { %11444 = vrcp.f32 %v788_v18  ;;  %v787_v28 = vadd.f32 1.0, %v739_v46  ;;  %v742_v33 = vmul.f32 %v726_v26, %v726_v26  ;;  %v725_v34 = vadd.f32 1.0, %v11431_v27 }
 0x1d3   :  { %v11433_v32 = vpop.eup %11432  ;;  %11446 = vpow2.f32 %v713_v30  ;;  %v711_v40 = vmul.f32 1.442695, %v685_v22  ;;  %v688_v42 = vmin.f32 %v12342_v63, 20.0  ;;  %v12348_v48 = vadd.f32 %v12291_v53, %v656_v29  ;;  %v11263_v51 = vpop.f32.mrf.mxu0 }
 0x1d4   :  { %11448 = vrcp.f32 %v787_v28  ;;  %v728_v41 = vadd.f32 1.0, %v11433_v32  ;;  %v790_v43 = vadd.f32 1.0, %v742_v33  ;;  %v741_v56 = vmul.f32 %v725_v34, %v725_v34 }
 0x1d5   :  { %v11435_v13 = vpop.eup %11434  ;;  %11450 = vpow2.f32 %v711_v40  ;;  %v717_v58 = vmul.f32 1.442695, %v688_v42  ;;  %v687_v61 = vmin.f32 %v12348_v48, 20.0  ;;  %v12353_v38 = vadd.f32 %v11263_v51, %v12291_v53  ;;  %v666_v7 = vpop.f32.mrf.mxu0 }
 0x1d6   :  { %v12345_v37 = vmul.f32 %v728_v41, %v728_v41  ;;  %v727_v44 = vadd.f32 1.0, %v11435_v13  ;;  %v789_v25 = vadd.f32 1.0, %v741_v56  ;;  %11452 = vrcp.f32 %v790_v43 }
 0x1d7   :  { %v11437_v57 = vpop.eup %11436  ;;  %v715_v15 = vmul.f32 1.442695, %v687_v61  ;;  %v11063_v49 = vadd.f32 -1.0, %v739_v46  ;;  %v690_v16 = vmin.f32 %v12353_v38, 20.0  ;;  %v12362_v21 = vadd.f32 %v12291_v53, %v666_v7 }
 0x1d8   :  { %v792_v36 = vadd.f32 1.0, %v12345_v37  ;;  %v743_v55 = vmul.f32 %v727_v44, %v727_v44  ;;  %v730_v50 = vadd.f32 1.0, %v11437_v57  ;;  %11454 = vrcp.f32 %v789_v25 }
 0x1d9   :  { %v11439_v59 = vpop.eup %11438  ;;  %v772_v26 = vmul.f32 %v11064_v62, %v12294_v10  ;;  %v721_v30 = vmul.f32 1.442695, %v690_v16  ;;  %v771_v22 = vmul.f32 %v11063_v49, %v12298_v31  ;;  %v11065_v28 = vadd.f32 -1.0, %v741_v56 }
 0x1da   :  { %11456 = vrcp.f32 %v792_v36  ;;  %v791_v6 = vadd.f32 1.0, %v743_v55  ;;  %v12355_v1 = vmul.f32 %v730_v50, %v730_v50  ;;  %v729_v3 = vadd.f32 1.0, %v11439_v59 }
 0x1db   :  { %v11441_v39 = vpop.eup %11440  ;;  %11458 = vpow2.f32 %v717_v58  ;;  %v689_v41 = vmin.f32 %v12362_v21, 20.0  ;;  %v11066_v13 = vadd.f32 -1.0, %v742_v33  ;;  %v11067_v57 = vadd.f32 -1.0, %v743_v55 }
 0x1dc   :  { %11460 = vrcp.f32 %v791_v6  ;;  %v732_v14 = vadd.f32 1.0, %v11441_v39  ;;  %v794_v4 = vadd.f32 1.0, %v12355_v1  ;;  %v745_v19 = vmul.f32 %v729_v3, %v729_v3 }
 0x1dd   :  { %11462 = vpow2.f32 %v715_v15  ;;  %v11443_v17 = vpop.eup %11442  ;;  %v719_v56 = vmul.f32 1.442695, %v689_v41  ;;  %v773_v58 = vmul.f32 %v11065_v28, %v12306_v54  ;;  %v774_v33 = vmul.f32 %v11066_v13, %v12302_v35 }
 0x1de   :  { %v12359_v45 = vmul.f32 %v732_v14, %v732_v14  ;;  %v793_v27 = vadd.f32 1.0, %v745_v19  ;;  %11464 = vrcp.f32 %v794_v4  ;;  %v731_v29 = vadd.f32 1.0, %v11443_v17 }
 0x1df   :  { %v11445_v18 = vpop.eup %11444  ;;  %v11068_v61 = vadd.f32 -1.0, %v12345_v37  ;;  %v775_v3 = vmul.f32 %v11067_v57, %v12314_v47  ;;  %v11069_v7 = vadd.f32 -1.0, %v745_v19  ;;  %v11070_v37 = vadd.f32 -1.0, %v12355_v1 }
 0x1e0   :  { %v11447_v46 = vpop.eup %11446  ;;  %11466 = vrcp.f32 %v793_v27  ;;  %v796_v34 = vadd.f32 1.0, %v12359_v45  ;;  %v747_v43 = vmul.f32 %v731_v29, %v731_v29  ;;  %v820_v10 = vmul.f32 %v11445_v18, %v772_v26 }
 0x1e1   :  { %v11449_v32 = vpop.eup %11448  ;;  %v734_v40 = vadd.f32 1.0, %v11447_v46  ;;  %11468 = vpow2.f32 %v721_v30  ;;  %v776_v35 = vmul.f32 %v11068_v61, %v12310_v23  ;;  %v777_v19 = vmul.f32 %v11069_v7, %v12322_v60 }
 0x1e2   :  { %v11451_v53 = vpop.eup %11450  ;;  %v819_v42 = vmul.f32 %v11449_v32, %v771_v22  ;;  %v795_v31 = vadd.f32 1.0, %v747_v43  ;;  %11470 = vrcp.f32 %v796_v34  ;;  %v778_v46 = vmul.f32 %v11070_v37, %v12318_v52 }
 0x1e3   :  { %v750_v44 = vmul.f32 %v734_v40, %v734_v40  ;;  %v733_v51 = vadd.f32 1.0, %v11451_v53  ;;  %v11453_v25 = vpop.eup %11452  ;;  %v11071_v23 = vadd.f32 -1.0, %v747_v43  ;;  %v11072_v22 = vadd.f32 -1.0, %v12359_v45 }
 0x1e4   :  { %11272 = vmatprep.mubr.msk.f32.mxu1 %vm481_vm5, %v819_v42  ;;  %11472 = vrcp.f32 %v795_v31  ;;  %v822_v39 = vmul.f32 %v11453_v25, %v774_v33 }
 0x1e5   :  { %v798_v36 = vadd.f32 1.0, %v750_v44  ;;  %v749_v50 = vmul.f32 %v733_v51, %v733_v51  ;;  %11273 = vmatmul.mubr.msk.f32.vlgmr.msra.gmra.mxu1 %vm481_vm5, %v820_v10  ;;  %v11455_v59 = vpop.eup %11454  ;;  %11474 = vpow2.f32 %v719_v56  ;;  %v779_v60 = vmul.f32 %v11071_v23, %v12330_v0 }
 0x1e6   :  { %v821_v55 = vmul.f32 %v11455_v59, %v773_v58  ;;  %v780_v53 = vmul.f32 %v11072_v22, %v12326_v2  ;;  %v11074_v42 = vadd.f32 -1.0, %v750_v44 }
 0x1e7   :  { %v11457_v62 = vpop.eup %11456  ;;  %v797_v15 = vadd.f32 1.0, %v749_v50  ;;  %11476 = vrcp.f32 %v798_v36  ;;  %v11073_v41 = vadd.f32 -1.0, %v749_v50 }
 0x1e8   :  { %v11459_v6 = vpop.eup %11458  ;;  %11275 = vmatprep.mubr.msk.f32.mxu1 %vm481_vm5, %v821_v55  ;;  %v824_v47 = vmul.f32 %v11457_v62, %v776_v35  ;;  %v782_v0 = vmul.f32 %v11074_v42, %v12334_v8 }
 0x1e9   :  { %v11461_v54 = vpop.eup %11460  ;;  %v736_v49 = vadd.f32 1.0, %v11459_v6  ;;  %11478 = vrcp.f32 %v797_v15  ;;  %11276 = vmatmul.mubr.msk.f32.gmra.mxu1 %vm481_vm5, %v822_v39  ;;  %v781_v57 = vmul.f32 %v11073_v41, %v12338_v20 }
 0x1ea   :  { %v11463_v14 = vpop.eup %11462  ;;  %v823_v16 = vmul.f32 %v11461_v54, %v775_v3 }
 0x1eb   :  { %v752_v4 = vmul.f32 %v736_v49, %v736_v49  ;;  %v735_v17 = vadd.f32 1.0, %v11463_v14  ;;  %v11465_v18 = vpop.eup %11464 }
 0x1ec   :  { %11278 = vmatprep.mubr.msk.f32.mxu1 %vm481_vm5, %v823_v16  ;;  %v826_v29 = vmul.f32 %v11465_v18, %v778_v46 }
 0x1ed   :  { %v800_v26 = vadd.f32 1.0, %v752_v4  ;;  %v751_v27 = vmul.f32 %v735_v17, %v735_v17  ;;  %v11467_v30 = vpop.eup %11466  ;;  %11279 = vmatmul.mubr.msk.f32.gmra.mxu1 %vm481_vm5, %v824_v47  ;;  %v11076_v59 = vadd.f32 -1.0, %v752_v4 }
 0x1ee   :  { %v825_v1 = vmul.f32 %v11467_v30, %v777_v19  ;;  %v11469_v28 = vpop.eup %11468 }
 0x1ef   :  { %v799_v32 = vadd.f32 1.0, %v751_v27  ;;  %11480 = vrcp.f32 %v800_v26  ;;  %v738_v34 = vadd.f32 1.0, %v11469_v28  ;;  %v11471_v40 = vpop.eup %11470  ;;  %v11075_v44 = vadd.f32 -1.0, %v751_v27 }
 0x1f0   :  { %11281 = vmatprep.mubr.msk.f32.mxu1 %vm481_vm5, %v825_v1  ;;  %v828_v10 = vmul.f32 %v11471_v40, %v780_v53  ;;  %v784_v8 = vmul.f32 %v11076_v59, %v12342_v63  ;;  %v12404_v63 = vld [vmem:[%s18191_s8] ss:$0 sm:$0xff] }
 0x1f1   :  { %11482 = vrcp.f32 %v799_v32  ;;  %11282 = vmatmul.mubr.msk.f32.gmra.mxu1 %vm481_vm5, %v826_v29  ;;  %v11473_v52 = vpop.eup %11472  ;;  %v754_v13 = vmul.f32 %v738_v34, %v738_v34  ;;  %v783_v33 = vmul.f32 %v11075_v44, %v12348_v48 }
 0x1f2   :  { %v827_v45 = vmul.f32 %v11473_v52, %v779_v60  ;;  %v11475_v43 = vpop.eup %11474 }
 0x1f3   :  { %v737_v31 = vadd.f32 1.0, %v11475_v43  ;;  %v802_v25 = vadd.f32 1.0, %v754_v13  ;;  %v11078_v39 = vadd.f32 -1.0, %v754_v13 }
 0x1f4   :  { %v11477_v51 = vpop.eup %11476  ;;  %11284 = vmatprep.mubr.msk.f32.mxu1 %vm481_vm5, %v827_v45 }
 0x1f5   :  { %11285 = vmatmul.mubr.msk.f32.gmra.mxu1 %vm481_vm5, %v828_v10  ;;  %v753_v36 = vmul.f32 %v737_v31, %v737_v31  ;;  %v830_v2 = vmul.f32 %v11477_v51, %v782_v0  ;;  %11484 = vrcp.f32 %v802_v25  ;;  %v786_v7 = vmul.f32 %v11078_v39, %v12353_v38 }
 0x1f6   :  { %v11479_v56 = vpop.eup %11478 }
 0x1f7   :  { %v829_v58 = vmul.f32 %v11479_v56, %v781_v57  ;;  %v801_v50 = vadd.f32 1.0, %v753_v36  ;;  %v11077_v6 = vadd.f32 -1.0, %v753_v36 }
 0x1f9   :  { %11287 = vmatprep.mubr.msk.f32.mxu1 %vm481_vm5, %v829_v58  ;;  %11486 = vrcp.f32 %v801_v50  ;;  %v785_v15 = vmul.f32 %v11077_v6, %v12362_v21 }
 0x1fa   :  { %11288 = vmatmul.mubr.msk.f32.gmra.mxu1 %vm481_vm5, %v830_v2 }
 0x1fc   :  { %v11481_v20 = vpop.eup %11480 }
 0x1fd   :  { %v832_v55 = vmul.f32 %v11481_v20, %v784_v8 }
 0x1fe   :  { %v11483_v61 = vpop.eup %11482 }
 0x1ff   :  { %v831_v62 = vmul.f32 %v11483_v61, %v783_v33 }
 0x201   :  { %11290 = vmatprep.mubr.msk.f32.mxu1 %vm481_vm5, %v831_v62 }
 0x202   :  { %11291 = vmatmul.mubr.msk.f32.gmra.mxu1 %vm481_vm5, %v832_v55  ;;  %v11485_v3 = vpop.eup %11484 }
 0x203   :  { %v834_v14 = vmul.f32 %v11485_v3, %v786_v7 }
 0x206   :  { %v11487_v54 = vpop.eup %11486 }
 0x207   :  { %v833_v49 = vmul.f32 %v11487_v54, %v785_v15 }
 0x209   :  { %11293 = vmatprep.mubr.msk.f32.mxu1 %vm481_vm5, %v833_v49 }
 0x20a   :  { %11294 = vmatmul.mubr.msk.f32.gmra.mxu1 %vm481_vm5, %v834_v14 }
 0x2a5   :  { %v11274_v48 = vpop.f32.mrf.mxu1 }
 0x2a6   :  { %v12407_v35 = vadd.f32 %v11274_v48, %v12404_v63 }
 0x2a7   :  { %v960_v16 = vpop.f32.mrf.mxu1 }
 0x2a8   :  { %1057 = vrot.lane.b32.xlu0 %v12407_v35, %s12067_s12  ;;  %v1361_v38 = vmul.f32 -2.0, %v12407_v35  ;;  %v12413_v21 = vadd.f32 %v12404_v63, %v960_v16  ;;  %v1297_v22 = vsub.f32 0.0, %v12407_v35 }
 0x2a9   :  { %v11277_v37 = vpop.f32.mrf.mxu1 }
 0x2aa   :  { %1394 = vrot.lane.b32.xlu1 %v1361_v38, %s12068_s13  ;;  %v12417_v4 = vadd.f32 %v11277_v37, %v12404_v63  ;;  %v1360_v47 = vmul.f32 -2.0, %v12413_v21  ;;  %v1314_v34 = vmul.f32 1.442695, %v1297_v22  ;;  %v1296_v41 = vsub.f32 0.0, %v12413_v21 }
 0x2ab   :  { %v970_v17 = vpop.f32.mrf.mxu1 }
 0x2ac   :  { %1055 = vrot.lane.b32.xlu0 %v12413_v21, %s12067_s12  ;;  %v12425_v19 = vadd.f32 %v12404_v63, %v970_v17  ;;  %v1363_v26 = vmul.f32 -2.0, %v12417_v4  ;;  %11488 = vpow2.f32 %v1314_v34  ;;  %v1312_v13 = vmul.f32 1.442695, %v1296_v41 }
 0x2ad   :  { %v11280_v18 = vpop.f32.mrf.mxu1  ;;  %v1299_v43 = vsub.f32 0.0, %v12417_v4 }
 0x2ae   :  { %1061 = vrot.lane.b32.xlu1 %v12417_v4, %s12067_s12  ;;  %v12432_v30 = vadd.f32 %v11280_v18, %v12404_v63  ;;  %v1362_v1 = vmul.f32 -2.0, %v12425_v19  ;;  %11490 = vpow2.f32 %v1312_v13  ;;  %v1298_v0 = vsub.f32 0.0, %v12425_v19 }
 0x2af   :  { %v980_v27 = vpop.f32.mrf.mxu1  ;;  %v1318_v31 = vmul.f32 1.442695, %v1299_v43 }
 0x2b0   :  { %1392 = vrot.lane.b32.xlu0 %v1360_v47, %s12068_s13  ;;  %v12436_v46 = vadd.f32 %v12404_v63, %v980_v27  ;;  %v1365_v28 = vmul.f32 -2.0, %v12432_v30  ;;  %v1316_v2 = vmul.f32 1.442695, %v1298_v0  ;;  %v1301_v50 = vsub.f32 0.0, %v12432_v30 }
 0x2b1   :  { %v11283_v23 = vpop.f32.mrf.mxu1  ;;  %11492 = vpow2.f32 %v1318_v31 }
 0x2b2   :  { %1059 = vrot.lane.b32.xlu1 %v12425_v19, %s12067_s12  ;;  %v12447_v32 = vadd.f32 %v11283_v23, %v12404_v63  ;;  %v1364_v52 = vmul.f32 -2.0, %v12436_v46  ;;  %11494 = vpow2.f32 %v1316_v2  ;;  %v1322_v61 = vmul.f32 1.442695, %v1301_v50 }
 0x2b3   :  { %v990_v29 = vpop.f32.mrf.mxu1  ;;  %v1300_v62 = vsub.f32 0.0, %v12436_v46 }
 0x2b4   :  { %1398 = vrot.lane.b32.xlu0 %v1363_v26, %s12068_s13  ;;  %v12451_v40 = vadd.f32 %v12404_v63, %v990_v29  ;;  %v1367_v53 = vmul.f32 -2.0, %v12447_v32  ;;  %11496 = vpow2.f32 %v1322_v61  ;;  %v1303_v54 = vsub.f32 0.0, %v12447_v32 }
 0x2b5   :  { %v11286_v60 = vpop.f32.mrf.mxu1  ;;  %v1320_v3 = vmul.f32 1.442695, %v1300_v62 }
 0x2b6   :  { %1065 = vrot.lane.b32.xlu1 %v12432_v30, %s12067_s12  ;;  %v12462_v45 = vadd.f32 %v11286_v60, %v12404_v63  ;;  %v1366_v51 = vmul.f32 -2.0, %v12451_v40  ;;  %v1302_v49 = vsub.f32 0.0, %v12451_v40  ;;  %v1326_v16 = vmul.f32 1.442695, %v1303_v54 }
 0x2b7   :  { %v1000_v42 = vpop.f32.mrf.mxu1  ;;  %11498 = vpow2.f32 %v1320_v3  ;;  %v1344_v54 = vmul.f32 %v12413_v21, %v12413_v21 }
 0x2b8   :  { %1063 = vrot.lane.b32.xlu0 %v12436_v46, %s12067_s12  ;;  %v12467_v10 = vadd.f32 %v12404_v63, %v1000_v42  ;;  %v1369_v56 = vmul.f32 -2.0, %v12462_v45  ;;  %v1305_v38 = vsub.f32 0.0, %v12462_v45  ;;  %v1324_v17 = vmul.f32 1.442695, %v1302_v49 }
 0x2b9   :  { %v11489_v58 = vpop.eup %11488  ;;  %11500 = vpow2.f32 %v1326_v16 }
 0x2ba   :  { %1396 = vrot.lane.b32.xlu1 %v1362_v1, %s12068_s13  ;;  %v11289_v57 = vpop.f32.mrf.mxu1  ;;  %v1368_v44 = vmul.f32 -2.0, %v12467_v10  ;;  %v1304_v47 = vsub.f32 0.0, %v12467_v10  ;;  %v1330_v26 = vmul.f32 1.442695, %v1305_v38  ;;  %11502 = vpow2.f32 %v1324_v17 }
 0x2bb   :  { %v12478_v25 = vadd.f32 %v11289_v57, %v12404_v63  ;;  %v11491_v20 = vpop.eup %11490 }
 0x2bc   :  { %1402 = vrot.lane.b32.xlu0 %v1365_v28, %s12068_s13  ;;  %v1010_v36 = vpop.f32.mrf.mxu1  ;;  %v1328_v22 = vmul.f32 1.442695, %v1304_v47  ;;  %11504 = vpow2.f32 %v1330_v26 }
 0x2bd   :  { %v12487_v59 = vadd.f32 %v12404_v63, %v1010_v36  ;;  %v1371_v8 = vmul.f32 -2.0, %v12478_v25  ;;  %v1307_v27 = vsub.f32 0.0, %v12478_v25 }
 0x2be   :  { %1069 = vrot.lane.b32.xlu1 %v12447_v32, %s12067_s12  ;;  %v11493_v6 = vpop.eup %11492  ;;  %11506 = vpow2.f32 %v1328_v22 }
 0x2bf   :  { %v1370_v15 = vmul.f32 -2.0, %v12487_v59  ;;  %v11495_v14 = vpop.eup %11494  ;;  %v1306_v28 = vsub.f32 0.0, %v12487_v59  ;;  %v1334_v34 = vmul.f32 1.442695, %v1307_v27 }
 0x2c0   :  { %1067 = vrot.lane.b32.xlu0 %v12451_v40, %s12067_s12 }
 0x2c1   :  { %v11497_v23 = vpop.eup %11496  ;;  %11508 = vpow2.f32 %v1334_v34 }
 0x2c2   :  { %1400 = vrot.lane.b32.xlu1 %v1364_v52, %s12068_s13  ;;  %v11292_v33 = vpop.f32.mrf.mxu1  ;;  %v1332_v52 = vmul.f32 1.442695, %v1306_v28 }
 0x2c3   :  { %v12496_v55 = vadd.f32 %v11292_v33, %v12404_v63 }
 0x2c4   :  { %1406 = vrot.lane.b32.xlu0 %v1367_v53, %s12068_s13  ;;  %v1020_v39 = vpop.f32.mrf.mxu1  ;;  %v11499_v42 = vpop.eup %11498  ;;  %11510 = vpow2.f32 %v1332_v52 }
 0x2c5   :  { %v12505_v7 = vadd.f32 %v12404_v63, %v1020_v39  ;;  %v1373_v37 = vmul.f32 -2.0, %v12496_v55  ;;  %v1309_v60 = vsub.f32 0.0, %v12496_v55 }
 0x2c6   :  { %1073 = vrot.lane.b32.xlu1 %v12462_v45, %s12067_s12  ;;  %v11501_v0 = vpop.eup %11500 }
 0x2c7   :  { %v1372_v29 = vmul.f32 -2.0, %v12505_v7  ;;  %v1308_v53 = vsub.f32 0.0, %v12505_v7  ;;  %v1338_v13 = vmul.f32 1.442695, %v1309_v60  ;;  %v11503_v36 = vpop.eup %11502 }
 0x2c8   :  { %1071 = vrot.lane.b32.xlu0 %v12467_v10, %s12067_s12 }
 0x2c9   :  { %11512 = vpow2.f32 %v1338_v13  ;;  %v11505_v2 = vpop.eup %11504 }
 0x2ca   :  { %1404 = vrot.lane.b32.xlu1 %v1366_v51, %s12068_s13  ;;  %v11295_v48 = vpop.f32.mrf.mxu1 }
 0x2cb   :  { %v12516_v18 = vadd.f32 %v11295_v48, %v12404_v63 }
 0x2cc   :  { %1410 = vrot.lane.b32.xlu0 %v1369_v56, %s12068_s13  ;;  %v1030_v1 = vpop.f32.mrf.mxu1 }
 0x2cd   :  { %v12527_v41 = vadd.f32 %v12404_v63, %v1030_v1  ;;  %v1311_v43 = vsub.f32 0.0, %v12516_v18  ;;  %v1375_v51 = vmul.f32 -2.0, %v12516_v18  ;;  %v1336_v63 = vmul.f32 1.442695, %v1308_v53 }
 0x2ce   :  { %1077 = vrot.lane.b32.xlu1 %v12478_v25, %s12067_s12 }
 0x2cf   :  { %v1310_v57 = vsub.f32 0.0, %v12527_v41  ;;  %v1374_v31 = vmul.f32 -2.0, %v12527_v41  ;;  %v1342_v56 = vmul.f32 1.442695, %v1311_v43  ;;  %11514 = vpow2.f32 %v1336_v63 }
 0x2d0   :  { %1474 = vrot.lane.b32.xlu0 %v11489_v58, %s12067_s12 }
 0x2d1   :  { %v1340_v58 = vmul.f32 1.442695, %v1310_v57  ;;  %11516 = vpow2.f32 %v1342_v56 }
 0x2d2   :  { %1408 = vrot.lane.b32.xlu1 %v1368_v44, %s12068_s13  ;;  %v11507_v44 = vpop.eup %11506 }
 0x2d3   :  { %11518 = vpow2.f32 %v1340_v58  ;;  %v11509_v50 = vpop.eup %11508 }
 0x2d4   :  { %1075 = vrot.lane.b32.xlu0 %v12487_v59, %s12067_s12 }
 0x2d6   :  { %1472 = vrot.lane.b32.xlu1 %v11491_v20, %s12067_s12  ;;  %v11511_v20 = vpop.eup %11510 }
 0x2d7   :  { %v11513_v33 = vpop.eup %11512 }
 0x2d8   :  { %1414 = vrot.lane.b32.xlu0 %v1371_v8, %s12068_s13 }
 0x2da   :  { %1081 = vrot.lane.b32.xlu1 %v12496_v55, %s12067_s12 }
 0x2dc   :  { %1478 = vrot.lane.b32.xlu0 %v11493_v6, %s12067_s12  ;;  %v11515_v61 = vpop.eup %11514 }
 0x2de   :  { %1412 = vrot.lane.b32.xlu1 %v1370_v15, %s12068_s13  ;;  %v11517_v8 = vpop.eup %11516 }
 0x2e0   :  { %1079 = vrot.lane.b32.xlu0 %v12505_v7, %s12067_s12  ;;  %v11519_v62 = vpop.eup %11518 }
 0x2e2   :  { %1476 = vrot.lane.b32.xlu1 %v11495_v14, %s12067_s12 }
 0x2e4   :  { %1418 = vrot.lane.b32.xlu0 %v1373_v37, %s12068_s13 }
 0x2e6   :  { %1085 = vrot.lane.b32.xlu1 %v12516_v18, %s12067_s12 }
 0x2e8   :  { %1482 = vrot.lane.b32.xlu0 %v11497_v23, %s12067_s12  ;;  %v12564_v23 = vmul.f32 %v12425_v19, %v12425_v19 }
 0x2ea   :  { %1416 = vrot.lane.b32.xlu1 %v1372_v29, %s12068_s13 }
 0x2ec   :  { %1083 = vrot.lane.b32.xlu0 %v12527_v41, %s12067_s12 }
 0x2ee   :  { %1480 = vrot.lane.b32.xlu1 %v11499_v42, %s12067_s12 }
 0x2f0   :  { %1422 = vrot.lane.b32.xlu0 %v1375_v51, %s12068_s13 }
 0x2f2   :  { %1420 = vrot.lane.b32.xlu1 %v1374_v31, %s12068_s13 }
 0x2f4   :  { %1486 = vrot.lane.b32.xlu0 %v11501_v0, %s12067_s12 }
 0x2f6   :  { %1484 = vrot.lane.b32.xlu1 %v11503_v36, %s12067_s12 }
 0x2f8   :  { %1490 = vrot.lane.b32.xlu0 %v11505_v2, %s12067_s12 }
 0x2fa   :  { %1488 = vrot.lane.b32.xlu1 %v11507_v44, %s12067_s12 }
 0x2fc   :  { %1494 = vrot.lane.b32.xlu0 %v11509_v50, %s12067_s12 }
 0x2fe   :  { %1492 = vrot.lane.b32.xlu1 %v11511_v20, %s12067_s12 }
 0x300   :  { %1498 = vrot.lane.b32.xlu0 %v11513_v33, %s12067_s12 }
 0x302   :  { %1496 = vrot.lane.b32.xlu1 %v11515_v61, %s12067_s12 }
 0x304   :  { %1502 = vrot.lane.b32.xlu0 %v11517_v8, %s12067_s12  ;;  %v12601_v8 = vmul.f32 %v12407_v35, %v12407_v35 }
 0x306   :  { %1500 = vrot.lane.b32.xlu1 %v11519_v62, %s12067_s12 }
 0x31a   :  { %v1058_v6 = vpop.permute.xlu0 %1057 }
 0x31b   :  { %v1106_v47 = vsel %vm34_vm2, %v1058_v6, 0.0 }
 0x31c   :  { %v12550_v39 = vpop.permute.xlu1 %1394 }
 0x31e   :  { %v1056_v3 = vpop.permute.xlu0 %1055 }
 0x31f   :  { %v1103_v14 = vsel %vm34_vm2, %v1056_v3, 0.0 }
 0x320   :  { %v1062_v15 = vpop.permute.xlu1 %1061 }
 0x321   :  { %v1112_v37 = vsel %vm34_vm2, %v1062_v15, 0.0 }
 0x322   :  { %v1393_v49 = vpop.permute.xlu0 %1392 }
 0x323   :  { %v1440_v48 = vsel %vm34_vm2, %v1344_v54, %v1393_v49  ;;  %1104 = vadd.xlane.f32.xlu0 %v1103_v14  ;;  %v12612_v14 = vmul.f32 %v12417_v4, %v12417_v4 }
 0x324   :  { %v1060_v16 = vpop.permute.xlu1 %1059  ;;  %11300 = vmatprep.mubr.msk.f32.mxu0 %vm1290_vm6, %v1440_v48 }
 0x325   :  { %v1109_v27 = vsel %vm34_vm2, %v1060_v16, 0.0 }
 0x326   :  { %v12557_v38 = vpop.permute.xlu0 %1398 }
 0x327   :  { %1113 = vadd.xlane.f32.xlu0 %v1112_v37 }
 0x328   :  { %v1066_v17 = vpop.permute.xlu1 %1065 }
 0x329   :  { %v1118_v34 = vsel %vm34_vm2, %v1066_v17, 0.0 }
 0x32a   :  { %v1064_v26 = vpop.permute.xlu0 %1063  ;;  %1107 = vadd.xlane.f32.xlu1 %v1106_v47 }
 0x32b   :  { %1110 = vadd.xlane.f32.xlu0 %v1109_v27  ;;  %v1115_v28 = vsel %vm34_vm2, %v1064_v26, 0.0 }
 0x32c   :  { %v1397_v1 = vpop.permute.xlu1 %1396 }
 0x32d   :  { %v1442_v22 = vsel %vm34_vm2, %v12564_v23, %v1397_v1 }
 0x32e   :  { %11307 = vmatprep.mubr.msk.f32.mxu1 %vm1290_vm6, %v1442_v22  ;;  %v12570_v29 = vpop.permute.xlu0 %1402  ;;  %1116 = vadd.xlane.f32.xlu1 %v1115_v28 }
 0x32f   :  { %1119 = vadd.xlane.f32.xlu0 %v1118_v34 }
 0x330   :  { %v1070_v60 = vpop.permute.xlu1 %1069 }
 0x331   :  { %v1124_v52 = vsel %vm34_vm2, %v1070_v60, 0.0 }
 0x332   :  { %v1068_v53 = vpop.permute.xlu0 %1067 }
 0x333   :  { %1125 = vadd.xlane.f32.xlu0 %v1124_v52  ;;  %v1121_v42 = vsel %vm34_vm2, %v1068_v53, 0.0 }
 0x334   :  { %v12575_v13 = vpop.permute.xlu1 %1400  ;;  %1122 = vadd.xlane.f32.xlu1 %v1121_v42 }
 0x336   :  { %v12577_v43 = vpop.permute.xlu0 %1406 }
 0x338   :  { %v1074_v51 = vpop.permute.xlu1 %1073 }
 0x339   :  { %v1130_v63 = vsel %vm34_vm2, %v1074_v51, 0.0 }
 0x33a   :  { %1131 = vadd.xlane.f32.xlu0 %v1130_v63  ;;  %v1072_v57 = vpop.permute.xlu0 %1071 }
 0x33b   :  { %v1127_v31 = vsel %vm34_vm2, %v1072_v57, 0.0 }
 0x33c   :  { %v12581_v56 = vpop.permute.xlu1 %1404  ;;  %1128 = vadd.xlane.f32.xlu1 %v1127_v31 }
 0x33e   :  { %v12585_v36 = vpop.permute.xlu0 %1410 }
 0x340   :  { %v1078_v0 = vpop.permute.xlu1 %1077 }
 0x341   :  { %v1136_v6 = vsel %vm34_vm2, %v1078_v0, 0.0 }
 0x342   :  { %v12589_v44 = vpop.permute.xlu0 %1474 }
 0x343   :  { %v1521_v20 = vmul.f32 %v12589_v44, %v12407_v35 }
 0x344   :  { %v12583_v58 = vpop.permute.xlu1 %1408 }
 0x346   :  { %v1076_v33 = vpop.permute.xlu0 %1075 }
 0x347   :  { %v1133_v3 = vsel %vm34_vm2, %v1076_v33, 0.0 }
 0x348   :  { %v12587_v2 = vpop.permute.xlu1 %1472 }
 0x349   :  { %v1520_v50 = vmul.f32 %v12587_v2, %v12413_v21  ;;  %v1617_v21 = vmul.f32 %v12589_v44, %v12601_v8  ;;  %v1616_v15 = vmul.f32 %v12587_v2, %v1344_v54 }
 0x34a   :  { %v12597_v61 = vpop.permute.xlu0 %1414 }
 0x34b   :  { %v1635_v48 = vsel %vm34_vm2, %v1617_v21, 0.0  ;;  %v1632_v16 = vsel %vm34_vm2, %v1616_v15, 0.0 }
 0x34c   :  { %v1082_v49 = vpop.permute.xlu1 %1081 }
 0x34d   :  { %1552 = vrot.lane.b32.xlu1 %v1520_v50, %s12068_s13  ;;  %v1142_v50 = vsel %vm34_vm2, %v1082_v49, 0.0 }
 0x34e   :  { %v12603_v62 = vpop.permute.xlu0 %1478 }
 0x34f   :  { %v1619_v37 = vmul.f32 %v12603_v62, %v12612_v14  ;;  %v1523_v28 = vmul.f32 %v12603_v62, %v12417_v4 }
 0x350   :  { %1554 = vrot.lane.b32.xlu0 %v1521_v20, %s12068_s13  ;;  %v12618_v17 = vpop.permute.xlu1 %1412 }
 0x351   :  { %v1641_v54 = vsel %vm34_vm2, %v1619_v37, 0.0 }
 0x352   :  { %v1080_v35 = vpop.permute.xlu0 %1079 }
 0x354   :  { %v12623_v26 = vpop.permute.xlu1 %1476 }
 0x355   :  { %v1522_v34 = vmul.f32 %v12623_v26, %v12425_v19  ;;  %v1618_v20 = vmul.f32 %v12623_v26, %v12564_v23 }
 0x356   :  { %v12620_v47 = vpop.permute.xlu0 %1418 }
 0x357   :  { %18516 = vst [vmem:[#allocation6_spill] sm:$0xff] %v12620_v47  ;;  %v1638_v21 = vsel %vm34_vm2, %v1618_v20, 0.0 }
 0x358   :  { %v1086_v1 = vpop.permute.xlu1 %1085 }
 0x35a   :  { %v12625_v27 = vpop.permute.xlu0 %1482 }
 0x35b   :  { %v1525_v20 = vmul.f32 %v12625_v27, %v12432_v30 }
 0x35c   :  { %v12633_v60 = vpop.permute.xlu1 %1416 }
 0x35e   :  { %v12627_v22 = vpop.permute.xlu0 %1083 }
 0x360   :  { %v12639_v53 = vpop.permute.xlu1 %1480 }
 0x362   :  { %v12636_v52 = vpop.permute.xlu0 %1422 }
 0x363   :  { %18517 = vst [vmem:[#allocation7_spill] sm:$0xff] %v12636_v52 }
 0x364   :  { %v12643_v51 = vpop.permute.xlu1 %1420 }
 0x366   :  { %v12641_v42 = vpop.permute.xlu0 %1486 }
 0x368   :  { %v12647_v4 = vpop.permute.xlu1 %1484 }
 0x36a   :  { %v12645_v63 = vpop.permute.xlu0 %1490 }
 0x36c   :  { %v12651_v19 = vpop.permute.xlu1 %1488 }
 0x36e   :  { %v12649_v57 = vpop.permute.xlu0 %1494 }
 0x36f   :  { %1137 = vadd.xlane.f32.xlu0 %v1136_v6  ;;  %v12664_v6 = vmul.f32 %v12432_v30, %v12432_v30 }
 0x370   :  { %v12655_v0 = vpop.permute.xlu1 %1492 }
 0x371   :  { %1134 = vadd.xlane.f32.xlu1 %v1133_v3  ;;  %v1621_v49 = vmul.f32 %v12625_v27, %v12664_v6 }
 0x372   :  { %v12653_v31 = vpop.permute.xlu0 %1498 }
 0x373   :  { %1636 = vadd.xlane.f32.xlu0 %v1635_v48  ;;  %v1139_v48 = vsel %vm34_vm2, %v1080_v35, 0.0 }
 0x374   :  { %v12669_v15 = vpop.permute.xlu1 %1496 }
 0x375   :  { %1633 = vadd.xlane.f32.xlu1 %v1632_v16  ;;  %v1647_v16 = vsel %vm34_vm2, %v1621_v49, 0.0 }
 0x376   :  { %v12660_v33 = vpop.permute.xlu0 %1502 }
 0x378   :  { %v12677_v37 = vpop.permute.xlu1 %1500 }
 0x379   :  { %1642 = vadd.xlane.f32.xlu1 %v1641_v54 }
 0x389   :  { %1558 = vrot.lane.b32.xlu0 %v1523_v28, %s12068_s13 }
 0x38a   :  { %1556 = vrot.lane.b32.xlu1 %v1522_v34, %s12068_s13 }
 0x3a8   :  { %1143 = vadd.xlane.f32.xlu0 %v1142_v50 }
 0x3ac   :  { %v12667_v3 = vpop.xlane.xlu0 %1104  ;;  %1639 = vadd.xlane.f32.xlu0 %v1638_v21 }
 0x3ae   :  { %1140 = vadd.xlane.f32.xlu1 %v1139_v48  ;;  %v1524_v48 = vmul.f32 %v12639_v53, %v12436_v46 }
 0x3b0   :  { %v12674_v23 = vpop.xlane.xlu0 %1113 }
 0x3b2   :  { %1648 = vadd.xlane.f32.xlu1 %v1647_v16 }
 0x3b3   :  { %v12681_v28 = vpop.xlane.xlu1 %1107 }
 0x3b4   :  { %v12679_v54 = vpop.xlane.xlu0 %1110 }
 0x3b7   :  { %v12685_v50 = vpop.xlane.xlu1 %1116 }
 0x3b8   :  { %v12683_v34 = vpop.xlane.xlu0 %1119 }
 0x3bc   :  { %v12687_v35 = vpop.xlane.xlu0 %1125 }
 0x3bd   :  { %v12691_v21 = vpop.xlane.xlu1 %1122 }
 0x3c2   :  { %1562 = vrot.lane.b32.xlu0 %v1525_v20, %s12068_s13  ;;  %v1348_v20 = vmul.f32 %v12436_v46, %v12436_v46 }
 0x3c3   :  { %v12696_v49 = vpop.xlane.xlu0 %1131  ;;  %1560 = vrot.lane.b32.xlu1 %v1524_v48, %s12068_s13  ;;  %v1441_v48 = vsel %vm34_vm2, %v12601_v8, %v12550_v39  ;;  %v1145_v39 = vsel %vm34_vm2, %v12627_v22, 0.0 }
 0x3c5   :  { %v12699_v16 = vpop.xlane.xlu1 %1128 }
 0x3c7   :  { %v1555_v12 = vpop.permute.xlu0 %1554 }
 0x3c8   :  { %v1601_v52 = vsel %vm34_vm2, %v12589_v44, %v1555_v12  ;;  %v1444_v12 = vsel %vm34_vm2, %v1348_v20, %v12575_v13  ;;  %v1620_v44 = vmul.f32 %v12639_v53, %v1348_v20  ;;  %v1526_v20 = vmul.f32 %v12647_v4, %v12451_v40 }
 0x3c9   :  { %11296 = vmatprep.subr.msk.mxu0 %vm1290_vm6, %v1601_v52  ;;  %v1553_v30 = vpop.permute.xlu1 %1552 }
 0x3ca   :  { %v1600_v47 = vsel %vm34_vm2, %v12587_v2, %v1553_v30  ;;  %11297 = vmatpush3.xpose.msk.msra.mxu0 %vm1290_vm6, %v1601_v52  ;;  %v1148_v2 = vsel %vm34_vm2, %v1086_v1, 0.0  ;;  %v1644_v46 = vsel %vm34_vm2, %v1620_v44, 0.0  ;;  %v1527_v52 = vmul.f32 %v12641_v42, %v12447_v32 }
 0x3cb   :  { %11298 = vmatprep.subr.msk.mxu0 %vm1290_vm6, %v1600_v47 }
 0x3ce   :  { %11299 = vmatpush3.xpose.msk.msra.mxu0 %vm1290_vm6, %v1600_v47  ;;  %v12722_v47 = vmul.f32 %v12447_v32, %v12447_v32 }
 0x3d0   :  { %v1623_v13 = vmul.f32 %v12641_v42, %v12722_v47 }
 0x3d1   :  { %11301 = vmatmul.mubr.msk.f32.vlgmr.msra.gmra.mxu0 %vm1290_vm6, %v1441_v48 }
 0x3d2   :  { %11314 = vmatprep.mubr.msk.f32.mxu0 %vm1290_vm6, %v1444_v12  ;;  %v1653_v8 = vsel %vm34_vm2, %v1623_v13, 0.0 }
 0x3e1   :  { %1149 = vadd.xlane.f32.xlu0 %v1148_v2 }
 0x3e5   :  { %1645 = vadd.xlane.f32.xlu0 %v1644_v46 }
 0x3e7   :  { %1146 = vadd.xlane.f32.xlu1 %v1145_v39  ;;  %v1350_v39 = vmul.f32 %v12451_v40, %v12451_v40 }
 0x3e9   :  { %v1446_v13 = vsel %vm34_vm2, %v1350_v39, %v12581_v56  ;;  %v1529_v56 = vmul.f32 %v12645_v63, %v12462_v45 }
 0x3eb   :  { %1654 = vadd.xlane.f32.xlu1 %v1653_v8  ;;  %v12766_v8 = vmul.f32 %v12462_v45, %v12462_v45 }
 0x3ed   :  { %v1625_v40 = vmul.f32 %v12645_v63, %v12766_v8 }
 0x3f8   :  { %v12730_v1 = vpop.xlane.xlu0 %1137 }
 0x3fa   :  { %v12734_v30 = vpop.xlane.xlu1 %1134 }
 0x3fb   :  { %1566 = vrot.lane.b32.xlu0 %v1527_v52, %s12068_s13 }
 0x3fc   :  { %v12739_v22 = vpop.xlane.xlu0 %1636  ;;  %1564 = vrot.lane.b32.xlu1 %v1526_v20, %s12068_s13 }
 0x3fe   :  { %v12742_v48 = vpop.xlane.xlu1 %1633 }
 0x400   :  { %v1559_v12 = vpop.permute.xlu0 %1558 }
 0x401   :  { %v1603_v2 = vsel %vm34_vm2, %v12603_v62, %v1559_v12  ;;  %v1443_v62 = vsel %vm34_vm2, %v12612_v14, %v12557_v38  ;;  %v1659_v38 = vsel %vm34_vm2, %v1625_v40, 0.0  ;;  %v1528_v14 = vmul.f32 %v12651_v19, %v12467_v10 }
 0x402   :  { %11303 = vmatprep.subr.msk.mxu1 %vm1290_vm6, %v1603_v2  ;;  %v12747_v32 = vpop.xlane.xlu1 %1642 }
 0x403   :  { %11304 = vmatpush3.xpose.msk.msra.mxu1 %vm1290_vm6, %v1603_v2 }
 0x406   :  { %v1557_v44 = vpop.permute.xlu1 %1556 }
 0x407   :  { %v1602_v46 = vsel %vm34_vm2, %v12623_v26, %v1557_v44  ;;  %v1622_v26 = vmul.f32 %v12647_v4, %v1350_v39 }
 0x408   :  { %11305 = vmatprep.subr.msk.mxu1 %vm1290_vm6, %v1602_v46 }
 0x409   :  { %11306 = vmatpush3.xpose.msk.msra.mxu1 %vm1290_vm6, %v1602_v46  ;;  %v1650_v52 = vsel %vm34_vm2, %v1622_v26, 0.0 }
 0x40c   :  { %11308 = vmatmul.mubr.msk.f32.vlgmr.msra.gmra.mxu1 %vm1290_vm6, %v1443_v62 }
 0x40d   :  { %11321 = vmatprep.mubr.msk.f32.mxu1 %vm1290_vm6, %v1446_v13  ;;  %v1352_v13 = vmul.f32 %v12467_v10, %v12467_v10 }
 0x40f   :  { %v1448_v26 = vsel %vm34_vm2, %v1352_v13, %v12583_v58  ;;  %v1531_v58 = vmul.f32 %v12649_v57, %v12478_v25 }
 0x41a   :  { %1651 = vadd.xlane.f32.xlu0 %v1650_v52  ;;  %v12806_v52 = vmul.f32 %v12478_v25, %v12478_v25 }
 0x41c   :  { %v1627_v10 = vmul.f32 %v12649_v57, %v12806_v52 }
 0x420   :  { %1660 = vadd.xlane.f32.xlu1 %v1659_v38 }
 0x430   :  { %1570 = vrot.lane.b32.xlu0 %v1529_v56, %s12068_s13 }
 0x431   :  { %v12777_v20 = vpop.xlane.xlu0 %1143  ;;  %1568 = vrot.lane.b32.xlu1 %v1528_v14, %s12068_s13 }
 0x435   :  { %v12780_v12 = vpop.xlane.xlu0 %1639 }
 0x437   :  { %v12782_v2 = vpop.xlane.xlu1 %1140 }
 0x439   :  { %v1563_v44 = vpop.permute.xlu0 %1562 }
 0x43a   :  { %v1605_v46 = vsel %vm34_vm2, %v12625_v27, %v1563_v44  ;;  %v1445_v27 = vsel %vm34_vm2, %v12664_v6, %v12570_v29  ;;  %v1665_v29 = vsel %vm34_vm2, %v1627_v10, 0.0  ;;  %v1530_v6 = vmul.f32 %v12655_v0, %v12487_v59 }
 0x43b   :  { %11310 = vmatprep.subr.msk.mxu0 %vm1290_vm6, %v1605_v46  ;;  %v12787_v45 = vpop.xlane.xlu1 %1648 }
 0x43c   :  { %11311 = vmatpush3.xpose.msk.msra.mxu0 %vm1290_vm6, %v1605_v46 }
 0x43f   :  { %v1561_v39 = vpop.permute.xlu1 %1560 }
 0x440   :  { %v1604_v62 = vsel %vm34_vm2, %v12639_v53, %v1561_v39  ;;  %v1624_v53 = vmul.f32 %v12651_v19, %v1352_v13  ;;  %v1354_v13 = vmul.f32 %v12487_v59, %v12487_v59 }
 0x441   :  { %11312 = vmatprep.subr.msk.mxu0 %vm1290_vm6, %v1604_v62 }
 0x442   :  { %11313 = vmatpush3.xpose.msk.msra.mxu0 %vm1290_vm6, %v1604_v62  ;;  %v1656_v40 = vsel %vm34_vm2, %v1624_v53, 0.0 }
 0x445   :  { %11315 = vmatmul.mubr.msk.f32.vlgmr.msra.gmra.mxu0 %vm1290_vm6, %v1445_v27  ;;  %v1450_v27 = vsel %vm34_vm2, %v1354_v13, %v12618_v17  ;;  %v1533_v17 = vmul.f32 %v12653_v31, %v12496_v55 }
 0x446   :  { %11328 = vmatprep.mubr.msk.f32.mxu0 %vm1290_vm6, %v1448_v26  ;;  %v12846_v26 = vmul.f32 %v12496_v55, %v12496_v55 }
 0x448   :  { %v1629_v59 = vmul.f32 %v12653_v31, %v12846_v26 }
 0x44f   :  { %1657 = vadd.xlane.f32.xlu0 %v1656_v40 }
 0x455   :  { %1666 = vadd.xlane.f32.xlu1 %v1665_v29 }
 0x465   :  { %1574 = vrot.lane.b32.xlu0 %v1531_v58, %s12068_s13 }
 0x466   :  { %1572 = vrot.lane.b32.xlu1 %v1530_v6, %s12068_s13 }
 0x46a   :  { %v12818_v38 = vpop.xlane.xlu0 %1149 }
 0x46e   :  { %v12820_v56 = vpop.xlane.xlu0 %1645 }
 0x470   :  { %v12822_v14 = vpop.xlane.xlu1 %1146 }
 0x472   :  { %v1567_v44 = vpop.permute.xlu0 %1566 }
 0x473   :  { %v1607_v46 = vsel %vm34_vm2, %v12641_v42, %v1567_v44  ;;  %v1447_v42 = vsel %vm34_vm2, %v12722_v47, %v12577_v43  ;;  %v1671_v43 = vsel %vm34_vm2, %v1629_v59, 0.0  ;;  %v1532_v47 = vmul.f32 %v12669_v15, %v12505_v7 }
 0x474   :  { %11317 = vmatprep.subr.msk.mxu1 %vm1290_vm6, %v1607_v46  ;;  %v12827_v25 = vpop.xlane.xlu1 %1654  ;;  %v1356_v44 = vmul.f32 %v12505_v7, %v12505_v7  ;;  %v1358_v59 = vmul.f32 %v12527_v41, %v12527_v41 }
 0x475   :  { %11318 = vmatpush3.xpose.msk.msra.mxu1 %vm1290_vm6, %v1607_v46 }
 0x476   :  { %v1452_v46 = vsel %vm34_vm2, %v1356_v44, %v12633_v60  ;;  %v1535_v60 = vmul.f32 %v12660_v33, %v12516_v18 }
 0x478   :  { %v1565_v39 = vpop.permute.xlu1 %1564 }
 0x479   :  { %v1606_v62 = vsel %vm34_vm2, %v12647_v4, %v1565_v39  ;;  %v1626_v4 = vmul.f32 %v12655_v0, %v1354_v13  ;;  %v12882_v39 = vmul.f32 %v12516_v18, %v12516_v18  ;;  %v12895_v13 = vadd.f32 14.703016, %v12667_v3 }
 0x47a   :  { %11319 = vmatprep.subr.msk.mxu1 %vm1290_vm6, %v1606_v62  ;;  %v12906_v18 = vadd.f32 14.703016, %v12679_v54  ;;  %v12915_v3 = vadd.f32 14.703016, %v12683_v34  ;;  %v12924_v54 = vadd.f32 14.703016, %v12691_v21 }
 0x47b   :  { %11320 = vmatpush3.xpose.msk.msra.mxu1 %vm1290_vm6, %v1606_v62  ;;  %v1662_v53 = vsel %vm34_vm2, %v1626_v4, 0.0  ;;  %v1631_v7 = vmul.f32 %v12660_v33, %v12882_v39  ;;  %v12903_v4 = vadd.f32 14.703016, %v12681_v28  ;;  %v12921_v28 = vadd.f32 14.703016, %v12687_v35 }
 0x47c   :  { %18520 = vst [vmem:[#allocation10_spill] sm:$0xff] %v12915_v3  ;;  %18522 = vst [vmem:[#allocation12_spill] sm:$0xff] %v12924_v54  ;;  %v12937_v35 = vadd.f32 14.703016, %v12734_v30  ;;  %v1169_v21 = vmul.f32 0.5, %v12906_v18 }
 0x47d   :  { %18521 = vst [vmem:[#allocation11_spill] sm:$0xff] %v12921_v28  ;;  %v12951_v30 = vadd.f32 14.703016, %v12730_v1  ;;  %v12965_v1 = vadd.f32 14.703016, %v12818_v38 }
 0x47e   :  { %11322 = vmatmul.mubr.msk.f32.vlgmr.msra.gmra.mxu1 %vm1290_vm6, %v1447_v42  ;;  %18524 = vst [vmem:[#allocation14_spill] sm:$0xff] %v12937_v35 }
 0x47f   :  { %11335 = vmatprep.mubr.msk.f32.mxu1 %vm1290_vm6, %v1450_v27  ;;  %v12900_v27 = vadd.f32 14.703016, %v12674_v23  ;;  %v1451_v23 = vsel %vm34_vm2, %v12806_v52, %v12597_v61  ;;  %v12946_v52 = vadd.f32 14.703016, %v12782_v2  ;;  %18527 = vst [vmem:[#allocation17_spill] sm:$0xff] %v12951_v30  ;;  %18530 = vst [vmem:[#allocation20_spill] sm:$0xff] %v12965_v1 }
 0x480   :  { %v1178_v38 = vmul.f32 0.5, %v12951_v30 }
 0x481   :  { %18518 = vst [vmem:[#allocation8_spill] sm:$0xff] %v12900_v27  ;;  %v1170_v61 = vmul.f32 0.5, %v12900_v27  ;;  %18526 = vst [vmem:[#allocation16_spill] sm:$0xff] %v12946_v52 }
 0x484   :  { %1663 = vadd.xlane.f32.xlu0 %v1662_v53  ;;  %v1167_v53 = vmul.f32 0.5, %v12895_v13 }
 0x48a   :  { %1672 = vadd.xlane.f32.xlu1 %v1671_v43  ;;  %v12912_v43 = vadd.f32 14.703016, %v12685_v50  ;;  %v12929_v50 = vadd.f32 14.703016, %v12699_v16  ;;  %v12943_v16 = vadd.f32 14.703016, %v12696_v49 }
 0x48b   :  { %v12959_v49 = vadd.f32 14.703016, %v12777_v20 }
 0x48c   :  { %18519 = vst [vmem:[#allocation9_spill] sm:$0xff] %v12912_v43  ;;  %18523 = vst [vmem:[#allocation13_spill] sm:$0xff] %v12929_v50  ;;  %v1175_v2 = vmul.f32 0.5, %v12929_v50  ;;  %v1176_v20 = vmul.f32 0.5, %v12943_v16 }
 0x48d   :  { %18525 = vst [vmem:[#allocation15_spill] sm:$0xff] %v12943_v16  ;;  %18529 = vst [vmem:[#allocation19_spill] sm:$0xff] %v12959_v49 }
 0x49a   :  { %1578 = vrot.lane.b32.xlu0 %v1533_v17, %s12068_s13 }
 0x49b   :  { %1576 = vrot.lane.b32.xlu1 %v1532_v47, %s12068_s13  ;;  %v1168_v47 = vmul.f32 0.5, %v12903_v4 }
 0x4a3   :  { %v12858_v40 = vpop.xlane.xlu0 %1651 }
 0x4a4   :  { %v2000_v16 = vrot.slane %v12858_v40, %v12141_v9 }
 0x4a7   :  { %v1571_v10 = vpop.permute.xlu0 %1570 }
 0x4a8   :  { %v1609_v29 = vsel %vm34_vm2, %v12645_v63, %v1571_v10  ;;  %v1449_v63 = vsel %vm34_vm2, %v12766_v8, %v12585_v36  ;;  %v1677_v36 = vsel %vm34_vm2, %v1631_v7, 0.0  ;;  %v1534_v8 = vmul.f32 %v12677_v37, %v12527_v41 }
 0x4a9   :  { %11324 = vmatprep.subr.msk.mxu0 %vm1290_vm6, %v1609_v29  ;;  %v12863_v58 = vpop.xlane.xlu1 %1660  ;;  %v1171_v10 = vmul.f32 0.5, %v12912_v43  ;;  %v1215_v7 = vrot.slane %v1169_v21, %v12141_v9 }
 0x4aa   :  { %11325 = vmatpush3.xpose.msk.msra.mxu0 %vm1290_vm6, %v1609_v29  ;;  %v1172_v29 = vmul.f32 0.5, %v12915_v3 }
 0x4ad   :  { %v1569_v55 = vpop.permute.xlu1 %1568 }
 0x4ae   :  { %v1608_v6 = vsel %vm34_vm2, %v12651_v19, %v1569_v55  ;;  %v1628_v19 = vmul.f32 %v12669_v15, %v1356_v44  ;;  %v12954_v55 = vadd.f32 14.703016, %v12822_v14  ;;  %v1174_v44 = vmul.f32 0.5, %v12921_v28 }
 0x4af   :  { %11326 = vmatprep.subr.msk.mxu0 %vm1290_vm6, %v1608_v6  ;;  %v2004_v28 = vrot.slane %v12827_v25, %v12144_v11 }
 0x4b0   :  { %11327 = vmatpush3.xpose.msk.msra.mxu0 %vm1290_vm6, %v1608_v6  ;;  %v1668_v62 = vsel %vm34_vm2, %v1628_v19, 0.0  ;;  %18528 = vst [vmem:[#allocation18_spill] sm:$0xff] %v12954_v55  ;;  %v1173_v6 = vmul.f32 0.5, %v12924_v54  ;;  %v1219_v19 = vrot.slane %v1170_v61, %v12144_v11  ;;  %v1182_v61 = vmul.f32 0.5, %v12965_v1 }
 0x4b1   :  { %v2005_v3 = vsel %vm1210_vm7, %v2004_v28, %v2000_v16 }
 0x4b3   :  { %11329 = vmatmul.mubr.msk.f32.vlgmr.msra.gmra.mxu0 %vm1290_vm6, %v1449_v63 }
 0x4b4   :  { %11342 = vmatprep.mubr.msk.f32.mxu0 %vm1290_vm6, %v1452_v46  ;;  %v1209_v46 = vrot.slane %v1168_v47, %v12144_v11  ;;  %v1242_v47 = vrot.slane %v1175_v2, %v12141_v9 }
 0x4b9   :  { %1669 = vadd.xlane.f32.xlu0 %v1668_v62  ;;  %v1177_v62 = vmul.f32 0.5, %v12937_v35 }
 0x4bf   :  { %1678 = vadd.xlane.f32.xlu1 %v1677_v36  ;;  %v1179_v36 = vmul.f32 0.5, %v12946_v52 }
 0x4c1   :  { %v1260_v2 = vrot.slane %v1179_v36, %v12141_v9 }
 0x4cf   :  { %1582 = vrot.lane.b32.xlu0 %v1535_v60, %s12068_s13  ;;  %v1224_v60 = vrot.slane %v1171_v10, %v12141_v9  ;;  %v1220_v10 = vsel %vm1210_vm7, %v1219_v19, %v1215_v7 }
 0x4d0   :  { %1580 = vrot.lane.b32.xlu1 %v1534_v8, %s12068_s13  ;;  %v1228_v8 = vrot.slane %v1172_v29, %v12144_v11  ;;  %v1251_v29 = vrot.slane %v1177_v62, %v12141_v9 }
 0x4d8   :  { %v12897_v42 = vpop.xlane.xlu0 %1657 }
 0x4dc   :  { %v1575_v17 = vpop.permute.xlu0 %1574 }
 0x4dd   :  { %v1611_v41 = vsel %vm34_vm2, %v12649_v57, %v1575_v17  ;;  %v1204_v57 = vrot.slane %v1167_v53, %v12141_v9  ;;  %v1233_v53 = vrot.slane %v1173_v6, %v12141_v9  ;;  %v1237_v17 = vrot.slane %v1174_v44, %v12144_v11 }
 0x4de   :  { %11331 = vmatprep.subr.msk.mxu1 %vm1290_vm6, %v1611_v41  ;;  %v12932_v34 = vpop.xlane.xlu1 %1666  ;;  %v1229_v6 = vsel %vm1210_vm7, %v1228_v8, %v1224_v60  ;;  %v1246_v44 = vrot.slane %v1176_v20, %v12144_v11  ;;  %v1273_v20 = vrot.slane %v1182_v61, %v12144_v11  ;;  %v1685_v61 = vrot.slane %v12742_v48, %v12141_v9 }
 0x4df   :  { %11332 = vmatpush3.xpose.msk.msra.mxu1 %vm1290_vm6, %v1611_v41  ;;  %v1180_v41 = vmul.f32 0.5, %v12959_v49  ;;  %v1211_v21 = vsel %vm1210_vm7, %v1209_v46, %v1204_v57  ;;  %v1238_v57 = vsel %vm1210_vm7, %v1237_v17, %v1233_v53  ;;  %v1255_v46 = vrot.slane %v1178_v38, %v12144_v11 }
 0x4e0   :  { %v1276_v62 = vsel %vm1275_vm8, %v1220_v10, %v1211_v21  ;;  %v1689_v21 = vrot.slane %v12739_v22, %v12144_v11  ;;  %v11302_v10 = vpop.f32.mrf.mxu0  ;;  %v13027_v22 = vsub.s32 3, %v12129_v5 }
 0x4e1   :  { %v1256_v7 = vsel %vm1210_vm7, %v1255_v46, %v1251_v29  ;;  %v1278_v36 = vsel %vm1277_vm9, %v1229_v6, %v1276_v62  ;;  %v13019_v6 = vsub.s32 1, %v12129_v5  ;;  %v13033_v46 = vsub.s32 4, %v12129_v5 }
 0x4e2   :  { %v1573_v63 = vpop.permute.xlu1 %1572  ;;  %v1280_v60 = vsel %vm1279_vm10, %v1238_v57, %v1278_v36  ;;  %v1690_v29 = vsel %vm1210_vm7, %v1689_v21, %v1685_v61  ;;  %18533 = vst [vmem:[#allocation23_spill] sm:$0xff] %v13027_v22  ;;  %v13047_v36 = vsub.s32 6, %v12129_v5 }
 0x4e3   :  { %v1610_v14 = vsel %vm34_vm2, %v12655_v0, %v1573_v63  ;;  %v1181_v0 = vmul.f32 0.5, %v12954_v55  ;;  %v1454_v63 = vsel %vm34_vm2, %v1358_v59, %v12643_v51  ;;  %v1247_v51 = vsel %vm1210_vm7, %v1246_v44, %v1242_v47  ;;  %18531 = vst [vmem:[#allocation21_spill] sm:$0xff] %v13019_v6  ;;  %18534 = vst [vmem:[#allocation24_spill] sm:$0xff] %v13033_v46 }
 0x4e4   :  { %11333 = vmatprep.subr.msk.mxu1 %vm1290_vm6, %v1610_v14  ;;  %18536 = vst [vmem:[#allocation26_spill] sm:$0xff] %v13047_v36 }
 0x4e5   :  { %11334 = vmatpush3.xpose.msk.msra.mxu1 %vm1290_vm6, %v1610_v14  ;;  %v1630_v14 = vmul.f32 %v12677_v37, %v1358_v59  ;;  %v1269_v19 = vrot.slane %v1181_v0, %v12141_v9  ;;  %v1282_v0 = vsel %vm1281_vm11, %v1247_v51, %v1280_v60 }
 0x4e6   :  { %v1284_v53 = vsel %vm1283_vm12, %v1256_v7, %v1282_v0  ;;  %v1776_v0 = vpop.f32.mrf.mxu0 }
 0x4e7   :  { %v1674_v8 = vsel %vm34_vm2, %v1630_v14, 0.0  ;;  %v1274_v38 = vsel %vm1210_vm7, %v1273_v20, %v1269_v19 }
 0x4e8   :  { %11336 = vmatmul.mubr.msk.f32.vlgmr.msra.gmra.mxu1 %vm1290_vm6, %v1451_v23  ;;  %v1264_v23 = vrot.slane %v1180_v41, %v12144_v11 }
 0x4e9   :  { %11349 = vmatprep.mubr.msk.f32.mxu1 %vm1290_vm6, %v1454_v63  ;;  %v1782_v63 = vadd.f32 %v11302_v10, %v1690_v29 }
 0x4ea   :  { %v1265_v59 = vsel %vm1210_vm7, %v1264_v23, %v1260_v2  ;;  %v13023_v2 = vsub.s32 2, %v12129_v5  ;;  %v13037_v23 = vsub.s32 5, %v12129_v5 }
 0x4eb   :  { %v1286_v17 = vsel %vm1285_vm13, %v1265_v59, %v1284_v53  ;;  %v2627_v44 = vrot.slane %v1782_v63, %v12163_v24  ;;  %v2638_v14 = vrot.slane %v1782_v63, %v13019_v6  ;;  %v2660_v19 = vrot.slane %v1782_v63, %v13027_v22  ;;  %v18538_v53 = vld [vmem:[#allocation6_spill] sm:$0xff] }
 0x4ec   :  { %v1288_v41 = vsel %vm1287_vm14, %v1274_v38, %v1286_v17  ;;  %18532 = vst [vmem:[#allocation22_spill] sm:$0xff] %v13023_v2  ;;  %v2649_v48 = vrot.slane %v1782_v63, %v13023_v2  ;;  %18535 = vst [vmem:[#allocation25_spill] sm:$0xff] %v13037_v23  ;;  %v2671_v7 = vrot.slane %v1782_v63, %v13033_v46 }
 0x4ed   :  { %v1291_v47 = vsel %vm1290_vm6, %v1288_v41, 0.0  ;;  %v2682_v59 = vrot.slane %v1782_v63, %v13037_v23  ;;  %v2693_v38 = vrot.slane %v1782_v63, %v13047_v36  ;;  %v1453_v17 = vsel %vm34_vm2, %v12846_v26, %v18538_v53  ;;  %v18539_v53 = vld [vmem:[#allocation7_spill] sm:$0xff] }
 0x4ee   :  { %1675 = vadd.xlane.f32.xlu0 %v1674_v8 }
 0x4f4   :  { %1292 = vadd.xlane.f32.xlu1 %v1291_v47 }
 0x504   :  { %2633 = vbcast.lane.b32.xlu0 %v2627_v44, 264 }
 0x505   :  { %2629 = vbcast.lane.b32.xlu1 %v2627_v44, 256  ;;  %v1794_v44 = vrot.slane %v12747_v32, %v12144_v11 }
 0x508   :  { %2644 = vbcast.lane.b32.xlu0 %v2638_v14, 264 }
 0x509   :  { %2640 = vbcast.lane.b32.xlu1 %v2638_v14, 256  ;;  %v11309_v14 = vpop.f32.mrf.mxu1 }
 0x50c   :  { %2655 = vbcast.lane.b32.xlu0 %v2649_v48, 264 }
 0x50d   :  { %v13030_v57 = vpop.xlane.xlu0 %1663  ;;  %2651 = vbcast.lane.b32.xlu1 %v2649_v48, 256 }
 0x510   :  { %2666 = vbcast.lane.b32.xlu0 %v2660_v19, 264 }
 0x511   :  { %v1579_v51 = vpop.permute.xlu0 %1578  ;;  %2662 = vbcast.lane.b32.xlu1 %v2660_v19, 256 }
 0x512   :  { %v1613_v62 = vsel %vm34_vm2, %v12653_v31, %v1579_v51  ;;  %v13054_v31 = vsub.s32 7, %v12129_v5 }
 0x513   :  { %11338 = vmatprep.subr.msk.mxu0 %vm1290_vm6, %v1613_v62  ;;  %v13043_v20 = vpop.xlane.xlu1 %1672 }
 0x514   :  { %2677 = vbcast.lane.b32.xlu0 %v2671_v7, 264  ;;  %11339 = vmatpush3.xpose.msk.msra.mxu0 %vm1290_vm6, %v1613_v62  ;;  %18537 = vst [vmem:[#allocation27_spill] sm:$0xff] %v13054_v31  ;;  %v2704_v41 = vrot.slane %v1782_v63, %v13054_v31 }
 0x515   :  { %2673 = vbcast.lane.b32.xlu1 %v2671_v7, 256 }
 0x517   :  { %v1577_v60 = vpop.permute.xlu1 %1576 }
 0x518   :  { %v1612_v8 = vsel %vm34_vm2, %v12669_v15, %v1577_v60  ;;  %2688 = vbcast.lane.b32.xlu0 %v2682_v59, 264  ;;  %v1777_v15 = vadd.f32 %v1776_v0, %v1690_v29  ;;  %v1790_v29 = vrot.slane %v12780_v12, %v12141_v9 }
 0x519   :  { %2684 = vbcast.lane.b32.xlu1 %v2682_v59, 256  ;;  %11340 = vmatprep.subr.msk.mxu0 %vm1290_vm6, %v1612_v8 }
 0x51a   :  { %11341 = vmatpush3.xpose.msk.msra.mxu0 %vm1290_vm6, %v1612_v8  ;;  %v2539_v5 = vrot.slane %v1777_v15, %v12163_v24  ;;  %v2550_v47 = vrot.slane %v1777_v15, %v13019_v6  ;;  %v2561_v61 = vrot.slane %v1777_v15, %v13023_v2  ;;  %v2572_v26 = vrot.slane %v1777_v15, %v13027_v22 }
 0x51b   :  { %v2583_v21 = vrot.slane %v1777_v15, %v13033_v46  ;;  %v2594_v10 = vrot.slane %v1777_v15, %v13037_v23  ;;  %v2605_v63 = vrot.slane %v1777_v15, %v13047_v36  ;;  %v1795_v48 = vsel %vm1210_vm7, %v1794_v44, %v1790_v29 }
 0x51c   :  { %2699 = vbcast.lane.b32.xlu0 %v2693_v38, 264  ;;  %v1887_v19 = vadd.f32 %v11309_v14, %v1795_v48  ;;  %v2616_v51 = vrot.slane %v1777_v15, %v13054_v31  ;;  %v1895_v14 = vrot.slane %v12820_v56, %v12141_v9 }
 0x51d   :  { %2695 = vbcast.lane.b32.xlu1 %v2693_v38, 256  ;;  %11343 = vmatmul.mubr.msk.f32.vlgmr.msra.gmra.mxu0 %vm1290_vm6, %v1453_v17  ;;  %v1455_v17 = vsel %vm34_vm2, %v12882_v39, %v18539_v53 }
 0x51e   :  { %v2803_v12 = vrot.slane %v1887_v19, %v12163_v24  ;;  %v2814_v59 = vrot.slane %v1887_v19, %v13019_v6  ;;  %v2825_v8 = vrot.slane %v1887_v19, %v13023_v2  ;;  %v2847_v15 = vrot.slane %v1887_v19, %v13033_v46 }
 0x520   :  { %2710 = vbcast.lane.b32.xlu0 %v2704_v41, 264 }
 0x521   :  { %2706 = vbcast.lane.b32.xlu1 %v2704_v41, 256  ;;  %v2869_v41 = vrot.slane %v1887_v19, %v13047_v36 }
 0x524   :  { %2541 = vbcast.lane.b32.xlu0 %v2539_v5, 256 }
 0x525   :  { %2545 = vbcast.lane.b32.xlu1 %v2539_v5, 264  ;;  %v1881_v5 = vpop.f32.mrf.mxu1 }
 0x528   :  { %2556 = vbcast.lane.b32.xlu0 %v2550_v47, 264 }
 0x529   :  { %2552 = vbcast.lane.b32.xlu1 %v2550_v47, 256  ;;  %v1882_v47 = vadd.f32 %v1881_v5, %v1795_v48 }
 0x52b   :  { %v2715_v39 = vrot.slane %v1882_v47, %v12163_v24  ;;  %v2759_v29 = vrot.slane %v1882_v47, %v13033_v46  ;;  %v2781_v48 = vrot.slane %v1882_v47, %v13047_v36 }
 0x52c   :  { %2567 = vbcast.lane.b32.xlu0 %v2561_v61, 264 }
 0x52d   :  { %2563 = vbcast.lane.b32.xlu1 %v2561_v61, 256  ;;  %v2880_v61 = vrot.slane %v1887_v19, %v13054_v31 }
 0x530   :  { %2578 = vbcast.lane.b32.xlu0 %v2572_v26, 264 }
 0x531   :  { %2574 = vbcast.lane.b32.xlu1 %v2572_v26, 256  ;;  %v2726_v26 = vrot.slane %v1882_v47, %v13019_v6 }
 0x534   :  { %2589 = vbcast.lane.b32.xlu0 %v2583_v21, 264 }
 0x535   :  { %2585 = vbcast.lane.b32.xlu1 %v2583_v21, 256  ;;  %v2737_v21 = vrot.slane %v1882_v47, %v13023_v2 }
 0x538   :  { %2600 = vbcast.lane.b32.xlu0 %v2594_v10, 264 }
 0x539   :  { %2596 = vbcast.lane.b32.xlu1 %v2594_v10, 256  ;;  %v2748_v10 = vrot.slane %v1882_v47, %v13027_v22 }
 0x53c   :  { %2611 = vbcast.lane.b32.xlu0 %v2605_v63, 264 }
 0x53d   :  { %2607 = vbcast.lane.b32.xlu1 %v2605_v63, 256  ;;  %v2770_v63 = vrot.slane %v1882_v47, %v13037_v23 }
 0x53e   :  { %v11323_v54 = vpop.f32.mrf.mxu1 }
 0x53f   :  { %v2097_v27 = vadd.f32 %v11323_v54, %v2005_v3 }
 0x540   :  { %2622 = vbcast.lane.b32.xlu0 %v2616_v51, 264 }
 0x541   :  { %2618 = vbcast.lane.b32.xlu1 %v2616_v51, 256  ;;  %v11316_v51 = vpop.f32.mrf.mxu0  ;;  %v3155_v25 = vrot.slane %v2097_v27, %v12163_v24  ;;  %v3166_v28 = vrot.slane %v2097_v27, %v13019_v6  ;;  %v3177_v16 = vrot.slane %v2097_v27, %v13023_v2 }
 0x542   :  { %v13076_v62 = vpop.xlane.xlu0 %1669 }
 0x544   :  { %2809 = vbcast.lane.b32.xlu0 %v2803_v12, 264 }
 0x545   :  { %2805 = vbcast.lane.b32.xlu1 %v2803_v12, 256 }
 0x546   :  { %v1583_v7 = vpop.permute.xlu0 %1582 }
 0x547   :  { %v1615_v32 = vsel %vm34_vm2, %v12660_v33, %v1583_v7  ;;  %v2836_v33 = vrot.slane %v1887_v19, %v13027_v22 }
 0x548   :  { %2820 = vbcast.lane.b32.xlu0 %v2814_v59, 264  ;;  %11345 = vmatprep.subr.msk.mxu1 %vm1290_vm6, %v1615_v32  ;;  %v13083_v60 = vpop.xlane.xlu1 %1678 }
 0x549   :  { %2816 = vbcast.lane.b32.xlu1 %v2814_v59, 256  ;;  %11346 = vmatpush3.xpose.msk.msra.mxu1 %vm1290_vm6, %v1615_v32 }
 0x54c   :  { %2831 = vbcast.lane.b32.xlu0 %v2825_v8, 264  ;;  %v1581_v38 = vpop.permute.xlu1 %1580 }
 0x54d   :  { %v1614_v0 = vsel %vm34_vm2, %v12677_v37, %v1581_v38  ;;  %2827 = vbcast.lane.b32.xlu1 %v2825_v8, 256  ;;  %v2858_v37 = vrot.slane %v1887_v19, %v13037_v23  ;;  %v1899_v19 = vrot.slane %v12787_v45, %v12144_v11  ;;  %v2792_v8 = vrot.slane %v1882_v47, %v13054_v31 }
 0x54e   :  { %11347 = vmatprep.subr.msk.mxu1 %vm1290_vm6, %v1614_v0 }
 0x54f   :  { %11348 = vmatpush3.xpose.msk.msra.mxu1 %vm1290_vm6, %v1614_v0  ;;  %v1900_v7 = vsel %vm1210_vm7, %v1899_v19, %v1895_v14  ;;  %v1986_v19 = vpop.f32.mrf.mxu0 }
 0x550   :  { %2842 = vbcast.lane.b32.xlu0 %v2836_v33, 264  ;;  %v1992_v32 = vadd.f32 %v11316_v51, %v1900_v7 }
 0x551   :  { %2838 = vbcast.lane.b32.xlu1 %v2836_v33, 256 }
 0x552   :  { %11350 = vmatmul.mubr.msk.f32.vlgmr.msra.gmra.mxu1 %vm1290_vm6, %v1455_v17  ;;  %v2979_v45 = vrot.slane %v1992_v32, %v12163_v24  ;;  %v2990_v53 = vrot.slane %v1992_v32, %v13019_v6  ;;  %v3012_v47 = vrot.slane %v1992_v32, %v13027_v22 }
 0x554   :  { %2853 = vbcast.lane.b32.xlu0 %v2847_v15, 264 }
 0x555   :  { %2849 = vbcast.lane.b32.xlu1 %v2847_v15, 256 }
 0x558   :  { %2864 = vbcast.lane.b32.xlu0 %v2858_v37, 264 }
 0x559   :  { %2860 = vbcast.lane.b32.xlu1 %v2858_v37, 256  ;;  %v3001_v37 = vrot.slane %v1992_v32, %v13023_v2 }
 0x55c   :  { %2875 = vbcast.lane.b32.xlu0 %v2869_v41, 264 }
 0x55d   :  { %2871 = vbcast.lane.b32.xlu1 %v2869_v41, 256 }
 0x560   :  { %2886 = vbcast.lane.b32.xlu0 %v2880_v61, 264 }
 0x561   :  { %2882 = vbcast.lane.b32.xlu1 %v2880_v61, 256 }
 0x564   :  { %2721 = vbcast.lane.b32.xlu0 %v2715_v39, 264 }
 0x565   :  { %2717 = vbcast.lane.b32.xlu1 %v2715_v39, 256 }
 0x568   :  { %2732 = vbcast.lane.b32.xlu0 %v2726_v26, 264 }
 0x569   :  { %2728 = vbcast.lane.b32.xlu1 %v2726_v26, 256  ;;  %v3023_v26 = vrot.slane %v1992_v32, %v13033_v46 }
 0x56c   :  { %2743 = vbcast.lane.b32.xlu0 %v2737_v21, 264 }
 0x56d   :  { %2739 = vbcast.lane.b32.xlu1 %v2737_v21, 256 }
 0x570   :  { %2754 = vbcast.lane.b32.xlu0 %v2748_v10, 264 }
 0x571   :  { %2750 = vbcast.lane.b32.xlu1 %v2748_v10, 256 }
 0x574   :  { %2765 = vbcast.lane.b32.xlu0 %v2759_v29, 264 }
 0x575   :  { %2761 = vbcast.lane.b32.xlu1 %v2759_v29, 256  ;;  %v3034_v29 = vrot.slane %v1992_v32, %v13037_v23 }
 0x577   :  { %v13106_v44 = vpop.xlane.xlu0 %1675 }
 0x578   :  { %2776 = vbcast.lane.b32.xlu0 %v2770_v63, 264 }
 0x579   :  { %2772 = vbcast.lane.b32.xlu1 %v2770_v63, 256 }
 0x57b   :  { %v13113_v12 = vpop.permute.xlu0 %2633 }
 0x57c   :  { %2787 = vbcast.lane.b32.xlu0 %v2781_v48, 264 }
 0x57d   :  { %2783 = vbcast.lane.b32.xlu1 %v2781_v48, 256  ;;  %v13116_v59 = vpop.xlane.xlu1 %1292  ;;  %v3045_v48 = vrot.slane %v1992_v32, %v13047_v36 }
 0x57e   :  { %18540 = vst [vmem:[#allocation6_spill] sm:$0xff] %v13116_v59 }
 0x57f   :  { %v13119_v38 = vpop.permute.xlu0 %2644 }
 0x580   :  { %2798 = vbcast.lane.b32.xlu0 %v2792_v8, 264 }
 0x581   :  { %2794 = vbcast.lane.b32.xlu1 %v2792_v8, 256  ;;  %v13121_v56 = vpop.permute.xlu1 %2629 }
 0x583   :  { %v13124_v0 = vpop.permute.xlu0 %2655 }
 0x584   :  { %2985 = vbcast.lane.b32.xlu0 %v2979_v45, 264 }
 0x585   :  { %2981 = vbcast.lane.b32.xlu1 %v2979_v45, 256  ;;  %v13126_v33 = vpop.permute.xlu1 %2640  ;;  %v1987_v45 = vadd.f32 %v1986_v19, %v1900_v7 }
 0x587   :  { %v13129_v17 = vpop.permute.xlu0 %2666  ;;  %v2957_v50 = vrot.slane %v1987_v45, %v13047_v36  ;;  %v2968_v40 = vrot.slane %v1987_v45, %v13054_v31 }
 0x588   :  { %2996 = vbcast.lane.b32.xlu0 %v2990_v53, 264 }
 0x589   :  { %2992 = vbcast.lane.b32.xlu1 %v2990_v53, 256  ;;  %v13131_v15 = vpop.permute.xlu1 %2651  ;;  %v3056_v53 = vrot.slane %v1992_v32, %v13054_v31  ;;  %v2913_v32 = vrot.slane %v1987_v45, %v13023_v2 }
 0x58b   :  { %v13134_v41 = vpop.permute.xlu0 %2677 }
 0x58c   :  { %3007 = vbcast.lane.b32.xlu0 %v3001_v37, 264 }
 0x58d   :  { %3003 = vbcast.lane.b32.xlu1 %v3001_v37, 256  ;;  %v13136_v5 = vpop.permute.xlu1 %2662 }
 0x58f   :  { %v13139_v61 = vpop.permute.xlu0 %2688 }
 0x590   :  { %3018 = vbcast.lane.b32.xlu0 %v3012_v47, 264 }
 0x591   :  { %3014 = vbcast.lane.b32.xlu1 %v3012_v47, 256  ;;  %v13141_v39 = vpop.permute.xlu1 %2673 }
 0x593   :  { %v13144_v21 = vpop.permute.xlu0 %2699 }
 0x594   :  { %3029 = vbcast.lane.b32.xlu0 %v3023_v26, 264 }
 0x595   :  { %3025 = vbcast.lane.b32.xlu1 %v3023_v26, 256  ;;  %v13146_v10 = vpop.permute.xlu1 %2684  ;;  %v2891_v26 = vrot.slane %v1987_v45, %v12163_v24 }
 0x597   :  { %v13149_v63 = vpop.permute.xlu0 %2710 }
 0x598   :  { %3040 = vbcast.lane.b32.xlu0 %v3034_v29, 264 }
 0x599   :  { %3036 = vbcast.lane.b32.xlu1 %v3034_v29, 256  ;;  %v13151_v14 = vpop.permute.xlu1 %2695 }
 0x59b   :  { %v13154_v51 = vpop.permute.xlu0 %2541 }
 0x59c   :  { %3051 = vbcast.lane.b32.xlu0 %v3045_v48, 264 }
 0x59d   :  { %3047 = vbcast.lane.b32.xlu1 %v3045_v48, 256  ;;  %v13156_v8 = vpop.permute.xlu1 %2706  ;;  %v2902_v48 = vrot.slane %v1987_v45, %v13019_v6 }
 0x59f   :  { %v13159_v37 = vpop.permute.xlu0 %2556 }
 0x5a0   :  { %3062 = vbcast.lane.b32.xlu0 %v3056_v53, 264 }
 0x5a1   :  { %3058 = vbcast.lane.b32.xlu1 %v3056_v53, 256  ;;  %v13161_v47 = vpop.permute.xlu1 %2545 }
 0x5a3   :  { %v13164_v29 = vpop.permute.xlu0 %2567 }
 0x5a4   :  { %2897 = vbcast.lane.b32.xlu0 %v2891_v26, 264 }
 0x5a5   :  { %2893 = vbcast.lane.b32.xlu1 %v2891_v26, 256  ;;  %v13166_v59 = vpop.permute.xlu1 %2552  ;;  %v2924_v26 = vrot.slane %v1987_v45, %v13027_v22 }
 0x5a7   :  { %v13169_v1 = vpop.permute.xlu0 %2578 }
 0x5a8   :  { %2908 = vbcast.lane.b32.xlu0 %v2902_v48, 264 }
 0x5a9   :  { %2904 = vbcast.lane.b32.xlu1 %v2902_v48, 256  ;;  %v13171_v7 = vpop.permute.xlu1 %2563  ;;  %v2935_v48 = vrot.slane %v1987_v45, %v13033_v46 }
 0x5ab   :  { %v13174_v19 = vpop.permute.xlu0 %2589 }
 0x5ac   :  { %2919 = vbcast.lane.b32.xlu0 %v2913_v32, 264 }
 0x5ad   :  { %2915 = vbcast.lane.b32.xlu1 %v2913_v32, 256  ;;  %v13176_v53 = vpop.permute.xlu1 %2574  ;;  %v2946_v32 = vrot.slane %v1987_v45, %v13037_v23 }
 0x5af   :  { %v13179_v55 = vpop.permute.xlu0 %2600 }
 0x5b0   :  { %2930 = vbcast.lane.b32.xlu0 %v2924_v26, 264 }
 0x5b1   :  { %2926 = vbcast.lane.b32.xlu1 %v2924_v26, 256  ;;  %v13181_v49 = vpop.permute.xlu1 %2585 }
 0x5b3   :  { %v13184_v52 = vpop.permute.xlu0 %2611 }
 0x5b4   :  { %18541 = vst [vmem:[#allocation7_spill] sm:$0xff] %v13184_v52  ;;  %2941 = vbcast.lane.b32.xlu0 %v2935_v48, 264 }
 0x5b5   :  { %2937 = vbcast.lane.b32.xlu1 %v2935_v48, 256  ;;  %v13186_v30 = vpop.permute.xlu1 %2596 }
 0x5b7   :  { %v13189_v35 = vpop.permute.xlu0 %2622 }
 0x5b8   :  { %18542 = vst [vmem:[#allocation28_spill] sm:$0xff] %v13189_v35  ;;  %2952 = vbcast.lane.b32.xlu0 %v2946_v32, 264 }
 0x5b9   :  { %2948 = vbcast.lane.b32.xlu1 %v2946_v32, 256  ;;  %v13193_v26 = vpop.permute.xlu1 %2607 }
 0x5bb   :  { %v13198_v48 = vpop.permute.xlu0 %2809 }
 0x5bc   :  { %18543 = vst [vmem:[#allocation29_spill] sm:$0xff] %v13198_v48  ;;  %2963 = vbcast.lane.b32.xlu0 %v2957_v50, 264 }
 0x5bd   :  { %2959 = vbcast.lane.b32.xlu1 %v2957_v50, 256  ;;  %v13201_v43 = vpop.permute.xlu1 %2618 }
 0x5bf   :  { %v13204_v32 = vpop.permute.xlu0 %2820 }
 0x5c0   :  { %18544 = vst [vmem:[#allocation30_spill] sm:$0xff] %v13204_v32  ;;  %2974 = vbcast.lane.b32.xlu0 %v2968_v40, 264 }
 0x5c1   :  { %2970 = vbcast.lane.b32.xlu1 %v2968_v40, 256  ;;  %v13206_v35 = vpop.permute.xlu1 %2805 }
 0x5c3   :  { %v13209_v52 = vpop.permute.xlu0 %2831 }
 0x5c4   :  { %18545 = vst [vmem:[#allocation31_spill] sm:$0xff] %v13209_v52  ;;  %3161 = vbcast.lane.b32.xlu0 %v3155_v25, 264 }
 0x5c5   :  { %3157 = vbcast.lane.b32.xlu1 %v3155_v25, 256  ;;  %v13211_v48 = vpop.permute.xlu1 %2816  ;;  %v3188_v25 = vrot.slane %v2097_v27, %v13027_v22 }
 0x5c6   :  { %18546 = vst [vmem:[#allocation32_spill] sm:$0xff] %v13211_v48 }
 0x5c7   :  { %v13214_v50 = vpop.permute.xlu0 %2842 }
 0x5c8   :  { %18547 = vst [vmem:[#allocation33_spill] sm:$0xff] %v13214_v50  ;;  %3172 = vbcast.lane.b32.xlu0 %v3166_v28, 264 }
 0x5c9   :  { %3168 = vbcast.lane.b32.xlu1 %v3166_v28, 256  ;;  %v13216_v54 = vpop.permute.xlu1 %2827  ;;  %v3199_v28 = vrot.slane %v2097_v27, %v13033_v46 }
 0x5ca   :  { %18548 = vst [vmem:[#allocation34_spill] sm:$0xff] %v13216_v54 }
 0x5cb   :  { %v13219_v45 = vpop.permute.xlu0 %2853 }
 0x5cc   :  { %18549 = vst [vmem:[#allocation35_spill] sm:$0xff] %v13219_v45  ;;  %3183 = vbcast.lane.b32.xlu0 %v3177_v16, 264 }
 0x5cd   :  { %3179 = vbcast.lane.b32.xlu1 %v3177_v16, 256  ;;  %v13221_v40 = vpop.permute.xlu1 %2838  ;;  %v3210_v16 = vrot.slane %v2097_v27, %v13037_v23 }
 0x5ce   :  { %18550 = vst [vmem:[#allocation36_spill] sm:$0xff] %v13221_v40 }
 0x5cf   :  { %v13224_v52 = vpop.permute.xlu0 %2864 }
 0x5d0   :  { %18551 = vst [vmem:[#allocation37_spill] sm:$0xff] %v13224_v52  ;;  %3194 = vbcast.lane.b32.xlu0 %v3188_v25, 264  ;;  %v2091_v52 = vpop.f32.mrf.mxu1 }
 0x5d1   :  { %3190 = vbcast.lane.b32.xlu1 %v3188_v25, 256  ;;  %v13226_v32 = vpop.permute.xlu1 %2849  ;;  %v3221_v25 = vrot.slane %v2097_v27, %v13047_v36 }
 0x5d2   :  { %18552 = vst [vmem:[#allocation38_spill] sm:$0xff] %v13226_v32 }
 0x5d3   :  { %v13229_v50 = vpop.permute.xlu0 %2875 }
 0x5d4   :  { %18553 = vst [vmem:[#allocation39_spill] sm:$0xff] %v13229_v50  ;;  %3205 = vbcast.lane.b32.xlu0 %v3199_v28, 264 }
 0x5d5   :  { %3201 = vbcast.lane.b32.xlu1 %v3199_v28, 256  ;;  %v13231_v54 = vpop.permute.xlu1 %2860  ;;  %v2092_v28 = vadd.f32 %v2091_v52, %v2005_v3 }
 0x5d6   :  { %18554 = vst [vmem:[#allocation40_spill] sm:$0xff] %v13231_v54  ;;  %v3232_v54 = vrot.slane %v2097_v27, %v13054_v31 }
 0x5d7   :  { %v13234_v45 = vpop.permute.xlu0 %2886  ;;  %v3089_v3 = vrot.slane %v2092_v28, %v13023_v2 }
 0x5d8   :  { %18555 = vst [vmem:[#allocation41_spill] sm:$0xff] %v13234_v45  ;;  %3216 = vbcast.lane.b32.xlu0 %v3210_v16, 264 }
 0x5d9   :  { %3212 = vbcast.lane.b32.xlu1 %v3210_v16, 256  ;;  %v13236_v40 = vpop.permute.xlu1 %2871  ;;  %v3067_v16 = vrot.slane %v2092_v28, %v12163_v24 }
 0x5da   :  { %18556 = vst [vmem:[#allocation42_spill] sm:$0xff] %v13236_v40 }
 0x5db   :  { %v13239_v32 = vpop.permute.xlu0 %2721 }
 0x5dc   :  { %18557 = vst [vmem:[#allocation43_spill] sm:$0xff] %v13239_v32  ;;  %3227 = vbcast.lane.b32.xlu0 %v3221_v25, 264 }
 0x5dd   :  { %3223 = vbcast.lane.b32.xlu1 %v3221_v25, 256  ;;  %v13241_v50 = vpop.permute.xlu1 %2882  ;;  %v3078_v25 = vrot.slane %v2092_v28, %v13019_v6 }
 0x5de   :  { %18558 = vst [vmem:[#allocation44_spill] sm:$0xff] %v13241_v50 }
 0x5df   :  { %v13244_v48 = vpop.permute.xlu0 %2732 }
 0x5e0   :  { %18559 = vst [vmem:[#allocation45_spill] sm:$0xff] %v13244_v48  ;;  %3238 = vbcast.lane.b32.xlu0 %v3232_v54, 264 }
 0x5e1   :  { %3234 = vbcast.lane.b32.xlu1 %v3232_v54, 256  ;;  %v13246_v45 = vpop.permute.xlu1 %2717 }
 0x5e2   :  { %18560 = vst [vmem:[#allocation46_spill] sm:$0xff] %v13246_v45 }
 0x5e3   :  { %v13249_v40 = vpop.permute.xlu0 %2743 }
 0x5e4   :  { %18561 = vst [vmem:[#allocation47_spill] sm:$0xff] %v13249_v40  ;;  %3073 = vbcast.lane.b32.xlu0 %v3067_v16, 264 }
 0x5e5   :  { %3069 = vbcast.lane.b32.xlu1 %v3067_v16, 256  ;;  %v13251_v32 = vpop.permute.xlu1 %2728  ;;  %v3100_v16 = vrot.slane %v2092_v28, %v13027_v22 }
 0x5e6   :  { %18562 = vst [vmem:[#allocation48_spill] sm:$0xff] %v13251_v32 }
 0x5e7   :  { %v13254_v50 = vpop.permute.xlu0 %2754 }
 0x5e8   :  { %18563 = vst [vmem:[#allocation49_spill] sm:$0xff] %v13254_v50  ;;  %3084 = vbcast.lane.b32.xlu0 %v3078_v25, 264 }
 0x5e9   :  { %3080 = vbcast.lane.b32.xlu1 %v3078_v25, 256  ;;  %v13256_v27 = vpop.permute.xlu1 %2739  ;;  %v3111_v25 = vrot.slane %v2092_v28, %v13033_v46 }
 0x5ea   :  { %18564 = vst [vmem:[#allocation50_spill] sm:$0xff] %v13256_v27 }
 0x5eb   :  { %v13259_v52 = vpop.permute.xlu0 %2765 }
 0x5ec   :  { %18565 = vst [vmem:[#allocation51_spill] sm:$0xff] %v13259_v52  ;;  %3095 = vbcast.lane.b32.xlu0 %v3089_v3, 264 }
 0x5ed   :  { %3091 = vbcast.lane.b32.xlu1 %v3089_v3, 256  ;;  %v13261_v54 = vpop.permute.xlu1 %2750  ;;  %v3122_v3 = vrot.slane %v2092_v28, %v13037_v23 }
 0x5ee   :  { %18566 = vst [vmem:[#allocation52_spill] sm:$0xff] %v13261_v54  ;;  %v11330_v54 = vpop.f32.mrf.mxu0 }
 0x5ef   :  { %v13264_v40 = vpop.permute.xlu0 %2776 }
 0x5f0   :  { %18567 = vst [vmem:[#allocation53_spill] sm:$0xff] %v13264_v40  ;;  %3106 = vbcast.lane.b32.xlu0 %v3100_v16, 264  ;;  %v2105_v40 = vrot.slane %v12897_v42, %v12141_v9  ;;  %v3144_v42 = vrot.slane %v2092_v28, %v13054_v31 }
 0x5f1   :  { %3102 = vbcast.lane.b32.xlu1 %v3100_v16, 256  ;;  %v13266_v48 = vpop.permute.xlu1 %2761 }
 0x5f2   :  { %18568 = vst [vmem:[#allocation54_spill] sm:$0xff] %v13266_v48  ;;  %v3133_v48 = vrot.slane %v2092_v28, %v13047_v36 }
 0x5f3   :  { %v13269_v50 = vpop.permute.xlu0 %2787 }
 0x5f4   :  { %18569 = vst [vmem:[#allocation55_spill] sm:$0xff] %v13269_v50  ;;  %3117 = vbcast.lane.b32.xlu0 %v3111_v25, 264  ;;  %v2109_v50 = vrot.slane %v12863_v58, %v12144_v11 }
 0x5f5   :  { %3113 = vbcast.lane.b32.xlu1 %v3111_v25, 256  ;;  %v13271_v27 = vpop.permute.xlu1 %2772 }
 0x5f6   :  { %18570 = vst [vmem:[#allocation56_spill] sm:$0xff] %v13271_v27  ;;  %v2110_v27 = vsel %vm1210_vm7, %v2109_v50, %v2105_v40 }
 0x5f7   :  { %v13274_v52 = vpop.permute.xlu0 %2798  ;;  %v2202_v32 = vadd.f32 %v11330_v54, %v2110_v27 }
 0x5f8   :  { %18571 = vst [vmem:[#allocation57_spill] sm:$0xff] %v13274_v52  ;;  %3128 = vbcast.lane.b32.xlu0 %v3122_v3, 264 }
 0x5f9   :  { %3124 = vbcast.lane.b32.xlu1 %v3122_v3, 256  ;;  %v13278_v16 = vpop.permute.xlu1 %2783  ;;  %v3331_v58 = vrot.slane %v2202_v32, %v12163_v24  ;;  %v3353_v28 = vrot.slane %v2202_v32, %v13023_v2 }
 0x5fa   :  { %18572 = vst [vmem:[#allocation58_spill] sm:$0xff] %v13278_v16 }
 0x5fb   :  { %v13283_v25 = vpop.permute.xlu0 %2985 }
 0x5fc   :  { %18573 = vst [vmem:[#allocation59_spill] sm:$0xff] %v13283_v25  ;;  %3139 = vbcast.lane.b32.xlu0 %v3133_v48, 264 }
 0x5fd   :  { %3135 = vbcast.lane.b32.xlu1 %v3133_v48, 256  ;;  %v13286_v52 = vpop.permute.xlu1 %2794  ;;  %v3342_v48 = vrot.slane %v2202_v32, %v13019_v6 }
 0x5ff   :  { %v13289_v3 = vpop.permute.xlu0 %2996 }
 0x600   :  { %18574 = vst [vmem:[#allocation60_spill] sm:$0xff] %v13289_v3  ;;  %3150 = vbcast.lane.b32.xlu0 %v3144_v42, 264 }
 0x601   :  { %3146 = vbcast.lane.b32.xlu1 %v3144_v42, 256  ;;  %v13291_v16 = vpop.permute.xlu1 %2981 }
 0x603   :  { %v13294_v45 = vpop.permute.xlu0 %3007 }
 0x604   :  { %18575 = vst [vmem:[#allocation61_spill] sm:$0xff] %v13294_v45  ;;  %3337 = vbcast.lane.b32.xlu0 %v3331_v58, 264 }
 0x605   :  { %3333 = vbcast.lane.b32.xlu1 %v3331_v58, 256  ;;  %v13296_v25 = vpop.permute.xlu1 %2992  ;;  %v3364_v58 = vrot.slane %v2202_v32, %v13027_v22 }
 0x606   :  { %18576 = vst [vmem:[#allocation62_spill] sm:$0xff] %v13296_v25 }
 0x607   :  { %v13299_v50 = vpop.permute.xlu0 %3018 }
 0x608   :  { %18577 = vst [vmem:[#allocation63_spill] sm:$0xff] %v13299_v50  ;;  %3348 = vbcast.lane.b32.xlu0 %v3342_v48, 264 }
 0x609   :  { %3344 = vbcast.lane.b32.xlu1 %v3342_v48, 256  ;;  %v13301_v40 = vpop.permute.xlu1 %3003  ;;  %v3375_v48 = vrot.slane %v2202_v32, %v13033_v46 }
 0x60a   :  { %18578 = vst [vmem:[#allocation64_spill] sm:$0xff] %v13301_v40 }
 0x60b   :  { %v13304_v54 = vpop.permute.xlu0 %3029 }
 0x60c   :  { %18579 = vst [vmem:[#allocation65_spill] sm:$0xff] %v13304_v54  ;;  %3359 = vbcast.lane.b32.xlu0 %v3353_v28, 264 }
 0x60d   :  { %3355 = vbcast.lane.b32.xlu1 %v3353_v28, 256  ;;  %v13306_v42 = vpop.permute.xlu1 %3014  ;;  %v3386_v28 = vrot.slane %v2202_v32, %v13037_v23 }
 0x60e   :  { %18580 = vst [vmem:[#allocation66_spill] sm:$0xff] %v13306_v42 }
 0x60f   :  { %v13309_v45 = vpop.permute.xlu0 %3040 }
 0x610   :  { %18581 = vst [vmem:[#allocation67_spill] sm:$0xff] %v13309_v45  ;;  %3370 = vbcast.lane.b32.xlu0 %v3364_v58, 264  ;;  %v2196_v45 = vpop.f32.mrf.mxu0 }
 0x611   :  { %3366 = vbcast.lane.b32.xlu1 %v3364_v58, 256  ;;  %v13311_v3 = vpop.permute.xlu1 %3025  ;;  %v3397_v58 = vrot.slane %v2202_v32, %v13047_v36 }
 0x612   :  { %18582 = vst [vmem:[#allocation68_spill] sm:$0xff] %v13311_v3 }
 0x613   :  { %v13314_v50 = vpop.permute.xlu0 %3051 }
 0x614   :  { %18583 = vst [vmem:[#allocation69_spill] sm:$0xff] %v13314_v50  ;;  %3381 = vbcast.lane.b32.xlu0 %v3375_v48, 264 }
 0x615   :  { %3377 = vbcast.lane.b32.xlu1 %v3375_v48, 256  ;;  %v13316_v40 = vpop.permute.xlu1 %3036  ;;  %v2197_v48 = vadd.f32 %v2196_v45, %v2110_v27 }
 0x616   :  { %18584 = vst [vmem:[#allocation70_spill] sm:$0xff] %v13316_v40  ;;  %v3408_v40 = vrot.slane %v2202_v32, %v13054_v31 }
 0x617   :  { %v13319_v54 = vpop.permute.xlu0 %3062  ;;  %v3265_v45 = vrot.slane %v2197_v48, %v13023_v2 }
 0x618   :  { %18585 = vst [vmem:[#allocation71_spill] sm:$0xff] %v13319_v54  ;;  %3392 = vbcast.lane.b32.xlu0 %v3386_v28, 264 }
 0x619   :  { %3388 = vbcast.lane.b32.xlu1 %v3386_v28, 256  ;;  %v13321_v42 = vpop.permute.xlu1 %3047  ;;  %v3243_v28 = vrot.slane %v2197_v48, %v12163_v24 }
 0x61a   :  { %18586 = vst [vmem:[#allocation72_spill] sm:$0xff] %v13321_v42 }
 0x61b   :  { %v13324_v3 = vpop.permute.xlu0 %2897 }
 0x61c   :  { %18587 = vst [vmem:[#allocation73_spill] sm:$0xff] %v13324_v3  ;;  %3403 = vbcast.lane.b32.xlu0 %v3397_v58, 264 }
 0x61d   :  { %3399 = vbcast.lane.b32.xlu1 %v3397_v58, 256  ;;  %v13326_v50 = vpop.permute.xlu1 %3058  ;;  %v3254_v58 = vrot.slane %v2197_v48, %v13019_v6 }
 0x61e   :  { %18588 = vst [vmem:[#allocation74_spill] sm:$0xff] %v13326_v50 }
 0x61f   :  { %v13329_v25 = vpop.permute.xlu0 %2908 }
 0x620   :  { %18589 = vst [vmem:[#allocation75_spill] sm:$0xff] %v13329_v25  ;;  %3414 = vbcast.lane.b32.xlu0 %v3408_v40, 264 }
 0x621   :  { %3410 = vbcast.lane.b32.xlu1 %v3408_v40, 256  ;;  %v13331_v54 = vpop.permute.xlu1 %2893 }
 0x622   :  { %18590 = vst [vmem:[#allocation76_spill] sm:$0xff] %v13331_v54 }
 0x623   :  { %v13334_v42 = vpop.permute.xlu0 %2919 }
 0x624   :  { %18591 = vst [vmem:[#allocation77_spill] sm:$0xff] %v13334_v42  ;;  %3249 = vbcast.lane.b32.xlu0 %v3243_v28, 264 }
 0x625   :  { %3245 = vbcast.lane.b32.xlu1 %v3243_v28, 256  ;;  %v13336_v3 = vpop.permute.xlu1 %2904  ;;  %v3276_v28 = vrot.slane %v2197_v48, %v13027_v22 }
 0x626   :  { %18592 = vst [vmem:[#allocation78_spill] sm:$0xff] %v13336_v3 }
 0x627   :  { %v13339_v50 = vpop.permute.xlu0 %2930 }
 0x628   :  { %18593 = vst [vmem:[#allocation79_spill] sm:$0xff] %v13339_v50  ;;  %3260 = vbcast.lane.b32.xlu0 %v3254_v58, 264 }
 0x629   :  { %3256 = vbcast.lane.b32.xlu1 %v3254_v58, 256  ;;  %v13341_v32 = vpop.permute.xlu1 %2915  ;;  %v3287_v58 = vrot.slane %v2197_v48, %v13033_v46 }
 0x62a   :  { %18594 = vst [vmem:[#allocation80_spill] sm:$0xff] %v13341_v32 }
 0x62b   :  { %v13344_v27 = vpop.permute.xlu0 %2941 }
 0x62c   :  { %18595 = vst [vmem:[#allocation81_spill] sm:$0xff] %v13344_v27  ;;  %3271 = vbcast.lane.b32.xlu0 %v3265_v45, 264 }
 0x62d   :  { %3267 = vbcast.lane.b32.xlu1 %v3265_v45, 256  ;;  %v13346_v40 = vpop.permute.xlu1 %2926  ;;  %v3298_v45 = vrot.slane %v2197_v48, %v13037_v23 }
 0x62e   :  { %18596 = vst [vmem:[#allocation82_spill] sm:$0xff] %v13346_v40  ;;  %v11337_v40 = vpop.f32.mrf.mxu1 }
 0x62f   :  { %v13349_v42 = vpop.permute.xlu0 %2952 }
 0x630   :  { %18597 = vst [vmem:[#allocation83_spill] sm:$0xff] %v13349_v42  ;;  %3282 = vbcast.lane.b32.xlu0 %v3276_v28, 264  ;;  %v2210_v42 = vrot.slane %v13030_v57, %v12141_v9  ;;  %v3320_v57 = vrot.slane %v2197_v48, %v13054_v31 }
 0x631   :  { %3278 = vbcast.lane.b32.xlu1 %v3276_v28, 256  ;;  %v13351_v25 = vpop.permute.xlu1 %2937 }
 0x632   :  { %18598 = vst [vmem:[#allocation84_spill] sm:$0xff] %v13351_v25  ;;  %v3309_v25 = vrot.slane %v2197_v48, %v13047_v36 }
 0x633   :  { %v13354_v50 = vpop.permute.xlu0 %2963 }
 0x634   :  { %18599 = vst [vmem:[#allocation85_spill] sm:$0xff] %v13354_v50  ;;  %3293 = vbcast.lane.b32.xlu0 %v3287_v58, 264  ;;  %v2214_v50 = vrot.slane %v12932_v34, %v12144_v11 }
 0x635   :  { %3289 = vbcast.lane.b32.xlu1 %v3287_v58, 256  ;;  %v13356_v32 = vpop.permute.xlu1 %2948 }
 0x636   :  { %18600 = vst [vmem:[#allocation86_spill] sm:$0xff] %v13356_v32  ;;  %v2215_v32 = vsel %vm1210_vm7, %v2214_v50, %v2210_v42 }
 0x637   :  { %v13359_v27 = vpop.permute.xlu0 %2974  ;;  %v2307_v3 = vadd.f32 %v11337_v40, %v2215_v32 }
 0x638   :  { %18601 = vst [vmem:[#allocation87_spill] sm:$0xff] %v13359_v27  ;;  %3304 = vbcast.lane.b32.xlu0 %v3298_v45, 264 }
 0x639   :  { %3300 = vbcast.lane.b32.xlu1 %v3298_v45, 256  ;;  %v13363_v28 = vpop.permute.xlu1 %2959  ;;  %v3507_v34 = vrot.slane %v2307_v3, %v12163_v24  ;;  %v3529_v48 = vrot.slane %v2307_v3, %v13023_v2 }
 0x63a   :  { %18602 = vst [vmem:[#allocation88_spill] sm:$0xff] %v13363_v28 }
 0x63b   :  { %v13368_v58 = vpop.permute.xlu0 %3161 }
 0x63c   :  { %18603 = vst [vmem:[#allocation89_spill] sm:$0xff] %v13368_v58  ;;  %3315 = vbcast.lane.b32.xlu0 %v3309_v25, 264 }
 0x63d   :  { %3311 = vbcast.lane.b32.xlu1 %v3309_v25, 256  ;;  %v13371_v27 = vpop.permute.xlu1 %2970  ;;  %v3518_v25 = vrot.slane %v2307_v3, %v13019_v6 }
 0x63f   :  { %v13374_v45 = vpop.permute.xlu0 %3172 }
 0x640   :  { %18604 = vst [vmem:[#allocation90_spill] sm:$0xff] %v13374_v45  ;;  %3326 = vbcast.lane.b32.xlu0 %v3320_v57, 264 }
 0x641   :  { %3322 = vbcast.lane.b32.xlu1 %v3320_v57, 256  ;;  %v13376_v28 = vpop.permute.xlu1 %3157 }
 0x643   :  { %v13379_v54 = vpop.permute.xlu0 %3183 }
 0x644   :  { %18605 = vst [vmem:[#allocation91_spill] sm:$0xff] %v13379_v54  ;;  %3513 = vbcast.lane.b32.xlu0 %v3507_v34, 264 }
 0x645   :  { %3509 = vbcast.lane.b32.xlu1 %v3507_v34, 256  ;;  %v13381_v58 = vpop.permute.xlu1 %3168  ;;  %v3540_v34 = vrot.slane %v2307_v3, %v13027_v22 }
 0x646   :  { %18606 = vst [vmem:[#allocation92_spill] sm:$0xff] %v13381_v58 }
 0x647   :  { %v13384_v50 = vpop.permute.xlu0 %3194 }
 0x648   :  { %18607 = vst [vmem:[#allocation93_spill] sm:$0xff] %v13384_v50  ;;  %3524 = vbcast.lane.b32.xlu0 %v3518_v25, 264 }
 0x649   :  { %3520 = vbcast.lane.b32.xlu1 %v3518_v25, 256  ;;  %v13386_v42 = vpop.permute.xlu1 %3179  ;;  %v3551_v25 = vrot.slane %v2307_v3, %v13033_v46 }
 0x64a   :  { %18608 = vst [vmem:[#allocation94_spill] sm:$0xff] %v13386_v42 }
 0x64b   :  { %v13389_v40 = vpop.permute.xlu0 %3205 }
 0x64c   :  { %18609 = vst [vmem:[#allocation95_spill] sm:$0xff] %v13389_v40  ;;  %3535 = vbcast.lane.b32.xlu0 %v3529_v48, 264 }
 0x64d   :  { %3531 = vbcast.lane.b32.xlu1 %v3529_v48, 256  ;;  %v13391_v57 = vpop.permute.xlu1 %3190  ;;  %v3562_v48 = vrot.slane %v2307_v3, %v13037_v23 }
 0x64e   :  { %18610 = vst [vmem:[#allocation96_spill] sm:$0xff] %v13391_v57 }
 0x64f   :  { %v13394_v54 = vpop.permute.xlu0 %3216 }
 0x650   :  { %18611 = vst [vmem:[#allocation97_spill] sm:$0xff] %v13394_v54  ;;  %3546 = vbcast.lane.b32.xlu0 %v3540_v34, 264  ;;  %v2301_v54 = vpop.f32.mrf.mxu1 }
 0x651   :  { %3542 = vbcast.lane.b32.xlu1 %v3540_v34, 256  ;;  %v13396_v45 = vpop.permute.xlu1 %3201  ;;  %v3573_v34 = vrot.slane %v2307_v3, %v13047_v36 }
 0x652   :  { %18612 = vst [vmem:[#allocation98_spill] sm:$0xff] %v13396_v45 }
 0x653   :  { %v13399_v50 = vpop.permute.xlu0 %3227 }
 0x654   :  { %18613 = vst [vmem:[#allocation99_spill] sm:$0xff] %v13399_v50  ;;  %3557 = vbcast.lane.b32.xlu0 %v3551_v25, 264 }
 0x655   :  { %3553 = vbcast.lane.b32.xlu1 %v3551_v25, 256  ;;  %v13401_v42 = vpop.permute.xlu1 %3212  ;;  %v2302_v25 = vadd.f32 %v2301_v54, %v2215_v32 }
 0x656   :  { %18614 = vst [vmem:[#allocation100_spill] sm:$0xff] %v13401_v42  ;;  %v3584_v42 = vrot.slane %v2307_v3, %v13054_v31 }
 0x657   :  { %v13404_v40 = vpop.permute.xlu0 %3238  ;;  %v3441_v54 = vrot.slane %v2302_v25, %v13023_v2 }
 0x658   :  { %18615 = vst [vmem:[#allocation101_spill] sm:$0xff] %v13404_v40  ;;  %3568 = vbcast.lane.b32.xlu0 %v3562_v48, 264 }
 0x659   :  { %3564 = vbcast.lane.b32.xlu1 %v3562_v48, 256  ;;  %v13406_v57 = vpop.permute.xlu1 %3223  ;;  %v3419_v48 = vrot.slane %v2302_v25, %v12163_v24 }
 0x65a   :  { %18616 = vst [vmem:[#allocation102_spill] sm:$0xff] %v13406_v57 }
 0x65b   :  { %v13409_v45 = vpop.permute.xlu0 %3073 }
 0x65c   :  { %18617 = vst [vmem:[#allocation103_spill] sm:$0xff] %v13409_v45  ;;  %3579 = vbcast.lane.b32.xlu0 %v3573_v34, 264 }
 0x65d   :  { %3575 = vbcast.lane.b32.xlu1 %v3573_v34, 256  ;;  %v13411_v50 = vpop.permute.xlu1 %3234  ;;  %v3430_v34 = vrot.slane %v2302_v25, %v13019_v6 }
 0x65e   :  { %18618 = vst [vmem:[#allocation104_spill] sm:$0xff] %v13411_v50 }
 0x65f   :  { %v13414_v58 = vpop.permute.xlu0 %3084 }
 0x660   :  { %18619 = vst [vmem:[#allocation105_spill] sm:$0xff] %v13414_v58  ;;  %3590 = vbcast.lane.b32.xlu0 %v3584_v42, 264 }
 0x661   :  { %3586 = vbcast.lane.b32.xlu1 %v3584_v42, 256  ;;  %v13416_v40 = vpop.permute.xlu1 %3069 }
 0x662   :  { %18620 = vst [vmem:[#allocation106_spill] sm:$0xff] %v13416_v40 }
 0x663   :  { %v13419_v57 = vpop.permute.xlu0 %3095 }
 0x664   :  { %18621 = vst [vmem:[#allocation107_spill] sm:$0xff] %v13419_v57  ;;  %3425 = vbcast.lane.b32.xlu0 %v3419_v48, 264 }
 0x665   :  { %3421 = vbcast.lane.b32.xlu1 %v3419_v48, 256  ;;  %v13421_v45 = vpop.permute.xlu1 %3080  ;;  %v3452_v48 = vrot.slane %v2302_v25, %v13027_v22 }
 0x666   :  { %18622 = vst [vmem:[#allocation108_spill] sm:$0xff] %v13421_v45 }
 0x667   :  { %v13424_v50 = vpop.permute.xlu0 %3106 }
 0x668   :  { %18623 = vst [vmem:[#allocation109_spill] sm:$0xff] %v13424_v50  ;;  %3436 = vbcast.lane.b32.xlu0 %v3430_v34, 264 }
 0x669   :  { %3432 = vbcast.lane.b32.xlu1 %v3430_v34, 256  ;;  %v13426_v3 = vpop.permute.xlu1 %3091  ;;  %v3463_v34 = vrot.slane %v2302_v25, %v13033_v46 }
 0x66a   :  { %18624 = vst [vmem:[#allocation110_spill] sm:$0xff] %v13426_v3 }
 0x66b   :  { %v13429_v32 = vpop.permute.xlu0 %3117 }
 0x66c   :  { %18625 = vst [vmem:[#allocation111_spill] sm:$0xff] %v13429_v32  ;;  %3447 = vbcast.lane.b32.xlu0 %v3441_v54, 264 }
 0x66d   :  { %3443 = vbcast.lane.b32.xlu1 %v3441_v54, 256  ;;  %v13431_v42 = vpop.permute.xlu1 %3102  ;;  %v3474_v54 = vrot.slane %v2302_v25, %v13037_v23 }
 0x66e   :  { %18626 = vst [vmem:[#allocation112_spill] sm:$0xff] %v13431_v42  ;;  %v11344_v42 = vpop.f32.mrf.mxu0 }
 0x66f   :  { %v13434_v57 = vpop.permute.xlu0 %3128 }
 0x670   :  { %18627 = vst [vmem:[#allocation113_spill] sm:$0xff] %v13434_v57  ;;  %3458 = vbcast.lane.b32.xlu0 %v3452_v48, 264  ;;  %v2315_v57 = vrot.slane %v13076_v62, %v12141_v9  ;;  %v3496_v62 = vrot.slane %v2302_v25, %v13054_v31 }
 0x671   :  { %3454 = vbcast.lane.b32.xlu1 %v3452_v48, 256  ;;  %v13436_v58 = vpop.permute.xlu1 %3113 }
 0x672   :  { %18628 = vst [vmem:[#allocation114_spill] sm:$0xff] %v13436_v58  ;;  %v3485_v58 = vrot.slane %v2302_v25, %v13047_v36 }
 0x673   :  { %v13439_v50 = vpop.permute.xlu0 %3139 }
 0x674   :  { %18629 = vst [vmem:[#allocation115_spill] sm:$0xff] %v13439_v50  ;;  %3469 = vbcast.lane.b32.xlu0 %v3463_v34, 264  ;;  %v2319_v50 = vrot.slane %v13043_v20, %v12144_v11 }
 0x675   :  { %3465 = vbcast.lane.b32.xlu1 %v3463_v34, 256  ;;  %v13441_v3 = vpop.permute.xlu1 %3124 }
 0x676   :  { %18630 = vst [vmem:[#allocation116_spill] sm:$0xff] %v13441_v3  ;;  %v2320_v3 = vsel %vm1210_vm7, %v2319_v50, %v2315_v57 }
 0x677   :  { %v13444_v32 = vpop.permute.xlu0 %3150  ;;  %v2412_v45 = vadd.f32 %v11344_v42, %v2320_v3 }
 0x678   :  { %18631 = vst [vmem:[#allocation117_spill] sm:$0xff] %v13444_v32  ;;  %3480 = vbcast.lane.b32.xlu0 %v3474_v54, 264 }
 0x679   :  { %3476 = vbcast.lane.b32.xlu1 %v3474_v54, 256  ;;  %v13448_v48 = vpop.permute.xlu1 %3135  ;;  %v3683_v20 = vrot.slane %v2412_v45, %v12163_v24  ;;  %v3694_v50 = vrot.slane %v2412_v45, %v13019_v6  ;;  %v3705_v42 = vrot.slane %v2412_v45, %v13023_v2 }
 0x67a   :  { %18632 = vst [vmem:[#allocation118_spill] sm:$0xff] %v13448_v48 }
 0x67b   :  { %v13453_v34 = vpop.permute.xlu0 %3337 }
 0x67c   :  { %18633 = vst [vmem:[#allocation119_spill] sm:$0xff] %v13453_v34  ;;  %3491 = vbcast.lane.b32.xlu0 %v3485_v58, 264 }
 0x67d   :  { %3487 = vbcast.lane.b32.xlu1 %v3485_v58, 256  ;;  %v13456_v32 = vpop.permute.xlu1 %3146  ;;  %v12069_v58 = vmov 0  }
 0x67e   :  { %11358 = vset.pattern.permute.xlu0 %v12069_v58  ;;  %11359 = vset.pattern.permute.xlu1 %v12069_v58 }
 0x67f   :  { %v13459_v54 = vpop.permute.xlu0 %3348 }
 0x680   :  { %18634 = vst [vmem:[#allocation120_spill] sm:$0xff] %v13459_v54  ;;  %3502 = vbcast.lane.b32.xlu0 %v3496_v62, 264 }
 0x681   :  { %3498 = vbcast.lane.b32.xlu1 %v3496_v62, 256  ;;  %v13461_v48 = vpop.permute.xlu1 %3333 }
 0x683   :  { %v13464_v40 = vpop.permute.xlu0 %3359 }
 0x684   :  { %18635 = vst [vmem:[#allocation121_spill] sm:$0xff] %v13464_v40  ;;  %3689 = vbcast.lane.b32.xlu0 %v3683_v20, 264  ;;  %v3716_v40 = vrot.slane %v2412_v45, %v13027_v22 }
 0x685   :  { %3685 = vbcast.lane.b32.xlu1 %v3683_v20, 256  ;;  %v13466_v34 = vpop.permute.xlu1 %3344 }
 0x686   :  { %18636 = vst [vmem:[#allocation122_spill] sm:$0xff] %v13466_v34 }
 0x687   :  { %v13469_v57 = vpop.permute.xlu0 %3370 }
 0x688   :  { %18637 = vst [vmem:[#allocation123_spill] sm:$0xff] %v13469_v57  ;;  %3700 = vbcast.lane.b32.xlu0 %v3694_v50, 264 }
 0x689   :  { %3696 = vbcast.lane.b32.xlu1 %v3694_v50, 256  ;;  %v13471_v25 = vpop.permute.xlu1 %3355  ;;  %v3727_v50 = vrot.slane %v2412_v45, %v13033_v46 }
 0x68a   :  { %18638 = vst [vmem:[#allocation124_spill] sm:$0xff] %v13471_v25 }
 0x68b   :  { %v13474_v62 = vpop.permute.xlu0 %3381 }
 0x68c   :  { %18639 = vst [vmem:[#allocation125_spill] sm:$0xff] %v13474_v62  ;;  %3711 = vbcast.lane.b32.xlu0 %v3705_v42, 264 }
 0x68d   :  { %3707 = vbcast.lane.b32.xlu1 %v3705_v42, 256  ;;  %v13476_v20 = vpop.permute.xlu1 %3366  ;;  %v3738_v42 = vrot.slane %v2412_v45, %v13037_v23 }
 0x68e   :  { %18640 = vst [vmem:[#allocation126_spill] sm:$0xff] %v13476_v20 }
 0x68f   :  { %v13479_v54 = vpop.permute.xlu0 %3392 }
 0x690   :  { %18641 = vst [vmem:[#allocation127_spill] sm:$0xff] %v13479_v54  ;;  %3722 = vbcast.lane.b32.xlu0 %v3716_v40, 264  ;;  %v2406_v54 = vpop.f32.mrf.mxu0 }
 0x691   :  { %3718 = vbcast.lane.b32.xlu1 %v3716_v40, 256  ;;  %v13481_v58 = vpop.permute.xlu1 %3377  ;;  %v3749_v40 = vrot.slane %v2412_v45, %v13047_v36 }
 0x692   :  { %18642 = vst [vmem:[#allocation128_spill] sm:$0xff] %v13481_v58 }
 0x693   :  { %v13484_v57 = vpop.permute.xlu0 %3403 }
 0x694   :  { %18643 = vst [vmem:[#allocation129_spill] sm:$0xff] %v13484_v57  ;;  %3733 = vbcast.lane.b32.xlu0 %v3727_v50, 264 }
 0x695   :  { %3729 = vbcast.lane.b32.xlu1 %v3727_v50, 256  ;;  %v13486_v25 = vpop.permute.xlu1 %3388  ;;  %v2407_v50 = vadd.f32 %v2406_v54, %v2320_v3 }
 0x696   :  { %18644 = vst [vmem:[#allocation130_spill] sm:$0xff] %v13486_v25  ;;  %v3760_v25 = vrot.slane %v2412_v45, %v13054_v31 }
 0x697   :  { %v13489_v62 = vpop.permute.xlu0 %3414  ;;  %v3617_v3 = vrot.slane %v2407_v50, %v13023_v2 }
 0x698   :  { %18645 = vst [vmem:[#allocation131_spill] sm:$0xff] %v13489_v62  ;;  %3744 = vbcast.lane.b32.xlu0 %v3738_v42, 264 }
 0x699   :  { %3740 = vbcast.lane.b32.xlu1 %v3738_v42, 256  ;;  %v13491_v20 = vpop.permute.xlu1 %3399  ;;  %v3595_v42 = vrot.slane %v2407_v50, %v12163_v24 }
 0x69a   :  { %18646 = vst [vmem:[#allocation132_spill] sm:$0xff] %v13491_v20 }
 0x69b   :  { %v13494_v58 = vpop.permute.xlu0 %3249 }
 0x69c   :  { %18647 = vst [vmem:[#allocation133_spill] sm:$0xff] %v13494_v58  ;;  %3755 = vbcast.lane.b32.xlu0 %v3749_v40, 264 }
 0x69d   :  { %3751 = vbcast.lane.b32.xlu1 %v3749_v40, 256  ;;  %v13496_v57 = vpop.permute.xlu1 %3410  ;;  %v3606_v40 = vrot.slane %v2407_v50, %v13019_v6 }
 0x69e   :  { %18648 = vst [vmem:[#allocation134_spill] sm:$0xff] %v13496_v57 }
 0x69f   :  { %v13499_v34 = vpop.permute.xlu0 %3260 }
 0x6a0   :  { %18649 = vst [vmem:[#allocation135_spill] sm:$0xff] %v13499_v34  ;;  %3766 = vbcast.lane.b32.xlu0 %v3760_v25, 264 }
 0x6a1   :  { %3762 = vbcast.lane.b32.xlu1 %v3760_v25, 256  ;;  %v13501_v62 = vpop.permute.xlu1 %3245 }
 0x6a3   :  { %v13504_v20 = vpop.permute.xlu0 %3271 }
 0x6a4   :  { %18650 = vst [vmem:[#allocation136_spill] sm:$0xff] %v13504_v20  ;;  %3601 = vbcast.lane.b32.xlu0 %v3595_v42, 264 }
 0x6a5   :  { %3597 = vbcast.lane.b32.xlu1 %v3595_v42, 256  ;;  %v13506_v58 = vpop.permute.xlu1 %3256  ;;  %v3628_v42 = vrot.slane %v2407_v50, %v13027_v22 }
 0x6a6   :  { %18651 = vst [vmem:[#allocation137_spill] sm:$0xff] %v13506_v58 }
 0x6a7   :  { %v13509_v57 = vpop.permute.xlu0 %3282 }
 0x6a8   :  { %18652 = vst [vmem:[#allocation138_spill] sm:$0xff] %v13509_v57  ;;  %3612 = vbcast.lane.b32.xlu0 %v3606_v40, 264 }
 0x6a9   :  { %3608 = vbcast.lane.b32.xlu1 %v3606_v40, 256  ;;  %v13511_v45 = vpop.permute.xlu1 %3267  ;;  %v3639_v40 = vrot.slane %v2407_v50, %v13033_v46 }
 0x6aa   :  { %18653 = vst [vmem:[#allocation139_spill] sm:$0xff] %v13511_v45 }
 0x6ab   :  { %v13514_v54 = vpop.permute.xlu0 %3293 }
 0x6ac   :  { %18654 = vst [vmem:[#allocation140_spill] sm:$0xff] %v13514_v54  ;;  %3623 = vbcast.lane.b32.xlu0 %v3617_v3, 264 }
 0x6ad   :  { %3619 = vbcast.lane.b32.xlu1 %v3617_v3, 256  ;;  %v13516_v25 = vpop.permute.xlu1 %3278  ;;  %v3650_v3 = vrot.slane %v2407_v50, %v13037_v23 }
 0x6ae   :  { %18655 = vst [vmem:[#allocation141_spill] sm:$0xff] %v13516_v25  ;;  %v11351_v25 = vpop.f32.mrf.mxu1 }
 0x6af   :  { %v13519_v20 = vpop.permute.xlu0 %3304 }
 0x6b0   :  { %18656 = vst [vmem:[#allocation142_spill] sm:$0xff] %v13519_v20  ;;  %3634 = vbcast.lane.b32.xlu0 %v3628_v42, 264  ;;  %v2420_v20 = vrot.slane %v13106_v44, %v12141_v9  ;;  %v3672_v44 = vrot.slane %v2407_v50, %v13054_v31 }
 0x6b1   :  { %3630 = vbcast.lane.b32.xlu1 %v3628_v42, 256  ;;  %v13521_v34 = vpop.permute.xlu1 %3289 }
 0x6b2   :  { %18657 = vst [vmem:[#allocation143_spill] sm:$0xff] %v13521_v34  ;;  %v3661_v34 = vrot.slane %v2407_v50, %v13047_v36 }
 0x6b3   :  { %v13524_v57 = vpop.permute.xlu0 %3315 }
 0x6b4   :  { %18658 = vst [vmem:[#allocation144_spill] sm:$0xff] %v13524_v57  ;;  %3645 = vbcast.lane.b32.xlu0 %v3639_v40, 264  ;;  %v2424_v57 = vrot.slane %v13083_v60, %v12144_v11 }
 0x6b5   :  { %3641 = vbcast.lane.b32.xlu1 %v3639_v40, 256  ;;  %v13526_v45 = vpop.permute.xlu1 %3300 }
 0x6b6   :  { %18659 = vst [vmem:[#allocation145_spill] sm:$0xff] %v13526_v45  ;;  %v2425_v45 = vsel %vm1210_vm7, %v2424_v57, %v2420_v20 }
 0x6b7   :  { %v13529_v54 = vpop.permute.xlu0 %3326  ;;  %v2517_v58 = vadd.f32 %v11351_v25, %v2425_v45 }
 0x6b8   :  { %18660 = vst [vmem:[#allocation146_spill] sm:$0xff] %v13529_v54  ;;  %3656 = vbcast.lane.b32.xlu0 %v3650_v3, 264 }
 0x6b9   :  { %3652 = vbcast.lane.b32.xlu1 %v3650_v3, 256  ;;  %v13533_v42 = vpop.permute.xlu1 %3311  ;;  %v3859_v60 = vrot.slane %v2517_v58, %v12163_v24  ;;  %v3881_v50 = vrot.slane %v2517_v58, %v13023_v2 }
 0x6bb   :  { %v13538_v40 = vpop.permute.xlu0 %3513 }
 0x6bc   :  { %18661 = vst [vmem:[#allocation147_spill] sm:$0xff] %v13538_v40  ;;  %3667 = vbcast.lane.b32.xlu0 %v3661_v34, 264 }
 0x6bd   :  { %3663 = vbcast.lane.b32.xlu1 %v3661_v34, 256  ;;  %v13541_v54 = vpop.permute.xlu1 %3322  ;;  %v3870_v34 = vrot.slane %v2517_v58, %v13019_v6 }
 0x6bf   :  { %v13544_v3 = vpop.permute.xlu0 %3524 }
 0x6c0   :  { %18662 = vst [vmem:[#allocation148_spill] sm:$0xff] %v13544_v3  ;;  %3678 = vbcast.lane.b32.xlu0 %v3672_v44, 264 }
 0x6c1   :  { %3674 = vbcast.lane.b32.xlu1 %v3672_v44, 256  ;;  %v13546_v9 = vpop.permute.xlu1 %3509 }
 0x6c3   :  { %v13549_v11 = vpop.permute.xlu0 %3535 }
 0x6c4   :  { %18663 = vst [vmem:[#allocation149_spill] sm:$0xff] %v13549_v11  ;;  %3865 = vbcast.lane.b32.xlu0 %v3859_v60, 264 }
 0x6c5   :  { %3861 = vbcast.lane.b32.xlu1 %v3859_v60, 256  ;;  %v13551_v40 = vpop.permute.xlu1 %3520  ;;  %v3892_v60 = vrot.slane %v2517_v58, %v13027_v22 }
 0x6c6   :  { %18664 = vst [vmem:[#allocation150_spill] sm:$0xff] %v13551_v40 }
 0x6c7   :  { %v13554_v57 = vpop.permute.xlu0 %3546 }
 0x6c8   :  { %18665 = vst [vmem:[#allocation151_spill] sm:$0xff] %v13554_v57  ;;  %3876 = vbcast.lane.b32.xlu0 %v3870_v34, 264 }
 0x6c9   :  { %3872 = vbcast.lane.b32.xlu1 %v3870_v34, 256  ;;  %v13556_v20 = vpop.permute.xlu1 %3531  ;;  %v3903_v34 = vrot.slane %v2517_v58, %v13033_v46 }
 0x6ca   :  { %18666 = vst [vmem:[#allocation152_spill] sm:$0xff] %v13556_v20 }
 0x6cb   :  { %v13559_v25 = vpop.permute.xlu0 %3557 }
 0x6cc   :  { %18667 = vst [vmem:[#allocation153_spill] sm:$0xff] %v13559_v25  ;;  %3887 = vbcast.lane.b32.xlu0 %v3881_v50, 264 }
 0x6cd   :  { %3883 = vbcast.lane.b32.xlu1 %v3881_v50, 256  ;;  %v13561_v44 = vpop.permute.xlu1 %3542  ;;  %v3914_v50 = vrot.slane %v2517_v58, %v13037_v23 }
 0x6ce   :  { %18668 = vst [vmem:[#allocation154_spill] sm:$0xff] %v13561_v44 }
 0x6cf   :  { %v13564_v11 = vpop.permute.xlu0 %3568 }
 0x6d0   :  { %18669 = vst [vmem:[#allocation155_spill] sm:$0xff] %v13564_v11  ;;  %3898 = vbcast.lane.b32.xlu0 %v3892_v60, 264  ;;  %v2511_v11 = vpop.f32.mrf.mxu1 }
 0x6d1   :  { %3894 = vbcast.lane.b32.xlu1 %v3892_v60, 256  ;;  %v13566_v3 = vpop.permute.xlu1 %3553  ;;  %v3925_v60 = vrot.slane %v2517_v58, %v13047_v36 }
 0x6d2   :  { %18670 = vst [vmem:[#allocation156_spill] sm:$0xff] %v13566_v3 }
 0x6d3   :  { %v13569_v57 = vpop.permute.xlu0 %3579 }
 0x6d4   :  { %18671 = vst [vmem:[#allocation157_spill] sm:$0xff] %v13569_v57  ;;  %3909 = vbcast.lane.b32.xlu0 %v3903_v34, 264 }
 0x6d5   :  { %3905 = vbcast.lane.b32.xlu1 %v3903_v34, 256  ;;  %v13571_v20 = vpop.permute.xlu1 %3564  ;;  %v2512_v34 = vadd.f32 %v2511_v11, %v2425_v45 }
 0x6d6   :  { %18672 = vst [vmem:[#allocation158_spill] sm:$0xff] %v13571_v20  ;;  %v3936_v20 = vrot.slane %v2517_v58, %v13054_v31 }
 0x6d7   :  { %v13574_v25 = vpop.permute.xlu0 %3590  ;;  %v3793_v58 = vrot.slane %v2512_v34, %v13023_v2 }
 0x6d8   :  { %18673 = vst [vmem:[#allocation159_spill] sm:$0xff] %v13574_v25  ;;  %3920 = vbcast.lane.b32.xlu0 %v3914_v50, 264 }
 0x6d9   :  { %3916 = vbcast.lane.b32.xlu1 %v3914_v50, 256  ;;  %v13576_v44 = vpop.permute.xlu1 %3575  ;;  %v3771_v50 = vrot.slane %v2512_v34, %v12163_v24 }
 0x6da   :  { %18674 = vst [vmem:[#allocation160_spill] sm:$0xff] %v13576_v44 }
 0x6db   :  { %v13579_v3 = vpop.permute.xlu0 %3425 }
 0x6dc   :  { %18675 = vst [vmem:[#allocation161_spill] sm:$0xff] %v13579_v3  ;;  %3931 = vbcast.lane.b32.xlu0 %v3925_v60, 264 }
 0x6dd   :  { %3927 = vbcast.lane.b32.xlu1 %v3925_v60, 256  ;;  %v13581_v57 = vpop.permute.xlu1 %3586  ;;  %v3782_v60 = vrot.slane %v2512_v34, %v13019_v6 }
 0x6de   :  { %18676 = vst [vmem:[#allocation162_spill] sm:$0xff] %v13581_v57 }
 0x6df   :  { %v13584_v40 = vpop.permute.xlu0 %3436 }
 0x6e0   :  { %3942 = vbcast.lane.b32.xlu0 %v3936_v20, 264 }
 0x6e1   :  { %3938 = vbcast.lane.b32.xlu1 %v3936_v20, 256  ;;  %v13586_v25 = vpop.permute.xlu1 %3421 }
 0x6e3   :  { %v13589_v44 = vpop.permute.xlu0 %3447 }
 0x6e4   :  { %3777 = vbcast.lane.b32.xlu0 %v3771_v50, 264 }
 0x6e5   :  { %3773 = vbcast.lane.b32.xlu1 %v3771_v50, 256  ;;  %v13591_v3 = vpop.permute.xlu1 %3432  ;;  %v3804_v50 = vrot.slane %v2512_v34, %v13027_v22 }
 0x6e7   :  { %v13594_v57 = vpop.permute.xlu0 %3458 }
 0x6e8   :  { %18677 = vst [vmem:[#allocation163_spill] sm:$0xff] %v13594_v57  ;;  %3788 = vbcast.lane.b32.xlu0 %v3782_v60, 264 }
 0x6e9   :  { %3784 = vbcast.lane.b32.xlu1 %v3782_v60, 256  ;;  %v13596_v11 = vpop.permute.xlu1 %3443  ;;  %v3815_v60 = vrot.slane %v2512_v34, %v13033_v46 }
 0x6eb   :  { %v13599_v45 = vpop.permute.xlu0 %3469 }
 0x6ec   :  { %18678 = vst [vmem:[#allocation164_spill] sm:$0xff] %v13599_v45  ;;  %3799 = vbcast.lane.b32.xlu0 %v3793_v58, 264 }
 0x6ed   :  { %3795 = vbcast.lane.b32.xlu1 %v3793_v58, 256  ;;  %v13601_v20 = vpop.permute.xlu1 %3454  ;;  %v3826_v58 = vrot.slane %v2512_v34, %v13037_v23  ;;  %v4217_v23 = vadd.f32 %v13113_v12, %v12903_v4 }
 0x6ef   :  { %v13604_v24 = vpop.permute.xlu0 %3480 }
 0x6f0   :  { %18679 = vst [vmem:[#allocation165_spill] sm:$0xff] %v13604_v24  ;;  %3810 = vbcast.lane.b32.xlu0 %v3804_v50, 264 }
 0x6f1   :  { %3806 = vbcast.lane.b32.xlu1 %v3804_v50, 256  ;;  %v13606_v6 = vpop.permute.xlu1 %3465  ;;  %v3837_v50 = vrot.slane %v2512_v34, %v13047_v36 }
 0x6f3   :  { %v13609_v57 = vpop.permute.xlu0 %3491 }
 0x6f4   :  { %18680 = vst [vmem:[#allocation166_spill] sm:$0xff] %v13609_v57  ;;  %3821 = vbcast.lane.b32.xlu0 %v3815_v60, 264  ;;  %v3848_v57 = vrot.slane %v2512_v34, %v13054_v31 }
 0x6f5   :  { %3817 = vbcast.lane.b32.xlu1 %v3815_v60, 256  ;;  %v13611_v2 = vpop.permute.xlu1 %3476  ;;  %v4216_v60 = vadd.f32 %v13121_v56, %v12895_v13  ;;  %v4219_v56 = vadd.f32 %v13119_v38, %v12903_v4 }
 0x6f7   :  { %v13614_v45 = vpop.permute.xlu0 %3502  ;;  %v13632_v36 = vmul.f32 -0.5, %v4216_v60  ;;  %v4220_v60 = vadd.f32 %v13131_v15, %v12895_v13  ;;  %v13650_v31 = vmul.f32 -0.5, %v4219_v56  ;;  %v4223_v15 = vadd.f32 %v13129_v17, %v12903_v4 }
 0x6f8   :  { %18681 = vst [vmem:[#allocation167_spill] sm:$0xff] %v13614_v45  ;;  %3832 = vbcast.lane.b32.xlu0 %v3826_v58, 264 }
 0x6f9   :  { %3828 = vbcast.lane.b32.xlu1 %v3826_v58, 256  ;;  %v13616_v22 = vpop.permute.xlu1 %3487  ;;  %18683 = vst [vmem:[#allocation169_spill] sm:$0xff] %v13632_v36  ;;  %18686 = vst [vmem:[#allocation172_spill] sm:$0xff] %v13650_v31 }
 0x6fb   :  { %v13619_v24 = vpop.permute.xlu0 %3689 }
 0x6fc   :  { %18682 = vst [vmem:[#allocation168_spill] sm:$0xff] %v13619_v24  ;;  %3843 = vbcast.lane.b32.xlu0 %v3837_v50, 264  ;;  %v13636_v24 = vmul.f32 -0.5, %v4217_v23  ;;  %v4221_v23 = vadd.f32 %v13124_v0, %v12903_v4 }
 0x6fd   :  { %3839 = vbcast.lane.b32.xlu1 %v3837_v50, 256  ;;  %v13621_v46 = vpop.permute.xlu1 %3498  ;;  %v4218_v50 = vadd.f32 %v13126_v33, %v12895_v13 }
 0x6fe   :  { %18684 = vst [vmem:[#allocation170_spill] sm:$0xff] %v13636_v24 }
 0x6ff   :  { %v13628_v45 = vpop.permute.xlu0 %3700 }
 0x700   :  { %3854 = vbcast.lane.b32.xlu0 %v3848_v57, 264 }
 0x701   :  { %3850 = vbcast.lane.b32.xlu1 %v3848_v57, 256  ;;  %v13630_v58 = vpop.permute.xlu1 %3685  ;;  %v13646_v57 = vmul.f32 -0.5, %v4218_v50  ;;  %v4222_v50 = vadd.f32 %v13136_v5, %v12895_v13  ;;  %v4225_v5 = vadd.f32 %v13134_v41, %v12903_v4 }
 0x703   :  { %v13640_v34 = vpop.permute.xlu0 %3711  ;;  %18685 = vst [vmem:[#allocation171_spill] sm:$0xff] %v13646_v57 }
 0x704   :  { %5017 = vperm.xlu0 %11358, %v13632_v36   ;;  %v13664_v36 = vmul.f32 -0.5, %v4221_v23 }
 0x705   :  { %5020 = vperm.xlu1 %11359, %v13636_v24   ;;  %v13644_v12 = vpop.permute.xlu1 %3696  ;;  %v13660_v24 = vmul.f32 -0.5, %v4220_v60  ;;  %v4224_v60 = vadd.f32 %v13141_v39, %v12895_v13  ;;  %v4227_v39 = vadd.f32 %v13139_v61, %v12903_v4 }
 0x706   :  { %18688 = vst [vmem:[#allocation174_spill] sm:$0xff] %v13664_v36 }
 0x707   :  { %v13654_v33 = vpop.permute.xlu0 %3722  ;;  %18687 = vst [vmem:[#allocation173_spill] sm:$0xff] %v13660_v24 }
 0x708   :  { %5023 = vperm.xlu0 %11358, %v13646_v57   ;;  %v13678_v57 = vmul.f32 -0.5, %v4223_v15 }
 0x709   :  { %5026 = vperm.xlu1 %11359, %v13650_v31   ;;  %v13658_v38 = vpop.permute.xlu1 %3707  ;;  %v13674_v31 = vmul.f32 -0.5, %v4222_v50  ;;  %v4226_v50 = vadd.f32 %v13146_v10, %v12895_v13  ;;  %v4229_v10 = vadd.f32 %v13144_v21, %v12903_v4 }
 0x70a   :  { %18690 = vst [vmem:[#allocation176_spill] sm:$0xff] %v13678_v57 }
 0x70b   :  { %v13668_v56 = vpop.permute.xlu0 %3733  ;;  %18689 = vst [vmem:[#allocation175_spill] sm:$0xff] %v13674_v31 }
 0x70c   :  { %5029 = vperm.xlu0 %11358, %v13660_v24   ;;  %v13692_v24 = vmul.f32 -0.5, %v4225_v5 }
 0x70d   :  { %5032 = vperm.xlu1 %11359, %v13664_v36   ;;  %v13672_v0 = vpop.permute.xlu1 %3718  ;;  %v13688_v36 = vmul.f32 -0.5, %v4224_v60  ;;  %v4228_v60 = vadd.f32 %v13151_v14, %v12895_v13  ;;  %v4231_v14 = vadd.f32 %v13149_v63, %v12903_v4 }
 0x70e   :  { %18692 = vst [vmem:[#allocation178_spill] sm:$0xff] %v13692_v24 }
 0x70f   :  { %v13682_v23 = vpop.permute.xlu0 %3744  ;;  %18691 = vst [vmem:[#allocation177_spill] sm:$0xff] %v13688_v36 }
 0x710   :  { %5035 = vperm.xlu0 %11358, %v13674_v31   ;;  %v13706_v31 = vmul.f32 -0.5, %v4227_v39 }
 0x711   :  { %5038 = vperm.xlu1 %11359, %v13678_v57   ;;  %v13686_v17 = vpop.permute.xlu1 %3729  ;;  %v13702_v57 = vmul.f32 -0.5, %v4226_v50  ;;  %v4230_v50 = vadd.f32 %v13156_v8, %v12895_v13  ;;  %v4200_v8 = vadd.f32 %v13154_v51, %v12895_v13 }
 0x712   :  { %18694 = vst [vmem:[#allocation180_spill] sm:$0xff] %v13706_v31 }
 0x713   :  { %v13696_v15 = vpop.permute.xlu0 %3755  ;;  %18693 = vst [vmem:[#allocation179_spill] sm:$0xff] %v13702_v57 }
 0x714   :  { %5041 = vperm.xlu0 %11358, %v13688_v36   ;;  %v13720_v36 = vmul.f32 -0.5, %v4229_v10 }
 0x715   :  { %5044 = vperm.xlu1 %11359, %v13692_v24   ;;  %v13700_v41 = vpop.permute.xlu1 %3740  ;;  %v13716_v24 = vmul.f32 -0.5, %v4228_v60  ;;  %v4201_v60 = vadd.f32 %v13161_v47, %v12903_v4  ;;  %v4202_v47 = vadd.f32 %v13166_v59, %v12895_v13 }
 0x716   :  { %18696 = vst [vmem:[#allocation182_spill] sm:$0xff] %v13720_v36 }
 0x717   :  { %v13710_v5 = vpop.permute.xlu0 %3766  ;;  %18695 = vst [vmem:[#allocation181_spill] sm:$0xff] %v13716_v24 }
 0x718   :  { %5047 = vperm.xlu0 %11358, %v13702_v57   ;;  %v13734_v57 = vmul.f32 -0.5, %v4231_v14 }
 0x719   :  { %5050 = vperm.xlu1 %11359, %v13706_v31   ;;  %v13714_v61 = vpop.permute.xlu1 %3751  ;;  %v13730_v31 = vmul.f32 -0.5, %v4230_v50  ;;  %v4204_v50 = vadd.f32 %v13171_v7, %v12895_v13  ;;  %v4203_v7 = vadd.f32 %v13159_v37, %v12903_v4  ;;  %v4205_v37 = vadd.f32 %v13164_v29, %v12903_v4 }
 0x71a   :  { %18698 = vst [vmem:[#allocation184_spill] sm:$0xff] %v13734_v57 }
 0x71b   :  { %v13724_v39 = vpop.permute.xlu0 %3601  ;;  %18697 = vst [vmem:[#allocation183_spill] sm:$0xff] %v13730_v31 }
 0x71c   :  { %5053 = vperm.xlu0 %11358, %v13716_v24   ;;  %v13748_v24 = vmul.f32 -0.5, %v4200_v8  ;;  %v13764_v8 = vmul.f32 -0.5, %v4202_v47 }
 0x71d   :  { %5056 = vperm.xlu1 %11359, %v13720_v36   ;;  %v13728_v21 = vpop.permute.xlu1 %3762  ;;  %v13744_v36 = vmul.f32 -0.5, %v4201_v60  ;;  %v4206_v60 = vadd.f32 %v13176_v53, %v12895_v13 }
 0x71e   :  { %18700 = vst [vmem:[#allocation186_spill] sm:$0xff] %v13748_v24  ;;  %18702 = vst [vmem:[#allocation188_spill] sm:$0xff] %v13764_v8 }
 0x71f   :  { %v13738_v10 = vpop.permute.xlu0 %3612  ;;  %18699 = vst [vmem:[#allocation185_spill] sm:$0xff] %v13744_v36 }
 0x720   :  { %5059 = vperm.xlu0 %11358, %v13730_v31  }
 0x721   :  { %5062 = vperm.xlu1 %11359, %v13734_v57   ;;  %v13742_v63 = vpop.permute.xlu1 %3597  ;;  %v13758_v57 = vmul.f32 -0.5, %v4204_v50  ;;  %v4208_v50 = vadd.f32 %v13181_v49, %v12895_v13  ;;  %v4207_v49 = vadd.f32 %v13169_v1, %v12903_v4 }
 0x723   :  { %v13752_v14 = vpop.permute.xlu0 %3623  ;;  %18701 = vst [vmem:[#allocation187_spill] sm:$0xff] %v13758_v57 }
 0x724   :  { %4972 = vperm.xlu0 %11358, %v13744_v36   ;;  %v13776_v36 = vmul.f32 -0.5, %v4203_v7 }
 0x725   :  { %4969 = vperm.xlu1 %11359, %v13748_v24   ;;  %v13756_v51 = vpop.permute.xlu1 %3608  ;;  %v13772_v24 = vmul.f32 -0.5, %v4206_v60  ;;  %v4210_v60 = vadd.f32 %v13186_v30, %v12895_v13  ;;  %v4209_v30 = vadd.f32 %v13174_v19, %v12903_v4 }
 0x726   :  { %18704 = vst [vmem:[#allocation190_spill] sm:$0xff] %v13776_v36 }
 0x727   :  { %v13766_v31 = vpop.permute.xlu0 %3634  ;;  %18703 = vst [vmem:[#allocation189_spill] sm:$0xff] %v13772_v24 }
 0x728   :  { %4981 = vperm.xlu0 %11358, %v13758_v57   ;;  %v13790_v57 = vmul.f32 -0.5, %v4205_v37 }
 0x729   :  { %4975 = vperm.xlu1 %11359, %v13764_v8   ;;  %v13770_v59 = vpop.permute.xlu1 %3619  ;;  %v13786_v8 = vmul.f32 -0.5, %v4208_v50  ;;  %v4212_v50 = vadd.f32 %v13193_v26, %v12895_v13  ;;  %v4211_v26 = vadd.f32 %v13179_v55, %v12903_v4 }
 0x72a   :  { %18706 = vst [vmem:[#allocation192_spill] sm:$0xff] %v13790_v57 }
 0x72b   :  { %v13780_v53 = vpop.permute.xlu0 %3645  ;;  %18705 = vst [vmem:[#allocation191_spill] sm:$0xff] %v13786_v8 }
 0x72c   :  { %4987 = vperm.xlu0 %11358, %v13772_v24   ;;  %v13804_v24 = vmul.f32 -0.5, %v4207_v49 }
 0x72d   :  { %4978 = vperm.xlu1 %11359, %v13776_v36   ;;  %v13784_v47 = vpop.permute.xlu1 %3630  ;;  %v13800_v36 = vmul.f32 -0.5, %v4210_v60  ;;  %v4214_v60 = vadd.f32 %v13201_v43, %v12895_v13  ;;  %v18716_v13 = vld [vmem:[#allocation7_spill] sm:$0xff] }
 0x72e   :  { %18709 = vst [vmem:[#allocation195_spill] sm:$0xff] %v13804_v24  ;;  %v4213_v43 = vadd.f32 %v18716_v13, %v12903_v4 }
 0x72f   :  { %v13794_v7 = vpop.permute.xlu0 %3656  ;;  %18708 = vst [vmem:[#allocation194_spill] sm:$0xff] %v13800_v36 }
 0x730   :  { %18707 = vst [vmem:[#allocation193_spill] sm:$0xff] %v13794_v7  ;;  %4993 = vperm.xlu0 %11358, %v13786_v8   ;;  %v13818_v8 = vmul.f32 -0.5, %v4209_v30 }
 0x731   :  { %4984 = vperm.xlu1 %11359, %v13790_v57   ;;  %v13798_v29 = vpop.permute.xlu1 %3641  ;;  %v13814_v57 = vmul.f32 -0.5, %v4212_v50  ;;  %v4248_v50 = vadd.f32 %v13206_v35, %v12906_v18  ;;  %v18722_v35 = vld [vmem:[#allocation28_spill] sm:$0xff] }
 0x732   :  { %18712 = vst [vmem:[#allocation198_spill] sm:$0xff] %v13818_v8 }
 0x733   :  { %v13808_v37 = vpop.permute.xlu0 %3667  ;;  %18711 = vst [vmem:[#allocation197_spill] sm:$0xff] %v13814_v57 }
 0x734   :  { %18710 = vst [vmem:[#allocation196_spill] sm:$0xff] %v13808_v37  ;;  %4999 = vperm.xlu0 %11358, %v13800_v36   ;;  %v13832_v36 = vmul.f32 -0.5, %v4211_v26  ;;  %v4215_v26 = vadd.f32 %v18722_v35, %v12903_v4 }
 0x735   :  { %4990 = vperm.xlu1 %11359, %v13804_v24   ;;  %v13812_v1 = vpop.permute.xlu1 %3652  ;;  %v13828_v24 = vmul.f32 -0.5, %v4214_v60  ;;  %v18720_v60 = vld [vmem:[#allocation32_spill] sm:$0xff] }
 0x736   :  { %18715 = vst [vmem:[#allocation201_spill] sm:$0xff] %v13832_v36 }
 0x737   :  { %v13822_v49 = vpop.permute.xlu0 %3678  ;;  %18714 = vst [vmem:[#allocation200_spill] sm:$0xff] %v13828_v24 }
 0x738   :  { %18713 = vst [vmem:[#allocation199_spill] sm:$0xff] %v13822_v49  ;;  %5005 = vperm.xlu0 %11358, %v13814_v57   ;;  %v4250_v57 = vadd.f32 %v18720_v60, %v12906_v18  ;;  %v13846_v49 = vmul.f32 -0.5, %v4213_v43  ;;  %v18727_v43 = vld [vmem:[#allocation8_spill] sm:$0xff]  ;;  %v18728_v60 = vld [vmem:[#allocation29_spill] sm:$0xff] }
 0x739   :  { %4996 = vperm.xlu1 %11359, %v13818_v8   ;;  %v13826_v19 = vpop.permute.xlu1 %3663  ;;  %v13842_v8 = vmul.f32 -0.5, %v4248_v50  ;;  %v18725_v50 = vld [vmem:[#allocation34_spill] sm:$0xff]  ;;  %v4249_v7 = vadd.f32 %v18728_v60, %v18727_v43 }
 0x73a   :  { %18721 = vst [vmem:[#allocation32_spill] sm:$0xff] %v13846_v49 }
 0x73b   :  { %v13836_v30 = vpop.permute.xlu0 %3865  ;;  %18719 = vst [vmem:[#allocation203_spill] sm:$0xff] %v13842_v8 }
 0x73c   :  { %18717 = vst [vmem:[#allocation7_spill] sm:$0xff] %v13836_v30  ;;  %5011 = vperm.xlu0 %11358, %v13828_v24   ;;  %v4252_v24 = vadd.f32 %v18725_v50, %v12906_v18  ;;  %v13860_v30 = vmul.f32 -0.5, %v4215_v26  ;;  %v18734_v26 = vld [vmem:[#allocation30_spill] sm:$0xff] }
 0x73d   :  { %5002 = vperm.xlu1 %11359, %v13832_v36   ;;  %v13840_v55 = vpop.permute.xlu1 %3674  ;;  %v13856_v36 = vmul.f32 -0.5, %v4250_v57  ;;  %v18732_v57 = vld [vmem:[#allocation36_spill] sm:$0xff]  ;;  %v4251_v50 = vadd.f32 %v18734_v26, %v18727_v43 }
 0x73e   :  { %18718 = vst [vmem:[#allocation202_spill] sm:$0xff] %v13840_v55  ;;  %18726 = vst [vmem:[#allocation34_spill] sm:$0xff] %v13860_v30  ;;  %v13870_v35 = vmul.f32 -0.5, %v4252_v24  ;;  %v18738_v24 = vld [vmem:[#allocation38_spill] sm:$0xff] }
 0x73f   :  { %v13850_v37 = vpop.permute.xlu0 %3876  ;;  %18724 = vst [vmem:[#allocation204_spill] sm:$0xff] %v13856_v36 }
 0x740   :  { %18723 = vst [vmem:[#allocation28_spill] sm:$0xff] %v13850_v37  ;;  %5113 = vperm.xlu0 %11358, %v13842_v8   ;;  %18731 = vst [vmem:[#allocation205_spill] sm:$0xff] %v13870_v35  ;;  %v13874_v8 = vmul.f32 -0.5, %v4249_v7  ;;  %v18740_v7 = vld [vmem:[#allocation31_spill] sm:$0xff] }
 0x741   :  { %5008 = vperm.xlu1 %11359, %v13846_v49   ;;  %v13854_v13 = vpop.permute.xlu1 %3861  ;;  %v4254_v49 = vadd.f32 %v18732_v57, %v12906_v18  ;;  %v4253_v57 = vadd.f32 %v18740_v7, %v18727_v43 }
 0x742   :  { %18733 = vst [vmem:[#allocation36_spill] sm:$0xff] %v13874_v8 }
 0x743   :  { %v13864_v55 = vpop.permute.xlu0 %3887 }
 0x744   :  { %18729 = vst [vmem:[#allocation8_spill] sm:$0xff] %v13864_v55  ;;  %5119 = vperm.xlu0 %11358, %v13856_v36   ;;  %v4256_v36 = vadd.f32 %v18738_v24, %v12906_v18 }
 0x745   :  { %5014 = vperm.xlu1 %11359, %v13860_v30   ;;  %v13868_v4 = vpop.permute.xlu1 %3872  ;;  %v13884_v30 = vmul.f32 -0.5, %v4254_v49  ;;  %v18744_v49 = vld [vmem:[#allocation40_spill] sm:$0xff] }
 0x746   :  { %18730 = vst [vmem:[#allocation29_spill] sm:$0xff] %v13868_v4  ;;  %v13888_v4 = vmul.f32 -0.5, %v4251_v50  ;;  %v18746_v50 = vld [vmem:[#allocation33_spill] sm:$0xff] }
 0x747   :  { %v13878_v37 = vpop.permute.xlu0 %3898  ;;  %18737 = vst [vmem:[#allocation207_spill] sm:$0xff] %v13884_v30  ;;  %v4255_v24 = vadd.f32 %v18746_v50, %v18727_v43 }
 0x748   :  { %18735 = vst [vmem:[#allocation30_spill] sm:$0xff] %v13878_v37  ;;  %5125 = vperm.xlu0 %11358, %v13870_v35   ;;  %18739 = vst [vmem:[#allocation38_spill] sm:$0xff] %v13888_v4  ;;  %v4258_v35 = vadd.f32 %v18744_v49, %v12906_v18 }
 0x749   :  { %5116 = vperm.xlu1 %11359, %v13874_v8   ;;  %v13882_v60 = vpop.permute.xlu1 %3883  ;;  %v13898_v8 = vmul.f32 -0.5, %v4256_v36  ;;  %v18750_v36 = vld [vmem:[#allocation42_spill] sm:$0xff] }
 0x74a   :  { %18736 = vst [vmem:[#allocation206_spill] sm:$0xff] %v13882_v60  ;;  %v13902_v60 = vmul.f32 -0.5, %v4253_v57  ;;  %v18752_v57 = vld [vmem:[#allocation35_spill] sm:$0xff] }
 0x74b   :  { %v13892_v55 = vpop.permute.xlu0 %3909  ;;  %18743 = vst [vmem:[#allocation209_spill] sm:$0xff] %v13898_v8  ;;  %v4257_v49 = vadd.f32 %v18752_v57, %v18727_v43 }
 0x74c   :  { %18741 = vst [vmem:[#allocation31_spill] sm:$0xff] %v13892_v55  ;;  %5131 = vperm.xlu0 %11358, %v13884_v30   ;;  %18745 = vst [vmem:[#allocation40_spill] sm:$0xff] %v13902_v60  ;;  %v4260_v30 = vadd.f32 %v18750_v36, %v12906_v18 }
 0x74d   :  { %5122 = vperm.xlu1 %11359, %v13888_v4   ;;  %v13896_v26 = vpop.permute.xlu1 %3894  ;;  %v13912_v4 = vmul.f32 -0.5, %v4258_v35  ;;  %v18756_v35 = vld [vmem:[#allocation44_spill] sm:$0xff] }
 0x74e   :  { %18742 = vst [vmem:[#allocation208_spill] sm:$0xff] %v13896_v26  ;;  %v13916_v26 = vmul.f32 -0.5, %v4255_v24  ;;  %v18758_v24 = vld [vmem:[#allocation37_spill] sm:$0xff] }
 0x74f   :  { %v13906_v37 = vpop.permute.xlu0 %3920  ;;  %18749 = vst [vmem:[#allocation211_spill] sm:$0xff] %v13912_v4  ;;  %v4259_v36 = vadd.f32 %v18758_v24, %v18727_v43 }
 0x750   :  { %18747 = vst [vmem:[#allocation33_spill] sm:$0xff] %v13906_v37  ;;  %5137 = vperm.xlu0 %11358, %v13898_v8   ;;  %18751 = vst [vmem:[#allocation42_spill] sm:$0xff] %v13916_v26  ;;  %v4262_v8 = vadd.f32 %v18756_v35, %v12906_v18 }
 0x751   :  { %5128 = vperm.xlu1 %11359, %v13902_v60   ;;  %v13910_v7 = vpop.permute.xlu1 %3905  ;;  %v13926_v60 = vmul.f32 -0.5, %v4260_v30  ;;  %v18762_v30 = vld [vmem:[#allocation46_spill] sm:$0xff] }
 0x752   :  { %18748 = vst [vmem:[#allocation210_spill] sm:$0xff] %v13910_v7  ;;  %v13930_v7 = vmul.f32 -0.5, %v4257_v49  ;;  %v18764_v49 = vld [vmem:[#allocation39_spill] sm:$0xff] }
 0x753   :  { %v13920_v55 = vpop.permute.xlu0 %3931  ;;  %18755 = vst [vmem:[#allocation213_spill] sm:$0xff] %v13926_v60  ;;  %v4261_v35 = vadd.f32 %v18764_v49, %v18727_v43 }
 0x754   :  { %18753 = vst [vmem:[#allocation35_spill] sm:$0xff] %v13920_v55  ;;  %5143 = vperm.xlu0 %11358, %v13912_v4   ;;  %18757 = vst [vmem:[#allocation44_spill] sm:$0xff] %v13930_v7  ;;  %v4232_v4 = vadd.f32 %v18762_v30, %v12906_v18 }
 0x755   :  { %5134 = vperm.xlu1 %11359, %v13916_v26   ;;  %v13924_v50 = vpop.permute.xlu1 %3916  ;;  %v13940_v26 = vmul.f32 -0.5, %v4262_v8  ;;  %v18768_v8 = vld [vmem:[#allocation48_spill] sm:$0xff] }
 0x756   :  { %18754 = vst [vmem:[#allocation212_spill] sm:$0xff] %v13924_v50  ;;  %v13944_v50 = vmul.f32 -0.5, %v4259_v36  ;;  %v18770_v36 = vld [vmem:[#allocation41_spill] sm:$0xff] }
 0x757   :  { %v13934_v37 = vpop.permute.xlu0 %3942  ;;  %18761 = vst [vmem:[#allocation215_spill] sm:$0xff] %v13940_v26  ;;  %v4263_v30 = vadd.f32 %v18770_v36, %v18727_v43 }
 0x758   :  { %18759 = vst [vmem:[#allocation37_spill] sm:$0xff] %v13934_v37  ;;  %5149 = vperm.xlu0 %11358, %v13926_v60   ;;  %18763 = vst [vmem:[#allocation46_spill] sm:$0xff] %v13944_v50  ;;  %v4234_v60 = vadd.f32 %v18768_v8, %v12906_v18 }
 0x759   :  { %5140 = vperm.xlu1 %11359, %v13930_v7   ;;  %v13938_v57 = vpop.permute.xlu1 %3927  ;;  %v13954_v7 = vmul.f32 -0.5, %v4232_v4  ;;  %v18774_v4 = vld [vmem:[#allocation50_spill] sm:$0xff] }
 0x75a   :  { %18760 = vst [vmem:[#allocation214_spill] sm:$0xff] %v13938_v57  ;;  %v13958_v57 = vmul.f32 -0.5, %v4261_v35  ;;  %v18776_v35 = vld [vmem:[#allocation43_spill] sm:$0xff] }
 0x75b   :  { %v13948_v55 = vpop.permute.xlu0 %3777  ;;  %18767 = vst [vmem:[#allocation217_spill] sm:$0xff] %v13954_v7  ;;  %v4233_v8 = vadd.f32 %v18776_v35, %v18727_v43 }
 0x75c   :  { %18765 = vst [vmem:[#allocation39_spill] sm:$0xff] %v13948_v55  ;;  %5155 = vperm.xlu0 %11358, %v13940_v26   ;;  %18769 = vst [vmem:[#allocation48_spill] sm:$0xff] %v13958_v57  ;;  %v4236_v26 = vadd.f32 %v18774_v4, %v12906_v18 }
 0x75d   :  { %5146 = vperm.xlu1 %11359, %v13944_v50   ;;  %v13952_v24 = vpop.permute.xlu1 %3938  ;;  %v13968_v50 = vmul.f32 -0.5, %v4234_v60  ;;  %v18780_v60 = vld [vmem:[#allocation52_spill] sm:$0xff] }
 0x75e   :  { %18766 = vst [vmem:[#allocation216_spill] sm:$0xff] %v13952_v24  ;;  %v13972_v24 = vmul.f32 -0.5, %v4263_v30  ;;  %v18782_v30 = vld [vmem:[#allocation45_spill] sm:$0xff] }
 0x75f   :  { %v13962_v37 = vpop.permute.xlu0 %3788  ;;  %18773 = vst [vmem:[#allocation219_spill] sm:$0xff] %v13968_v50  ;;  %v4235_v4 = vadd.f32 %v18782_v30, %v18727_v43 }
 0x760   :  { %18771 = vst [vmem:[#allocation41_spill] sm:$0xff] %v13962_v37  ;;  %5065 = vperm.xlu0 %11358, %v13954_v7   ;;  %18775 = vst [vmem:[#allocation50_spill] sm:$0xff] %v13972_v24  ;;  %v4238_v7 = vadd.f32 %v18780_v60, %v12906_v18  ;;  %v13986_v37 = vmul.f32 -0.5, %v4233_v8  ;;  %v18788_v8 = vld [vmem:[#allocation47_spill] sm:$0xff] }
 0x761   :  { %5152 = vperm.xlu1 %11359, %v13958_v57   ;;  %v13966_v49 = vpop.permute.xlu1 %3773  ;;  %v13982_v57 = vmul.f32 -0.5, %v4236_v26  ;;  %v18786_v26 = vld [vmem:[#allocation54_spill] sm:$0xff]  ;;  %v4237_v60 = vadd.f32 %v18788_v8, %v18727_v43 }
 0x762   :  { %18772 = vst [vmem:[#allocation218_spill] sm:$0xff] %v13966_v49  ;;  %18781 = vst [vmem:[#allocation52_spill] sm:$0xff] %v13986_v37 }
 0x763   :  { %v13976_v55 = vpop.permute.xlu0 %3799  ;;  %18779 = vst [vmem:[#allocation221_spill] sm:$0xff] %v13982_v57 }
 0x764   :  { %18777 = vst [vmem:[#allocation43_spill] sm:$0xff] %v13976_v55  ;;  %5071 = vperm.xlu0 %11358, %v13968_v50   ;;  %v4240_v50 = vadd.f32 %v18786_v26, %v12906_v18 }
 0x765   :  { %5158 = vperm.xlu1 %11359, %v13972_v24   ;;  %v13980_v36 = vpop.permute.xlu1 %3784  ;;  %v13996_v24 = vmul.f32 -0.5, %v4238_v7  ;;  %v18791_v7 = vld [vmem:[#allocation56_spill] sm:$0xff] }
 0x766   :  { %18778 = vst [vmem:[#allocation220_spill] sm:$0xff] %v13980_v36  ;;  %v14000_v36 = vmul.f32 -0.5, %v4235_v4  ;;  %v18793_v4 = vld [vmem:[#allocation49_spill] sm:$0xff] }
 0x767   :  { %v13990_v49 = vpop.permute.xlu0 %3810  ;;  %18785 = vst [vmem:[#allocation223_spill] sm:$0xff] %v13996_v24  ;;  %v4239_v26 = vadd.f32 %v18793_v4, %v18727_v43 }
 0x768   :  { %18783 = vst [vmem:[#allocation45_spill] sm:$0xff] %v13990_v49  ;;  %5077 = vperm.xlu0 %11358, %v13982_v57   ;;  %18787 = vst [vmem:[#allocation54_spill] sm:$0xff] %v14000_v36  ;;  %v4242_v57 = vadd.f32 %v18791_v7, %v12906_v18 }
 0x769   :  { %5068 = vperm.xlu1 %11359, %v13986_v37   ;;  %v13994_v35 = vpop.permute.xlu1 %3795  ;;  %v14010_v37 = vmul.f32 -0.5, %v4240_v50  ;;  %v18797_v50 = vld [vmem:[#allocation58_spill] sm:$0xff] }
 0x76a   :  { %18784 = vst [vmem:[#allocation222_spill] sm:$0xff] %v13994_v35  ;;  %v14014_v35 = vmul.f32 -0.5, %v4237_v60  ;;  %v18799_v60 = vld [vmem:[#allocation51_spill] sm:$0xff] }
 0x76b   :  { %v14004_v55 = vpop.permute.xlu0 %3821  ;;  %18790 = vst [vmem:[#allocation224_spill] sm:$0xff] %v14010_v37  ;;  %v4241_v7 = vadd.f32 %v18799_v60, %v18727_v43 }
 0x76c   :  { %5083 = vperm.xlu0 %11358, %v13996_v24   ;;  %18792 = vst [vmem:[#allocation56_spill] sm:$0xff] %v14014_v35  ;;  %v4244_v24 = vadd.f32 %v18797_v50, %v12906_v18 }
 0x76d   :  { %5074 = vperm.xlu1 %11359, %v14000_v36   ;;  %v14008_v30 = vpop.permute.xlu1 %3806  ;;  %v14024_v36 = vmul.f32 -0.5, %v4242_v57  ;;  %v4246_v57 = vadd.f32 %v13286_v52, %v12906_v18  ;;  %v18809_v18 = vld [vmem:[#allocation55_spill] sm:$0xff] }
 0x76e   :  { %18789 = vst [vmem:[#allocation47_spill] sm:$0xff] %v14008_v30  ;;  %v14028_v30 = vmul.f32 -0.5, %v4239_v26  ;;  %v18804_v26 = vld [vmem:[#allocation53_spill] sm:$0xff]  ;;  %v4245_v52 = vadd.f32 %v18809_v18, %v18727_v43 }
 0x76f   :  { %v14018_v49 = vpop.permute.xlu0 %3832  ;;  %18796 = vst [vmem:[#allocation226_spill] sm:$0xff] %v14024_v36  ;;  %v4243_v50 = vadd.f32 %v18804_v26, %v18727_v43 }
 0x770   :  { %18794 = vst [vmem:[#allocation49_spill] sm:$0xff] %v14018_v49  ;;  %5089 = vperm.xlu0 %11358, %v14010_v37   ;;  %18798 = vst [vmem:[#allocation58_spill] sm:$0xff] %v14028_v30 }
 0x771   :  { %5080 = vperm.xlu1 %11359, %v14014_v35   ;;  %v14022_v8 = vpop.permute.xlu1 %3817  ;;  %v14038_v35 = vmul.f32 -0.5, %v4244_v24 }
 0x772   :  { %18795 = vst [vmem:[#allocation225_spill] sm:$0xff] %v14022_v8  ;;  %v14042_v8 = vmul.f32 -0.5, %v4241_v7 }
 0x773   :  { %v14033_v4 = vpop.permute.xlu0 %3843  ;;  %18802 = vst [vmem:[#allocation228_spill] sm:$0xff] %v14038_v35 }
 0x774   :  { %5095 = vperm.xlu0 %11358, %v14024_v36   ;;  %18800 = vst [vmem:[#allocation51_spill] sm:$0xff] %v14033_v4  ;;  %18803 = vst [vmem:[#allocation229_spill] sm:$0xff] %v14042_v8  ;;  %v14050_v36 = vmul.f32 -0.5, %v4246_v57  ;;  %v18813_v57 = vld [vmem:[#allocation62_spill] sm:$0xff] }
 0x775   :  { %5086 = vperm.xlu1 %11359, %v14028_v30   ;;  %v14036_v37 = vpop.permute.xlu1 %3828  ;;  %v18807_v30 = vld [vmem:[#allocation9_spill] sm:$0xff] }
 0x776   :  { %18801 = vst [vmem:[#allocation227_spill] sm:$0xff] %v14036_v37  ;;  %18806 = vst [vmem:[#allocation230_spill] sm:$0xff] %v14050_v36  ;;  %v4280_v24 = vadd.f32 %v13291_v16, %v18807_v30  ;;  %v14054_v37 = vmul.f32 -0.5, %v4243_v50  ;;  %v18815_v16 = vld [vmem:[#allocation57_spill] sm:$0xff] }
 0x777   :  { %v14058_v7 = vpop.permute.xlu0 %3854  ;;  %v4247_v50 = vadd.f32 %v18815_v16, %v18727_v43 }
 0x778   :  { %5101 = vperm.xlu0 %11358, %v14038_v35   ;;  %18808 = vst [vmem:[#allocation9_spill] sm:$0xff] %v14054_v37  ;;  %18810 = vst [vmem:[#allocation55_spill] sm:$0xff] %v14058_v7  ;;  %v4282_v35 = vadd.f32 %v18813_v57, %v18807_v30  ;;  %v18822_v57 = vld [vmem:[#allocation59_spill] sm:$0xff] }
 0x779   :  { %5092 = vperm.xlu1 %11359, %v14042_v8   ;;  %v14048_v60 = vpop.permute.xlu1 %3839  ;;  %v14064_v8 = vmul.f32 -0.5, %v4280_v24  ;;  %v18819_v24 = vld [vmem:[#allocation64_spill] sm:$0xff] }
 0x77a   :  { %18805 = vst [vmem:[#allocation53_spill] sm:$0xff] %v14048_v60  ;;  %v14068_v60 = vmul.f32 -0.5, %v4245_v52  ;;  %v18821_v52 = vld [vmem:[#allocation10_spill] sm:$0xff] }
 0x77b   :  { %18812 = vst [vmem:[#allocation232_spill] sm:$0xff] %v14064_v8  ;;  %v4281_v7 = vadd.f32 %v18822_v57, %v18821_v52 }
 0x77c   :  { %5107 = vperm.xlu0 %11358, %v14050_v36   ;;  %18814 = vst [vmem:[#allocation62_spill] sm:$0xff] %v14068_v60  ;;  %v4284_v36 = vadd.f32 %v18819_v24, %v18807_v30 }
 0x77d   :  { %5098 = vperm.xlu1 %11359, %v14054_v37   ;;  %v14062_v26 = vpop.permute.xlu1 %3850  ;;  %v14078_v37 = vmul.f32 -0.5, %v4282_v35  ;;  %v18825_v35 = vld [vmem:[#allocation66_spill] sm:$0xff] }
 0x77e   :  { %18811 = vst [vmem:[#allocation231_spill] sm:$0xff] %v14062_v26  ;;  %v14082_v26 = vmul.f32 -0.5, %v4247_v50  ;;  %v14092_v16 = vmul.f32 -0.5, %v4284_v36  ;;  %v18827_v50 = vld [vmem:[#allocation60_spill] sm:$0xff] }
 0x77f   :  { %v14072_v4 = vpop.permute.xlu0 %5017  ;;  %18818 = vst [vmem:[#allocation234_spill] sm:$0xff] %v14078_v37  ;;  %v4283_v24 = vadd.f32 %v18827_v50, %v18821_v52  ;;  %v18831_v36 = vld [vmem:[#allocation68_spill] sm:$0xff] }
 0x780   :  { %18816 = vst [vmem:[#allocation57_spill] sm:$0xff] %v14072_v4  ;;  %5209 = vperm.xlu0 %11358, %v14064_v8   ;;  %18820 = vst [vmem:[#allocation64_spill] sm:$0xff] %v14082_v26  ;;  %v14096_v8 = vmul.f32 -0.5, %v4281_v7  ;;  %v18833_v7 = vld [vmem:[#allocation61_spill] sm:$0xff] }
 0x781   :  { %5104 = vperm.xlu1 %11359, %v14068_v60   ;;  %v14076_v18 = vpop.permute.xlu1 %5020  ;;  %18824 = vst [vmem:[#allocation59_spill] sm:$0xff] %v14092_v16  ;;  %v4286_v60 = vadd.f32 %v18825_v35, %v18807_v30  ;;  %v4285_v35 = vadd.f32 %v18833_v7, %v18821_v52 }
 0x782   :  { %18817 = vst [vmem:[#allocation233_spill] sm:$0xff] %v14076_v18  ;;  %18826 = vst [vmem:[#allocation66_spill] sm:$0xff] %v14096_v8 }
 0x783   :  { %v14086_v49 = vpop.permute.xlu0 %5023 }
 0x784   :  { %18823 = vst [vmem:[#allocation10_spill] sm:$0xff] %v14086_v49  ;;  %5215 = vperm.xlu0 %11358, %v14078_v37   ;;  %v4288_v37 = vadd.f32 %v18831_v36, %v18807_v30  ;;  %v14110_v49 = vmul.f32 -0.5, %v4283_v24  ;;  %v18839_v24 = vld [vmem:[#allocation63_spill] sm:$0xff] }
 0x785   :  { %5110 = vperm.xlu1 %11359, %v14082_v26   ;;  %v14090_v43 = vpop.permute.xlu1 %5026  ;;  %v14106_v26 = vmul.f32 -0.5, %v4286_v60  ;;  %v18837_v60 = vld [vmem:[#allocation70_spill] sm:$0xff]  ;;  %v4287_v36 = vadd.f32 %v18839_v24, %v18821_v52 }
 0x786   :  { %18832 = vst [vmem:[#allocation68_spill] sm:$0xff] %v14110_v49 }
 0x787   :  { %v14100_v4 = vpop.permute.xlu0 %5029  ;;  %18830 = vst [vmem:[#allocation236_spill] sm:$0xff] %v14106_v26 }
 0x788   :  { %18828 = vst [vmem:[#allocation60_spill] sm:$0xff] %v14100_v4  ;;  %5221 = vperm.xlu0 %11358, %v14092_v16   ;;  %v4290_v16 = vadd.f32 %v18837_v60, %v18807_v30  ;;  %v14124_v4 = vmul.f32 -0.5, %v4285_v35  ;;  %v18845_v35 = vld [vmem:[#allocation65_spill] sm:$0xff] }
 0x789   :  { %5212 = vperm.xlu1 %11359, %v14096_v8   ;;  %v14104_v57 = vpop.permute.xlu1 %5032  ;;  %v14120_v8 = vmul.f32 -0.5, %v4288_v37  ;;  %v18843_v37 = vld [vmem:[#allocation72_spill] sm:$0xff]  ;;  %v4289_v60 = vadd.f32 %v18845_v35, %v18821_v52 }
 0x78a   :  { %18829 = vst [vmem:[#allocation235_spill] sm:$0xff] %v14104_v57  ;;  %18838 = vst [vmem:[#allocation70_spill] sm:$0xff] %v14124_v4 }
 0x78b   :  { %v14114_v18 = vpop.permute.xlu0 %5035  ;;  %18836 = vst [vmem:[#allocation238_spill] sm:$0xff] %v14120_v8 }
 0x78c   :  { %18834 = vst [vmem:[#allocation61_spill] sm:$0xff] %v14114_v18  ;;  %5227 = vperm.xlu0 %11358, %v14106_v26   ;;  %v14134_v26 = vmul.f32 -0.5, %v4290_v16  ;;  %v14138_v18 = vmul.f32 -0.5, %v4287_v36  ;;  %v18849_v16 = vld [vmem:[#allocation74_spill] sm:$0xff]  ;;  %v18851_v36 = vld [vmem:[#allocation67_spill] sm:$0xff] }
 0x78d   :  { %5218 = vperm.xlu1 %11359, %v14110_v49   ;;  %v14118_v50 = vpop.permute.xlu1 %5038  ;;  %v4292_v49 = vadd.f32 %v18843_v37, %v18807_v30  ;;  %v4291_v37 = vadd.f32 %v18851_v36, %v18821_v52 }
 0x78e   :  { %18835 = vst [vmem:[#allocation237_spill] sm:$0xff] %v14118_v50  ;;  %18842 = vst [vmem:[#allocation240_spill] sm:$0xff] %v14134_v26 }
 0x78f   :  { %v14128_v57 = vpop.permute.xlu0 %5041  ;;  %18844 = vst [vmem:[#allocation72_spill] sm:$0xff] %v14138_v18 }
 0x790   :  { %18840 = vst [vmem:[#allocation63_spill] sm:$0xff] %v14128_v57  ;;  %5233 = vperm.xlu0 %11358, %v14120_v8   ;;  %v14148_v8 = vmul.f32 -0.5, %v4292_v49  ;;  %v14152_v57 = vmul.f32 -0.5, %v4289_v60  ;;  %v18855_v49 = vld [vmem:[#allocation76_spill] sm:$0xff]  ;;  %v18857_v60 = vld [vmem:[#allocation69_spill] sm:$0xff] }
 0x791   :  { %5224 = vperm.xlu1 %11359, %v14124_v4   ;;  %v14132_v7 = vpop.permute.xlu1 %5044  ;;  %v4294_v4 = vadd.f32 %v18849_v16, %v18807_v30  ;;  %v4293_v16 = vadd.f32 %v18857_v60, %v18821_v52 }
 0x792   :  { %18841 = vst [vmem:[#allocation239_spill] sm:$0xff] %v14132_v7  ;;  %18848 = vst [vmem:[#allocation242_spill] sm:$0xff] %v14148_v8 }
 0x793   :  { %v14142_v50 = vpop.permute.xlu0 %5047  ;;  %18850 = vst [vmem:[#allocation74_spill] sm:$0xff] %v14152_v57 }
 0x794   :  { %18846 = vst [vmem:[#allocation65_spill] sm:$0xff] %v14142_v50  ;;  %5239 = vperm.xlu0 %11358, %v14134_v26   ;;  %v4264_v26 = vadd.f32 %v18855_v49, %v18807_v30  ;;  %v14166_v50 = vmul.f32 -0.5, %v4291_v37  ;;  %v18863_v37 = vld [vmem:[#allocation71_spill] sm:$0xff] }
 0x795   :  { %5230 = vperm.xlu1 %11359, %v14138_v18   ;;  %v14146_v24 = vpop.permute.xlu1 %5050  ;;  %v14162_v18 = vmul.f32 -0.5, %v4294_v4  ;;  %v18861_v4 = vld [vmem:[#allocation78_spill] sm:$0xff]  ;;  %v4295_v49 = vadd.f32 %v18863_v37, %v18821_v52 }
 0x796   :  { %18847 = vst [vmem:[#allocation241_spill] sm:$0xff] %v14146_v24  ;;  %18856 = vst [vmem:[#allocation76_spill] sm:$0xff] %v14166_v50 }
 0x797   :  { %v14156_v7 = vpop.permute.xlu0 %5053  ;;  %18854 = vst [vmem:[#allocation244_spill] sm:$0xff] %v14162_v18 }
 0x798   :  { %18852 = vst [vmem:[#allocation67_spill] sm:$0xff] %v14156_v7  ;;  %5245 = vperm.xlu0 %11358, %v14148_v8   ;;  %v4266_v8 = vadd.f32 %v18861_v4, %v18807_v30  ;;  %v14180_v7 = vmul.f32 -0.5, %v4293_v16  ;;  %v18869_v16 = vld [vmem:[#allocation73_spill] sm:$0xff] }
 0x799   :  { %5236 = vperm.xlu1 %11359, %v14152_v57   ;;  %v14160_v35 = vpop.permute.xlu1 %5056  ;;  %v14176_v57 = vmul.f32 -0.5, %v4264_v26  ;;  %v18867_v26 = vld [vmem:[#allocation80_spill] sm:$0xff]  ;;  %v4265_v4 = vadd.f32 %v18869_v16, %v18821_v52 }
 0x79a   :  { %18853 = vst [vmem:[#allocation243_spill] sm:$0xff] %v14160_v35  ;;  %18862 = vst [vmem:[#allocation78_spill] sm:$0xff] %v14180_v7 }
 0x79b   :  { %v14170_v24 = vpop.permute.xlu0 %5059  ;;  %18860 = vst [vmem:[#allocation246_spill] sm:$0xff] %v14176_v57 }
 0x79c   :  { %18858 = vst [vmem:[#allocation69_spill] sm:$0xff] %v14170_v24  ;;  %5251 = vperm.xlu0 %11358, %v14162_v18   ;;  %v4268_v18 = vadd.f32 %v18867_v26, %v18807_v30  ;;  %v14194_v24 = vmul.f32 -0.5, %v4295_v49  ;;  %v18875_v49 = vld [vmem:[#allocation75_spill] sm:$0xff] }
 0x79d   :  { %5242 = vperm.xlu1 %11359, %v14166_v50   ;;  %v14174_v36 = vpop.permute.xlu1 %5062  ;;  %v14190_v50 = vmul.f32 -0.5, %v4266_v8  ;;  %v18873_v8 = vld [vmem:[#allocation82_spill] sm:$0xff]  ;;  %v4267_v26 = vadd.f32 %v18875_v49, %v18821_v52 }
 0x79e   :  { %18859 = vst [vmem:[#allocation245_spill] sm:$0xff] %v14174_v36  ;;  %18868 = vst [vmem:[#allocation80_spill] sm:$0xff] %v14194_v24 }
 0x79f   :  { %v14184_v35 = vpop.permute.xlu0 %4972  ;;  %18866 = vst [vmem:[#allocation248_spill] sm:$0xff] %v14190_v50 }
 0x7a0   :  { %18864 = vst [vmem:[#allocation71_spill] sm:$0xff] %v14184_v35  ;;  %5161 = vperm.xlu0 %11358, %v14176_v57   ;;  %v4270_v57 = vadd.f32 %v18873_v8, %v18807_v30  ;;  %v14208_v35 = vmul.f32 -0.5, %v4265_v4  ;;  %v18881_v4 = vld [vmem:[#allocation77_spill] sm:$0xff] }
 0x7a1   :  { %5248 = vperm.xlu1 %11359, %v14180_v7   ;;  %v14188_v60 = vpop.permute.xlu1 %4969  ;;  %v14204_v7 = vmul.f32 -0.5, %v4268_v18  ;;  %v18879_v18 = vld [vmem:[#allocation84_spill] sm:$0xff]  ;;  %v4269_v8 = vadd.f32 %v18881_v4, %v18821_v52 }
 0x7a2   :  { %18865 = vst [vmem:[#allocation247_spill] sm:$0xff] %v14188_v60  ;;  %18874 = vst [vmem:[#allocation82_spill] sm:$0xff] %v14208_v35 }
 0x7a3   :  { %v14198_v36 = vpop.permute.xlu0 %4981  ;;  %18872 = vst [vmem:[#allocation250_spill] sm:$0xff] %v14204_v7 }
 0x7a4   :  { %18870 = vst [vmem:[#allocation73_spill] sm:$0xff] %v14198_v36  ;;  %5167 = vperm.xlu0 %11358, %v14190_v50   ;;  %v4272_v50 = vadd.f32 %v18879_v18, %v18807_v30  ;;  %v14222_v36 = vmul.f32 -0.5, %v4267_v26  ;;  %v18887_v26 = vld [vmem:[#allocation79_spill] sm:$0xff] }
 0x7a5   :  { %5254 = vperm.xlu1 %11359, %v14194_v24   ;;  %v14202_v37 = vpop.permute.xlu1 %4975  ;;  %v14218_v24 = vmul.f32 -0.5, %v4270_v57  ;;  %v18885_v57 = vld [vmem:[#allocation86_spill] sm:$0xff]  ;;  %v4271_v18 = vadd.f32 %v18887_v26, %v18821_v52 }
 0x7a6   :  { %18871 = vst [vmem:[#allocation249_spill] sm:$0xff] %v14202_v37  ;;  %18880 = vst [vmem:[#allocation84_spill] sm:$0xff] %v14222_v36 }
 0x7a7   :  { %v14212_v60 = vpop.permute.xlu0 %4987  ;;  %18878 = vst [vmem:[#allocation252_spill] sm:$0xff] %v14218_v24 }
 0x7a8   :  { %18876 = vst [vmem:[#allocation75_spill] sm:$0xff] %v14212_v60  ;;  %5173 = vperm.xlu0 %11358, %v14204_v7   ;;  %v4274_v7 = vadd.f32 %v18885_v57, %v18807_v30  ;;  %v14236_v60 = vmul.f32 -0.5, %v4269_v8  ;;  %v18892_v8 = vld [vmem:[#allocation81_spill] sm:$0xff] }
 0x7a9   :  { %5164 = vperm.xlu1 %11359, %v14208_v35   ;;  %v14216_v16 = vpop.permute.xlu1 %4978  ;;  %v14232_v35 = vmul.f32 -0.5, %v4272_v50  ;;  %v18890_v50 = vld [vmem:[#allocation88_spill] sm:$0xff]  ;;  %v4273_v57 = vadd.f32 %v18892_v8, %v18821_v52 }
 0x7aa   :  { %18877 = vst [vmem:[#allocation251_spill] sm:$0xff] %v14216_v16  ;;  %18886 = vst [vmem:[#allocation86_spill] sm:$0xff] %v14236_v60 }
 0x7ab   :  { %v14226_v37 = vpop.permute.xlu0 %4993  ;;  %18884 = vst [vmem:[#allocation254_spill] sm:$0xff] %v14232_v35 }
 0x7ac   :  { %18882 = vst [vmem:[#allocation77_spill] sm:$0xff] %v14226_v37  ;;  %5179 = vperm.xlu0 %11358, %v14218_v24   ;;  %v4276_v24 = vadd.f32 %v18890_v50, %v18807_v30  ;;  %v14250_v37 = vmul.f32 -0.5, %v4271_v18  ;;  %v18897_v18 = vld [vmem:[#allocation83_spill] sm:$0xff] }
 0x7ad   :  { %5170 = vperm.xlu1 %11359, %v14222_v36   ;;  %v14230_v49 = vpop.permute.xlu1 %4984  ;;  %v14246_v36 = vmul.f32 -0.5, %v4274_v7  ;;  %v4278_v7 = vadd.f32 %v13371_v27, %v18807_v30  ;;  %v4275_v50 = vadd.f32 %v18897_v18, %v18821_v52  ;;  %v18903_v27 = vld [vmem:[#allocation85_spill] sm:$0xff] }
 0x7ae   :  { %18883 = vst [vmem:[#allocation253_spill] sm:$0xff] %v14230_v49  ;;  %18891 = vst [vmem:[#allocation88_spill] sm:$0xff] %v14250_v37  ;;  %v4277_v30 = vadd.f32 %v18903_v27, %v18821_v52 }
 0x7af   :  { %v14240_v16 = vpop.permute.xlu0 %4999  ;;  %18889 = vst [vmem:[#allocation255_spill] sm:$0xff] %v14246_v36 }
 0x7b0   :  { %18888 = vst [vmem:[#allocation79_spill] sm:$0xff] %v14240_v16  ;;  %5185 = vperm.xlu0 %11358, %v14232_v35   ;;  %v14264_v35 = vmul.f32 -0.5, %v4273_v57 }
 0x7b1   :  { %5176 = vperm.xlu1 %11359, %v14236_v60   ;;  %v14244_v4 = vpop.permute.xlu1 %4990  ;;  %v14260_v60 = vmul.f32 -0.5, %v4276_v24  ;;  %v18901_v24 = vld [vmem:[#allocation12_spill] sm:$0xff] }
 0x7b2   :  { %18896 = vst [vmem:[#allocation258_spill] sm:$0xff] %v14264_v35 }
 0x7b3   :  { %v14254_v49 = vpop.permute.xlu0 %5005  ;;  %18895 = vst [vmem:[#allocation257_spill] sm:$0xff] %v14260_v60 }
 0x7b4   :  { %18893 = vst [vmem:[#allocation81_spill] sm:$0xff] %v14254_v49  ;;  %5191 = vperm.xlu0 %11358, %v14246_v36   ;;  %v4312_v36 = vadd.f32 %v13376_v28, %v18901_v24  ;;  %v14278_v49 = vmul.f32 -0.5, %v4275_v50  ;;  %v18909_v28 = vld [vmem:[#allocation87_spill] sm:$0xff] }
 0x7b5   :  { %5182 = vperm.xlu1 %11359, %v14250_v37   ;;  %v14258_v26 = vpop.permute.xlu1 %4996  ;;  %v14274_v37 = vmul.f32 -0.5, %v4278_v7  ;;  %v18907_v7 = vld [vmem:[#allocation92_spill] sm:$0xff]  ;;  %v4279_v50 = vadd.f32 %v18909_v28, %v18821_v52 }
 0x7b6   :  { %18894 = vst [vmem:[#allocation256_spill] sm:$0xff] %v14258_v26  ;;  %18902 = vst [vmem:[#allocation12_spill] sm:$0xff] %v14278_v49 }
 0x7b7   :  { %v14268_v16 = vpop.permute.xlu0 %5011  ;;  %18900 = vst [vmem:[#allocation260_spill] sm:$0xff] %v14274_v37 }
 0x7b8   :  { %18898 = vst [vmem:[#allocation83_spill] sm:$0xff] %v14268_v16  ;;  %5197 = vperm.xlu0 %11358, %v14260_v60   ;;  %v4314_v60 = vadd.f32 %v18907_v7, %v18901_v24  ;;  %v14292_v16 = vmul.f32 -0.5, %v4277_v30  ;;  %v18914_v30 = vld [vmem:[#allocation11_spill] sm:$0xff]  ;;  %v18915_v7 = vld [vmem:[#allocation89_spill] sm:$0xff] }
 0x7b9   :  { %5188 = vperm.xlu1 %11359, %v14264_v35   ;;  %v14272_v8 = vpop.permute.xlu1 %5002  ;;  %v14288_v35 = vmul.f32 -0.5, %v4312_v36  ;;  %v18912_v36 = vld [vmem:[#allocation94_spill] sm:$0xff] }
 0x7ba   :  { %18899 = vst [vmem:[#allocation259_spill] sm:$0xff] %v14272_v8  ;;  %18908 = vst [vmem:[#allocation92_spill] sm:$0xff] %v14292_v16 }
 0x7bb   :  { %v14282_v57 = vpop.permute.xlu0 %5113  ;;  %18906 = vst [vmem:[#allocation262_spill] sm:$0xff] %v14288_v35 }
 0x7bc   :  { %18904 = vst [vmem:[#allocation85_spill] sm:$0xff] %v14282_v57  ;;  %5203 = vperm.xlu0 %11358, %v14274_v37   ;;  %v4316_v37 = vadd.f32 %v18912_v36, %v18901_v24  ;;  %v14306_v57 = vmul.f32 -0.5, %v4279_v50  ;;  %v18921_v50 = vld [vmem:[#allocation90_spill] sm:$0xff] }
 0x7bd   :  { %5194 = vperm.xlu1 %11359, %v14278_v49   ;;  %v14286_v18 = vpop.permute.xlu1 %5008  ;;  %v14302_v49 = vmul.f32 -0.5, %v4314_v60  ;;  %v18919_v60 = vld [vmem:[#allocation96_spill] sm:$0xff]  ;;  %v4315_v36 = vadd.f32 %v18921_v50, %v18914_v30 }
 0x7be   :  { %18905 = vst [vmem:[#allocation261_spill] sm:$0xff] %v14286_v18  ;;  %18913 = vst [vmem:[#allocation94_spill] sm:$0xff] %v14306_v57  ;;  %v4313_v18 = vadd.f32 %v18915_v7, %v18914_v30  ;;  %v14316_v28 = vmul.f32 -0.5, %v4316_v37  ;;  %v18925_v37 = vld [vmem:[#allocation98_spill] sm:$0xff] }
 0x7bf   :  { %v14296_v8 = vpop.permute.xlu0 %5119  ;;  %18911 = vst [vmem:[#allocation263_spill] sm:$0xff] %v14302_v49 }
 0x7c0   :  { %18910 = vst [vmem:[#allocation87_spill] sm:$0xff] %v14296_v8  ;;  %5305 = vperm.xlu0 %11358, %v14288_v35   ;;  %18918 = vst [vmem:[#allocation264_spill] sm:$0xff] %v14316_v28  ;;  %v4318_v35 = vadd.f32 %v18919_v60, %v18901_v24 }
 0x7c1   :  { %5200 = vperm.xlu1 %11359, %v14292_v16   ;;  %v14300_v27 = vpop.permute.xlu1 %5014  ;;  %v14320_v16 = vmul.f32 -0.5, %v4313_v18  ;;  %v18927_v18 = vld [vmem:[#allocation91_spill] sm:$0xff] }
 0x7c2   :  { %v4317_v60 = vadd.f32 %v18927_v18, %v18914_v30 }
 0x7c3   :  { %v14310_v26 = vpop.permute.xlu0 %5125  ;;  %18920 = vst [vmem:[#allocation96_spill] sm:$0xff] %v14320_v16 }
 0x7c4   :  { %18916 = vst [vmem:[#allocation11_spill] sm:$0xff] %v14310_v26  ;;  %5311 = vperm.xlu0 %11358, %v14302_v49   ;;  %v14330_v49 = vmul.f32 -0.5, %v4318_v35  ;;  %v14334_v26 = vmul.f32 -0.5, %v4315_v36  ;;  %v18931_v35 = vld [vmem:[#allocation100_spill] sm:$0xff]  ;;  %v18933_v36 = vld [vmem:[#allocation93_spill] sm:$0xff] }
 0x7c5   :  { %5206 = vperm.xlu1 %11359, %v14306_v57   ;;  %v14314_v52 = vpop.permute.xlu1 %5116  ;;  %v4320_v57 = vadd.f32 %v18925_v37, %v18901_v24  ;;  %v4319_v37 = vadd.f32 %v18933_v36, %v18914_v30 }
 0x7c6   :  { %18917 = vst [vmem:[#allocation89_spill] sm:$0xff] %v14314_v52  ;;  %18924 = vst [vmem:[#allocation266_spill] sm:$0xff] %v14330_v49 }
 0x7c7   :  { %v14324_v8 = vpop.permute.xlu0 %5131  ;;  %18926 = vst [vmem:[#allocation98_spill] sm:$0xff] %v14334_v26 }
 0x7c8   :  { %18922 = vst [vmem:[#allocation90_spill] sm:$0xff] %v14324_v8  ;;  %5317 = vperm.xlu0 %11358, %v14316_v28   ;;  %v4322_v28 = vadd.f32 %v18931_v35, %v18901_v24  ;;  %v14348_v8 = vmul.f32 -0.5, %v4317_v60  ;;  %v18939_v60 = vld [vmem:[#allocation95_spill] sm:$0xff] }
 0x7c9   :  { %5308 = vperm.xlu1 %11359, %v14320_v16   ;;  %v14328_v7 = vpop.permute.xlu1 %5122  ;;  %v14344_v16 = vmul.f32 -0.5, %v4320_v57  ;;  %v18937_v57 = vld [vmem:[#allocation102_spill] sm:$0xff]  ;;  %v4321_v35 = vadd.f32 %v18939_v60, %v18914_v30 }
 0x7ca   :  { %18923 = vst [vmem:[#allocation265_spill] sm:$0xff] %v14328_v7  ;;  %18932 = vst [vmem:[#allocation100_spill] sm:$0xff] %v14348_v8 }
 0x7cb   :  { %v14338_v52 = vpop.permute.xlu0 %5137  ;;  %18930 = vst [vmem:[#allocation268_spill] sm:$0xff] %v14344_v16 }
 0x7cc   :  { %18928 = vst [vmem:[#allocation91_spill] sm:$0xff] %v14338_v52  ;;  %5323 = vperm.xlu0 %11358, %v14330_v49   ;;  %v4324_v49 = vadd.f32 %v18937_v57, %v18901_v24  ;;  %v14362_v52 = vmul.f32 -0.5, %v4319_v37  ;;  %v18945_v37 = vld [vmem:[#allocation97_spill] sm:$0xff] }
 0x7cd   :  { %5314 = vperm.xlu1 %11359, %v14334_v26   ;;  %v14342_v50 = vpop.permute.xlu1 %5128  ;;  %v14358_v26 = vmul.f32 -0.5, %v4322_v28  ;;  %v18943_v28 = vld [vmem:[#allocation104_spill] sm:$0xff]  ;;  %v4323_v57 = vadd.f32 %v18945_v37, %v18914_v30 }
 0x7ce   :  { %18929 = vst [vmem:[#allocation267_spill] sm:$0xff] %v14342_v50  ;;  %18938 = vst [vmem:[#allocation102_spill] sm:$0xff] %v14362_v52 }
 0x7cf   :  { %v14352_v7 = vpop.permute.xlu0 %5143  ;;  %18936 = vst [vmem:[#allocation270_spill] sm:$0xff] %v14358_v26 }
 0x7d0   :  { %18934 = vst [vmem:[#allocation93_spill] sm:$0xff] %v14352_v7  ;;  %5329 = vperm.xlu0 %11358, %v14344_v16   ;;  %v4326_v16 = vadd.f32 %v18943_v28, %v18901_v24  ;;  %v14376_v7 = vmul.f32 -0.5, %v4321_v35  ;;  %v18951_v35 = vld [vmem:[#allocation99_spill] sm:$0xff] }
 0x7d1   :  { %5320 = vperm.xlu1 %11359, %v14348_v8   ;;  %v14356_v18 = vpop.permute.xlu1 %5134  ;;  %v14372_v8 = vmul.f32 -0.5, %v4324_v49  ;;  %v18949_v49 = vld [vmem:[#allocation106_spill] sm:$0xff]  ;;  %v4325_v28 = vadd.f32 %v18951_v35, %v18914_v30 }
 0x7d2   :  { %18935 = vst [vmem:[#allocation269_spill] sm:$0xff] %v14356_v18  ;;  %18944 = vst [vmem:[#allocation104_spill] sm:$0xff] %v14376_v7 }
 0x7d3   :  { %v14366_v50 = vpop.permute.xlu0 %5149  ;;  %18942 = vst [vmem:[#allocation272_spill] sm:$0xff] %v14372_v8 }
 0x7d4   :  { %18940 = vst [vmem:[#allocation95_spill] sm:$0xff] %v14366_v50  ;;  %5335 = vperm.xlu0 %11358, %v14358_v26   ;;  %v4296_v26 = vadd.f32 %v18949_v49, %v18901_v24  ;;  %v14390_v50 = vmul.f32 -0.5, %v4323_v57  ;;  %v18957_v57 = vld [vmem:[#allocation101_spill] sm:$0xff] }
 0x7d5   :  { %5326 = vperm.xlu1 %11359, %v14362_v52   ;;  %v14370_v36 = vpop.permute.xlu1 %5140  ;;  %v14386_v52 = vmul.f32 -0.5, %v4326_v16  ;;  %v18955_v16 = vld [vmem:[#allocation108_spill] sm:$0xff]  ;;  %v4327_v49 = vadd.f32 %v18957_v57, %v18914_v30 }
 0x7d6   :  { %18941 = vst [vmem:[#allocation271_spill] sm:$0xff] %v14370_v36  ;;  %18950 = vst [vmem:[#allocation106_spill] sm:$0xff] %v14390_v50 }
 0x7d7   :  { %v14380_v18 = vpop.permute.xlu0 %5155  ;;  %18948 = vst [vmem:[#allocation274_spill] sm:$0xff] %v14386_v52 }
 0x7d8   :  { %18946 = vst [vmem:[#allocation97_spill] sm:$0xff] %v14380_v18  ;;  %5341 = vperm.xlu0 %11358, %v14372_v8   ;;  %v4298_v8 = vadd.f32 %v18955_v16, %v18901_v24  ;;  %v14404_v18 = vmul.f32 -0.5, %v4325_v28  ;;  %v18963_v28 = vld [vmem:[#allocation103_spill] sm:$0xff] }
 0x7d9   :  { %5332 = vperm.xlu1 %11359, %v14376_v7   ;;  %v14384_v60 = vpop.permute.xlu1 %5146  ;;  %v14400_v7 = vmul.f32 -0.5, %v4296_v26  ;;  %v18961_v26 = vld [vmem:[#allocation110_spill] sm:$0xff]  ;;  %v4297_v16 = vadd.f32 %v18963_v28, %v18914_v30 }
 0x7da   :  { %18947 = vst [vmem:[#allocation273_spill] sm:$0xff] %v14384_v60  ;;  %18956 = vst [vmem:[#allocation108_spill] sm:$0xff] %v14404_v18 }
 0x7db   :  { %v14394_v36 = vpop.permute.xlu0 %5065  ;;  %18954 = vst [vmem:[#allocation276_spill] sm:$0xff] %v14400_v7 }
 0x7dc   :  { %18952 = vst [vmem:[#allocation99_spill] sm:$0xff] %v14394_v36  ;;  %5347 = vperm.xlu0 %11358, %v14386_v52   ;;  %v4300_v52 = vadd.f32 %v18961_v26, %v18901_v24  ;;  %v14418_v36 = vmul.f32 -0.5, %v4327_v49  ;;  %v18969_v49 = vld [vmem:[#allocation105_spill] sm:$0xff] }
 0x7dd   :  { %5338 = vperm.xlu1 %11359, %v14390_v50   ;;  %v14398_v37 = vpop.permute.xlu1 %5152  ;;  %v14414_v50 = vmul.f32 -0.5, %v4298_v8  ;;  %v18967_v8 = vld [vmem:[#allocation112_spill] sm:$0xff]  ;;  %v4299_v26 = vadd.f32 %v18969_v49, %v18914_v30 }
 0x7de   :  { %18953 = vst [vmem:[#allocation275_spill] sm:$0xff] %v14398_v37  ;;  %18962 = vst [vmem:[#allocation110_spill] sm:$0xff] %v14418_v36 }
 0x7df   :  { %v14408_v60 = vpop.permute.xlu0 %5071  ;;  %18960 = vst [vmem:[#allocation278_spill] sm:$0xff] %v14414_v50 }
 0x7e0   :  { %18958 = vst [vmem:[#allocation101_spill] sm:$0xff] %v14408_v60  ;;  %5257 = vperm.xlu0 %11358, %v14400_v7   ;;  %v4302_v7 = vadd.f32 %v18967_v8, %v18901_v24 }
 0x7e1   :  { %5344 = vperm.xlu1 %11359, %v14404_v18   ;;  %v14412_v35 = vpop.permute.xlu1 %5158  ;;  %v14428_v18 = vmul.f32 -0.5, %v4300_v52  ;;  %v18973_v52 = vld [vmem:[#allocation114_spill] sm:$0xff] }
 0x7e2   :  { %18959 = vst [vmem:[#allocation277_spill] sm:$0xff] %v14412_v35  ;;  %v14432_v35 = vmul.f32 -0.5, %v4297_v16  ;;  %v18975_v16 = vld [vmem:[#allocation107_spill] sm:$0xff] }
 0x7e3   :  { %v14422_v37 = vpop.permute.xlu0 %5077  ;;  %18966 = vst [vmem:[#allocation280_spill] sm:$0xff] %v14428_v18  ;;  %v4301_v8 = vadd.f32 %v18975_v16, %v18914_v30 }
 0x7e4   :  { %18964 = vst [vmem:[#allocation103_spill] sm:$0xff] %v14422_v37  ;;  %5263 = vperm.xlu0 %11358, %v14414_v50   ;;  %18968 = vst [vmem:[#allocation112_spill] sm:$0xff] %v14432_v35  ;;  %v4304_v50 = vadd.f32 %v18973_v52, %v18901_v24  ;;  %v14446_v37 = vmul.f32 -0.5, %v4299_v26  ;;  %v18981_v26 = vld [vmem:[#allocation109_spill] sm:$0xff] }
 0x7e5   :  { %5350 = vperm.xlu1 %11359, %v14418_v36   ;;  %v14426_v57 = vpop.permute.xlu1 %5068  ;;  %v14442_v36 = vmul.f32 -0.5, %v4302_v7  ;;  %v18979_v7 = vld [vmem:[#allocation116_spill] sm:$0xff]  ;;  %v4303_v52 = vadd.f32 %v18981_v26, %v18914_v30 }
 0x7e6   :  { %18965 = vst [vmem:[#allocation279_spill] sm:$0xff] %v14426_v57  ;;  %18974 = vst [vmem:[#allocation114_spill] sm:$0xff] %v14446_v37 }
 0x7e7   :  { %v14436_v60 = vpop.permute.xlu0 %5083  ;;  %18972 = vst [vmem:[#allocation282_spill] sm:$0xff] %v14442_v36 }
 0x7e8   :  { %18970 = vst [vmem:[#allocation105_spill] sm:$0xff] %v14436_v60  ;;  %5269 = vperm.xlu0 %11358, %v14428_v18   ;;  %v4306_v18 = vadd.f32 %v18979_v7, %v18901_v24  ;;  %v14460_v60 = vmul.f32 -0.5, %v4301_v8  ;;  %v18986_v8 = vld [vmem:[#allocation111_spill] sm:$0xff] }
 0x7e9   :  { %5260 = vperm.xlu1 %11359, %v14432_v35   ;;  %v14440_v28 = vpop.permute.xlu1 %5074  ;;  %v14456_v35 = vmul.f32 -0.5, %v4304_v50  ;;  %v18984_v50 = vld [vmem:[#allocation118_spill] sm:$0xff]  ;;  %v4305_v7 = vadd.f32 %v18986_v8, %v18914_v30 }
 0x7ea   :  { %18971 = vst [vmem:[#allocation281_spill] sm:$0xff] %v14440_v28  ;;  %18980 = vst [vmem:[#allocation116_spill] sm:$0xff] %v14460_v60 }
 0x7eb   :  { %v14450_v57 = vpop.permute.xlu0 %5089  ;;  %18978 = vst [vmem:[#allocation284_spill] sm:$0xff] %v14456_v35 }
 0x7ec   :  { %18976 = vst [vmem:[#allocation107_spill] sm:$0xff] %v14450_v57  ;;  %5275 = vperm.xlu0 %11358, %v14442_v36   ;;  %v4308_v36 = vadd.f32 %v18984_v50, %v18901_v24  ;;  %v14474_v57 = vmul.f32 -0.5, %v4303_v52  ;;  %v18991_v52 = vld [vmem:[#allocation113_spill] sm:$0xff] }
 0x7ed   :  { %5266 = vperm.xlu1 %11359, %v14446_v37   ;;  %v14454_v49 = vpop.permute.xlu1 %5080  ;;  %v14470_v37 = vmul.f32 -0.5, %v4306_v18  ;;  %v4310_v18 = vadd.f32 %v13456_v32, %v18901_v24  ;;  %v4307_v50 = vadd.f32 %v18991_v52, %v18914_v30  ;;  %v18997_v32 = vld [vmem:[#allocation115_spill] sm:$0xff] }
 0x7ee   :  { %18977 = vst [vmem:[#allocation283_spill] sm:$0xff] %v14454_v49  ;;  %18985 = vst [vmem:[#allocation118_spill] sm:$0xff] %v14474_v57  ;;  %v4309_v24 = vadd.f32 %v18997_v32, %v18914_v30 }
 0x7ef   :  { %v14464_v28 = vpop.permute.xlu0 %5095  ;;  %18983 = vst [vmem:[#allocation285_spill] sm:$0xff] %v14470_v37 }
 0x7f0   :  { %18982 = vst [vmem:[#allocation109_spill] sm:$0xff] %v14464_v28  ;;  %5281 = vperm.xlu0 %11358, %v14456_v35   ;;  %v14488_v35 = vmul.f32 -0.5, %v4305_v7 }
 0x7f1   :  { %5272 = vperm.xlu1 %11359, %v14460_v60   ;;  %v14468_v16 = vpop.permute.xlu1 %5086  ;;  %v14484_v60 = vmul.f32 -0.5, %v4308_v36  ;;  %v18995_v36 = vld [vmem:[#allocation13_spill] sm:$0xff] }
 0x7f2   :  { %18990 = vst [vmem:[#allocation288_spill] sm:$0xff] %v14488_v35 }
 0x7f3   :  { %v14478_v49 = vpop.permute.xlu0 %5101  ;;  %18989 = vst [vmem:[#allocation287_spill] sm:$0xff] %v14484_v60 }
 0x7f4   :  { %18987 = vst [vmem:[#allocation111_spill] sm:$0xff] %v14478_v49  ;;  %5287 = vperm.xlu0 %11358, %v14470_v37   ;;  %v4344_v37 = vadd.f32 %v13461_v48, %v18995_v36  ;;  %v14502_v49 = vmul.f32 -0.5, %v4307_v50  ;;  %v19003_v48 = vld [vmem:[#allocation117_spill] sm:$0xff] }
 0x7f5   :  { %5278 = vperm.xlu1 %11359, %v14474_v57   ;;  %v14482_v26 = vpop.permute.xlu1 %5092  ;;  %v14498_v57 = vmul.f32 -0.5, %v4310_v18  ;;  %v19001_v18 = vld [vmem:[#allocation122_spill] sm:$0xff]  ;;  %v4311_v50 = vadd.f32 %v19003_v48, %v18914_v30 }
 0x7f6   :  { %18988 = vst [vmem:[#allocation286_spill] sm:$0xff] %v14482_v26  ;;  %18996 = vst [vmem:[#allocation13_spill] sm:$0xff] %v14502_v49 }
 0x7f7   :  { %v14492_v28 = vpop.permute.xlu0 %5107  ;;  %18994 = vst [vmem:[#allocation290_spill] sm:$0xff] %v14498_v57 }
 0x7f8   :  { %18992 = vst [vmem:[#allocation113_spill] sm:$0xff] %v14492_v28  ;;  %5293 = vperm.xlu0 %11358, %v14484_v60   ;;  %v4346_v60 = vadd.f32 %v19001_v18, %v18995_v36  ;;  %v14516_v28 = vmul.f32 -0.5, %v4309_v24  ;;  %v19008_v24 = vld [vmem:[#allocation15_spill] sm:$0xff] }
 0x7f9   :  { %5284 = vperm.xlu1 %11359, %v14488_v35   ;;  %v14496_v8 = vpop.permute.xlu1 %5098  ;;  %v14512_v35 = vmul.f32 -0.5, %v4344_v37  ;;  %v19006_v37 = vld [vmem:[#allocation124_spill] sm:$0xff]  ;;  %v19009_v18 = vld [vmem:[#allocation119_spill] sm:$0xff] }
 0x7fa   :  { %18993 = vst [vmem:[#allocation289_spill] sm:$0xff] %v14496_v8  ;;  %19002 = vst [vmem:[#allocation122_spill] sm:$0xff] %v14516_v28 }
 0x7fb   :  { %v14506_v7 = vpop.permute.xlu0 %5209  ;;  %19000 = vst [vmem:[#allocation292_spill] sm:$0xff] %v14512_v35 }
 0x7fc   :  { %18998 = vst [vmem:[#allocation115_spill] sm:$0xff] %v14506_v7  ;;  %5299 = vperm.xlu0 %11358, %v14498_v57   ;;  %v4348_v57 = vadd.f32 %v19006_v37, %v18995_v36  ;;  %v14530_v7 = vmul.f32 -0.5, %v4311_v50  ;;  %v19015_v50 = vld [vmem:[#allocation120_spill] sm:$0xff] }
 0x7fd   :  { %5290 = vperm.xlu1 %11359, %v14502_v49   ;;  %v14510_v52 = vpop.permute.xlu1 %5104  ;;  %v14526_v49 = vmul.f32 -0.5, %v4346_v60  ;;  %v19013_v60 = vld [vmem:[#allocation126_spill] sm:$0xff]  ;;  %v4347_v37 = vadd.f32 %v19015_v50, %v19008_v24 }
 0x7fe   :  { %18999 = vst [vmem:[#allocation291_spill] sm:$0xff] %v14510_v52  ;;  %19007 = vst [vmem:[#allocation124_spill] sm:$0xff] %v14530_v7  ;;  %v4345_v52 = vadd.f32 %v19009_v18, %v19008_v24  ;;  %v14540_v48 = vmul.f32 -0.5, %v4348_v57  ;;  %v19019_v57 = vld [vmem:[#allocation128_spill] sm:$0xff] }
 0x7ff   :  { %v14520_v8 = vpop.permute.xlu0 %5215  ;;  %19005 = vst [vmem:[#allocation293_spill] sm:$0xff] %v14526_v49 }
 0x800   :  { %19004 = vst [vmem:[#allocation117_spill] sm:$0xff] %v14520_v8  ;;  %5401 = vperm.xlu0 %11358, %v14512_v35   ;;  %19012 = vst [vmem:[#allocation294_spill] sm:$0xff] %v14540_v48  ;;  %v4350_v35 = vadd.f32 %v19013_v60, %v18995_v36 }
 0x801   :  { %5296 = vperm.xlu1 %11359, %v14516_v28   ;;  %v14524_v32 = vpop.permute.xlu1 %5110  ;;  %v14544_v28 = vmul.f32 -0.5, %v4345_v52  ;;  %v19021_v52 = vld [vmem:[#allocation121_spill] sm:$0xff] }
 0x802   :  { %v4349_v60 = vadd.f32 %v19021_v52, %v19008_v24 }
 0x803   :  { %v14534_v26 = vpop.permute.xlu0 %5221  ;;  %19014 = vst [vmem:[#allocation126_spill] sm:$0xff] %v14544_v28 }
 0x804   :  { %19010 = vst [vmem:[#allocation15_spill] sm:$0xff] %v14534_v26  ;;  %5407 = vperm.xlu0 %11358, %v14526_v49   ;;  %v14554_v49 = vmul.f32 -0.5, %v4350_v35  ;;  %v14558_v26 = vmul.f32 -0.5, %v4347_v37  ;;  %v19025_v35 = vld [vmem:[#allocation130_spill] sm:$0xff]  ;;  %v19027_v37 = vld [vmem:[#allocation123_spill] sm:$0xff] }
 0x805   :  { %5302 = vperm.xlu1 %11359, %v14530_v7   ;;  %v14538_v30 = vpop.permute.xlu1 %5212  ;;  %v4352_v7 = vadd.f32 %v19019_v57, %v18995_v36  ;;  %v4351_v57 = vadd.f32 %v19027_v37, %v19008_v24 }
 0x806   :  { %19011 = vst [vmem:[#allocation119_spill] sm:$0xff] %v14538_v30  ;;  %19018 = vst [vmem:[#allocation296_spill] sm:$0xff] %v14554_v49 }
 0x807   :  { %v14548_v8 = vpop.permute.xlu0 %5227  ;;  %19020 = vst [vmem:[#allocation128_spill] sm:$0xff] %v14558_v26 }
 0x808   :  { %19016 = vst [vmem:[#allocation120_spill] sm:$0xff] %v14548_v8  ;;  %5413 = vperm.xlu0 %11358, %v14540_v48   ;;  %v4354_v48 = vadd.f32 %v19025_v35, %v18995_v36  ;;  %v14572_v8 = vmul.f32 -0.5, %v4349_v60  ;;  %v19033_v60 = vld [vmem:[#allocation125_spill] sm:$0xff] }
 0x809   :  { %5404 = vperm.xlu1 %11359, %v14544_v28   ;;  %v14552_v18 = vpop.permute.xlu1 %5218  ;;  %v14568_v28 = vmul.f32 -0.5, %v4352_v7  ;;  %v19031_v7 = vld [vmem:[#allocation132_spill] sm:$0xff]  ;;  %v4353_v35 = vadd.f32 %v19033_v60, %v19008_v24 }
 0x80a   :  { %19017 = vst [vmem:[#allocation295_spill] sm:$0xff] %v14552_v18  ;;  %19026 = vst [vmem:[#allocation130_spill] sm:$0xff] %v14572_v8 }
 0x80b   :  { %v14562_v30 = vpop.permute.xlu0 %5233  ;;  %19024 = vst [vmem:[#allocation298_spill] sm:$0xff] %v14568_v28 }
 0x80c   :  { %19022 = vst [vmem:[#allocation121_spill] sm:$0xff] %v14562_v30  ;;  %5419 = vperm.xlu0 %11358, %v14554_v49   ;;  %v4356_v49 = vadd.f32 %v19031_v7, %v18995_v36  ;;  %v14586_v30 = vmul.f32 -0.5, %v4351_v57  ;;  %v19038_v57 = vld [vmem:[#allocation127_spill] sm:$0xff] }
 0x80d   :  { %5410 = vperm.xlu1 %11359, %v14558_v26   ;;  %v14566_v50 = vpop.permute.xlu1 %5224  ;;  %v14582_v26 = vmul.f32 -0.5, %v4354_v48  ;;  %v19036_v48 = vld [vmem:[#allocation134_spill] sm:$0xff]  ;;  %v4355_v7 = vadd.f32 %v19038_v57, %v19008_v24 }
 0x80e   :  { %19023 = vst [vmem:[#allocation297_spill] sm:$0xff] %v14566_v50  ;;  %19032 = vst [vmem:[#allocation132_spill] sm:$0xff] %v14586_v30 }
 0x80f   :  { %v14576_v18 = vpop.permute.xlu0 %5239  ;;  %19030 = vst [vmem:[#allocation300_spill] sm:$0xff] %v14582_v26 }
 0x810   :  { %19028 = vst [vmem:[#allocation123_spill] sm:$0xff] %v14576_v18  ;;  %5425 = vperm.xlu0 %11358, %v14568_v28   ;;  %v4358_v28 = vadd.f32 %v19036_v48, %v18995_v36  ;;  %v14600_v18 = vmul.f32 -0.5, %v4353_v35  ;;  %v19043_v35 = vld [vmem:[#allocation129_spill] sm:$0xff] }
 0x811   :  { %5416 = vperm.xlu1 %11359, %v14572_v8   ;;  %v14580_v52 = vpop.permute.xlu1 %5230  ;;  %v14596_v8 = vmul.f32 -0.5, %v4356_v49  ;;  %v4328_v49 = vadd.f32 %v13501_v62, %v18995_v36  ;;  %v4357_v48 = vadd.f32 %v19043_v35, %v19008_v24  ;;  %v19049_v62 = vld [vmem:[#allocation131_spill] sm:$0xff] }
 0x812   :  { %19029 = vst [vmem:[#allocation299_spill] sm:$0xff] %v14580_v52  ;;  %19037 = vst [vmem:[#allocation134_spill] sm:$0xff] %v14600_v18 }
 0x813   :  { %v14590_v50 = vpop.permute.xlu0 %5245  ;;  %19035 = vst [vmem:[#allocation301_spill] sm:$0xff] %v14596_v8 }
 0x814   :  { %19034 = vst [vmem:[#allocation125_spill] sm:$0xff] %v14590_v50  ;;  %5431 = vperm.xlu0 %11358, %v14582_v26   ;;  %v14614_v26 = vmul.f32 -0.5, %v4355_v7  ;;  %v4359_v7 = vadd.f32 %v19049_v62, %v19008_v24 }
 0x815   :  { %5422 = vperm.xlu1 %11359, %v14586_v30   ;;  %v14594_v37 = vpop.permute.xlu1 %5236  ;;  %v14610_v30 = vmul.f32 -0.5, %v4358_v28  ;;  %v19047_v28 = vld [vmem:[#allocation137_spill] sm:$0xff] }
 0x816   :  { %19042 = vst [vmem:[#allocation304_spill] sm:$0xff] %v14614_v26 }
 0x817   :  { %v14604_v52 = vpop.permute.xlu0 %5251  ;;  %19041 = vst [vmem:[#allocation303_spill] sm:$0xff] %v14610_v30 }
 0x818   :  { %19039 = vst [vmem:[#allocation127_spill] sm:$0xff] %v14604_v52  ;;  %5437 = vperm.xlu0 %11358, %v14596_v8   ;;  %v4330_v8 = vadd.f32 %v19047_v28, %v18995_v36  ;;  %v14628_v52 = vmul.f32 -0.5, %v4357_v48  ;;  %v19055_v48 = vld [vmem:[#allocation133_spill] sm:$0xff] }
 0x819   :  { %5428 = vperm.xlu1 %11359, %v14600_v18   ;;  %v14608_v60 = vpop.permute.xlu1 %5242  ;;  %v14624_v18 = vmul.f32 -0.5, %v4328_v49  ;;  %v19053_v49 = vld [vmem:[#allocation139_spill] sm:$0xff]  ;;  %v4329_v28 = vadd.f32 %v19055_v48, %v19008_v24 }
 0x81a   :  { %19040 = vst [vmem:[#allocation302_spill] sm:$0xff] %v14608_v60  ;;  %19048 = vst [vmem:[#allocation137_spill] sm:$0xff] %v14628_v52 }
 0x81b   :  { %v14618_v50 = vpop.permute.xlu0 %5161  ;;  %19046 = vst [vmem:[#allocation306_spill] sm:$0xff] %v14624_v18 }
 0x81c   :  { %19044 = vst [vmem:[#allocation129_spill] sm:$0xff] %v14618_v50  ;;  %5443 = vperm.xlu0 %11358, %v14610_v30   ;;  %v4332_v30 = vadd.f32 %v19053_v49, %v18995_v36  ;;  %v14642_v50 = vmul.f32 -0.5, %v4359_v7  ;;  %v19061_v7 = vld [vmem:[#allocation135_spill] sm:$0xff] }
 0x81d   :  { %5434 = vperm.xlu1 %11359, %v14614_v26   ;;  %v14622_v57 = vpop.permute.xlu1 %5248  ;;  %v14638_v26 = vmul.f32 -0.5, %v4330_v8  ;;  %v19059_v8 = vld [vmem:[#allocation141_spill] sm:$0xff]  ;;  %v4331_v49 = vadd.f32 %v19061_v7, %v19008_v24 }
 0x81e   :  { %19045 = vst [vmem:[#allocation305_spill] sm:$0xff] %v14622_v57  ;;  %19054 = vst [vmem:[#allocation139_spill] sm:$0xff] %v14642_v50 }
 0x81f   :  { %v14632_v60 = vpop.permute.xlu0 %5167  ;;  %19052 = vst [vmem:[#allocation308_spill] sm:$0xff] %v14638_v26 }
 0x820   :  { %19050 = vst [vmem:[#allocation131_spill] sm:$0xff] %v14632_v60  ;;  %5353 = vperm.xlu0 %11358, %v14624_v18   ;;  %v4334_v18 = vadd.f32 %v19059_v8, %v18995_v36 }
 0x821   :  { %5440 = vperm.xlu1 %11359, %v14628_v52   ;;  %v14636_v35 = vpop.permute.xlu1 %5254  ;;  %v14652_v52 = vmul.f32 -0.5, %v4332_v30  ;;  %v19065_v30 = vld [vmem:[#allocation143_spill] sm:$0xff] }
 0x822   :  { %19051 = vst [vmem:[#allocation307_spill] sm:$0xff] %v14636_v35  ;;  %v14656_v35 = vmul.f32 -0.5, %v4329_v28  ;;  %v19067_v28 = vld [vmem:[#allocation136_spill] sm:$0xff] }
 0x823   :  { %v14646_v57 = vpop.permute.xlu0 %5173  ;;  %19058 = vst [vmem:[#allocation310_spill] sm:$0xff] %v14652_v52  ;;  %v4333_v8 = vadd.f32 %v19067_v28, %v19008_v24 }
 0x824   :  { %19056 = vst [vmem:[#allocation133_spill] sm:$0xff] %v14646_v57  ;;  %5359 = vperm.xlu0 %11358, %v14638_v26   ;;  %19060 = vst [vmem:[#allocation141_spill] sm:$0xff] %v14656_v35  ;;  %v4336_v26 = vadd.f32 %v19065_v30, %v18995_v36  ;;  %v14670_v57 = vmul.f32 -0.5, %v4331_v49  ;;  %v19072_v49 = vld [vmem:[#allocation138_spill] sm:$0xff] }
 0x825   :  { %5446 = vperm.xlu1 %11359, %v14642_v50   ;;  %v14650_v62 = vpop.permute.xlu1 %5164  ;;  %v14666_v50 = vmul.f32 -0.5, %v4334_v18  ;;  %v19070_v18 = vld [vmem:[#allocation145_spill] sm:$0xff]  ;;  %v4335_v30 = vadd.f32 %v19072_v49, %v19008_v24 }
 0x826   :  { %19057 = vst [vmem:[#allocation309_spill] sm:$0xff] %v14650_v62  ;;  %19066 = vst [vmem:[#allocation143_spill] sm:$0xff] %v14670_v57 }
 0x827   :  { %v14660_v60 = vpop.permute.xlu0 %5179  ;;  %19064 = vst [vmem:[#allocation312_spill] sm:$0xff] %v14666_v50 }
 0x828   :  { %19062 = vst [vmem:[#allocation135_spill] sm:$0xff] %v14660_v60  ;;  %5365 = vperm.xlu0 %11358, %v14652_v52   ;;  %v4338_v52 = vadd.f32 %v19070_v18, %v18995_v36  ;;  %v14684_v60 = vmul.f32 -0.5, %v4333_v8  ;;  %v19076_v8 = vld [vmem:[#allocation140_spill] sm:$0xff] }
 0x829   :  { %5356 = vperm.xlu1 %11359, %v14656_v35   ;;  %v14664_v48 = vpop.permute.xlu1 %5170  ;;  %v14680_v35 = vmul.f32 -0.5, %v4336_v26  ;;  %v4340_v26 = vadd.f32 %v13533_v42, %v18995_v36  ;;  %v4337_v18 = vadd.f32 %v19076_v8, %v19008_v24  ;;  %v19081_v42 = vld [vmem:[#allocation142_spill] sm:$0xff] }
 0x82a   :  { %19063 = vst [vmem:[#allocation311_spill] sm:$0xff] %v14664_v48  ;;  %19071 = vst [vmem:[#allocation145_spill] sm:$0xff] %v14684_v60 }
 0x82b   :  { %v14674_v62 = vpop.permute.xlu0 %5185  ;;  %19069 = vst [vmem:[#allocation313_spill] sm:$0xff] %v14680_v35 }
 0x82c   :  { %19068 = vst [vmem:[#allocation136_spill] sm:$0xff] %v14674_v62  ;;  %5371 = vperm.xlu0 %11358, %v14666_v50   ;;  %v14698_v50 = vmul.f32 -0.5, %v4335_v30  ;;  %v4339_v30 = vadd.f32 %v19081_v42, %v19008_v24 }
 0x82d   :  { %5362 = vperm.xlu1 %11359, %v14670_v57   ;;  %v14678_v7 = vpop.permute.xlu1 %5176  ;;  %v14694_v57 = vmul.f32 -0.5, %v4338_v52  ;;  %v4342_v52 = vadd.f32 %v13541_v54, %v18995_v36  ;;  %v19087_v54 = vld [vmem:[#allocation144_spill] sm:$0xff] }
 0x82e   :  { %19075 = vst [vmem:[#allocation315_spill] sm:$0xff] %v14698_v50  ;;  %v4341_v36 = vadd.f32 %v19087_v54, %v19008_v24 }
 0x82f   :  { %v14688_v48 = vpop.permute.xlu0 %5191  ;;  %19074 = vst [vmem:[#allocation314_spill] sm:$0xff] %v14694_v57 }
 0x830   :  { %19073 = vst [vmem:[#allocation138_spill] sm:$0xff] %v14688_v48  ;;  %5377 = vperm.xlu0 %11358, %v14680_v35   ;;  %v14712_v35 = vmul.f32 -0.5, %v4337_v18 }
 0x831   :  { %5368 = vperm.xlu1 %11359, %v14684_v60   ;;  %v14692_v28 = vpop.permute.xlu1 %5182  ;;  %v14708_v60 = vmul.f32 -0.5, %v4340_v26  ;;  %v19085_v26 = vld [vmem:[#allocation14_spill] sm:$0xff] }
 0x832   :  { %19080 = vst [vmem:[#allocation318_spill] sm:$0xff] %v14712_v35 }
 0x833   :  { %v14702_v62 = vpop.permute.xlu0 %5197  ;;  %19079 = vst [vmem:[#allocation317_spill] sm:$0xff] %v14708_v60 }
 0x834   :  { %19077 = vst [vmem:[#allocation140_spill] sm:$0xff] %v14702_v62  ;;  %5383 = vperm.xlu0 %11358, %v14694_v57   ;;  %v4376_v57 = vadd.f32 %v13546_v9, %v19085_v26  ;;  %v14726_v62 = vmul.f32 -0.5, %v4339_v30  ;;  %v19093_v9 = vld [vmem:[#allocation146_spill] sm:$0xff] }
 0x835   :  { %5374 = vperm.xlu1 %11359, %v14698_v50   ;;  %v14706_v49 = vpop.permute.xlu1 %5188  ;;  %v14722_v50 = vmul.f32 -0.5, %v4342_v52  ;;  %v19091_v52 = vld [vmem:[#allocation150_spill] sm:$0xff]  ;;  %v4343_v30 = vadd.f32 %v19093_v9, %v19008_v24 }
 0x836   :  { %19078 = vst [vmem:[#allocation316_spill] sm:$0xff] %v14706_v49  ;;  %19086 = vst [vmem:[#allocation14_spill] sm:$0xff] %v14726_v62 }
 0x837   :  { %v14716_v48 = vpop.permute.xlu0 %5203  ;;  %19084 = vst [vmem:[#allocation320_spill] sm:$0xff] %v14722_v50 }
 0x838   :  { %19082 = vst [vmem:[#allocation142_spill] sm:$0xff] %v14716_v48  ;;  %5389 = vperm.xlu0 %11358, %v14708_v60   ;;  %v4378_v60 = vadd.f32 %v19091_v52, %v19085_v26  ;;  %v14740_v48 = vmul.f32 -0.5, %v4341_v36  ;;  %v19099_v36 = vld [vmem:[#allocation17_spill] sm:$0xff]  ;;  %v19100_v52 = vld [vmem:[#allocation147_spill] sm:$0xff] }
 0x839   :  { %5380 = vperm.xlu1 %11359, %v14712_v35   ;;  %v14720_v8 = vpop.permute.xlu1 %5194  ;;  %v14736_v35 = vmul.f32 -0.5, %v4376_v57  ;;  %v19097_v57 = vld [vmem:[#allocation152_spill] sm:$0xff] }
 0x83a   :  { %19083 = vst [vmem:[#allocation319_spill] sm:$0xff] %v14720_v8  ;;  %19092 = vst [vmem:[#allocation150_spill] sm:$0xff] %v14740_v48 }
 0x83b   :  { %v14730_v18 = vpop.permute.xlu0 %5305  ;;  %19090 = vst [vmem:[#allocation322_spill] sm:$0xff] %v14736_v35 }
 0x83c   :  { %19088 = vst [vmem:[#allocation144_spill] sm:$0xff] %v14730_v18  ;;  %5395 = vperm.xlu0 %11358, %v14722_v50   ;;  %v4380_v50 = vadd.f32 %v19097_v57, %v19085_v26  ;;  %v14754_v18 = vmul.f32 -0.5, %v4343_v30  ;;  %v19106_v30 = vld [vmem:[#allocation148_spill] sm:$0xff] }
 0x83d   :  { %5386 = vperm.xlu1 %11359, %v14726_v62   ;;  %v14734_v42 = vpop.permute.xlu1 %5200  ;;  %v14750_v62 = vmul.f32 -0.5, %v4378_v60  ;;  %v19104_v60 = vld [vmem:[#allocation154_spill] sm:$0xff]  ;;  %v4379_v57 = vadd.f32 %v19106_v30, %v19099_v36 }
 0x83e   :  { %19089 = vst [vmem:[#allocation321_spill] sm:$0xff] %v14734_v42  ;;  %19098 = vst [vmem:[#allocation152_spill] sm:$0xff] %v14754_v18  ;;  %v4377_v42 = vadd.f32 %v19100_v52, %v19099_v36  ;;  %v14764_v9 = vmul.f32 -0.5, %v4380_v50  ;;  %v19109_v50 = vld [vmem:[#allocation156_spill] sm:$0xff] }
 0x83f   :  { %v14744_v8 = vpop.permute.xlu0 %5311  ;;  %19096 = vst [vmem:[#allocation324_spill] sm:$0xff] %v14750_v62 }
 0x840   :  { %19094 = vst [vmem:[#allocation146_spill] sm:$0xff] %v14744_v8  ;;  %5497 = vperm.xlu0 %11358, %v14736_v35   ;;  %19103 = vst [vmem:[#allocation325_spill] sm:$0xff] %v14764_v9  ;;  %v4382_v35 = vadd.f32 %v19104_v60, %v19085_v26 }
 0x841   :  { %5392 = vperm.xlu1 %11359, %v14740_v48   ;;  %v14748_v54 = vpop.permute.xlu1 %5206  ;;  %v14768_v48 = vmul.f32 -0.5, %v4377_v42  ;;  %v19111_v42 = vld [vmem:[#allocation149_spill] sm:$0xff] }
 0x842   :  { %19095 = vst [vmem:[#allocation323_spill] sm:$0xff] %v14748_v54  ;;  %v4381_v60 = vadd.f32 %v19111_v42, %v19099_v36 }
 0x843   :  { %v14758_v49 = vpop.permute.xlu0 %5317  ;;  %19105 = vst [vmem:[#allocation154_spill] sm:$0xff] %v14768_v48 }
 0x844   :  { %19101 = vst [vmem:[#allocation17_spill] sm:$0xff] %v14758_v49  ;;  %5503 = vperm.xlu0 %11358, %v14750_v62   ;;  %v14778_v62 = vmul.f32 -0.5, %v4382_v35  ;;  %v14782_v49 = vmul.f32 -0.5, %v4379_v57  ;;  %v19115_v35 = vld [vmem:[#allocation158_spill] sm:$0xff]  ;;  %v19117_v57 = vld [vmem:[#allocation151_spill] sm:$0xff] }
 0x845   :  { %5398 = vperm.xlu1 %11359, %v14754_v18   ;;  %v14762_v24 = vpop.permute.xlu1 %5308  ;;  %v4384_v18 = vadd.f32 %v19109_v50, %v19085_v26  ;;  %v4383_v50 = vadd.f32 %v19117_v57, %v19099_v36 }
 0x846   :  { %19102 = vst [vmem:[#allocation147_spill] sm:$0xff] %v14762_v24  ;;  %19108 = vst [vmem:[#allocation326_spill] sm:$0xff] %v14778_v62 }
 0x847   :  { %v14772_v54 = vpop.permute.xlu0 %5323  ;;  %19110 = vst [vmem:[#allocation156_spill] sm:$0xff] %v14782_v49 }
 0x848   :  { %19107 = vst [vmem:[#allocation148_spill] sm:$0xff] %v14772_v54  ;;  %5509 = vperm.xlu0 %11358, %v14764_v9   ;;  %v4386_v9 = vadd.f32 %v19115_v35, %v19085_v26  ;;  %v14796_v54 = vmul.f32 -0.5, %v4381_v60  ;;  %v19123_v60 = vld [vmem:[#allocation153_spill] sm:$0xff] }
 0x849   :  { %5500 = vperm.xlu1 %11359, %v14768_v48   ;;  %v14776_v52 = vpop.permute.xlu1 %5314  ;;  %v14792_v48 = vmul.f32 -0.5, %v4384_v18  ;;  %v19121_v18 = vld [vmem:[#allocation160_spill] sm:$0xff]  ;;  %v4385_v35 = vadd.f32 %v19123_v60, %v19099_v36 }
 0x84a   :  { %19116 = vst [vmem:[#allocation158_spill] sm:$0xff] %v14796_v54 }
 0x84b   :  { %v14786_v24 = vpop.permute.xlu0 %5329  ;;  %19114 = vst [vmem:[#allocation328_spill] sm:$0xff] %v14792_v48 }
 0x84c   :  { %19112 = vst [vmem:[#allocation149_spill] sm:$0xff] %v14786_v24  ;;  %5515 = vperm.xlu0 %11358, %v14778_v62   ;;  %v4388_v62 = vadd.f32 %v19121_v18, %v19085_v26  ;;  %v14810_v24 = vmul.f32 -0.5, %v4383_v50  ;;  %v19128_v50 = vld [vmem:[#allocation155_spill] sm:$0xff] }
 0x84d   :  { %5506 = vperm.xlu1 %11359, %v14782_v49   ;;  %v14790_v30 = vpop.permute.xlu1 %5320  ;;  %v14806_v49 = vmul.f32 -0.5, %v4386_v9  ;;  %v19126_v9 = vld [vmem:[#allocation162_spill] sm:$0xff]  ;;  %v4387_v18 = vadd.f32 %v19128_v50, %v19099_v36 }
 0x84e   :  { %19113 = vst [vmem:[#allocation327_spill] sm:$0xff] %v14790_v30  ;;  %19122 = vst [vmem:[#allocation160_spill] sm:$0xff] %v14810_v24 }
 0x84f   :  { %v14800_v8 = vpop.permute.xlu0 %5335  ;;  %19120 = vst [vmem:[#allocation330_spill] sm:$0xff] %v14806_v49 }
 0x850   :  { %19118 = vst [vmem:[#allocation151_spill] sm:$0xff] %v14800_v8  ;;  %5521 = vperm.xlu0 %11358, %v14792_v48   ;;  %v4390_v48 = vadd.f32 %v19126_v9, %v19085_v26  ;;  %v14824_v8 = vmul.f32 -0.5, %v4385_v35  ;;  %v19132_v35 = vld [vmem:[#allocation157_spill] sm:$0xff] }
 0x851   :  { %5512 = vperm.xlu1 %11359, %v14796_v54   ;;  %v14804_v42 = vpop.permute.xlu1 %5326  ;;  %v14820_v54 = vmul.f32 -0.5, %v4388_v62  ;;  %v4360_v62 = vadd.f32 %v13586_v25, %v19085_v26  ;;  %v4389_v9 = vadd.f32 %v19132_v35, %v19099_v36  ;;  %v19136_v25 = vld [vmem:[#allocation159_spill] sm:$0xff] }
 0x852   :  { %19119 = vst [vmem:[#allocation329_spill] sm:$0xff] %v14804_v42  ;;  %19127 = vst [vmem:[#allocation162_spill] sm:$0xff] %v14824_v8 }
 0x853   :  { %v14814_v30 = vpop.permute.xlu0 %5341  ;;  %19125 = vst [vmem:[#allocation331_spill] sm:$0xff] %v14820_v54 }
 0x854   :  { %19124 = vst [vmem:[#allocation153_spill] sm:$0xff] %v14814_v30  ;;  %5527 = vperm.xlu0 %11358, %v14806_v49   ;;  %v14838_v49 = vmul.f32 -0.5, %v4387_v18  ;;  %v4391_v18 = vadd.f32 %v19136_v25, %v19099_v36 }
 0x855   :  { %5518 = vperm.xlu1 %11359, %v14810_v24   ;;  %v14818_v57 = vpop.permute.xlu1 %5332  ;;  %v14834_v24 = vmul.f32 -0.5, %v4390_v48  ;;  %v4362_v48 = vadd.f32 %v13591_v3, %v19085_v26  ;;  %v19139_v3 = vld [vmem:[#allocation161_spill] sm:$0xff] }
 0x856   :  { %19131 = vst [vmem:[#allocation333_spill] sm:$0xff] %v14838_v49 }
 0x857   :  { %v14828_v42 = vpop.permute.xlu0 %5347  ;;  %19130 = vst [vmem:[#allocation332_spill] sm:$0xff] %v14834_v24 }
 0x858   :  { %19129 = vst [vmem:[#allocation155_spill] sm:$0xff] %v14828_v42  ;;  %5533 = vperm.xlu0 %11358, %v14820_v54   ;;  %v14852_v54 = vmul.f32 -0.5, %v4389_v9  ;;  %v4361_v9 = vadd.f32 %v19139_v3, %v19099_v36 }
 0x859   :  { %5524 = vperm.xlu1 %11359, %v14824_v8   ;;  %v14832_v60 = vpop.permute.xlu1 %5338  ;;  %v14848_v8 = vmul.f32 -0.5, %v4360_v62  ;;  %v4364_v62 = vadd.f32 %v13596_v11, %v19085_v26  ;;  %v4363_v11 = vadd.f32 %v13584_v40, %v19099_v36 }
 0x85a   :  { %19135 = vst [vmem:[#allocation335_spill] sm:$0xff] %v14852_v54 }
 0x85b   :  { %v14842_v30 = vpop.permute.xlu0 %5257  ;;  %19134 = vst [vmem:[#allocation334_spill] sm:$0xff] %v14848_v8 }
 0x85c   :  { %19133 = vst [vmem:[#allocation157_spill] sm:$0xff] %v14842_v30  ;;  %5539 = vperm.xlu0 %11358, %v14834_v24   ;;  %v14866_v24 = vmul.f32 -0.5, %v4391_v18 }
 0x85d   :  { %5530 = vperm.xlu1 %11359, %v14838_v49   ;;  %v14846_v50 = vpop.permute.xlu1 %5344  ;;  %v14862_v49 = vmul.f32 -0.5, %v4362_v48  ;;  %v4366_v48 = vadd.f32 %v13601_v20, %v19085_v26  ;;  %v4365_v20 = vadd.f32 %v13589_v44, %v19099_v36 }
 0x85e   :  { %19138 = vst [vmem:[#allocation336_spill] sm:$0xff] %v14866_v24 }
 0x85f   :  { %v14856_v42 = vpop.permute.xlu0 %5263  ;;  %19137 = vst [vmem:[#allocation159_spill] sm:$0xff] %v14862_v49 }
 0x860   :  { %5449 = vperm.xlu0 %11358, %v14848_v8   ;;  %v14880_v8 = vmul.f32 -0.5, %v4361_v9 }
 0x861   :  { %5536 = vperm.xlu1 %11359, %v14852_v54   ;;  %v14860_v35 = vpop.permute.xlu1 %5350  ;;  %v14876_v54 = vmul.f32 -0.5, %v4364_v62  ;;  %v4368_v62 = vadd.f32 %v13606_v6, %v19085_v26  ;;  %v19149_v6 = vld [vmem:[#allocation163_spill] sm:$0xff] }
 0x862   :  { %19142 = vst [vmem:[#allocation338_spill] sm:$0xff] %v14880_v8 }
 0x863   :  { %v14870_v30 = vpop.permute.xlu0 %5269  ;;  %19141 = vst [vmem:[#allocation337_spill] sm:$0xff] %v14876_v54 }
 0x864   :  { %19140 = vst [vmem:[#allocation161_spill] sm:$0xff] %v14870_v30  ;;  %5455 = vperm.xlu0 %11358, %v14862_v49   ;;  %v14894_v49 = vmul.f32 -0.5, %v4363_v11  ;;  %v4367_v11 = vadd.f32 %v19149_v6, %v19099_v36 }
 0x865   :  { %5542 = vperm.xlu1 %11359, %v14866_v24   ;;  %v14874_v25 = vpop.permute.xlu1 %5260  ;;  %v14890_v24 = vmul.f32 -0.5, %v4366_v48  ;;  %v4370_v48 = vadd.f32 %v13611_v2, %v19085_v26  ;;  %v19153_v2 = vld [vmem:[#allocation164_spill] sm:$0xff] }
 0x866   :  { %19145 = vst [vmem:[#allocation341_spill] sm:$0xff] %v14894_v49 }
 0x867   :  { %v14884_v18 = vpop.permute.xlu0 %5275  ;;  %19144 = vst [vmem:[#allocation340_spill] sm:$0xff] %v14890_v24 }
 0x868   :  { %19143 = vst [vmem:[#allocation339_spill] sm:$0xff] %v14884_v18  ;;  %5461 = vperm.xlu0 %11358, %v14876_v54   ;;  %v14908_v54 = vmul.f32 -0.5, %v4365_v20  ;;  %v4369_v20 = vadd.f32 %v19153_v2, %v19099_v36 }
 0x869   :  { %5452 = vperm.xlu1 %11359, %v14880_v8   ;;  %v14888_v3 = vpop.permute.xlu1 %5266  ;;  %v14904_v8 = vmul.f32 -0.5, %v4368_v62  ;;  %v4372_v62 = vadd.f32 %v13616_v22, %v19085_v26  ;;  %v19158_v22 = vld [vmem:[#allocation165_spill] sm:$0xff] }
 0x86a   :  { %19148 = vst [vmem:[#allocation344_spill] sm:$0xff] %v14908_v54 }
 0x86b   :  { %v14898_v9 = vpop.permute.xlu0 %5281  ;;  %19147 = vst [vmem:[#allocation343_spill] sm:$0xff] %v14904_v8 }
 0x86c   :  { %19146 = vst [vmem:[#allocation342_spill] sm:$0xff] %v14898_v9  ;;  %5467 = vperm.xlu0 %11358, %v14890_v24   ;;  %v14922_v24 = vmul.f32 -0.5, %v4367_v11  ;;  %v4371_v11 = vadd.f32 %v19158_v22, %v19099_v36 }
 0x86d   :  { %5458 = vperm.xlu1 %11359, %v14894_v49   ;;  %v14902_v40 = vpop.permute.xlu1 %5272  ;;  %v14918_v49 = vmul.f32 -0.5, %v4370_v48  ;;  %v4374_v48 = vadd.f32 %v13621_v46, %v19085_v26  ;;  %v19164_v46 = vld [vmem:[#allocation166_spill] sm:$0xff] }
 0x86e   :  { %19152 = vst [vmem:[#allocation346_spill] sm:$0xff] %v14922_v24  ;;  %v4373_v26 = vadd.f32 %v19164_v46, %v19099_v36 }
 0x86f   :  { %v14912_v18 = vpop.permute.xlu0 %5287  ;;  %19151 = vst [vmem:[#allocation345_spill] sm:$0xff] %v14918_v49 }
 0x870   :  { %19150 = vst [vmem:[#allocation163_spill] sm:$0xff] %v14912_v18  ;;  %5473 = vperm.xlu0 %11358, %v14904_v8   ;;  %v14936_v8 = vmul.f32 -0.5, %v4369_v20 }
 0x871   :  { %5464 = vperm.xlu1 %11359, %v14908_v54   ;;  %v14916_v44 = vpop.permute.xlu1 %5278  ;;  %v14932_v54 = vmul.f32 -0.5, %v4372_v62  ;;  %v19162_v62 = vld [vmem:[#allocation16_spill] sm:$0xff] }
 0x872   :  { %19157 = vst [vmem:[#allocation349_spill] sm:$0xff] %v14936_v8 }
 0x873   :  { %v14926_v9 = vpop.permute.xlu0 %5293  ;;  %19156 = vst [vmem:[#allocation348_spill] sm:$0xff] %v14932_v54 }
 0x874   :  { %19154 = vst [vmem:[#allocation164_spill] sm:$0xff] %v14926_v9  ;;  %5479 = vperm.xlu0 %11358, %v14918_v49   ;;  %v4408_v49 = vadd.f32 %v13630_v58, %v19162_v62  ;;  %v14950_v9 = vmul.f32 -0.5, %v4371_v11  ;;  %v19169_v58 = vld [vmem:[#allocation167_spill] sm:$0xff] }
 0x875   :  { %5470 = vperm.xlu1 %11359, %v14922_v24   ;;  %v14930_v6 = vpop.permute.xlu1 %5284  ;;  %v14946_v24 = vmul.f32 -0.5, %v4374_v48  ;;  %v4410_v48 = vadd.f32 %v13644_v12, %v19162_v62  ;;  %v4375_v11 = vadd.f32 %v19169_v58, %v19099_v36  ;;  %v19174_v12 = vld [vmem:[#allocation19_spill] sm:$0xff] }
 0x876   :  { %19155 = vst [vmem:[#allocation347_spill] sm:$0xff] %v14930_v6  ;;  %19163 = vst [vmem:[#allocation16_spill] sm:$0xff] %v14950_v9 }
 0x877   :  { %v14940_v18 = vpop.permute.xlu0 %5299  ;;  %19161 = vst [vmem:[#allocation351_spill] sm:$0xff] %v14946_v24 }
 0x878   :  { %19159 = vst [vmem:[#allocation165_spill] sm:$0xff] %v14940_v18  ;;  %5485 = vperm.xlu0 %11358, %v14932_v54   ;;  %v14964_v54 = vmul.f32 -0.5, %v4373_v26  ;;  %v19175_v26 = vld [vmem:[#allocation168_spill] sm:$0xff] }
 0x879   :  { %5476 = vperm.xlu1 %11359, %v14936_v8   ;;  %v14944_v2 = vpop.permute.xlu1 %5290  ;;  %v14960_v8 = vmul.f32 -0.5, %v4408_v49  ;;  %v4412_v49 = vadd.f32 %v13658_v38, %v19162_v62  ;;  %v4411_v38 = vadd.f32 %v13628_v45, %v19174_v12 }
 0x87a   :  { %19160 = vst [vmem:[#allocation350_spill] sm:$0xff] %v14944_v2  ;;  %19168 = vst [vmem:[#allocation354_spill] sm:$0xff] %v14964_v54 }
 0x87b   :  { %v14954_v20 = vpop.permute.xlu0 %5401  ;;  %19167 = vst [vmem:[#allocation353_spill] sm:$0xff] %v14960_v8  ;;  %v14988_v58 = vmul.f32 -0.5, %v4412_v49  ;;  %v4416_v49 = vadd.f32 %v13686_v17, %v19162_v62  ;;  %v4415_v17 = vadd.f32 %v13654_v33, %v19174_v12 }
 0x87c   :  { %19165 = vst [vmem:[#allocation166_spill] sm:$0xff] %v14954_v20  ;;  %5491 = vperm.xlu0 %11358, %v14946_v24   ;;  %v14978_v24 = vmul.f32 -0.5, %v4375_v11  ;;  %v4409_v20 = vadd.f32 %v19175_v26, %v19174_v12 }
 0x87d   :  { %5482 = vperm.xlu1 %11359, %v14950_v9   ;;  %v14958_v22 = vpop.permute.xlu1 %5296  ;;  %v14974_v9 = vmul.f32 -0.5, %v4410_v48  ;;  %19178 = vst [vmem:[#allocation358_spill] sm:$0xff] %v14988_v58  ;;  %v4414_v48 = vadd.f32 %v13672_v0, %v19162_v62  ;;  %v4413_v0 = vadd.f32 %v13640_v34, %v19174_v12 }
 0x87e   :  { %19166 = vst [vmem:[#allocation352_spill] sm:$0xff] %v14958_v22  ;;  %19173 = vst [vmem:[#allocation357_spill] sm:$0xff] %v14978_v24 }
 0x87f   :  { %v14968_v18 = vpop.permute.xlu0 %5407  ;;  %19172 = vst [vmem:[#allocation356_spill] sm:$0xff] %v14974_v9 }
 0x880   :  { %19170 = vst [vmem:[#allocation167_spill] sm:$0xff] %v14968_v18  ;;  %5593 = vperm.xlu0 %11358, %v14960_v8   ;;  %v14992_v8 = vmul.f32 -0.5, %v4409_v20 }
 0x881   :  { %5488 = vperm.xlu1 %11359, %v14964_v54   ;;  %v14972_v46 = vpop.permute.xlu1 %5302 }
 0x882   :  { %19171 = vst [vmem:[#allocation355_spill] sm:$0xff] %v14972_v46  ;;  %19179 = vst [vmem:[#allocation359_spill] sm:$0xff] %v14992_v8 }
 0x883   :  { %v14982_v22 = vpop.permute.xlu0 %5413 }
 0x884   :  { %19176 = vst [vmem:[#allocation19_spill] sm:$0xff] %v14982_v22  ;;  %5599 = vperm.xlu0 %11358, %v14974_v9   ;;  %v15002_v9 = vmul.f32 -0.5, %v4414_v48  ;;  %v4418_v48 = vadd.f32 %v13700_v41, %v19162_v62  ;;  %v4417_v41 = vadd.f32 %v13668_v56, %v19174_v12  ;;  %v19301_v22 = vld [vmem:[#allocation2_spill] sm:$0xff] }
 0x885   :  { %5494 = vperm.xlu1 %11359, %v14978_v24   ;;  %v14986_v36 = vpop.permute.xlu1 %5404  ;;  %v15006_v24 = vmul.f32 -0.5, %v4411_v38 }
 0x886   :  { %19177 = vst [vmem:[#allocation168_spill] sm:$0xff] %v14986_v36  ;;  %19182 = vst [vmem:[#allocation362_spill] sm:$0xff] %v15002_v9 }
 0x887   :  { %v14996_v11 = vpop.permute.xlu0 %5419  ;;  %19183 = vst [vmem:[#allocation363_spill] sm:$0xff] %v15006_v24 }
 0x888   :  { %19180 = vst [vmem:[#allocation360_spill] sm:$0xff] %v14996_v11  ;;  %5605 = vperm.xlu0 %11358, %v14988_v58   ;;  %v15016_v58 = vmul.f32 -0.5, %v4416_v49  ;;  %v4420_v49 = vadd.f32 %v13714_v61, %v19162_v62  ;;  %v4419_v61 = vadd.f32 %v13682_v23, %v19174_v12 }
 0x889   :  { %5596 = vperm.xlu1 %11359, %v14992_v8   ;;  %v15000_v26 = vpop.permute.xlu1 %5410  ;;  %v15020_v8 = vmul.f32 -0.5, %v4413_v0 }
 0x88a   :  { %19181 = vst [vmem:[#allocation361_spill] sm:$0xff] %v15000_v26  ;;  %19186 = vst [vmem:[#allocation366_spill] sm:$0xff] %v15016_v58 }
 0x88b   :  { %v15010_v20 = vpop.permute.xlu0 %5425  ;;  %19187 = vst [vmem:[#allocation367_spill] sm:$0xff] %v15020_v8 }
 0x88c   :  { %19184 = vst [vmem:[#allocation364_spill] sm:$0xff] %v15010_v20  ;;  %5611 = vperm.xlu0 %11358, %v15002_v9   ;;  %v15030_v9 = vmul.f32 -0.5, %v4418_v48  ;;  %v4422_v48 = vadd.f32 %v13728_v21, %v19162_v62  ;;  %v4421_v21 = vadd.f32 %v13696_v15, %v19174_v12  ;;  %v19276_v20 = vld [vmem:[#allocation222_spill] sm:$0xff] }
 0x88d   :  { %5602 = vperm.xlu1 %11359, %v15006_v24   ;;  %v15014_v45 = vpop.permute.xlu1 %5416  ;;  %v15034_v24 = vmul.f32 -0.5, %v4415_v17 }
 0x88e   :  { %19185 = vst [vmem:[#allocation365_spill] sm:$0xff] %v15014_v45  ;;  %19190 = vst [vmem:[#allocation370_spill] sm:$0xff] %v15030_v9 }
 0x88f   :  { %v15024_v38 = vpop.permute.xlu0 %5431  ;;  %19191 = vst [vmem:[#allocation371_spill] sm:$0xff] %v15034_v24 }
 0x890   :  { %19188 = vst [vmem:[#allocation368_spill] sm:$0xff] %v15024_v38  ;;  %5617 = vperm.xlu0 %11358, %v15016_v58   ;;  %v15044_v58 = vmul.f32 -0.5, %v4420_v49  ;;  %v4392_v49 = vadd.f32 %v13742_v63, %v19162_v62  ;;  %v4423_v63 = vadd.f32 %v13710_v5, %v19174_v12 }
 0x891   :  { %5608 = vperm.xlu1 %11359, %v15020_v8   ;;  %v15028_v34 = vpop.permute.xlu1 %5422  ;;  %v15048_v8 = vmul.f32 -0.5, %v4417_v41 }
 0x892   :  { %19189 = vst [vmem:[#allocation369_spill] sm:$0xff] %v15028_v34  ;;  %19194 = vst [vmem:[#allocation374_spill] sm:$0xff] %v15044_v58 }
 0x893   :  { %v15038_v0 = vpop.permute.xlu0 %5437  ;;  %19195 = vst [vmem:[#allocation375_spill] sm:$0xff] %v15048_v8 }
 0x894   :  { %19192 = vst [vmem:[#allocation372_spill] sm:$0xff] %v15038_v0  ;;  %5623 = vperm.xlu0 %11358, %v15030_v9   ;;  %v15058_v9 = vmul.f32 -0.5, %v4422_v48  ;;  %v4394_v48 = vadd.f32 %v13756_v51, %v19162_v62  ;;  %v4393_v51 = vadd.f32 %v13724_v39, %v19174_v12 }
 0x895   :  { %5614 = vperm.xlu1 %11359, %v15034_v24   ;;  %v15042_v33 = vpop.permute.xlu1 %5428  ;;  %v15062_v24 = vmul.f32 -0.5, %v4419_v61 }
 0x896   :  { %19193 = vst [vmem:[#allocation373_spill] sm:$0xff] %v15042_v33  ;;  %19198 = vst [vmem:[#allocation378_spill] sm:$0xff] %v15058_v9 }
 0x897   :  { %v15052_v17 = vpop.permute.xlu0 %5443  ;;  %19199 = vst [vmem:[#allocation379_spill] sm:$0xff] %v15062_v24 }
 0x898   :  { %19196 = vst [vmem:[#allocation376_spill] sm:$0xff] %v15052_v17  ;;  %5629 = vperm.xlu0 %11358, %v15044_v58   ;;  %v15072_v58 = vmul.f32 -0.5, %v4392_v49  ;;  %v4396_v49 = vadd.f32 %v13770_v59, %v19162_v62  ;;  %v4395_v59 = vadd.f32 %v13738_v10, %v19174_v12 }
 0x899   :  { %5620 = vperm.xlu1 %11359, %v15048_v8   ;;  %v15056_v56 = vpop.permute.xlu1 %5434  ;;  %v15076_v8 = vmul.f32 -0.5, %v4421_v21 }
 0x89a   :  { %19197 = vst [vmem:[#allocation377_spill] sm:$0xff] %v15056_v56  ;;  %19202 = vst [vmem:[#allocation382_spill] sm:$0xff] %v15072_v58 }
 0x89b   :  { %v15066_v41 = vpop.permute.xlu0 %5353  ;;  %19203 = vst [vmem:[#allocation383_spill] sm:$0xff] %v15076_v8 }
 0x89c   :  { %19200 = vst [vmem:[#allocation380_spill] sm:$0xff] %v15066_v41  ;;  %5635 = vperm.xlu0 %11358, %v15058_v9   ;;  %v15086_v9 = vmul.f32 -0.5, %v4394_v48  ;;  %v4398_v48 = vadd.f32 %v13784_v47, %v19162_v62  ;;  %v4397_v47 = vadd.f32 %v13752_v14, %v19174_v12 }
 0x89d   :  { %5626 = vperm.xlu1 %11359, %v15062_v24   ;;  %v15070_v23 = vpop.permute.xlu1 %5440  ;;  %v15090_v24 = vmul.f32 -0.5, %v4423_v63 }
 0x89e   :  { %19201 = vst [vmem:[#allocation381_spill] sm:$0xff] %v15070_v23  ;;  %19206 = vst [vmem:[#allocation386_spill] sm:$0xff] %v15086_v9 }
 0x89f   :  { %v15080_v61 = vpop.permute.xlu0 %5359  ;;  %19207 = vst [vmem:[#allocation387_spill] sm:$0xff] %v15090_v24 }
 0x8a0   :  { %19204 = vst [vmem:[#allocation384_spill] sm:$0xff] %v15080_v61  ;;  %5545 = vperm.xlu0 %11358, %v15072_v58   ;;  %v15104_v58 = vmul.f32 -0.5, %v4393_v51 }
 0x8a1   :  { %5632 = vperm.xlu1 %11359, %v15076_v8   ;;  %v15084_v15 = vpop.permute.xlu1 %5446  ;;  %v15100_v8 = vmul.f32 -0.5, %v4396_v49  ;;  %v4400_v49 = vadd.f32 %v13798_v29, %v19162_v62  ;;  %v4399_v29 = vadd.f32 %v13766_v31, %v19174_v12 }
 0x8a2   :  { %19205 = vst [vmem:[#allocation385_spill] sm:$0xff] %v15084_v15  ;;  %19211 = vst [vmem:[#allocation391_spill] sm:$0xff] %v15104_v58 }
 0x8a3   :  { %v15094_v21 = vpop.permute.xlu0 %5365  ;;  %19210 = vst [vmem:[#allocation390_spill] sm:$0xff] %v15100_v8 }
 0x8a4   :  { %19208 = vst [vmem:[#allocation388_spill] sm:$0xff] %v15094_v21  ;;  %5551 = vperm.xlu0 %11358, %v15086_v9   ;;  %v15118_v9 = vmul.f32 -0.5, %v4395_v59 }
 0x8a5   :  { %5638 = vperm.xlu1 %11359, %v15090_v24   ;;  %v15098_v5 = vpop.permute.xlu1 %5356  ;;  %v15114_v24 = vmul.f32 -0.5, %v4398_v48  ;;  %v4402_v48 = vadd.f32 %v13812_v1, %v19162_v62  ;;  %v4401_v1 = vadd.f32 %v13780_v53, %v19174_v12 }
 0x8a6   :  { %19209 = vst [vmem:[#allocation389_spill] sm:$0xff] %v15098_v5  ;;  %19215 = vst [vmem:[#allocation395_spill] sm:$0xff] %v15118_v9 }
 0x8a7   :  { %v15108_v63 = vpop.permute.xlu0 %5371  ;;  %19214 = vst [vmem:[#allocation394_spill] sm:$0xff] %v15114_v24  ;;  %v15160_v54 = vmul.f32 -0.5, %v4401_v1  ;;  %v19235_v1 = vld [vmem:[#allocation18_spill] sm:$0xff] }
 0x8a8   :  { %19212 = vst [vmem:[#allocation392_spill] sm:$0xff] %v15108_v63  ;;  %5557 = vperm.xlu0 %11358, %v15100_v8   ;;  %v15132_v8 = vmul.f32 -0.5, %v4397_v47  ;;  %v4428_v46 = vadd.f32 %v19276_v20, %v19235_v1 }
 0x8a9   :  { %5548 = vperm.xlu1 %11359, %v15104_v58   ;;  %v15112_v39 = vpop.permute.xlu1 %5362  ;;  %v15128_v58 = vmul.f32 -0.5, %v4400_v49  ;;  %v4404_v49 = vadd.f32 %v13826_v19, %v19162_v62  ;;  %v19229_v19 = vld [vmem:[#allocation193_spill] sm:$0xff] }
 0x8aa   :  { %19213 = vst [vmem:[#allocation393_spill] sm:$0xff] %v15112_v39  ;;  %19219 = vst [vmem:[#allocation399_spill] sm:$0xff] %v15132_v8 }
 0x8ab   :  { %v15122_v51 = vpop.permute.xlu0 %5377  ;;  %19218 = vst [vmem:[#allocation398_spill] sm:$0xff] %v15128_v58 }
 0x8ac   :  { %19216 = vst [vmem:[#allocation396_spill] sm:$0xff] %v15122_v51  ;;  %5563 = vperm.xlu0 %11358, %v15114_v24   ;;  %v15146_v24 = vmul.f32 -0.5, %v4399_v29  ;;  %v4403_v29 = vadd.f32 %v19229_v19, %v19174_v12  ;;  %v19238_v51 = vld [vmem:[#allocation7_spill] sm:$0xff] }
 0x8ad   :  { %5554 = vperm.xlu1 %11359, %v15118_v9   ;;  %v15126_v10 = vpop.permute.xlu1 %5368  ;;  %v15142_v9 = vmul.f32 -0.5, %v4402_v48  ;;  %v19227_v48 = vld [vmem:[#allocation202_spill] sm:$0xff] }
 0x8ae   :  { %19217 = vst [vmem:[#allocation397_spill] sm:$0xff] %v15126_v10  ;;  %19223 = vst [vmem:[#allocation403_spill] sm:$0xff] %v15146_v24  ;;  %v15178_v19 = vmul.f32 -0.5, %v4403_v29 }
 0x8af   :  { %v15136_v59 = vpop.permute.xlu0 %5383  ;;  %19222 = vst [vmem:[#allocation402_spill] sm:$0xff] %v15142_v9  ;;  %19228 = vst [vmem:[#allocation202_spill] sm:$0xff] %v15160_v54 }
 0x8b0   :  { %19220 = vst [vmem:[#allocation400_spill] sm:$0xff] %v15136_v59  ;;  %5569 = vperm.xlu0 %11358, %v15128_v58   ;;  %v4406_v58 = vadd.f32 %v19227_v48, %v19162_v62  ;;  %v4440_v48 = vadd.f32 %v13854_v13, %v19235_v1  ;;  %v19244_v13 = vld [vmem:[#allocation206_spill] sm:$0xff] }
 0x8b1   :  { %5560 = vperm.xlu1 %11359, %v15132_v8   ;;  %v15140_v14 = vpop.permute.xlu1 %5374  ;;  %v15156_v8 = vmul.f32 -0.5, %v4404_v49  ;;  %v4444_v29 = vadd.f32 %v19244_v13, %v19235_v1 }
 0x8b2   :  { %19221 = vst [vmem:[#allocation401_spill] sm:$0xff] %v15140_v14  ;;  %v15174_v62 = vmul.f32 -0.5, %v4406_v58  ;;  %v19243_v58 = vld [vmem:[#allocation30_spill] sm:$0xff] }
 0x8b3   :  { %v15150_v47 = vpop.permute.xlu0 %5389  ;;  %19226 = vst [vmem:[#allocation406_spill] sm:$0xff] %v15156_v8 }
 0x8b4   :  { %19224 = vst [vmem:[#allocation404_spill] sm:$0xff] %v15150_v47  ;;  %5575 = vperm.xlu0 %11358, %v15142_v9   ;;  %v19233_v9 = vld [vmem:[#allocation199_spill] sm:$0xff] }
 0x8b5   :  { %5566 = vperm.xlu1 %11359, %v15146_v24   ;;  %v15154_v31 = vpop.permute.xlu1 %5380  ;;  %v19232_v24 = vld [vmem:[#allocation196_spill] sm:$0xff]  ;;  %v4407_v47 = vadd.f32 %v19233_v9, %v19174_v12  ;;  %19236 = vst [vmem:[#allocation199_spill] sm:$0xff] %v15178_v19  ;;  %v19242_v9 = vld [vmem:[#allocation29_spill] sm:$0xff] }
 0x8b6   :  { %19225 = vst [vmem:[#allocation405_spill] sm:$0xff] %v15154_v31  ;;  %v4405_v49 = vadd.f32 %v19232_v24, %v19174_v12  ;;  %19234 = vst [vmem:[#allocation196_spill] sm:$0xff] %v15174_v62  ;;  %v4442_v12 = vadd.f32 %v19242_v9, %v19235_v1  ;;  %v19249_v9 = vld [vmem:[#allocation31_spill] sm:$0xff] }
 0x8b7   :  { %v15164_v59 = vpop.permute.xlu0 %5395 }
 0x8b8   :  { %19230 = vst [vmem:[#allocation193_spill] sm:$0xff] %v15164_v59  ;;  %5581 = vperm.xlu0 %11358, %v15156_v8   ;;  %v19237_v59 = vld [vmem:[#allocation20_spill] sm:$0xff] }
 0x8b9   :  { %5572 = vperm.xlu1 %11359, %v15160_v54   ;;  %v15168_v53 = vpop.permute.xlu1 %5386  ;;  %v4441_v8 = vadd.f32 %v19238_v51, %v19237_v59  ;;  %v19239_v54 = vld [vmem:[#allocation28_spill] sm:$0xff]  ;;  %v4447_v31 = vadd.f32 %v19243_v58, %v19237_v59  ;;  %v4449_v21 = vadd.f32 %v19249_v9, %v19237_v59  ;;  %v4433_v20 = vadd.f32 %v14004_v55, %v19237_v59 }
 0x8ba   :  { %19231 = vst [vmem:[#allocation407_spill] sm:$0xff] %v15168_v53  ;;  %v4443_v63 = vadd.f32 %v19239_v54, %v19237_v59  ;;  %v19240_v53 = vld [vmem:[#allocation8_spill] sm:$0xff]  ;;  %v15198_v54 = vmul.f32 -0.5, %v4405_v49  ;;  %v15216_v49 = vmul.f32 -0.5, %v4442_v12  ;;  %v19262_v12 = vld [vmem:[#allocation37_spill] sm:$0xff] }
 0x8bb   :  { %v4445_v41 = vadd.f32 %v19240_v53, %v19237_v59  ;;  %v15186_v24 = vpop.permute.xlu0 %5497  ;;  %v15200_v53 = vmul.f32 -0.5, %v4407_v47  ;;  %v15206_v14 = vmul.f32 -0.5, %v4441_v8  ;;  %v15218_v47 = vmul.f32 -0.5, %v4447_v31  ;;  %v19259_v8 = vld [vmem:[#allocation210_spill] sm:$0xff] }
 0x8bc   :  { %19241 = vst [vmem:[#allocation18_spill] sm:$0xff] %v15186_v24  ;;  %5587 = vperm.xlu0 %11358, %v15174_v62   ;;  %19246 = vst [vmem:[#allocation7_spill] sm:$0xff] %v15198_v54  ;;  %v15202_v24 = vmul.f32 -0.5, %v4440_v48  ;;  %v15208_v58 = vmul.f32 -0.5, %v4443_v63  ;;  %v19253_v62 = vld [vmem:[#allocation208_spill] sm:$0xff]  ;;  %v15220_v48 = vmul.f32 -0.5, %v4444_v29  ;;  %v4455_v31 = vadd.f32 %v19262_v12, %v19237_v59 }
 0x8bd   :  { %5578 = vperm.xlu1 %11359, %v15178_v19   ;;  %v15196_v51 = vpop.permute.xlu1 %5392  ;;  %19247 = vst [vmem:[#allocation28_spill] sm:$0xff] %v15200_v53  ;;  %19250 = vst [vmem:[#allocation29_spill] sm:$0xff] %v15206_v14  ;;  %v15210_v13 = vmul.f32 -0.5, %v4445_v41  ;;  %v4446_v19 = vadd.f32 %v19253_v62, %v19235_v1  ;;  %v4448_v41 = vadd.f32 %v19259_v8, %v19235_v1  ;;  %v19260_v63 = vld [vmem:[#allocation35_spill] sm:$0xff]  ;;  %v19261_v62 = vld [vmem:[#allocation212_spill] sm:$0xff]  ;;  %v15236_v10 = vmul.f32 -0.5, %v4449_v21 }
 0x8be   :  { %19245 = vst [vmem:[#allocation20_spill] sm:$0xff] %v15196_v51  ;;  %19248 = vst [vmem:[#allocation8_spill] sm:$0xff] %v15202_v24  ;;  %v19258_v51 = vld [vmem:[#allocation33_spill] sm:$0xff]  ;;  %v4453_v61 = vadd.f32 %v19260_v63, %v19237_v59  ;;  %v19266_v8 = vld [vmem:[#allocation39_spill] sm:$0xff]  ;;  %v15312_v33 = vmul.f32 -0.5, %v4433_v20 }
 0x8bf   :  { %19251 = vst [vmem:[#allocation30_spill] sm:$0xff] %v15208_v58  ;;  %19252 = vst [vmem:[#allocation206_spill] sm:$0xff] %v15210_v13  ;;  %v15214_v5 = vpop.permute.xlu0 %5503  ;;  %v4451_v9 = vadd.f32 %v19258_v51, %v19237_v59  ;;  %v19265_v51 = vld [vmem:[#allocation214_spill] sm:$0xff]  ;;  %v4425_v39 = vadd.f32 %v19266_v8, %v19237_v59  ;;  %v15244_v0 = vmul.f32 -0.5, %v4446_v19  ;;  %v19271_v21 = vld [vmem:[#allocation43_spill] sm:$0xff] }
 0x8c0   :  { %19254 = vst [vmem:[#allocation31_spill] sm:$0xff] %v15214_v5  ;;  %19255 = vst [vmem:[#allocation208_spill] sm:$0xff] %v15216_v49  ;;  %5689 = vperm.xlu0 %11358, %v15202_v24   ;;  %v4450_v5 = vadd.f32 %v19261_v62, %v19235_v1  ;;  %v4452_v24 = vadd.f32 %v19265_v51, %v19235_v1  ;;  %v19267_v63 = vld [vmem:[#allocation218_spill] sm:$0xff]  ;;  %v19269_v62 = vld [vmem:[#allocation216_spill] sm:$0xff] }
 0x8c1   :  { %19256 = vst [vmem:[#allocation408_spill] sm:$0xff] %v15218_v47  ;;  %19257 = vst [vmem:[#allocation409_spill] sm:$0xff] %v15220_v48  ;;  %5584 = vperm.xlu1 %11359, %v15198_v54   ;;  %v15234_v29 = vpop.permute.xlu1 %5398  ;;  %v4424_v17 = vadd.f32 %v19267_v63, %v19235_v1  ;;  %v4454_v12 = vadd.f32 %v19269_v62, %v19235_v1  ;;  %v19270_v54 = vld [vmem:[#allocation41_spill] sm:$0xff]  ;;  %v15254_v51 = vmul.f32 -0.5, %v4451_v9  ;;  %v19274_v8 = vld [vmem:[#allocation220_spill] sm:$0xff]  ;;  %v15263_v62 = vmul.f32 -0.5, %v4448_v41 }
 0x8c2   :  { %19263 = vst [vmem:[#allocation33_spill] sm:$0xff] %v15234_v29  ;;  %19264 = vst [vmem:[#allocation210_spill] sm:$0xff] %v15236_v10  ;;  %v4427_v15 = vadd.f32 %v19270_v54, %v19237_v59  ;;  %v4429_v29 = vadd.f32 %v19271_v21, %v19237_v59  ;;  %v4426_v23 = vadd.f32 %v19274_v8, %v19235_v1  ;;  %v19275_v63 = vld [vmem:[#allocation45_spill] sm:$0xff]  ;;  %v15265_v54 = vmul.f32 -0.5, %v4453_v61  ;;  %v19307_v20 = vld [vmem:[#allocation60_spill] sm:$0xff] }
 0x8c3   :  { %19268 = vst [vmem:[#allocation35_spill] sm:$0xff] %v15244_v0  ;;  %v15252_v38 = vpop.permute.xlu0 %5509  ;;  %19273 = vst [vmem:[#allocation37_spill] sm:$0xff] %v15254_v51  ;;  %v4431_v19 = vadd.f32 %v19275_v63, %v19237_v59  ;;  %v15267_v21 = vmul.f32 -0.5, %v4450_v5  ;;  %v15274_v8 = vmul.f32 -0.5, %v4452_v24  ;;  %v15276_v63 = vmul.f32 -0.5, %v4425_v39 }
 0x8c4   :  { %19272 = vst [vmem:[#allocation212_spill] sm:$0xff] %v15252_v38  ;;  %5695 = vperm.xlu0 %11358, %v15216_v49   ;;  %19277 = vst [vmem:[#allocation214_spill] sm:$0xff] %v15263_v62  ;;  %v15269_v38 = vmul.f32 -0.5, %v4455_v31  ;;  %v15278_v56 = vmul.f32 -0.5, %v4424_v17  ;;  %v15282_v41 = vmul.f32 -0.5, %v4454_v12  ;;  %v15284_v61 = vmul.f32 -0.5, %v4427_v15 }
 0x8c5   :  { %19278 = vst [vmem:[#allocation39_spill] sm:$0xff] %v15265_v54  ;;  %19279 = vst [vmem:[#allocation218_spill] sm:$0xff] %v15267_v21  ;;  %5590 = vperm.xlu1 %11359, %v15200_v53   ;;  %v15272_v9 = vpop.permute.xlu1 %5500  ;;  %v15286_v5 = vmul.f32 -0.5, %v4429_v29  ;;  %v19288_v31 = vld [vmem:[#allocation47_spill] sm:$0xff]  ;;  %v15292_v24 = vmul.f32 -0.5, %v4426_v23  ;;  %v15294_v39 = vmul.f32 -0.5, %v4431_v19 }
 0x8c6   :  { %19280 = vst [vmem:[#allocation216_spill] sm:$0xff] %v15269_v38  ;;  %19281 = vst [vmem:[#allocation41_spill] sm:$0xff] %v15272_v9  ;;  %v4430_v53 = vadd.f32 %v19288_v31, %v19235_v1  ;;  %v15296_v17 = vmul.f32 -0.5, %v4428_v46  ;;  %v19293_v9 = vld [vmem:[#allocation3_spill] sm:$0xff]  ;;  %v19294_v15 = vld [vmem:[#allocation49_spill] sm:$0xff] }
 0x8c7   :  { %19282 = vst [vmem:[#allocation43_spill] sm:$0xff] %v15274_v8  ;;  %19283 = vst [vmem:[#allocation220_spill] sm:$0xff] %v15276_v63  ;;  %v15290_v49 = vpop.permute.xlu0 %5515  ;;  %v5824_v55 = vrot.slane %v14090_v43, %v19293_v9  ;;  %v4435_v29 = vadd.f32 %v19294_v15, %v19237_v59  ;;  %v19295_v12 = vld [vmem:[#allocation225_spill] sm:$0xff]  ;;  %v19296_v31 = vld [vmem:[#allocation51_spill] sm:$0xff] }
 0x8c8   :  { %19284 = vst [vmem:[#allocation45_spill] sm:$0xff] %v15278_v56  ;;  %19285 = vst [vmem:[#allocation222_spill] sm:$0xff] %v15282_v41  ;;  %5641 = vperm.xlu0 %11358, %v15278_v56   ;;  %v4432_v11 = vadd.f32 %v19295_v12, %v19235_v1  ;;  %v19297_v23 = vld [vmem:[#allocation235_spill] sm:$0xff]  ;;  %v19300_v43 = vld [vmem:[#allocation233_spill] sm:$0xff]  ;;  %v15320_v18 = vmul.f32 -0.5, %v4430_v53 }
 0x8c9   :  { %19286 = vst [vmem:[#allocation410_spill] sm:$0xff] %v15284_v61  ;;  %19287 = vst [vmem:[#allocation411_spill] sm:$0xff] %v15286_v5  ;;  %v5833_v19 = vrot.slane %v19297_v23, %v19293_v9  ;;  %5692 = vperm.xlu1 %11359, %v15206_v14   ;;  %v15310_v46 = vpop.permute.xlu1 %5506  ;;  %v5815_v56 = vrot.slane %v19300_v43, %v19293_v9  ;;  %v19302_v15 = vld [vmem:[#allocation10_spill] sm:$0xff]  ;;  %v19303_v12 = vld [vmem:[#allocation237_spill] sm:$0xff] }
 0x8ca   :  { %19289 = vst [vmem:[#allocation47_spill] sm:$0xff] %v15290_v49  ;;  %19290 = vst [vmem:[#allocation412_spill] sm:$0xff] %v15292_v24  ;;  %v4437_v49 = vadd.f32 %v19296_v31, %v19237_v59  ;;  %v5820_v34 = vrot.slane %v19302_v15, %v19301_v22  ;;  %v5842_v36 = vrot.slane %v19303_v12, %v19293_v9  ;;  %v19305_v31 = vld [vmem:[#allocation227_spill] sm:$0xff]  ;;  %v19309_v43 = vld [vmem:[#allocation57_spill] sm:$0xff] }
 0x8cb   :  { %19291 = vst [vmem:[#allocation413_spill] sm:$0xff] %v15294_v39  ;;  %19292 = vst [vmem:[#allocation414_spill] sm:$0xff] %v15296_v17  ;;  %v4434_v23 = vadd.f32 %v19305_v31, %v19235_v1  ;;  %v19306_v14 = vld [vmem:[#allocation55_spill] sm:$0xff]  ;;  %v15328_v26 = vpop.permute.xlu0 %5521  ;;  %v5811_v2 = vrot.slane %v19309_v43, %v19301_v22  ;;  %v19310_v12 = vld [vmem:[#allocation61_spill] sm:$0xff]  ;;  %v15338_v31 = vmul.f32 -0.5, %v4435_v29 }
 0x8cc   :  { %19298 = vst [vmem:[#allocation3_spill] sm:$0xff] %v15310_v46  ;;  %19299 = vst [vmem:[#allocation49_spill] sm:$0xff] %v15312_v33  ;;  %v4439_v45 = vadd.f32 %v19306_v14, %v19237_v59  ;;  %v5829_v46 = vrot.slane %v19307_v20, %v19301_v22  ;;  %v5825_v15 = vsel %vm1210_vm7, %v5824_v55, %v5820_v34  ;;  %v19311_v38 = vld [vmem:[#allocation239_spill] sm:$0xff]  ;;  %5647 = vperm.xlu0 %11358, %v15292_v24   ;;  %v19317_v29 = vld [vmem:[#allocation241_spill] sm:$0xff] }
 0x8cd   :  { %19304 = vst [vmem:[#allocation225_spill] sm:$0xff] %v15320_v18  ;;  %19308 = vst [vmem:[#allocation51_spill] sm:$0xff] %v15328_v26  ;;  %v5838_v53 = vrot.slane %v19310_v12, %v19301_v22  ;;  %v5851_v6 = vrot.slane %v19311_v38, %v19293_v9  ;;  %v15340_v59 = vmul.f32 -0.5, %v4432_v11  ;;  %v15342_v14 = vmul.f32 -0.5, %v4437_v49  ;;  %5698 = vperm.xlu1 %11359, %v15208_v58   ;;  %v15346_v43 = vpop.permute.xlu1 %5512  ;;  %v19316_v38 = vld [vmem:[#allocation63_spill] sm:$0xff] }
 0x8ce   :  { %19312 = vst [vmem:[#allocation235_spill] sm:$0xff] %v15338_v31  ;;  %v5834_v20 = vsel %vm1210_vm7, %v5833_v19, %v5829_v46  ;;  %19315 = vst [vmem:[#allocation10_spill] sm:$0xff] %v15346_v43  ;;  %v5816_v34 = vsel %vm1210_vm7, %v5815_v56, %v5811_v2  ;;  %v5847_v12 = vrot.slane %v19316_v38, %v19301_v22  ;;  %v15354_v11 = vmul.f32 -0.5, %v4434_v23  ;;  %v19320_v19 = vld [vmem:[#allocation53_spill] sm:$0xff]  ;;  %v19323_v23 = vld [vmem:[#allocation251_spill] sm:$0xff] }
 0x8cf   :  { %19313 = vst [vmem:[#allocation233_spill] sm:$0xff] %v15340_v59  ;;  %19314 = vst [vmem:[#allocation2_spill] sm:$0xff] %v15342_v14  ;;  %v5843_v55 = vsel %vm1210_vm7, %v5842_v36, %v5838_v53  ;;  %v5860_v24 = vrot.slane %v19317_v29, %v19293_v9  ;;  %v15356_v49 = vmul.f32 -0.5, %v4439_v45  ;;  %v15360_v46 = vadd.f32 %v19320_v19, %v19235_v1  ;;  %v15363_v26 = vpop.permute.xlu0 %5527  ;;  %v19322_v56 = vld [vmem:[#allocation65_spill] sm:$0xff]  ;;  %v19324_v45 = vld [vmem:[#allocation231_spill] sm:$0xff] }
 0x8d0   :  { %19318 = vst [vmem:[#allocation237_spill] sm:$0xff] %v15354_v11  ;;  %v6895_v58 = vsel %vm1275_vm8, %v5825_v15, %v5816_v34  ;;  %19321 = vst [vmem:[#allocation55_spill] sm:$0xff] %v15363_v26  ;;  %v5852_v36 = vsel %vm1210_vm7, %v5851_v6, %v5847_v12  ;;  %v5856_v53 = vrot.slane %v19322_v56, %v19301_v22  ;;  %5653 = vperm.xlu0 %11358, %v15296_v17   ;;  %v19325_v34 = vld [vmem:[#allocation243_spill] sm:$0xff]  ;;  %v19331_v17 = vld [vmem:[#allocation245_spill] sm:$0xff] }
 0x8d1   :  { %19319 = vst [vmem:[#allocation227_spill] sm:$0xff] %v15356_v49  ;;  %v6896_v2 = vsel %vm1277_vm9, %v5834_v20, %v6895_v58  ;;  %v5752_v38 = vrot.slane %v19323_v23, %v19293_v9  ;;  %v15374_v29 = vadd.f32 %v19324_v45, %v19235_v1  ;;  %v5869_v19 = vrot.slane %v19325_v34, %v19293_v9  ;;  %v19326_v58 = vld [vmem:[#allocation253_spill] sm:$0xff]  ;;  %v15382_v20 = vpop.permute.xlu1 %5518  ;;  %v19328_v56 = vld [vmem:[#allocation247_spill] sm:$0xff] }
 0x8d2   :  { %v6897_v15 = vsel %vm1279_vm10, %v5843_v55, %v6896_v2  ;;  %v5761_v6 = vrot.slane %v19326_v58, %v19293_v9  ;;  %5644 = vperm.xlu1 %11359, %v15276_v63   ;;  %19327 = vst [vmem:[#allocation60_spill] sm:$0xff] %v15382_v20  ;;  %v5861_v12 = vsel %vm1210_vm7, %v5860_v24, %v5856_v53  ;;  %v19329_v1 = vld [vmem:[#allocation249_spill] sm:$0xff]  ;;  %v19330_v34 = vld [vmem:[#allocation67_spill] sm:$0xff] }
 0x8d3   :  { %v5739_v23 = vrot.slane %v19328_v56, %v19301_v22  ;;  %v5748_v45 = vrot.slane %v19329_v1, %v19301_v22  ;;  %v5770_v55 = vrot.slane %v14244_v4, %v19293_v9  ;;  %v6898_v2 = vsel %vm1281_vm11, %v5852_v36, %v6897_v15  ;;  %v19332_v26 = vld [vmem:[#allocation73_spill] sm:$0xff]  ;;  %v15398_v53 = vpop.permute.xlu0 %5533  ;;  %v19334_v56 = vld [vmem:[#allocation71_spill] sm:$0xff]  ;;  %v19336_v36 = vld [vmem:[#allocation256_spill] sm:$0xff] }
 0x8d4   :  { %v5865_v58 = vrot.slane %v19330_v34, %v19301_v22  ;;  %v5878_v63 = vrot.slane %v19331_v17, %v19293_v9  ;;  %v5757_v24 = vrot.slane %v19332_v26, %v19301_v22  ;;  %19333 = vst [vmem:[#allocation57_spill] sm:$0xff] %v15398_v53  ;;  %v5743_v20 = vrot.slane %v19334_v56, %v19293_v9  ;;  %v19335_v1 = vld [vmem:[#allocation75_spill] sm:$0xff]  ;;  %v19337_v34 = vld [vmem:[#allocation69_spill] sm:$0xff] }
 0x8d5   :  { %v5766_v43 = vrot.slane %v19335_v1, %v19301_v22  ;;  %v5753_v4 = vsel %vm1210_vm7, %v5752_v38, %v5748_v45  ;;  %v5779_v15 = vrot.slane %v19336_v36, %v19293_v9  ;;  %5659 = vperm.xlu0 %11358, %v15320_v18   ;;  %v5874_v26 = vrot.slane %v19337_v34, %v19301_v22  ;;  %v15413_v56 = vpop.permute.xlu1 %5524  ;;  %v19339_v45 = vld [vmem:[#allocation77_spill] sm:$0xff] }
 0x8d6   :  { %v5870_v17 = vsel %vm1210_vm7, %v5869_v19, %v5865_v58  ;;  %v5762_v53 = vsel %vm1210_vm7, %v5761_v6, %v5757_v24  ;;  %5650 = vperm.xlu1 %11359, %v15284_v61   ;;  %19338 = vst [vmem:[#allocation61_spill] sm:$0xff] %v15413_v56  ;;  %v6899_v1 = vsel %vm1283_vm12, %v5861_v12, %v6898_v2  ;;  %v19340_v19 = vld [vmem:[#allocation259_spill] sm:$0xff]  ;;  %v19342_v61 = vld [vmem:[#allocation261_spill] sm:$0xff] }
 0x8d7   :  { %v5744_v38 = vsel %vm1210_vm7, %v5743_v20, %v5739_v23  ;;  %v5775_v36 = vrot.slane %v19339_v45, %v19301_v22  ;;  %v5771_v18 = vsel %vm1210_vm7, %v5770_v55, %v5766_v43  ;;  %v5788_v58 = vrot.slane %v19340_v19, %v19293_v9  ;;  %v19341_v6 = vld [vmem:[#allocation79_spill] sm:$0xff]  ;;  %v15427_v30 = vpop.permute.xlu0 %5539  ;;  %v19344_v55 = vld [vmem:[#allocation265_spill] sm:$0xff] }
 0x8d8   :  { %v6888_v34 = vsel %vm1275_vm8, %v5753_v4, %v5744_v38  ;;  %v5784_v24 = vrot.slane %v19341_v6, %v19301_v22  ;;  %v5797_v56 = vrot.slane %v19342_v61, %v19293_v9  ;;  %19343 = vst [vmem:[#allocation239_spill] sm:$0xff] %v15427_v30  ;;  %v5879_v20 = vsel %vm1210_vm7, %v5878_v63, %v5874_v26  ;;  %v19345_v61 = vld [vmem:[#allocation81_spill] sm:$0xff]  ;;  %v19346_v45 = vld [vmem:[#allocation83_spill] sm:$0xff] }
 0x8d9   :  { %v6889_v12 = vsel %vm1277_vm9, %v5762_v53, %v6888_v34  ;;  %v5780_v23 = vsel %vm1210_vm7, %v5779_v15, %v5775_v36  ;;  %v5806_v43 = vrot.slane %v14300_v27, %v19293_v9  ;;  %v5968_v2 = vrot.slane %v19344_v55, %v19293_v9  ;;  %5665 = vperm.xlu0 %11358, %v15340_v59   ;;  %v19347_v53 = vld [vmem:[#allocation267_spill] sm:$0xff]  ;;  %v15445_v15 = vpop.permute.xlu1 %5530  ;;  %v19350_v6 = vld [vmem:[#allocation269_spill] sm:$0xff] }
 0x8da   :  { %v6890_v4 = vsel %vm1279_vm10, %v5771_v18, %v6889_v12  ;;  %v5793_v38 = vrot.slane %v19345_v61, %v19301_v22  ;;  %v5802_v63 = vrot.slane %v19346_v45, %v19301_v22  ;;  %v5977_v26 = vrot.slane %v19347_v53, %v19293_v9  ;;  %5656 = vperm.xlu1 %11359, %v15286_v5   ;;  %v19348_v36 = vld [vmem:[#allocation87_spill] sm:$0xff]  ;;  %v19349_v18 = vld [vmem:[#allocation89_spill] sm:$0xff] }
 0x8db   :  { %v5789_v27 = vsel %vm1210_vm7, %v5788_v58, %v5784_v24  ;;  %v5964_v19 = vrot.slane %v19348_v36, %v19301_v22  ;;  %v5959_v34 = vrot.slane %v19349_v18, %v19293_v9  ;;  %v5986_v12 = vrot.slane %v19350_v6, %v19293_v9  ;;  %v19351_v61 = vld [vmem:[#allocation85_spill] sm:$0xff]  ;;  %v19352_v59 = vld [vmem:[#allocation11_spill] sm:$0xff]  ;;  %v15460_v58 = vpop.permute.xlu0 %5449  ;;  %v19353_v24 = vld [vmem:[#allocation90_spill] sm:$0xff] }
 0x8dc   :  { %v6891_v55 = vsel %vm1281_vm11, %v5780_v23, %v6890_v4  ;;  %v5955_v45 = vrot.slane %v19351_v61, %v19301_v22  ;;  %v5798_v53 = vsel %vm1210_vm7, %v5797_v56, %v5793_v38  ;;  %v5973_v5 = vrot.slane %v19352_v59, %v19301_v22  ;;  %v19354_v30 = vld [vmem:[#allocation271_spill] sm:$0xff] }
 0x8dd   :  { %v5982_v36 = vrot.slane %v19353_v24, %v19301_v22  ;;  %v5969_v18 = vsel %vm1210_vm7, %v5968_v2, %v5964_v19  ;;  %v5995_v6 = vrot.slane %v19354_v30, %v19293_v9  ;;  %5671 = vperm.xlu0 %11358, %v15354_v11   ;;  %v5807_v23 = vsel %vm1210_vm7, %v5806_v43, %v5802_v63  ;;  %v15474_v59 = vpop.permute.xlu1 %5536  ;;  %v19356_v30 = vld [vmem:[#allocation91_spill] sm:$0xff] }
 0x8de   :  { %v15470_v4 = vmul.f32 -0.5, %v15360_v46  ;;  %v5978_v56 = vsel %vm1210_vm7, %v5977_v26, %v5973_v5  ;;  %5662 = vperm.xlu1 %11359, %v15294_v39   ;;  %v6892_v38 = vsel %vm1283_vm12, %v5789_v27, %v6891_v55  ;;  %v6900_v2 = vsel %vm1285_vm13, %v5870_v17, %v6899_v1  ;;  %v19360_v24 = vld [vmem:[#allocation95_spill] sm:$0xff]  ;;  %v19373_v39 = vld [vmem:[#allocation289_spill] sm:$0xff] }
 0x8df   :  { %v5960_v19 = vsel %vm1210_vm7, %v5959_v34, %v5955_v45  ;;  %v5991_v61 = vrot.slane %v19356_v30, %v19301_v22  ;;  %v5987_v43 = vsel %vm1210_vm7, %v5986_v12, %v5982_v36  ;;  %v6893_v46 = vsel %vm1285_vm13, %v5798_v53, %v6892_v38  ;;  %v15487_v26 = vpop.permute.xlu0 %5455  ;;  %v19358_v34 = vld [vmem:[#allocation93_spill] sm:$0xff] }
 0x8e0   :  { %19355 = vst [vmem:[#allocation63_spill] sm:$0xff] %v15470_v4  ;;  %v15484_v63 = vmul.f32 -0.5, %v15374_v29  ;;  %v6909_v5 = vsel %vm1275_vm8, %v5969_v18, %v5960_v19  ;;  %v15490_v27 = vsel %vm1287_vm14, %v5807_v23, %v6893_v46  ;;  %v15493_v17 = vsel %vm1287_vm14, %v5879_v20, %v6900_v2  ;;  %v19359_v29 = vld [vmem:[#allocation281_spill] sm:$0xff]  ;;  %v19362_v23 = vld [vmem:[#allocation283_spill] sm:$0xff] }
 0x8e1   :  { %v6910_v1 = vsel %vm1277_vm9, %v5978_v56, %v6909_v5  ;;  %v6000_v12 = vrot.slane %v19358_v34, %v19301_v22  ;;  %v5996_v55 = vsel %vm1210_vm7, %v5995_v6, %v5991_v61  ;;  %v5896_v45 = vrot.slane %v19359_v29, %v19293_v9  ;;  %5677 = vperm.xlu0 %11358, %v15470_v4   ;;  %v19361_v20 = vld [vmem:[#allocation273_spill] sm:$0xff]  ;;  %v15510_v38 = vpop.permute.xlu1 %5542  ;;  %v19363_v6 = vld [vmem:[#allocation275_spill] sm:$0xff] }
 0x8e2   :  { %19357 = vst [vmem:[#allocation241_spill] sm:$0xff] %v15484_v63  ;;  %v6911_v53 = vsel %vm1279_vm10, %v5987_v43, %v6910_v1  ;;  %v6009_v36 = vrot.slane %v19360_v24, %v19301_v22  ;;  %v6004_v18 = vrot.slane %v19361_v20, %v19293_v9  ;;  %v5905_v56 = vrot.slane %v19362_v23, %v19293_v9  ;;  %v19364_v19 = vld [vmem:[#allocation101_spill] sm:$0xff]  ;;  %v19365_v61 = vld [vmem:[#allocation279_spill] sm:$0xff]  ;;  %v19368_v20 = vld [vmem:[#allocation286_spill] sm:$0xff] }
 0x8e3   :  { %5668 = vperm.xlu1 %11359, %v15312_v33   ;;  %v6013_v2 = vrot.slane %v19363_v6, %v19293_v9  ;;  %v5892_v30 = vrot.slane %v19364_v19, %v19301_v22  ;;  %v5887_v43 = vrot.slane %v19365_v61, %v19293_v9  ;;  %v5914_v46 = vrot.slane %v14468_v16, %v19293_v9  ;;  %v19366_v1 = vld [vmem:[#allocation97_spill] sm:$0xff]  ;;  %v19367_v29 = vld [vmem:[#allocation103_spill] sm:$0xff]  ;;  %v15527_v6 = vpop.permute.xlu0 %5461 }
 0x8e4   :  { %v6912_v5 = vsel %vm1281_vm11, %v5996_v55, %v6911_v53  ;;  %v6018_v34 = vrot.slane %v19366_v1, %v19301_v22  ;;  %v5901_v24 = vrot.slane %v19367_v29, %v19301_v22  ;;  %v5923_v23 = vrot.slane %v19368_v20, %v19293_v9  ;;  %v19369_v19 = vld [vmem:[#allocation99_spill] sm:$0xff]  ;;  %v19370_v61 = vld [vmem:[#allocation277_spill] sm:$0xff] }
 0x8e5   :  { %v5883_v4 = vrot.slane %v19369_v19, %v19301_v22  ;;  %v6022_v11 = vrot.slane %v19370_v61, %v19293_v9  ;;  %v19371_v16 = vld [vmem:[#allocation105_spill] sm:$0xff]  ;;  %v5897_v53 = vsel %vm1210_vm7, %v5896_v45, %v5892_v30  ;;  %5683 = vperm.xlu0 %11358, %v15484_v63   ;;  %v6005_v1 = vsel %vm1210_vm7, %v6004_v18, %v6000_v12  ;;  %v19372_v29 = vld [vmem:[#allocation107_spill] sm:$0xff]  ;;  %v15544_v61 = vpop.permute.xlu1 %5452 }
 0x8e6   :  { %v5910_v55 = vrot.slane %v19371_v16, %v19301_v22  ;;  %v5919_v20 = vrot.slane %v19372_v29, %v19301_v22  ;;  %v5906_v33 = vsel %vm1210_vm7, %v5905_v56, %v5901_v24  ;;  %v5932_v19 = vrot.slane %v19373_v39, %v19293_v9  ;;  %v19374_v12 = vld [vmem:[#allocation291_spill] sm:$0xff]  ;;  %v19375_v56 = vld [vmem:[#allocation109_spill] sm:$0xff] }
 0x8e7   :  { %5674 = vperm.xlu1 %11359, %v15338_v31   ;;  %v6014_v16 = vsel %vm1210_vm7, %v6013_v2, %v6009_v36  ;;  %v5888_v45 = vsel %vm1210_vm7, %v5887_v43, %v5883_v4  ;;  %v5941_v18 = vrot.slane %v19374_v12, %v19293_v9  ;;  %v5928_v24 = vrot.slane %v19375_v56, %v19301_v22  ;;  %v15557_v31 = vpop.permute.xlu0 %5467  ;;  %v19376_v4 = vld [vmem:[#allocation111_spill] sm:$0xff] }
 0x8e8   :  { %v5915_v30 = vsel %vm1210_vm7, %v5914_v46, %v5910_v55  ;;  %v6902_v29 = vsel %vm1275_vm8, %v5897_v53, %v5888_v45  ;;  %v5924_v39 = vsel %vm1210_vm7, %v5923_v23, %v5919_v20  ;;  %v5950_v63 = vrot.slane %v14524_v32, %v19293_v9  ;;  %v19377_v23 = vld [vmem:[#allocation113_spill] sm:$0xff]  ;;  %v19378_v20 = vld [vmem:[#allocation295_spill] sm:$0xff] }
 0x8e9   :  { %v6903_v36 = vsel %vm1277_vm9, %v5906_v33, %v6902_v29  ;;  %v5937_v2 = vrot.slane %v19376_v4, %v19301_v22  ;;  %5701 = vperm.xlu0 %11358, %v15220_v48   ;;  %v6023_v43 = vsel %vm1210_vm7, %v6022_v11, %v6018_v34  ;;  %v6913_v46 = vsel %vm1283_vm12, %v6005_v1, %v6912_v5  ;;  %v15572_v33 = vpop.permute.xlu1 %5458  ;;  %v19379_v5 = vld [vmem:[#allocation297_spill] sm:$0xff] }
 0x8ea   :  { %v6904_v55 = vsel %vm1279_vm10, %v5915_v30, %v6903_v36  ;;  %v5946_v53 = vrot.slane %v19377_v23, %v19301_v22  ;;  %v5933_v32 = vsel %vm1210_vm7, %v5932_v19, %v5928_v24  ;;  %v6112_v45 = vrot.slane %v19378_v20, %v19293_v9  ;;  %v19380_v30 = vld [vmem:[#allocation117_spill] sm:$0xff]  ;;  %v19381_v19 = vld [vmem:[#allocation119_spill] sm:$0xff]  ;;  %v19385_v20 = vld [vmem:[#allocation120_spill] sm:$0xff] }
 0x8eb   :  { %5680 = vperm.xlu1 %11359, %v15342_v14   ;;  %v6905_v12 = vsel %vm1281_vm11, %v5924_v39, %v6904_v55  ;;  %v5942_v11 = vsel %vm1210_vm7, %v5941_v18, %v5937_v2  ;;  %v6121_v34 = vrot.slane %v19379_v5, %v19293_v9  ;;  %v6914_v1 = vsel %vm1285_vm13, %v6014_v16, %v6913_v46  ;;  %v19382_v24 = vld [vmem:[#allocation299_spill] sm:$0xff]  ;;  %v15585_v4 = vpop.permute.xlu0 %5473 }
 0x8ec   :  { %v6108_v29 = vrot.slane %v19380_v30, %v19301_v22  ;;  %v6103_v56 = vrot.slane %v19381_v19, %v19293_v9  ;;  %v6130_v36 = vrot.slane %v19382_v24, %v19293_v9  ;;  %v5951_v39 = vsel %vm1210_vm7, %v5950_v63, %v5946_v53  ;;  %v19383_v18 = vld [vmem:[#allocation115_spill] sm:$0xff] }
 0x8ed   :  { %v6099_v2 = vrot.slane %v19383_v18, %v19301_v22  ;;  %v19384_v55 = vld [vmem:[#allocation15_spill] sm:$0xff]  ;;  %5707 = vperm.xlu0 %11358, %v15244_v0   ;;  %v6915_v16 = vsel %vm1287_vm14, %v6023_v43, %v6914_v1  ;;  %v6906_v46 = vsel %vm1283_vm12, %v5933_v32, %v6905_v12  ;;  %v6126_v5 = vrot.slane %v19385_v20, %v19301_v22  ;;  %v15601_v53 = vpop.permute.xlu1 %5464  ;;  %v19386_v43 = vld [vmem:[#allocation302_spill] sm:$0xff] }
 0x8ee   :  { %v6117_v23 = vrot.slane %v19384_v55, %v19301_v22  ;;  %v6113_v30 = vsel %vm1210_vm7, %v6112_v45, %v6108_v29  ;;  %v6139_v63 = vrot.slane %v14594_v37, %v19293_v9  ;;  %v6907_v19 = vsel %vm1285_vm13, %v5942_v11, %v6906_v46  ;;  %v19387_v37 = vld [vmem:[#allocation121_spill] sm:$0xff] }
 0x8ef   :  { %5686 = vperm.xlu1 %11359, %v15356_v49   ;;  %v6148_v1 = vrot.slane %v19386_v43, %v19293_v9  ;;  %v6908_v32 = vsel %vm1287_vm14, %v5951_v39, %v6907_v19  ;;  %v15610_v12 = vsel %vm1290_vm6, %v15493_v17, -inf  ;;  %v6104_v45 = vsel %vm1210_vm7, %v6103_v56, %v6099_v2  ;;  %v19388_v11 = vld [vmem:[#allocation305_spill] sm:$0xff]  ;;  %v19389_v39 = vld [vmem:[#allocation123_spill] sm:$0xff] }
 0x8f0   :  { %v6122_v24 = vsel %vm1210_vm7, %v6121_v34, %v6117_v23  ;;  %v6135_v29 = vrot.slane %v19387_v37, %v19301_v22  ;;  %v6131_v18 = vsel %vm1210_vm7, %v6130_v36, %v6126_v5  ;;  %v6157_v55 = vrot.slane %v19388_v11, %v19293_v9  ;;  %v15618_v34 = vpop.permute.xlu0 %5479  ;;  %v19390_v2 = vld [vmem:[#allocation125_spill] sm:$0xff]  ;;  %v19393_v11 = vld [vmem:[#allocation307_spill] sm:$0xff] }
 0x8f1   :  { %v6923_v23 = vsel %vm1275_vm8, %v6113_v30, %v6104_v45  ;;  %v6144_v46 = vrot.slane %v19389_v39, %v19301_v22  ;;  %5713 = vperm.xlu0 %11358, %v15263_v62   ;;  %v15626_v17 = vsel %vm1290_vm6, %v15490_v27, -inf  ;;  %v15629_v56 = vsel %vm1290_vm6, %v6915_v16, -inf  ;;  %v19391_v30 = vld [vmem:[#allocation311_spill] sm:$0xff]  ;;  %v15638_v43 = vpop.permute.xlu1 %5470  ;;  %v19394_v39 = vld [vmem:[#allocation309_spill] sm:$0xff] }
 0x8f2   :  { %v6924_v36 = vsel %vm1277_vm9, %v6122_v24, %v6923_v23  ;;  %v6153_v20 = vrot.slane %v19390_v2, %v19301_v22  ;;  %v6140_v5 = vsel %vm1210_vm7, %v6139_v63, %v6135_v29  ;;  %v6040_v19 = vrot.slane %v19391_v30, %v19293_v9  ;;  %v19392_v63 = vld [vmem:[#allocation131_spill] sm:$0xff]  ;;  %v19403_v49 = vld [vmem:[#allocation321_spill] sm:$0xff] }
 0x8f3   :  { %5704 = vperm.xlu1 %11359, %v15210_v13   ;;  %v6925_v27 = vsel %vm1279_vm10, %v6131_v18, %v6924_v36  ;;  %v6149_v45 = vsel %vm1210_vm7, %v6148_v1, %v6144_v46  ;;  %v6049_v16 = vrot.slane %v14678_v7, %v19293_v9  ;;  %v15645_v24 = vsel %vm1290_vm6, %v6908_v32, -inf  ;;  %v19396_v7 = vld [vmem:[#allocation127_spill] sm:$0xff]  ;;  %v19397_v32 = vld [vmem:[#allocation133_spill] sm:$0xff] }
 0x8f4   :  { %v6158_v37 = vsel %vm1210_vm7, %v6157_v55, %v6153_v20  ;;  %v6036_v29 = vrot.slane %v19392_v63, %v19301_v22  ;;  %v6166_v23 = vrot.slane %v19393_v11, %v19293_v9  ;;  %v6031_v2 = vrot.slane %v19394_v39, %v19293_v9  ;;  %v15654_v18 = vpop.permute.xlu0 %5485  ;;  %v19398_v20 = vld [vmem:[#allocation129_spill] sm:$0xff]  ;;  %v19399_v11 = vld [vmem:[#allocation316_spill] sm:$0xff] }
 0x8f5   :  { %19395 = vst [vmem:[#allocation53_spill] sm:$0xff] %v15654_v18  ;;  %v6926_v1 = vsel %vm1281_vm11, %v6140_v5, %v6925_v27  ;;  %v6162_v46 = vrot.slane %v19396_v7, %v19301_v22  ;;  %v6045_v36 = vrot.slane %v19397_v32, %v19301_v22  ;;  %v6058_v55 = vrot.slane %v14692_v28, %v19293_v9  ;;  %v15670_v5 = vpop.permute.xlu1 %5476  ;;  %v19400_v7 = vld [vmem:[#allocation135_spill] sm:$0xff] }
 0x8f6   :  { %5719 = vperm.xlu0 %11358, %v15267_v21   ;;  %v6027_v30 = vrot.slane %v19398_v20, %v19301_v22  ;;  %v6041_v63 = vsel %vm1210_vm7, %v6040_v19, %v6036_v29  ;;  %v6067_v39 = vrot.slane %v19399_v11, %v19293_v9  ;;  %v6927_v27 = vsel %vm1283_vm12, %v6149_v45, %v6926_v1  ;;  %v19401_v21 = vld [vmem:[#allocation319_spill] sm:$0xff]  ;;  %v19402_v29 = vld [vmem:[#allocation136_spill] sm:$0xff] }
 0x8f7   :  { %5710 = vperm.xlu1 %11359, %v15218_v47   ;;  %v6054_v32 = vrot.slane %v19400_v7, %v19301_v22  ;;  %v6050_v28 = vsel %vm1210_vm7, %v6049_v16, %v6045_v36  ;;  %v6076_v62 = vrot.slane %v19401_v21, %v19293_v9  ;;  %v6928_v20 = vsel %vm1285_vm13, %v6158_v37, %v6927_v27  ;;  %v19405_v16 = vld [vmem:[#allocation138_spill] sm:$0xff]  ;;  %v19445_v47 = vld [vmem:[#allocation385_spill] sm:$0xff] }
 0x8f8   :  { %v6032_v19 = vsel %vm1210_vm7, %v6031_v2, %v6027_v30  ;;  %v6063_v11 = vrot.slane %v19402_v29, %v19301_v22  ;;  %v6085_v14 = vrot.slane %v19403_v49, %v19293_v9  ;;  %v15684_v0 = vpop.permute.xlu0 %5491  ;;  %v6167_v45 = vsel %vm1210_vm7, %v6166_v23, %v6162_v46  ;;  %v19406_v49 = vld [vmem:[#allocation140_spill] sm:$0xff]  ;;  %v19407_v23 = vld [vmem:[#allocation327_spill] sm:$0xff] }
 0x8f9   :  { %19404 = vst [vmem:[#allocation65_spill] sm:$0xff] %v15684_v0  ;;  %v6916_v1 = vsel %vm1275_vm8, %v6041_v63, %v6032_v19  ;;  %v6072_v36 = vrot.slane %v19405_v16, %v19301_v22  ;;  %v6059_v21 = vsel %vm1210_vm7, %v6058_v55, %v6054_v32  ;;  %v6256_v37 = vrot.slane %v14776_v52, %v19293_v9  ;;  %v15701_v63 = vpop.permute.xlu1 %5482  ;;  %v19408_v52 = vld [vmem:[#allocation146_spill] sm:$0xff]  ;;  %v19409_v32 = vld [vmem:[#allocation147_spill] sm:$0xff]  ;;  %v19410_v19 = vld [vmem:[#allocation329_spill] sm:$0xff] }
 0x8fa   :  { %5725 = vperm.xlu0 %11358, %v15274_v8   ;;  %v6917_v2 = vsel %vm1277_vm9, %v6050_v28, %v6916_v1  ;;  %v6081_v30 = vrot.slane %v19406_v49, %v19301_v22  ;;  %v6068_v27 = vsel %vm1210_vm7, %v6067_v39, %v6063_v11  ;;  %v6265_v46 = vrot.slane %v19407_v23, %v19293_v9  ;;  %v19411_v1 = vld [vmem:[#allocation323_spill] sm:$0xff]  ;;  %v19412_v49 = vld [vmem:[#allocation17_spill] sm:$0xff]  ;;  %v19414_v8 = vld [vmem:[#allocation148_spill] sm:$0xff] }
 0x8fb   :  { %5716 = vperm.xlu1 %11359, %v15236_v10   ;;  %v6077_v55 = vsel %vm1210_vm7, %v6076_v62, %v6072_v36  ;;  %v6252_v7 = vrot.slane %v19408_v52, %v19301_v22  ;;  %v6247_v28 = vrot.slane %v19409_v32, %v19293_v9  ;;  %v6274_v29 = vrot.slane %v19410_v19, %v19293_v9  ;;  %v19413_v52 = vld [vmem:[#allocation144_spill] sm:$0xff]  ;;  %v19474_v0 = vld [vmem:[#allocation47_spill] sm:$0xff] }
 0x8fc   :  { %v6918_v39 = vsel %vm1279_vm10, %v6059_v21, %v6917_v2  ;;  %v6086_v11 = vsel %vm1210_vm7, %v6085_v14, %v6081_v30  ;;  %v6094_v16 = vrot.slane %v19411_v1, %v19293_v9  ;;  %v6261_v23 = vrot.slane %v19412_v49, %v19301_v22  ;;  %v15716_v62 = vpop.permute.xlu0 %5593  ;;  %v19415_v14 = vld [vmem:[#allocation142_spill] sm:$0xff] }
 0x8fd   :  { %v6919_v36 = vsel %vm1281_vm11, %v6068_v27, %v6918_v39  ;;  %v6243_v32 = vrot.slane %v19413_v52, %v19301_v22  ;;  %v6270_v19 = vrot.slane %v19414_v8, %v19301_v22  ;;  %v6257_v21 = vsel %vm1210_vm7, %v6256_v37, %v6252_v7  ;;  %v15729_v1 = vpop.permute.xlu1 %5488 }
 0x8fe   :  { %5731 = vperm.xlu0 %11358, %v15282_v41   ;;  %v6090_v2 = vrot.slane %v19415_v14, %v19301_v22  ;;  %v6266_v30 = vsel %vm1210_vm7, %v6265_v46, %v6261_v23  ;;  %v15732_v27 = vsel %vm1287_vm14, %v6167_v45, %v6928_v20  ;;  %v6920_v39 = vsel %vm1283_vm12, %v6077_v55, %v6919_v36  ;;  %v19416_v23 = vld [vmem:[#allocation149_spill] sm:$0xff] }
 0x8ff   :  { %5722 = vperm.xlu1 %11359, %v15254_v51   ;;  %v6248_v8 = vsel %vm1210_vm7, %v6247_v28, %v6243_v32  ;;  %v6275_v37 = vsel %vm1210_vm7, %v6274_v29, %v6270_v19  ;;  %v6283_v7 = vrot.slane %v14818_v57, %v19293_v9  ;;  %v6921_v49 = vsel %vm1285_vm13, %v6086_v11, %v6920_v39  ;;  %v19417_v29 = vld [vmem:[#allocation151_spill] sm:$0xff]  ;;  %v19418_v19 = vld [vmem:[#allocation153_spill] sm:$0xff] }
 0x900   :  { %v6937_v46 = vsel %vm1275_vm8, %v6257_v21, %v6248_v8  ;;  %v6279_v52 = vrot.slane %v19416_v23, %v19301_v22  ;;  %v6292_v20 = vrot.slane %v14832_v60, %v19293_v9  ;;  %v15745_v45 = vpop.permute.xlu0 %5599  ;;  %v6095_v55 = vsel %vm1210_vm7, %v6094_v16, %v6090_v2  ;;  %v19420_v8 = vld [vmem:[#allocation161_spill] sm:$0xff] }
 0x901   :  { %v6938_v28 = vsel %vm1277_vm9, %v6266_v30, %v6937_v46  ;;  %v6288_v36 = vrot.slane %v19417_v29, %v19301_v22  ;;  %v6301_v57 = vrot.slane %v14846_v50, %v19293_v9  ;;  %v6184_v11 = vrot.slane %v14888_v3, %v19293_v9  ;;  %v15763_v14 = vpop.permute.xlu1 %5494  ;;  %v19421_v46 = vld [vmem:[#allocation347_spill] sm:$0xff]  ;;  %v19443_v51 = vld [vmem:[#allocation381_spill] sm:$0xff] }
 0x902   :  { %v6939_v32 = vsel %vm1279_vm10, %v6275_v37, %v6938_v28  ;;  %v6297_v60 = vrot.slane %v19418_v19, %v19301_v22  ;;  %v6310_v21 = vrot.slane %v14860_v35, %v19293_v9  ;;  %v6193_v16 = vrot.slane %v14902_v40, %v19293_v9  ;;  %v19419_v35 = vld [vmem:[#allocation155_spill] sm:$0xff] }
 0x903   :  { %5728 = vperm.xlu1 %11359, %v15265_v54   ;;  %v6284_v50 = vsel %vm1210_vm7, %v6283_v7, %v6279_v52  ;;  %v6180_v3 = vrot.slane %v14856_v42, %v19301_v22  ;;  %v6175_v2 = vrot.slane %v14874_v25, %v19293_v9  ;;  %v6202_v30 = vrot.slane %v14916_v44, %v19293_v9  ;;  %v19422_v42 = vld [vmem:[#allocation157_spill] sm:$0xff]  ;;  %v19423_v44 = vld [vmem:[#allocation339_spill] sm:$0xff] }
 0x904   :  { %v6306_v39 = vrot.slane %v19419_v35, %v19301_v22  ;;  %v6293_v40 = vsel %vm1210_vm7, %v6292_v20, %v6288_v36  ;;  %v6189_v37 = vrot.slane %v19420_v8, %v19301_v22  ;;  %v6211_v7 = vrot.slane %v19421_v46, %v19293_v9  ;;  %v15779_v23 = vpop.permute.xlu0 %5605  ;;  %v19424_v36 = vld [vmem:[#allocation342_spill] sm:$0xff]  ;;  %v19425_v8 = vld [vmem:[#allocation216_spill] sm:$0xff] }
 0x905   :  { %v6171_v52 = vrot.slane %v19422_v42, %v19301_v22  ;;  %v6302_v25 = vsel %vm1210_vm7, %v6301_v57, %v6297_v60  ;;  %v6198_v28 = vrot.slane %v19423_v44, %v19301_v22  ;;  %v6185_v29 = vsel %vm1210_vm7, %v6184_v11, %v6180_v3  ;;  %v15792_v46 = vpop.permute.xlu1 %5596 }
 0x906   :  { %v6940_v20 = vsel %vm1281_vm11, %v6284_v50, %v6939_v32  ;;  %v6207_v19 = vrot.slane %v19424_v36, %v19301_v22  ;;  %v6194_v35 = vsel %vm1210_vm7, %v6193_v16, %v6189_v37  ;;  %v6311_v42 = vsel %vm1210_vm7, %v6310_v21, %v6306_v39  ;;  %v19426_v16 = vld [vmem:[#allocation350_spill] sm:$0xff] }
 0x907   :  { %5734 = vperm.xlu1 %11359, %v19425_v8   ;;  %v6176_v57 = vsel %vm1210_vm7, %v6175_v2, %v6171_v52  ;;  %v6203_v60 = vsel %vm1210_vm7, %v6202_v30, %v6198_v28  ;;  %v6941_v44 = vsel %vm1283_vm12, %v6293_v40, %v6940_v20  ;;  %v15799_v11 = vsel %vm1287_vm14, %v6095_v55, %v6921_v49  ;;  %v19427_v30 = vld [vmem:[#allocation163_spill] sm:$0xff]  ;;  %v19428_v40 = vld [vmem:[#allocation361_spill] sm:$0xff]  ;;  %v19429_v52 = vld [vmem:[#allocation164_spill] sm:$0xff] }
 0x908   :  { %v6930_v32 = vsel %vm1275_vm8, %v6185_v29, %v6176_v57  ;;  %v6212_v50 = vsel %vm1210_vm7, %v6211_v7, %v6207_v19  ;;  %v6220_v3 = vrot.slane %v19426_v16, %v19293_v9  ;;  %v15805_v37 = vpop.permute.xlu0 %5611  ;;  %v6942_v21 = vsel %vm1285_vm13, %v6302_v25, %v6941_v44  ;;  %v19430_v29 = vld [vmem:[#allocation165_spill] sm:$0xff]  ;;  %v19432_v57 = vld [vmem:[#allocation167_spill] sm:$0xff] }
 0x909   :  { %v6931_v2 = vsel %vm1277_vm9, %v6194_v35, %v6930_v32  ;;  %v6216_v39 = vrot.slane %v19427_v30, %v19301_v22  ;;  %v6400_v49 = vrot.slane %v19428_v40, %v19293_v9  ;;  %v15814_v55 = vsel %vm1287_vm14, %v6311_v42, %v6942_v21  ;;  %v19431_v25 = vld [vmem:[#allocation365_spill] sm:$0xff]  ;;  %v15823_v19 = vpop.permute.xlu1 %5602  ;;  %v19433_v42 = vld [vmem:[#allocation168_spill] sm:$0xff]  ;;  %v19436_v40 = vld [vmem:[#allocation19_spill] sm:$0xff] }
 0x90a   :  { %v6932_v7 = vsel %vm1279_vm10, %v6203_v60, %v6931_v2  ;;  %v6225_v28 = vrot.slane %v19429_v52, %v19301_v22  ;;  %v6234_v20 = vrot.slane %v19430_v29, %v19301_v22  ;;  %v6409_v36 = vrot.slane %v19431_v25, %v19293_v9  ;;  %v19434_v60 = vld [vmem:[#allocation369_spill] sm:$0xff]  ;;  %v19435_v2 = vld [vmem:[#allocation352_spill] sm:$0xff]  ;;  %v19438_v25 = vld [vmem:[#allocation166_spill] sm:$0xff] }
 0x90b   :  { %v6933_v35 = vsel %vm1281_vm11, %v6212_v50, %v6932_v7  ;;  %v6396_v44 = vrot.slane %v19432_v57, %v19301_v22  ;;  %v6391_v32 = vrot.slane %v19433_v42, %v19293_v9  ;;  %v6418_v16 = vrot.slane %v19434_v60, %v19293_v9  ;;  %v19437_v29 = vld [vmem:[#allocation373_spill] sm:$0xff]  ;;  %v19439_v42 = vld [vmem:[#allocation360_spill] sm:$0xff] }
 0x90c   :  { %v6221_v21 = vsel %vm1210_vm7, %v6220_v3, %v6216_v39  ;;  %v6229_v30 = vrot.slane %v19435_v2, %v19293_v9  ;;  %v6405_v52 = vrot.slane %v19436_v40, %v19301_v22  ;;  %v6427_v50 = vrot.slane %v19437_v29, %v19293_v9  ;;  %v15839_v7 = vpop.permute.xlu0 %5617  ;;  %v19440_v3 = vld [vmem:[#allocation377_spill] sm:$0xff]  ;;  %v19441_v2 = vld [vmem:[#allocation355_spill] sm:$0xff]  ;;  %v19442_v40 = vld [vmem:[#allocation364_spill] sm:$0xff] }
 0x90d   :  { %v6387_v57 = vrot.slane %v19438_v25, %v19301_v22  ;;  %v6414_v8 = vrot.slane %v19439_v42, %v19301_v22  ;;  %v6401_v60 = vsel %vm1210_vm7, %v6400_v49, %v6396_v44  ;;  %v6436_v39 = vrot.slane %v19440_v3, %v19293_v9  ;;  %v15855_v25 = vpop.permute.xlu1 %5608  ;;  %v19444_v49 = vld [vmem:[#allocation368_spill] sm:$0xff] }
 0x90e   :  { %v6238_v41 = vrot.slane %v19441_v2, %v19293_v9  ;;  %v6423_v54 = vrot.slane %v19442_v40, %v19301_v22  ;;  %v6410_v29 = vsel %vm1210_vm7, %v6409_v36, %v6405_v52  ;;  %v6445_v10 = vrot.slane %v19443_v51, %v19293_v9  ;;  %v19446_v36 = vld [vmem:[#allocation372_spill] sm:$0xff] }
 0x90f   :  { %v6392_v42 = vsel %vm1210_vm7, %v6391_v32, %v6387_v57  ;;  %v6432_v44 = vrot.slane %v19444_v49, %v19301_v22  ;;  %v6419_v3 = vsel %vm1210_vm7, %v6418_v16, %v6414_v8  ;;  %v6454_v2 = vrot.slane %v19445_v47, %v19293_v9  ;;  %v19447_v57 = vld [vmem:[#allocation376_spill] sm:$0xff] }
 0x910   :  { %v6230_v48 = vsel %vm1210_vm7, %v6229_v30, %v6225_v28  ;;  %v6951_v40 = vsel %vm1275_vm8, %v6401_v60, %v6392_v42  ;;  %v6441_v52 = vrot.slane %v19446_v36, %v19301_v22  ;;  %v6428_v51 = vsel %vm1210_vm7, %v6427_v50, %v6423_v54  ;;  %v15868_v13 = vpop.permute.xlu0 %5623  ;;  %v19448_v30 = vld [vmem:[#allocation393_spill] sm:$0xff] }
 0x911   :  { %v6952_v32 = vsel %vm1277_vm9, %v6410_v29, %v6951_v40  ;;  %v6450_v49 = vrot.slane %v19447_v57, %v19301_v22  ;;  %v6437_v8 = vsel %vm1210_vm7, %v6436_v39, %v6432_v44  ;;  %v6934_v47 = vsel %vm1283_vm12, %v6221_v21, %v6933_v35  ;;  %v15879_v42 = vpop.permute.xlu1 %5614  ;;  %v19449_v29 = vld [vmem:[#allocation397_spill] sm:$0xff]  ;;  %v19450_v21 = vld [vmem:[#allocation384_spill] sm:$0xff] }
 0x912   :  { %v6953_v28 = vsel %vm1279_vm10, %v6419_v3, %v6952_v32  ;;  %v6446_v16 = vsel %vm1210_vm7, %v6445_v10, %v6441_v52  ;;  %v6328_v60 = vrot.slane %v19448_v30, %v19293_v9  ;;  %v6239_v54 = vsel %vm1210_vm7, %v6238_v41, %v6234_v20  ;;  %v19451_v10 = vld [vmem:[#allocation389_spill] sm:$0xff]  ;;  %v19453_v20 = vld [vmem:[#allocation388_spill] sm:$0xff] }
 0x913   :  { %v6954_v50 = vsel %vm1281_vm11, %v6428_v51, %v6953_v28  ;;  %v6337_v40 = vrot.slane %v19449_v29, %v19293_v9  ;;  %v6455_v39 = vsel %vm1210_vm7, %v6454_v2, %v6450_v49  ;;  %v6935_v35 = vsel %vm1285_vm13, %v6230_v48, %v6934_v47  ;;  %v19452_v36 = vld [vmem:[#allocation401_spill] sm:$0xff]  ;;  %v19455_v47 = vld [vmem:[#allocation380_spill] sm:$0xff] }
 0x914   :  { %v6324_v44 = vrot.slane %v19450_v21, %v19301_v22  ;;  %v6319_v3 = vrot.slane %v19451_v10, %v19293_v9  ;;  %v6346_v52 = vrot.slane %v19452_v36, %v19293_v9  ;;  %v15893_v32 = vpop.permute.xlu0 %5629  ;;  %v6955_v41 = vsel %vm1283_vm12, %v6437_v8, %v6954_v50  ;;  %v19454_v2 = vld [vmem:[#allocation405_spill] sm:$0xff]  ;;  %v19456_v30 = vld [vmem:[#allocation392_spill] sm:$0xff] }
 0x915   :  { %v6333_v51 = vrot.slane %v19453_v20, %v19301_v22  ;;  %v6355_v57 = vrot.slane %v19454_v2, %v19293_v9  ;;  %v6956_v48 = vsel %vm1285_vm13, %v6446_v16, %v6955_v41  ;;  %v6936_v49 = vsel %vm1287_vm14, %v6239_v54, %v6935_v35  ;;  %v15907_v10 = vpop.permute.xlu1 %5620  ;;  %v19457_v50 = vld [vmem:[#allocation396_spill] sm:$0xff] }
 0x916   :  { %v6315_v28 = vrot.slane %v19455_v47, %v19301_v22  ;;  %v6342_v29 = vrot.slane %v19456_v30, %v19301_v22  ;;  %v6329_v21 = vsel %vm1210_vm7, %v6328_v60, %v6324_v44  ;;  %v6957_v8 = vsel %vm1287_vm14, %v6455_v39, %v6956_v48  ;;  %v19461_v2 = vld [vmem:[#allocation400_spill] sm:$0xff] }
 0x917   :  { %v6351_v36 = vrot.slane %v19457_v50, %v19301_v22  ;;  %v6338_v20 = vsel %vm1210_vm7, %v6337_v40, %v6333_v51  ;;  %v15915_v16 = vsel %vm1290_vm6, %v15732_v27, -inf  ;;  %v15919_v54 = vsel %vm1290_vm6, %v15799_v11, -inf  ;;  %v19459_v11 = vld [vmem:[#allocation407_spill] sm:$0xff] }
 0x918   :  { %v6320_v35 = vsel %vm1210_vm7, %v6319_v3, %v6315_v28  ;;  %v6347_v60 = vsel %vm1210_vm7, %v6346_v52, %v6342_v29  ;;  %v15923_v44 = vpop.permute.xlu0 %5635  ;;  %v15927_v39 = vsel %vm1290_vm6, %v15814_v55, -inf  ;;  %v15930_v40 = vsel %vm1290_vm6, %v6936_v49, -inf  ;;  %v19462_v55 = vld [vmem:[#allocation20_spill] sm:$0xff]  ;;  %v19463_v49 = vld [vmem:[#allocation3_spill] sm:$0xff] }
 0x919   :  { %19458 = vst [vmem:[#allocation251_spill] sm:$0xff] %v15930_v40  ;;  %v6944_v27 = vsel %vm1275_vm8, %v6329_v21, %v6320_v35  ;;  %v6356_v41 = vsel %vm1210_vm7, %v6355_v57, %v6351_v36  ;;  %v6364_v51 = vrot.slane %v19459_v11, %v19293_v9  ;;  %v15937_v3 = vsel %vm1290_vm6, %v6957_v8, -inf  ;;  %v15946_v30 = vpop.permute.xlu1 %5626  ;;  %v19464_v29 = vld [vmem:[#allocation404_spill] sm:$0xff]  ;;  %v19465_v8 = vld [vmem:[#allocation193_spill] sm:$0xff]  ;;  %v19466_v36 = vld [vmem:[#allocation10_spill] sm:$0xff] }
 0x91a   :  { %19460 = vst [vmem:[#allocation231_spill] sm:$0xff] %v15937_v3  ;;  %v6945_v52 = vsel %vm1277_vm9, %v6338_v20, %v6944_v27  ;;  %v6360_v48 = vrot.slane %v19461_v2, %v19301_v22  ;;  %v6373_v47 = vrot.slane %v19462_v55, %v19293_v9  ;;  %v6544_v28 = vrot.slane %v19463_v49, %v19293_v9  ;;  %v19467_v27 = vld [vmem:[#allocation31_spill] sm:$0xff]  ;;  %v19468_v2 = vld [vmem:[#allocation41_spill] sm:$0xff]  ;;  %v19469_v49 = vld [vmem:[#allocation60_spill] sm:$0xff] }
 0x91b   :  { %v6946_v57 = vsel %vm1279_vm10, %v6347_v60, %v6945_v52  ;;  %v6369_v21 = vrot.slane %v19464_v29, %v19301_v22  ;;  %v6378_v50 = vrot.slane %v19465_v8, %v19301_v22  ;;  %v6553_v20 = vrot.slane %v19466_v36, %v19293_v9  ;;  %v19471_v8 = vld [vmem:[#allocation18_spill] sm:$0xff] }
 0x91c   :  { %v6947_v35 = vsel %vm1281_vm11, %v6356_v41, %v6946_v57  ;;  %v6540_v11 = vrot.slane %v19467_v27, %v19301_v22  ;;  %v6535_v55 = vrot.slane %v19468_v2, %v19293_v9  ;;  %v6562_v60 = vrot.slane %v19469_v49, %v19293_v9  ;;  %v15962_v52 = vpop.permute.xlu0 %5545  ;;  %v19472_v41 = vld [vmem:[#allocation212_spill] sm:$0xff]  ;;  %v19473_v27 = vld [vmem:[#allocation61_spill] sm:$0xff] }
 0x91d   :  { %19470 = vst [vmem:[#allocation243_spill] sm:$0xff] %v15962_v52  ;;  %7017 = vmax.xlane.f32.xlu0 %v15626_v17  ;;  %v6365_v29 = vsel %vm1210_vm7, %v6364_v51, %v6360_v48  ;;  %v6531_v36 = vrot.slane %v19471_v8, %v19301_v22  ;;  %v6549_v57 = vrot.slane %v19472_v41, %v19301_v22  ;;  %v15978_v51 = vpop.permute.xlu1 %5632  ;;  %v19475_v48 = vld [vmem:[#allocation33_spill] sm:$0xff]  ;;  %v19476_v41 = vld [vmem:[#allocation51_spill] sm:$0xff] }
 0x91e   :  { %v6571_v40 = vrot.slane %v19473_v27, %v19293_v9  ;;  %v6374_v2 = vsel %vm1210_vm7, %v6373_v47, %v6369_v21  ;;  %v6558_v49 = vrot.slane %v19474_v0, %v19301_v22  ;;  %v6545_v52 = vsel %vm1210_vm7, %v6544_v28, %v6540_v11  ;;  %v19477_v28 = vld [vmem:[#allocation55_spill] sm:$0xff] }
 0x91f   :  { %v6580_v17 = vrot.slane %v15445_v15, %v19293_v9  ;;  %v6382_v8 = vrot.slane %v19475_v48, %v19293_v9  ;;  %v6567_v3 = vrot.slane %v19476_v41, %v19301_v22  ;;  %v6554_v27 = vsel %vm1210_vm7, %v6553_v20, %v6549_v57  ;;  %v19478_v20 = vld [vmem:[#allocation57_spill] sm:$0xff] }
 0x920   :  { %v6589_v47 = vrot.slane %v15474_v59, %v19293_v9  ;;  %v6536_v0 = vsel %vm1210_vm7, %v6535_v55, %v6531_v36  ;;  %v6576_v21 = vrot.slane %v19477_v28, %v19301_v22  ;;  %v6563_v15 = vsel %vm1210_vm7, %v6562_v60, %v6558_v49  ;;  %v15993_v18 = vpop.permute.xlu0 %5551  ;;  %v19479_v60 = vld [vmem:[#allocation239_spill] sm:$0xff] }
 0x921   :  { %v6598_v11 = vrot.slane %v15510_v38, %v19293_v9  ;;  %7026 = vmax.xlane.f32.xlu0 %v15629_v56  ;;  %v6965_v48 = vsel %vm1275_vm8, %v6545_v52, %v6536_v0  ;;  %v6585_v57 = vrot.slane %v19478_v20, %v19301_v22  ;;  %v6572_v59 = vsel %vm1210_vm7, %v6571_v40, %v6567_v3  ;;  %v16008_v41 = vpop.permute.xlu1 %5638 }
 0x922   :  { %v6472_v55 = vrot.slane %v15572_v33, %v19293_v9  ;;  %v6966_v36 = vsel %vm1277_vm9, %v6554_v27, %v6965_v48  ;;  %v6594_v49 = vrot.slane %v19479_v60, %v19301_v22  ;;  %v6581_v38 = vsel %vm1210_vm7, %v6580_v17, %v6576_v21 }
 0x923   :  { %v6481_v56 = vrot.slane %v15601_v53, %v19293_v9  ;;  %v6967_v52 = vsel %vm1279_vm10, %v6563_v15, %v6966_v36  ;;  %v6590_v0 = vsel %vm1210_vm7, %v6589_v47, %v6585_v57  ;;  %v6468_v40 = vrot.slane %v15487_v26, %v19301_v22 }
 0x924   :  { %v6463_v33 = vrot.slane %v15544_v61, %v19293_v9  ;;  %v6968_v3 = vsel %vm1281_vm11, %v6572_v59, %v6967_v52  ;;  %v6477_v17 = vrot.slane %v15527_v6, %v19301_v22  ;;  %v16019_v27 = vpop.permute.xlu0 %5557  ;;  %v6599_v53 = vsel %vm1210_vm7, %v6598_v11, %v6594_v49 }
 0x925   :  { %7023 = vmax.xlane.f32.xlu0 %v15645_v24  ;;  %v6948_v28 = vsel %vm1283_vm12, %v6365_v29, %v6947_v35  ;;  %v6459_v47 = vrot.slane %v15460_v58, %v19301_v22  ;;  %v6473_v26 = vsel %vm1210_vm7, %v6472_v55, %v6468_v40  ;;  %v6969_v61 = vsel %vm1283_vm12, %v6581_v38, %v6968_v3  ;;  %v16034_v24 = vpop.permute.xlu1 %5548 }
 0x926   :  { %v16029_v21 = vsel %vm1285_vm13, %v6374_v2, %v6948_v28  ;;  %v6482_v6 = vsel %vm1210_vm7, %v6481_v56, %v6477_v17  ;;  %v6490_v15 = vrot.slane %v15638_v43, %v19293_v9  ;;  %v6970_v11 = vsel %vm1285_vm13, %v6590_v0, %v6969_v61  ;;  %v19480_v0 = vld [vmem:[#allocation53_spill] sm:$0xff]  ;;  %v19481_v17 = vld [vmem:[#allocation231_spill] sm:$0xff] }
 0x927   :  { %v6383_v35 = vsel %vm1210_vm7, %v6382_v8, %v6378_v50  ;;  %v6464_v58 = vsel %vm1210_vm7, %v6463_v33, %v6459_v47  ;;  %v6486_v29 = vrot.slane %v15557_v31, %v19301_v22  ;;  %v6688_v2 = vrot.slane %v15823_v19, %v19293_v9 }
 0x928   :  { %v6971_v48 = vsel %vm1287_vm14, %v6599_v53, %v6970_v11  ;;  %v6958_v20 = vsel %vm1275_vm8, %v6473_v26, %v6464_v58  ;;  %v6495_v43 = vrot.slane %v15585_v4, %v19301_v22  ;;  %v6504_v57 = vrot.slane %v15618_v34, %v19301_v22  ;;  %v16051_v8 = vpop.permute.xlu0 %5563 }
 0x929   :  { %v6697_v50 = vrot.slane %v15855_v25, %v19293_v9  ;;  %7032 = vmax.xlane.f32.xlu0 %v15915_v16  ;;  %v6959_v31 = vsel %vm1277_vm9, %v6482_v6, %v6958_v20  ;;  %v6684_v19 = vrot.slane %v15745_v45, %v19301_v22  ;;  %v6679_v59 = vrot.slane %v15792_v46, %v19293_v9  ;;  %v16069_v45 = vpop.permute.xlu1 %5554  ;;  %v19483_v6 = vld [vmem:[#allocation251_spill] sm:$0xff] }
 0x92a   :  { %v6706_v4 = vrot.slane %v15879_v42, %v19293_v9  ;;  %v6491_v34 = vsel %vm1210_vm7, %v6490_v15, %v6486_v29  ;;  %v6499_v25 = vrot.slane %v15670_v5, %v19293_v9  ;;  %v6693_v55 = vrot.slane %v15779_v23, %v19301_v22 }
 0x92b   :  { %v6715_v16 = vrot.slane %v15907_v10, %v19293_v9  ;;  %7020 = vmax.xlane.f32.xlu1 %v15610_v12  ;;  %v6675_v46 = vrot.slane %v15716_v62, %v19301_v22  ;;  %v6702_v42 = vrot.slane %v15805_v37, %v19301_v22  ;;  %v6689_v36 = vsel %vm1210_vm7, %v6688_v2, %v6684_v19 }
 0x92c   :  { %v6724_v5 = vrot.slane %v15946_v30, %v19293_v9  ;;  %v6508_v23 = vrot.slane %v15701_v63, %v19293_v9  ;;  %v6711_v10 = vrot.slane %v15839_v7, %v19301_v22  ;;  %v6698_v12 = vsel %vm1210_vm7, %v6697_v50, %v6693_v55  ;;  %v16085_v62 = vpop.permute.xlu0 %5569 }
 0x92d   :  { %v6733_v60 = vrot.slane %v15978_v51, %v19293_v9  ;;  %7038 = vmax.xlane.f32.xlu0 %v15927_v39  ;;  %v6680_v37 = vsel %vm1210_vm7, %v6679_v59, %v6675_v46  ;;  %v6720_v30 = vrot.slane %v15868_v13, %v19301_v22  ;;  %v6707_v49 = vsel %vm1210_vm7, %v6706_v4, %v6702_v42  ;;  %v5561_v56 = vpop.permute.xlu1 %5560 }
 0x92e   :  { %v6742_v63 = vrot.slane %v16008_v41, %v19293_v9  ;;  %v6517_v7 = vrot.slane %v15729_v1, %v19293_v9  ;;  %v6979_v38 = vsel %vm1275_vm8, %v6689_v36, %v6680_v37  ;;  %v6729_v51 = vrot.slane %v15893_v32, %v19301_v22 }
 0x92f   :  { %v6716_v39 = vsel %vm1210_vm7, %v6715_v16, %v6711_v10  ;;  %7029 = vmax.xlane.f32.xlu1 %v15919_v54  ;;  %v6526_v13 = vrot.slane %v15763_v14, %v19293_v9  ;;  %v6980_v52 = vsel %vm1277_vm9, %v6698_v12, %v6979_v38  ;;  %v6738_v41 = vrot.slane %v15923_v44, %v19301_v22  ;;  %v19482_v14 = vld [vmem:[#allocation65_spill] sm:$0xff]  ;;  %v19484_v10 = vld [vmem:[#allocation243_spill] sm:$0xff] }
 0x930   :  { %v6725_v1 = vsel %vm1210_vm7, %v6724_v5, %v6720_v30  ;;  %v6513_v40 = vrot.slane %v19480_v0, %v19301_v22  ;;  %v6500_v32 = vsel %vm1210_vm7, %v6499_v25, %v6495_v43  ;;  %v6981_v33 = vsel %vm1279_vm10, %v6707_v49, %v6980_v52  ;;  %v5576_v3 = vpop.permute.xlu0 %5575 }
 0x931   :  { %v6734_v54 = vsel %vm1210_vm7, %v6733_v60, %v6729_v51  ;;  %7044 = vmax.xlane.f32.xlu0 %v19481_v17  ;;  %v6522_v53 = vrot.slane %v19482_v14, %v19301_v22  ;;  %v6509_v28 = vsel %vm1210_vm7, %v6508_v23, %v6504_v57  ;;  %v6982_v44 = vsel %vm1281_vm11, %v6716_v39, %v6981_v33  ;;  %v5567_v15 = vpop.permute.xlu1 %5566 }
 0x932   :  { %v6743_v47 = vsel %vm1210_vm7, %v6742_v63, %v6738_v41  ;;  %v6960_v26 = vsel %vm1279_vm10, %v6491_v34, %v6959_v31  ;;  %v6518_v61 = vsel %vm1210_vm7, %v6517_v7, %v6513_v40  ;;  %v6950_v11 = vsel %vm1287_vm14, %v6383_v35, %v16029_v21 }
 0x933   :  { %7035 = vmax.xlane.f32.xlu1 %v19483_v6  ;;  %v6983_v58 = vsel %vm1283_vm12, %v6725_v1, %v6982_v44  ;;  %v6961_v29 = vsel %vm1281_vm11, %v6500_v32, %v6960_v26  ;;  %v7049_v2 = vsel %vm1290_vm6, %v6971_v48, -inf  ;;  %v6527_v43 = vsel %vm1210_vm7, %v6526_v13, %v6522_v53 }
 0x934   :  { %v6984_v20 = vsel %vm1285_vm13, %v6734_v54, %v6983_v58  ;;  %v5582_v57 = vpop.permute.xlu0 %5581  ;;  %v6962_v31 = vsel %vm1283_vm12, %v6509_v28, %v6961_v29  ;;  %v7040_v19 = vsel %vm1290_vm6, %v6950_v11, -inf  ;;  %v6616_v34 = vrot.slane %v16069_v45, %v19293_v9 }
 0x935   :  { %7050 = vmax.xlane.f32.xlu0 %v7049_v2  ;;  %v6985_v50 = vsel %vm1287_vm14, %v6743_v47, %v6984_v20  ;;  %v6963_v21 = vsel %vm1285_vm13, %v6518_v61, %v6962_v31  ;;  %v5573_v35 = vpop.permute.xlu1 %5572  ;;  %v6625_v55 = vrot.slane %v5561_v56, %v19293_v9  ;;  %v6612_v46 = vrot.slane %v15993_v18, %v19301_v22 }
 0x936   :  { %v6964_v59 = vsel %vm1287_vm14, %v6527_v43, %v6963_v21  ;;  %v7055_v48 = vsel %vm1290_vm6, %v6985_v50, -inf  ;;  %v6607_v42 = vrot.slane %v16034_v24, %v19293_v9  ;;  %v6634_v36 = vrot.slane %v5567_v15, %v19293_v9 }
 0x937   :  { %7041 = vmax.xlane.f32.xlu1 %v7040_v19  ;;  %v7046_v25 = vsel %vm1290_vm6, %v6964_v59, -inf  ;;  %v6621_v5 = vrot.slane %v16019_v27, %v19301_v22  ;;  %v6643_v23 = vrot.slane %v5573_v35, %v19293_v9  ;;  %v6603_v12 = vrot.slane %v19484_v10, %v19301_v22 }
 0x938   :  { %v5588_v4 = vpop.permute.xlu0 %5587  ;;  %v6630_v60 = vrot.slane %v16051_v8, %v19301_v22  ;;  %v6617_v18 = vsel %vm1210_vm7, %v6616_v34, %v6612_v46  ;;  %v6639_v24 = vrot.slane %v16085_v62, %v19301_v22  ;;  %v6648_v63 = vrot.slane %v5576_v3, %v19301_v22 }
 0x939   :  { %7056 = vmax.xlane.f32.xlu0 %v7055_v48  ;;  %v5579_v16 = vpop.permute.xlu1 %5578  ;;  %v6626_v30 = vsel %vm1210_vm7, %v6625_v55, %v6621_v5  ;;  %v6608_v49 = vsel %vm1210_vm7, %v6607_v42, %v6603_v12  ;;  %v6657_v51 = vrot.slane %v5582_v57, %v19301_v22  ;;  %v6666_v40 = vrot.slane %v5588_v4, %v19301_v22 }
 0x93a   :  { %v6652_v37 = vrot.slane %v5579_v16, %v19293_v9  ;;  %v6635_v7 = vsel %vm1210_vm7, %v6634_v36, %v6630_v60  ;;  %v6972_v8 = vsel %vm1275_vm8, %v6617_v18, %v6608_v49  ;;  %v6644_v39 = vsel %vm1210_vm7, %v6643_v23, %v6639_v24 }
 0x93b   :  { %7047 = vmax.xlane.f32.xlu1 %v7046_v25  ;;  %v6973_v62 = vsel %vm1277_vm9, %v6626_v30, %v6972_v8 }
 0x93c   :  { %v16146_v45 = vpop.permute.xlu0 %5689  ;;  %v6653_v13 = vsel %vm1210_vm7, %v6652_v37, %v6648_v63  ;;  %v6974_v52 = vsel %vm1279_vm10, %v6635_v7, %v6973_v62 }
 0x93d   :  { %v5585_v27 = vpop.permute.xlu1 %5584  ;;  %v6975_v0 = vsel %vm1281_vm11, %v6644_v39, %v6974_v52 }
 0x93e   :  { %v6661_v38 = vrot.slane %v5585_v27, %v19293_v9  ;;  %v6976_v54 = vsel %vm1283_vm12, %v6653_v13, %v6975_v0 }
 0x940   :  { %v16164_v56 = vpop.permute.xlu0 %5695  ;;  %v6662_v41 = vsel %vm1210_vm7, %v6661_v38, %v6657_v51 }
 0x941   :  { %v5591_v1 = vpop.permute.xlu1 %5590  ;;  %v6977_v17 = vsel %vm1285_vm13, %v6662_v41, %v6976_v54 }
 0x942   :  { %v6670_v32 = vrot.slane %v5591_v1, %v19293_v9 }
 0x944   :  { %v5642_v33 = vpop.permute.xlu0 %5641  ;;  %v6671_v3 = vsel %vm1210_vm7, %v6670_v32, %v6666_v40 }
 0x945   :  { %v16176_v14 = vpop.permute.xlu1 %5692  ;;  %v6978_v53 = vsel %vm1287_vm14, %v6671_v3, %v6977_v17  ;;  %v6747_v25 = vrot.slane %v5642_v33, %v19301_v22 }
 0x946   :  { %v7052_v28 = vsel %vm1290_vm6, %v6978_v53, -inf }
 0x947   :  { %7053 = vmax.xlane.f32.xlu1 %v7052_v28 }
 0x948   :  { %v5648_v44 = vpop.permute.xlu0 %5647 }
 0x949   :  { %v16180_v47 = vpop.permute.xlu1 %5698  ;;  %v6756_v21 = vrot.slane %v5648_v44, %v19301_v22  ;;  %v6828_v44 = vrot.slane %v16164_v56, %v19301_v22 }
 0x94a   :  { %v6832_v3 = vrot.slane %v16180_v47, %v19293_v9 }
 0x94c   :  { %v5654_v26 = vpop.permute.xlu0 %5653  ;;  %v6833_v47 = vsel %vm1210_vm7, %v6832_v3, %v6828_v44  ;;  %v19496_v3 = vld [vmem:[#allocation24_spill] sm:$0xff] }
 0x94d   :  { %v5645_v61 = vpop.permute.xlu1 %5644  ;;  %v6765_v48 = vrot.slane %v5654_v26, %v19301_v22  ;;  %v6823_v26 = vrot.slane %v16176_v14, %v19293_v9 }
 0x94e   :  { %v6751_v35 = vrot.slane %v5645_v61, %v19293_v9 }
 0x950   :  { %v5660_v6 = vpop.permute.xlu0 %5659  ;;  %v6752_v23 = vsel %vm1210_vm7, %v6751_v35, %v6747_v25 }
 0x951   :  { %v5651_v15 = vpop.permute.xlu1 %5650  ;;  %v6774_v55 = vrot.slane %v5660_v6, %v19301_v22 }
 0x952   :  { %v6760_v50 = vrot.slane %v5651_v15, %v19293_v9 }
 0x954   :  { %v5666_v11 = vpop.permute.xlu0 %5665  ;;  %v6761_v16 = vsel %vm1210_vm7, %v6760_v50, %v6756_v21 }
 0x955   :  { %v5657_v58 = vpop.permute.xlu1 %5656  ;;  %v6783_v42 = vrot.slane %v5666_v11, %v19301_v22  ;;  %v6986_v18 = vsel %vm1275_vm8, %v6761_v16, %v6752_v23  ;;  %v6819_v11 = vrot.slane %v16146_v45, %v19301_v22 }
 0x956   :  { %v6769_v31 = vrot.slane %v5657_v58, %v19293_v9 }
 0x958   :  { %v5672_v29 = vpop.permute.xlu0 %5671  ;;  %v6770_v36 = vsel %vm1210_vm7, %v6769_v31, %v6765_v48 }
 0x959   :  { %v5663_v2 = vpop.permute.xlu1 %5662  ;;  %v6792_v10 = vrot.slane %v5672_v29, %v19301_v22  ;;  %v6987_v27 = vsel %vm1277_vm9, %v6770_v36, %v6986_v18  ;;  %v19487_v18 = vld [vmem:[#allocation21_spill] sm:$0xff] }
 0x95a   :  { %v6778_v59 = vrot.slane %v5663_v2, %v19293_v9 }
 0x95c   :  { %v5678_v20 = vpop.permute.xlu0 %5677  ;;  %v6779_v12 = vsel %vm1210_vm7, %v6778_v59, %v6774_v55 }
 0x95d   :  { %v6801_v37 = vrot.slane %v5678_v20, %v19301_v22  ;;  %v6988_v63 = vsel %vm1279_vm10, %v6779_v12, %v6987_v27  ;;  %v6824_v20 = vsel %vm1210_vm7, %v6823_v26, %v6819_v11  ;;  %v19486_v12 = vld [vmem:[#allocation5_spill] sm:$0xff]  ;;  %v19489_v27 = vld [vmem:[#allocation170_spill] sm:$0xff]  ;;  %v19498_v26 = vld [vmem:[#allocation176_spill] sm:$0xff] }
 0x95e   :  { %v5669_v43 = vpop.permute.xlu1 %5668  ;;  %v6993_v45 = vsel %vm1275_vm8, %v6833_v47, %v6824_v20  ;;  %v19500_v47 = vld [vmem:[#allocation177_spill] sm:$0xff]  ;;  %v19502_v20 = vld [vmem:[#allocation26_spill] sm:$0xff] }
 0x95f   :  { %v6787_v4 = vrot.slane %v5669_v43, %v19293_v9 }
 0x960   :  { %v5684_v57 = vpop.permute.xlu0 %5683 }
 0x961   :  { %v6788_v24 = vsel %vm1210_vm7, %v6787_v4, %v6783_v42  ;;  %v6810_v51 = vrot.slane %v5684_v57, %v19301_v22 }
 0x962   :  { %v5675_v19 = vpop.permute.xlu1 %5674  ;;  %v6989_v8 = vsel %vm1281_vm11, %v6788_v24, %v6988_v63  ;;  %v19488_v24 = vld [vmem:[#allocation169_spill] sm:$0xff]  ;;  %v19490_v63 = vld [vmem:[#allocation22_spill] sm:$0xff] }
 0x963   :  { %v6796_v46 = vrot.slane %v5675_v19, %v19293_v9 }
 0x964   :  { %v5702_v34 = vpop.permute.xlu0 %5701 }
 0x965   :  { %v6797_v49 = vsel %vm1210_vm7, %v6796_v46, %v6792_v10  ;;  %v6837_v6 = vrot.slane %v5702_v34, %v19301_v22 }
 0x966   :  { %v5681_v5 = vpop.permute.xlu1 %5680  ;;  %v6990_v62 = vsel %vm1283_vm12, %v6797_v49, %v6989_v8 }
 0x967   :  { %v6805_v60 = vrot.slane %v5681_v5, %v19293_v9 }
 0x968   :  { %v5708_v30 = vpop.permute.xlu0 %5707 }
 0x969   :  { %v6806_v7 = vsel %vm1210_vm7, %v6805_v60, %v6801_v37  ;;  %v6846_v58 = vrot.slane %v5708_v30, %v19301_v22 }
 0x96a   :  { %v5687_v38 = vpop.permute.xlu1 %5686  ;;  %v6991_v52 = vsel %vm1285_vm13, %v6806_v7, %v6990_v62 }
 0x96b   :  { %v6814_v39 = vrot.slane %v5687_v38, %v19293_v9  ;;  %v19491_v38 = vld [vmem:[#allocation171_spill] sm:$0xff] }
 0x96c   :  { %v5714_v41 = vpop.permute.xlu0 %5713 }
 0x96d   :  { %v6815_v13 = vsel %vm1210_vm7, %v6814_v39, %v6810_v51  ;;  %v6855_v56 = vrot.slane %v5714_v41, %v19301_v22  ;;  %v19492_v39 = vld [vmem:[#allocation172_spill] sm:$0xff] }
 0x96e   :  { %v5705_v1 = vpop.permute.xlu1 %5704  ;;  %v6992_v0 = vsel %vm1287_vm14, %v6815_v13, %v6991_v52  ;;  %v19493_v52 = vld [vmem:[#allocation23_spill] sm:$0xff] }
 0x96f   :  { %v7058_v40 = vsel %vm1290_vm6, %v6992_v0, -inf  ;;  %v6841_v17 = vrot.slane %v5705_v1, %v19293_v9  ;;  %v19494_v1 = vld [vmem:[#allocation173_spill] sm:$0xff] }
 0x970   :  { %7059 = vmax.xlane.f32.xlu1 %v7058_v40 }
 0x971   :  { %v5720_v33 = vpop.permute.xlu0 %5719  ;;  %v6842_v2 = vsel %vm1210_vm7, %v6841_v17, %v6837_v6 }
 0x972   :  { %v5711_v32 = vpop.permute.xlu1 %5710  ;;  %v6864_v43 = vrot.slane %v5720_v33, %v19301_v22  ;;  %v6994_v35 = vsel %vm1277_vm9, %v6842_v2, %v6993_v45 }
 0x973   :  { %v6850_v61 = vrot.slane %v5711_v32, %v19293_v9  ;;  %v19495_v32 = vld [vmem:[#allocation174_spill] sm:$0xff] }
 0x975   :  { %v5726_v53 = vpop.permute.xlu0 %5725  ;;  %v6851_v57 = vsel %vm1210_vm7, %v6850_v61, %v6846_v58 }
 0x976   :  { %v5717_v54 = vpop.permute.xlu1 %5716  ;;  %v6873_v31 = vrot.slane %v5726_v53, %v19301_v22  ;;  %v6995_v48 = vsel %vm1279_vm10, %v6851_v57, %v6994_v35  ;;  %v19497_v53 = vld [vmem:[#allocation175_spill] sm:$0xff] }
 0x977   :  { %v6859_v15 = vrot.slane %v5717_v54, %v19293_v9  ;;  %v19503_v57 = vld [vmem:[#allocation179_spill] sm:$0xff] }
 0x979   :  { %v6860_v19 = vsel %vm1210_vm7, %v6859_v15, %v6855_v56  ;;  %v5732_v21 = vpop.permute.xlu0 %5731  ;;  %v19499_v15 = vld [vmem:[#allocation25_spill] sm:$0xff]  ;;  %v19501_v56 = vld [vmem:[#allocation178_spill] sm:$0xff] }
 0x97a   :  { %v5723_v28 = vpop.permute.xlu1 %5722  ;;  %v6996_v25 = vsel %vm1281_vm11, %v6860_v19, %v6995_v48  ;;  %v6882_v55 = vrot.slane %v5732_v21, %v19301_v22  ;;  %v19504_v19 = vld [vmem:[#allocation180_spill] sm:$0xff]  ;;  %v19505_v48 = vld [vmem:[#allocation27_spill] sm:$0xff] }
 0x97b   :  { %v6868_v29 = vrot.slane %v5723_v28, %v19293_v9 }
 0x97d   :  { %v6869_v59 = vsel %vm1210_vm7, %v6868_v29, %v6864_v43 }
 0x97e   :  { %v5729_v14 = vpop.permute.xlu1 %5728  ;;  %v6997_v46 = vsel %vm1283_vm12, %v6869_v59, %v6996_v25 }
 0x97f   :  { %v6877_v50 = vrot.slane %v5729_v14, %v19293_v9 }
 0x981   :  { %v6878_v4 = vsel %vm1210_vm7, %v6877_v50, %v6873_v31 }
 0x982   :  { %v5735_v34 = vpop.permute.xlu1 %5734  ;;  %v6998_v36 = vsel %vm1285_vm13, %v6878_v4, %v6997_v46 }
 0x983   :  { %v6886_v16 = vrot.slane %v5735_v34, %v19293_v9  ;;  %v19506_v34 = vld [vmem:[#allocation181_spill] sm:$0xff] }
 0x985   :  { %v6887_v42 = vsel %vm1210_vm7, %v6886_v16, %v6882_v55 }
 0x986   :  { %v6999_v5 = vsel %vm1287_vm14, %v6887_v42, %v6998_v36  ;;  %v19508_v42 = vld [vmem:[#allocation182_spill] sm:$0xff] }
 0x987   :  { %v7061_v23 = vsel %vm1290_vm6, %v6999_v5, -inf }
 0x988   :  { %7062 = vmax.xlane.f32.xlu0 %v7061_v23 }
 0x9a6   :  { %v16281_v46 = vpop.xlane.xlu0 %7017 }
 0x9a7   :  { %19507 = vst [vmem:[#allocation247_spill] sm:$0xff] %v16281_v46 }
 0x9b4   :  { %v16250_v10 = vpop.xlane.xlu1 %7020 }
 0x9b5   :  { %19485 = vst [vmem:[#allocation253_spill] sm:$0xff] %v16250_v10  ;;  %v7115_v60 = vrot.slane %v16250_v10, %v19486_v12  ;;  %v7119_v37 = vrot.slane %v16250_v10, %v19487_v18  ;;  %v7123_v7 = vrot.slane %v16250_v10, %v19490_v63  ;;  %v7127_v41 = vrot.slane %v16250_v10, %v19493_v52 }
 0x9b6   :  { %v7131_v17 = vrot.slane %v16250_v10, %v19496_v3  ;;  %v7135_v11 = vrot.slane %v16250_v10, %v19499_v15  ;;  %v7139_v43 = vrot.slane %v16250_v10, %v19502_v20  ;;  %v7143_v4 = vrot.slane %v16250_v10, %v19505_v48 }
 0x9b7   :  { %v7736_v30 = vsub.f32 %v19488_v24, %v7115_v60  ;;  %v7737_v49 = vsub.f32 %v19489_v27, %v7115_v60  ;;  %v7738_v8 = vsub.f32 %v19491_v38, %v7119_v37  ;;  %v7739_v62 = vsub.f32 %v19492_v39, %v7119_v37  ;;  %v19509_v37 = vld [vmem:[#allocation183_spill] sm:$0xff]  ;;  %v19511_v39 = vld [vmem:[#allocation185_spill] sm:$0xff] }
 0x9b8   :  { %v7740_v0 = vsub.f32 %v19494_v1, %v7123_v7  ;;  %v7741_v33 = vsub.f32 %v19495_v32, %v7123_v7  ;;  %v7742_v28 = vsub.f32 %v19497_v53, %v7127_v41  ;;  %v7743_v61 = vsub.f32 %v19498_v26, %v7127_v41  ;;  %v19514_v26 = vld [vmem:[#allocation188_spill] sm:$0xff] }
 0x9b9   :  { %v8008_v51 = vmul.f32 1.442695, %v7736_v30  ;;  %v8010_v13 = vmul.f32 1.442695, %v7737_v49  ;;  %v8012_v40 = vmul.f32 1.442695, %v7738_v8  ;;  %v7744_v58 = vsub.f32 %v19500_v47, %v7131_v17 }
 0x9ba   :  { %v8014_v54 = vmul.f32 1.442695, %v7739_v62  ;;  %v8016_v44 = vmul.f32 1.442695, %v7740_v0  ;;  %v8018_v6 = vmul.f32 1.442695, %v7741_v33  ;;  %v7745_v2 = vsub.f32 %v19501_v56, %v7131_v17 }
 0x9bb   :  { %11520 = vpow2.f32 %v8008_v51  ;;  %v8020_v29 = vmul.f32 1.442695, %v7742_v28  ;;  %v8022_v14 = vmul.f32 1.442695, %v7743_v61  ;;  %v7746_v50 = vsub.f32 %v19503_v57, %v7135_v11  ;;  %v19510_v49 = vld [vmem:[#allocation184_spill] sm:$0xff]  ;;  %v19512_v0 = vld [vmem:[#allocation186_spill] sm:$0xff] }
 0x9bc   :  { %11522 = vpow2.f32 %v8010_v13  ;;  %v8024_v45 = vmul.f32 1.442695, %v7744_v58  ;;  %v7747_v21 = vsub.f32 %v19504_v19, %v7135_v11  ;;  %v8026_v35 = vmul.f32 1.442695, %v7745_v2  ;;  %v19513_v17 = vld [vmem:[#allocation187_spill] sm:$0xff]  ;;  %v19515_v58 = vld [vmem:[#allocation189_spill] sm:$0xff] }
 0x9bd   :  { %11524 = vpow2.f32 %v8012_v40  ;;  %v7748_v25 = vsub.f32 %v19506_v34, %v7139_v43  ;;  %v8028_v55 = vmul.f32 1.442695, %v7746_v50  ;;  %v7749_v36 = vsub.f32 %v19508_v42, %v7139_v43 }
 0x9be   :  { %11526 = vpow2.f32 %v8014_v54  ;;  %v8030_v5 = vmul.f32 1.442695, %v7747_v21  ;;  %v7083_v60 = vrot.slane %v16281_v46, %v19486_v12  ;;  %v7750_v24 = vsub.f32 %v19509_v37, %v7143_v4 }
 0x9bf   :  { %11528 = vpow2.f32 %v8016_v44  ;;  %v8032_v30 = vmul.f32 1.442695, %v7748_v25  ;;  %v7751_v7 = vsub.f32 %v19510_v49, %v7143_v4  ;;  %v8034_v38 = vmul.f32 1.442695, %v7749_v36 }
 0x9c0   :  { %11530 = vpow2.f32 %v8018_v6  ;;  %v7091_v51 = vrot.slane %v16281_v46, %v19490_v63  ;;  %v7721_v62 = vsub.f32 %v19511_v39, %v7083_v60  ;;  %v8036_v13 = vmul.f32 1.442695, %v7750_v24 }
 0x9c1   :  { %11532 = vpow2.f32 %v8020_v29  ;;  %v7087_v1 = vrot.slane %v16281_v46, %v19487_v18  ;;  %v7720_v40 = vsub.f32 %v19512_v0, %v7083_v60  ;;  %v8038_v32 = vmul.f32 1.442695, %v7751_v7 }
 0x9c2   :  { %11534 = vpow2.f32 %v8022_v14  ;;  %v7095_v54 = vrot.slane %v16281_v46, %v19493_v52  ;;  %v7724_v53 = vsub.f32 %v19513_v17, %v7091_v51  ;;  %v7978_v28 = vmul.f32 1.442695, %v7721_v62  ;;  %v19516_v14 = vld [vmem:[#allocation190_spill] sm:$0xff]  ;;  %v16314_v62 = vpop.xlane.xlu0 %7026 }
 0x9c3   :  { %11536 = vpow2.f32 %v8024_v45  ;;  %v7722_v61 = vsub.f32 %v19514_v26, %v7087_v1  ;;  %v7976_v6 = vmul.f32 1.442695, %v7720_v40  ;;  %v7099_v47 = vrot.slane %v16281_v46, %v19496_v3  ;;  %19523 = vst [vmem:[#allocation249_spill] sm:$0xff] %v16314_v62  ;;  %v19526_v26 = vld [vmem:[#allocation203_spill] sm:$0xff] }
 0x9c4   :  { %11538 = vpow2.f32 %v8026_v35  ;;  %v7726_v29 = vsub.f32 %v19515_v58, %v7095_v54  ;;  %v7984_v56 = vmul.f32 1.442695, %v7724_v53  ;;  %v7723_v43 = vsub.f32 %v19516_v14, %v7087_v1 }
 0x9c5   :  { %11540 = vpow2.f32 %v8028_v55  ;;  %v7980_v57 = vmul.f32 1.442695, %v7722_v61  ;;  %v7103_v45 = vrot.slane %v16281_v46, %v19499_v15  ;;  %v7107_v55 = vrot.slane %v16281_v46, %v19502_v20 }
 0x9c6   :  { %11542 = vpow2.f32 %v8030_v5  ;;  %v7988_v21 = vmul.f32 1.442695, %v7726_v29  ;;  %v7982_v34 = vmul.f32 1.442695, %v7723_v43  ;;  %v7179_v40 = vrot.slane %v16314_v62, %v19486_v12 }
 0x9c7   :  { %11544 = vpow2.f32 %v8032_v30  ;;  %v7111_v30 = vrot.slane %v16281_v46, %v19505_v48  ;;  %v19605_v46 = vld [vmem:[#allocation78_spill] sm:$0xff] }
 0x9c8   :  { %v11521_v31 = vpop.eup %11520  ;;  %11546 = vpow2.f32 %v8034_v38  ;;  %v7768_v61 = vsub.f32 %v19526_v26, %v7179_v40 }
 0x9c9   :  { %v11523_v59 = vpop.eup %11522  ;;  %8793 = vperm.xlu0 %11358, %v11521_v31   ;;  %11548 = vpow2.f32 %v8036_v13  ;;  %v19517_v31 = vld [vmem:[#allocation191_spill] sm:$0xff] }
 0x9ca   :  { %8796 = vperm.xlu1 %11359, %v11523_v59   ;;  %v11525_v16 = vpop.eup %11524  ;;  %11550 = vpow2.f32 %v8038_v32  ;;  %v7728_v19 = vsub.f32 %v19517_v31, %v7099_v47  ;;  %v19518_v59 = vld [vmem:[#allocation192_spill] sm:$0xff]  ;;  %v8072_v43 = vmul.f32 1.442695, %v7768_v61  ;;  %v7207_v61 = vrot.slane %v16314_v62, %v19505_v48 }
 0x9cb   :  { %v11527_v23 = vpop.eup %11526  ;;  %11552 = vpow2.f32 %v7978_v28  ;;  %v7725_v4 = vsub.f32 %v19518_v59, %v7091_v51 }
 0x9cc   :  { %v11529_v27 = vpop.eup %11528  ;;  %11554 = vpow2.f32 %v7976_v6  ;;  %v7992_v36 = vmul.f32 1.442695, %v7728_v19 }
 0x9cd   :  { %8799 = vperm.xlu0 %11358, %v11525_v16   ;;  %v11531_v8 = vpop.eup %11530  ;;  %11556 = vpow2.f32 %v7984_v56  ;;  %v19519_v16 = vld [vmem:[#allocation194_spill] sm:$0xff]  ;;  %v7986_v37 = vmul.f32 1.442695, %v7725_v4  ;;  %v7187_v56 = vrot.slane %v16314_v62, %v19490_v63 }
 0x9ce   :  { %8802 = vperm.xlu1 %11359, %v11527_v23   ;;  %v11533_v41 = vpop.eup %11532  ;;  %11558 = vpow2.f32 %v7980_v57  ;;  %v7730_v42 = vsub.f32 %v19519_v16, %v7103_v45  ;;  %v19520_v23 = vld [vmem:[#allocation195_spill] sm:$0xff] }
 0x9cf   :  { %v11535_v33 = vpop.eup %11534  ;;  %11560 = vpow2.f32 %v7988_v21  ;;  %v7727_v60 = vsub.f32 %v19520_v23, %v7095_v54  ;;  %v7191_v21 = vrot.slane %v16314_v62, %v19493_v52 }
 0x9d0   :  { %v11537_v44 = vpop.eup %11536  ;;  %11562 = vpow2.f32 %v7982_v34  ;;  %v7996_v7 = vmul.f32 1.442695, %v7730_v42 }
 0x9d1   :  { %8805 = vperm.xlu0 %11358, %v11529_v27   ;;  %v11539_v11 = vpop.eup %11538  ;;  %v19521_v27 = vld [vmem:[#allocation197_spill] sm:$0xff]  ;;  %11564 = vpow2.f32 %v7992_v36  ;;  %v7990_v39 = vmul.f32 1.442695, %v7727_v60  ;;  %v7195_v36 = vrot.slane %v16314_v62, %v19496_v3 }
 0x9d2   :  { %8808 = vperm.xlu1 %11359, %v11531_v8   ;;  %v11541_v2 = vpop.eup %11540  ;;  %v7732_v49 = vsub.f32 %v19521_v27, %v7107_v55  ;;  %v19522_v8 = vld [vmem:[#allocation198_spill] sm:$0xff]  ;;  %11566 = vpow2.f32 %v7986_v37 }
 0x9d3   :  { %v11543_v50 = vpop.eup %11542  ;;  %v7729_v51 = vsub.f32 %v19522_v8, %v7099_v47  ;;  %11568 = vpow2.f32 %v7996_v7  ;;  %v7199_v7 = vrot.slane %v16314_v62, %v19499_v15 }
 0x9d4   :  { %v11545_v35 = vpop.eup %11544  ;;  %v8000_v0 = vmul.f32 1.442695, %v7732_v49  ;;  %11570 = vpow2.f32 %v7990_v39 }
 0x9d5   :  { %8811 = vperm.xlu0 %11358, %v11533_v41   ;;  %v11547_v25 = vpop.eup %11546  ;;  %v19524_v41 = vld [vmem:[#allocation200_spill] sm:$0xff]  ;;  %v7994_v17 = vmul.f32 1.442695, %v7729_v51 }
 0x9d6   :  { %8814 = vperm.xlu1 %11359, %v11535_v33   ;;  %v11549_v5 = vpop.eup %11548  ;;  %v7734_v1 = vsub.f32 %v19524_v41, %v7111_v30  ;;  %v19525_v33 = vld [vmem:[#allocation201_spill] sm:$0xff]  ;;  %11572 = vpow2.f32 %v8000_v0 }
 0x9d7   :  { %v11551_v24 = vpop.eup %11550  ;;  %v7731_v54 = vsub.f32 %v19525_v33, %v7103_v45  ;;  %11574 = vpow2.f32 %v7994_v17 }
 0x9d8   :  { %v11553_v38 = vpop.eup %11552  ;;  %v8004_v28 = vmul.f32 1.442695, %v7734_v1 }
 0x9d9   :  { %8817 = vperm.xlu0 %11358, %v11537_v44   ;;  %v11555_v13 = vpop.eup %11554  ;;  %v7183_v44 = vrot.slane %v16314_v62, %v19487_v18  ;;  %v7998_v58 = vmul.f32 1.442695, %v7731_v54 }
 0x9da   :  { %8820 = vperm.xlu1 %11359, %v11539_v11   ;;  %v11557_v32 = vpop.eup %11556  ;;  %v19527_v11 = vld [vmem:[#allocation32_spill] sm:$0xff]  ;;  %11576 = vpow2.f32 %v8004_v28 }
 0x9db   :  { %v11559_v53 = vpop.eup %11558  ;;  %v7733_v47 = vsub.f32 %v19527_v11, %v7107_v55  ;;  %11578 = vpow2.f32 %v7998_v58  ;;  %v19531_v55 = vld [vmem:[#allocation36_spill] sm:$0xff] }
 0x9dc   :  { %v11561_v6 = vpop.eup %11560  ;;  %11580 = vpow2.f32 %v8072_v43  ;;  %v7769_v16 = vsub.f32 %v19531_v55, %v7179_v40  ;;  %v7203_v40 = vrot.slane %v16314_v62, %v19502_v20  ;;  %v19543_v55 = vld [vmem:[#allocation217_spill] sm:$0xff]  ;;  %v19608_v62 = vld [vmem:[#allocation80_spill] sm:$0xff] }
 0x9dd   :  { %8823 = vperm.xlu0 %11358, %v11541_v2   ;;  %v11563_v29 = vpop.eup %11562  ;;  %v19528_v2 = vld [vmem:[#allocation204_spill] sm:$0xff]  ;;  %v8002_v31 = vmul.f32 1.442695, %v7733_v47 }
 0x9de   :  { %8826 = vperm.xlu1 %11359, %v11543_v50   ;;  %v7770_v14 = vsub.f32 %v19528_v2, %v7183_v44  ;;  %v11565_v57 = vpop.eup %11564  ;;  %v19529_v50 = vld [vmem:[#allocation34_spill] sm:$0xff]  ;;  %v8074_v27 = vmul.f32 1.442695, %v7769_v16 }
 0x9df   :  { %v7735_v45 = vsub.f32 %v19529_v50, %v7111_v30  ;;  %v11567_v19 = vpop.eup %11566  ;;  %11582 = vpow2.f32 %v8002_v31 }
 0x9e0   :  { %v8076_v4 = vmul.f32 1.442695, %v7770_v14  ;;  %v11569_v34 = vpop.eup %11568  ;;  %v16348_v14 = vpop.xlane.xlu0 %7023 }
 0x9e1   :  { %8829 = vperm.xlu0 %11358, %v11545_v35   ;;  %v19530_v35 = vld [vmem:[#allocation205_spill] sm:$0xff]  ;;  %v11571_v42 = vpop.eup %11570  ;;  %19540 = vst [vmem:[#allocation67_spill] sm:$0xff] %v16348_v14  ;;  %v7147_v31 = vrot.slane %v16348_v14, %v19486_v12 }
 0x9e2   :  { %8832 = vperm.xlu1 %11359, %v11547_v25   ;;  %v7772_v59 = vsub.f32 %v19530_v35, %v7187_v56  ;;  %v8006_v25 = vmul.f32 1.442695, %v7735_v45  ;;  %11584 = vpow2.f32 %v8076_v4 }
 0x9e3   :  { %v11573_v37 = vpop.eup %11572  ;;  %v7752_v16 = vsub.f32 %v19543_v55, %v7147_v31 }
 0x9e4   :  { %v8080_v60 = vmul.f32 1.442695, %v7772_v59  ;;  %11586 = vpow2.f32 %v8006_v25  ;;  %v11575_v49 = vpop.eup %11574  ;;  %v7151_v25 = vrot.slane %v16348_v14, %v19487_v18 }
 0x9e5   :  { %8835 = vperm.xlu0 %11358, %v11549_v5   ;;  %v19532_v5 = vld [vmem:[#allocation207_spill] sm:$0xff] }
 0x9e6   :  { %8838 = vperm.xlu1 %11359, %v11551_v24   ;;  %v7774_v23 = vsub.f32 %v19532_v5, %v7191_v21  ;;  %v19533_v24 = vld [vmem:[#allocation38_spill] sm:$0xff]  ;;  %11588 = vpow2.f32 %v8080_v60 }
 0x9e7   :  { %v7771_v30 = vsub.f32 %v19533_v24, %v7183_v44  ;;  %v11577_v39 = vpop.eup %11576  ;;  %11590 = vpow2.f32 %v8074_v27  ;;  %v19545_v24 = vld [vmem:[#allocation219_spill] sm:$0xff]  ;;  %v8040_v27 = vmul.f32 1.442695, %v7752_v16  ;;  %v16378_v16 = vpop.xlane.xlu0 %7032 }
 0x9e8   :  { %v8084_v51 = vmul.f32 1.442695, %v7774_v23  ;;  %v11579_v0 = vpop.eup %11578  ;;  %19555 = vst [vmem:[#allocation245_spill] sm:$0xff] %v16378_v16 }
 0x9e9   :  { %8748 = vperm.xlu0 %11358, %v11553_v38   ;;  %v19534_v38 = vld [vmem:[#allocation209_spill] sm:$0xff]  ;;  %v8078_v1 = vmul.f32 1.442695, %v7771_v30  ;;  %v11581_v17 = vpop.eup %11580  ;;  %v7754_v30 = vsub.f32 %v19545_v24, %v7151_v25 }
 0x9ea   :  { %8745 = vperm.xlu1 %11359, %v11555_v13   ;;  %v7776_v8 = vsub.f32 %v19534_v38, %v7195_v36  ;;  %v19535_v13 = vld [vmem:[#allocation40_spill] sm:$0xff]  ;;  %11592 = vpow2.f32 %v8084_v51 }
 0x9eb   :  { %v7773_v41 = vsub.f32 %v19535_v13, %v7187_v56  ;;  %11594 = vpow2.f32 %v8078_v1  ;;  %v19547_v13 = vld [vmem:[#allocation221_spill] sm:$0xff]  ;;  %v8044_v1 = vmul.f32 1.442695, %v7754_v30 }
 0x9ec   :  { %v8088_v54 = vmul.f32 1.442695, %v7776_v8  ;;  %v11583_v26 = vpop.eup %11582  ;;  %v19558_v30 = vld [vmem:[#allocation229_spill] sm:$0xff] }
 0x9ed   :  { %8757 = vperm.xlu0 %11358, %v11557_v32   ;;  %v19536_v32 = vld [vmem:[#allocation211_spill] sm:$0xff]  ;;  %v8082_v44 = vmul.f32 1.442695, %v7773_v41 }
 0x9ee   :  { %8751 = vperm.xlu1 %11359, %v11559_v53   ;;  %v7778_v33 = vsub.f32 %v19536_v32, %v7199_v7  ;;  %v19537_v53 = vld [vmem:[#allocation42_spill] sm:$0xff]  ;;  %11596 = vpow2.f32 %v8088_v54  ;;  %v19548_v32 = vld [vmem:[#allocation52_spill] sm:$0xff] }
 0x9ef   :  { %v7775_v28 = vsub.f32 %v19537_v53, %v7191_v21  ;;  %v11585_v58 = vpop.eup %11584  ;;  %11598 = vpow2.f32 %v8082_v44  ;;  %v19542_v21 = vld [vmem:[#allocation46_spill] sm:$0xff]  ;;  %v19549_v53 = vld [vmem:[#allocation223_spill] sm:$0xff] }
 0x9f0   :  { %v8092_v47 = vmul.f32 1.442695, %v7778_v33  ;;  %v7779_v35 = vsub.f32 %v19542_v21, %v7199_v7  ;;  %v19546_v7 = vld [vmem:[#allocation50_spill] sm:$0xff]  ;;  %v7753_v33 = vsub.f32 %v19548_v32, %v7147_v31 }
 0x9f1   :  { %8763 = vperm.xlu0 %11358, %v11561_v6   ;;  %v19538_v6 = vld [vmem:[#allocation213_spill] sm:$0xff]  ;;  %v8086_v2 = vmul.f32 1.442695, %v7775_v28  ;;  %v11587_v43 = vpop.eup %11586  ;;  %v7783_v38 = vsub.f32 %v19546_v7, %v7207_v61  ;;  %v19553_v21 = vld [vmem:[#allocation226_spill] sm:$0xff] }
 0x9f2   :  { %8754 = vperm.xlu1 %11359, %v11563_v29   ;;  %v7780_v11 = vsub.f32 %v19538_v6, %v7203_v40  ;;  %v19539_v29 = vld [vmem:[#allocation44_spill] sm:$0xff]  ;;  %11600 = vpow2.f32 %v8092_v47  ;;  %v8094_v23 = vmul.f32 1.442695, %v7779_v35 }
 0x9f3   :  { %v7777_v56 = vsub.f32 %v19539_v29, %v7195_v36  ;;  %11602 = vpow2.f32 %v8086_v2  ;;  %v19544_v36 = vld [vmem:[#allocation48_spill] sm:$0xff] }
 0x9f4   :  { %v8096_v45 = vmul.f32 1.442695, %v7780_v11  ;;  %v7781_v5 = vsub.f32 %v19544_v36, %v7203_v40  ;;  %v8102_v40 = vmul.f32 1.442695, %v7783_v38  ;;  %v8042_v11 = vmul.f32 1.442695, %v7753_v33  ;;  %v16386_v38 = vpop.xlane.xlu0 %7038 }
 0x9f5   :  { %8769 = vperm.xlu0 %11358, %v11565_v57   ;;  %v19541_v57 = vld [vmem:[#allocation215_spill] sm:$0xff]  ;;  %v8090_v59 = vmul.f32 1.442695, %v7777_v56  ;;  %v19551_v29 = vld [vmem:[#allocation224_spill] sm:$0xff]  ;;  %v7175_v36 = vrot.slane %v16348_v14, %v19505_v48  ;;  %19559 = vst [vmem:[#allocation71_spill] sm:$0xff] %v16386_v38 }
 0x9f6   :  { %8760 = vperm.xlu1 %11359, %v11567_v19   ;;  %v7782_v50 = vsub.f32 %v19541_v57, %v7207_v61  ;;  %v11589_v19 = vpop.eup %11588  ;;  %11604 = vpow2.f32 %v8096_v45  ;;  %v8098_v8 = vmul.f32 1.442695, %v7781_v5  ;;  %v19550_v61 = vld [vmem:[#allocation54_spill] sm:$0xff]  ;;  %v19552_v57 = vld [vmem:[#allocation56_spill] sm:$0xff] }
 0x9f7   :  { %v11591_v4 = vpop.eup %11590  ;;  %11606 = vpow2.f32 %v8090_v59  ;;  %v7755_v6 = vsub.f32 %v19550_v61, %v7151_v25  ;;  %v19556_v5 = vld [vmem:[#allocation228_spill] sm:$0xff] }
 0x9f9   :  { %8775 = vperm.xlu0 %11358, %v11569_v34   ;;  %v8100_v34 = vmul.f32 1.442695, %v7782_v50  ;;  %v8046_v45 = vmul.f32 1.442695, %v7755_v6 }
 0x9fa   :  { %8766 = vperm.xlu1 %11359, %v11571_v42   ;;  %v11593_v42 = vpop.eup %11592 }
 0x9fb   :  { %v11595_v60 = vpop.eup %11594  ;;  %11608 = vpow2.f32 %v8100_v34  ;;  %v19554_v34 = vld [vmem:[#allocation58_spill] sm:$0xff] }
 0x9fc   :  { %11610 = vpow2.f32 %v8094_v23 }
 0x9fd   :  { %8781 = vperm.xlu0 %11358, %v11573_v37   ;;  %v7155_v37 = vrot.slane %v16348_v14, %v19490_v63  ;;  %11612 = vpow2.f32 %v8040_v27 }
 0x9fe   :  { %8772 = vperm.xlu1 %11359, %v11575_v49   ;;  %v11597_v49 = vpop.eup %11596  ;;  %11614 = vpow2.f32 %v8098_v8  ;;  %v19560_v8 = vld [vmem:[#allocation230_spill] sm:$0xff] }
 0x9ff   :  { %v11599_v51 = vpop.eup %11598  ;;  %v7756_v41 = vsub.f32 %v19547_v13, %v7155_v37  ;;  %11616 = vpow2.f32 %v8044_v1  ;;  %v7757_v50 = vsub.f32 %v19552_v57, %v7155_v37  ;;  %v16383_v37 = vpop.xlane.xlu1 %7029  ;;  %v7243_v13 = vrot.slane %v16378_v16, %v19486_v12  ;;  %v19561_v1 = vld [vmem:[#allocation9_spill] sm:$0xff] }
 0xa00   :  { %11618 = vpow2.f32 %v8102_v40  ;;  %19557 = vst [vmem:[#allocation73_spill] sm:$0xff] %v16383_v37 }
 0xa01   :  { %8787 = vperm.xlu0 %11358, %v11577_v39   ;;  %v7159_v39 = vrot.slane %v16348_v14, %v19493_v52  ;;  %v8048_v44 = vmul.f32 1.442695, %v7756_v41  ;;  %v8050_v55 = vmul.f32 1.442695, %v7757_v50  ;;  %v19568_v50 = vld [vmem:[#allocation64_spill] sm:$0xff] }
 0xa02   :  { %8778 = vperm.xlu1 %11359, %v11579_v0   ;;  %v11601_v0 = vpop.eup %11600 }
 0xa03   :  { %v11603_v54 = vpop.eup %11602  ;;  %v7758_v28 = vsub.f32 %v19549_v53, %v7159_v39  ;;  %11620 = vpow2.f32 %v8048_v44  ;;  %v7759_v25 = vsub.f32 %v19554_v34, %v7159_v39  ;;  %v16392_v33 = vpop.xlane.xlu1 %7035  ;;  %v19563_v53 = vld [vmem:[#allocation232_spill] sm:$0xff]  ;;  %v7211_v34 = vrot.slane %v16383_v37, %v19486_v12 }
 0xa04   :  { %11622 = vpow2.f32 %v8042_v11  ;;  %19562 = vst [vmem:[#allocation75_spill] sm:$0xff] %v16392_v33  ;;  %v16398_v11 = vpop.xlane.xlu0 %7044 }
 0xa05   :  { %8889 = vperm.xlu0 %11358, %v11581_v17   ;;  %v7163_v17 = vrot.slane %v16348_v14, %v19496_v3  ;;  %v8052_v2 = vmul.f32 1.442695, %v7758_v28  ;;  %v7800_v28 = vsub.f32 %v19563_v53, %v7243_v13  ;;  %19565 = vst [vmem:[#allocation256_spill] sm:$0xff] %v16398_v11  ;;  %v19578_v53 = vld [vmem:[#allocation70_spill] sm:$0xff] }
 0xa06   :  { %8784 = vperm.xlu1 %11359, %v11583_v26   ;;  %v11605_v26 = vpop.eup %11604 }
 0xa07   :  { %v11607_v47 = vpop.eup %11606  ;;  %v7760_v56 = vsub.f32 %v19551_v29, %v7163_v17  ;;  %11624 = vpow2.f32 %v8052_v2  ;;  %v7761_v27 = vsub.f32 %v19558_v30, %v7163_v17  ;;  %v7247_v17 = vrot.slane %v16378_v16, %v19487_v18  ;;  %v19566_v29 = vld [vmem:[#allocation234_spill] sm:$0xff] }
 0xa08   :  { %11626 = vpow2.f32 %v8046_v45  ;;  %v8136_v2 = vmul.f32 1.442695, %v7800_v28  ;;  %v7767_v45 = vsub.f32 %v19568_v50, %v7175_v36  ;;  %v19573_v30 = vld [vmem:[#allocation246_spill] sm:$0xff] }
 0xa09   :  { %8895 = vperm.xlu0 %11358, %v11585_v58   ;;  %v7167_v58 = vrot.slane %v16348_v14, %v19499_v15  ;;  %v8056_v59 = vmul.f32 1.442695, %v7760_v56  ;;  %v8058_v40 = vmul.f32 1.442695, %v7761_v27  ;;  %v7802_v56 = vsub.f32 %v19566_v29, %v7247_v17 }
 0xa0a   :  { %8790 = vperm.xlu1 %11359, %v11587_v43   ;;  %v11609_v43 = vpop.eup %11608  ;;  %v7784_v27 = vsub.f32 %v19573_v30, %v7211_v34 }
 0xa0b   :  { %v11611_v31 = vpop.eup %11610  ;;  %v7762_v35 = vsub.f32 %v19553_v21, %v7167_v58  ;;  %11628 = vpow2.f32 %v8056_v59  ;;  %v16406_v21 = vpop.xlane.xlu0 %7050 }
 0xa0c   :  { %11630 = vpow2.f32 %v8050_v55  ;;  %19569 = vst [vmem:[#allocation77_spill] sm:$0xff] %v16406_v21  ;;  %v8070_v55 = vmul.f32 1.442695, %v7767_v45 }
 0xa0d   :  { %8901 = vperm.xlu0 %11358, %v11589_v19   ;;  %v7171_v19 = vrot.slane %v16348_v14, %v19502_v20 }
 0xa0e   :  { %8892 = vperm.xlu1 %11359, %v11591_v4   ;;  %v11613_v4 = vpop.eup %11612 }
 0xa0f   :  { %v7764_v23 = vsub.f32 %v19556_v5, %v7171_v19 }
 0xa11   :  { %8907 = vperm.xlu0 %11358, %v11593_v42   ;;  %v11615_v42 = vpop.eup %11614  ;;  %v8064_v39 = vmul.f32 1.442695, %v7764_v23 }
 0xa12   :  { %8898 = vperm.xlu1 %11359, %v11595_v60   ;;  %v8060_v60 = vmul.f32 1.442695, %v7762_v35  ;;  %v11617_v24 = vpop.eup %11616  ;;  %v19570_v35 = vld [vmem:[#allocation59_spill] sm:$0xff] }
 0xa13   :  { %v11619_v7 = vpop.eup %11618 }
 0xa14   :  { %11632 = vpow2.f32 %v8060_v60  ;;  %v11621_v41 = vpop.eup %11620 }
 0xa15   :  { %8913 = vperm.xlu0 %11358, %v11597_v49   ;;  %v8054_v49 = vmul.f32 1.442695, %v7759_v25  ;;  %v11623_v32 = vpop.eup %11622 }
 0xa16   :  { %8904 = vperm.xlu1 %11359, %v11599_v51   ;;  %v7766_v51 = vsub.f32 %v19560_v8, %v7175_v36  ;;  %v11625_v44 = vpop.eup %11624 }
 0xa17   :  { %11634 = vpow2.f32 %v8054_v49 }
 0xa18   :  { %11636 = vpow2.f32 %v8064_v39  ;;  %v16418_v39 = vpop.xlane.xlu0 %7056 }
 0xa19   :  { %8919 = vperm.xlu0 %11358, %v11601_v0   ;;  %v7763_v0 = vsub.f32 %v19561_v1, %v7167_v58  ;;  %11638 = vpow2.f32 %v8058_v40  ;;  %v7251_v58 = vrot.slane %v16378_v16, %v19490_v63  ;;  %19575 = vst [vmem:[#allocation79_spill] sm:$0xff] %v16418_v39  ;;  %v7219_v1 = vrot.slane %v16383_v37, %v19490_v63 }
 0xa1a   :  { %8910 = vperm.xlu1 %11359, %v11603_v54   ;;  %v8068_v54 = vmul.f32 1.442695, %v7766_v51 }
 0xa1b   :  { %v8062_v6 = vmul.f32 1.442695, %v7763_v0  ;;  %v7804_v59 = vsub.f32 %v19570_v35, %v7251_v58  ;;  %v19577_v0 = vld [vmem:[#allocation248_spill] sm:$0xff]  ;;  %v7805_v28 = vsub.f32 %v19578_v53, %v7251_v58  ;;  %v19582_v58 = vld [vmem:[#allocation82_spill] sm:$0xff]  ;;  %v7227_v35 = vrot.slane %v16383_v37, %v19496_v3 }
 0xa1c   :  { %11640 = vpow2.f32 %v8068_v54  ;;  %v7785_v50 = vsub.f32 %v19582_v58, %v7211_v34  ;;  %v7235_v53 = vrot.slane %v16383_v37, %v19502_v20 }
 0xa1d   :  { %8925 = vperm.xlu0 %11358, %v11605_v26   ;;  %v19564_v26 = vld [vmem:[#allocation62_spill] sm:$0xff]  ;;  %11642 = vpow2.f32 %v8062_v6  ;;  %v8144_v60 = vmul.f32 1.442695, %v7804_v59  ;;  %v7223_v6 = vrot.slane %v16383_v37, %v19493_v52  ;;  %v19583_v59 = vld [vmem:[#allocation252_spill] sm:$0xff] }
 0xa1e   :  { %8916 = vperm.xlu1 %11359, %v11607_v47   ;;  %v7765_v61 = vsub.f32 %v19564_v26, %v7171_v19  ;;  %v11627_v47 = vpop.eup %11626  ;;  %11644 = vpow2.f32 %v8136_v2 }
 0xa1f   :  { %v11629_v57 = vpop.eup %11628 }
 0xa20   :  { %v11631_v19 = vpop.eup %11630 }
 0xa21   :  { %8931 = vperm.xlu0 %11358, %v11609_v43   ;;  %v16403_v43 = vpop.xlane.xlu1 %7041  ;;  %v11633_v25 = vpop.eup %11632 }
 0xa22   :  { %8922 = vperm.xlu1 %11359, %v11611_v31   ;;  %19567 = vst [vmem:[#allocation69_spill] sm:$0xff] %v16403_v43  ;;  %v8066_v31 = vmul.f32 1.442695, %v7765_v61 }
 0xa24   :  { %11646 = vpow2.f32 %v8066_v31  ;;  %v11635_v36 = vpop.eup %11634 }
 0xa25   :  { %8841 = vperm.xlu0 %11358, %v11613_v4   ;;  %v8140_v4 = vmul.f32 1.442695, %v7802_v56  ;;  %v16412_v23 = vpop.xlane.xlu1 %7047  ;;  %v11637_v49 = vpop.eup %11636 }
 0xa26   :  { %8928 = vperm.xlu1 %11359, %v11615_v42   ;;  %v19571_v42 = vld [vmem:[#allocation66_spill] sm:$0xff]  ;;  %19572 = vst [vmem:[#allocation259_spill] sm:$0xff] %v16412_v23 }
 0xa27   :  { %v7801_v5 = vsub.f32 %v19571_v42, %v7243_v13  ;;  %11648 = vpow2.f32 %v8140_v4  ;;  %v11639_v13 = vpop.eup %11638  ;;  %v7790_v4 = vsub.f32 %v19583_v59, %v7223_v6  ;;  %v19584_v42 = vld [vmem:[#allocation84_spill] sm:$0xff] }
 0xa28   :  { %11650 = vpow2.f32 %v8070_v55 }
 0xa29   :  { %8847 = vperm.xlu0 %11358, %v11617_v24   ;;  %v7215_v24 = vrot.slane %v16383_v37, %v19487_v18  ;;  %v8138_v51 = vmul.f32 1.442695, %v7801_v5  ;;  %11652 = vpow2.f32 %v8144_v60  ;;  %v11641_v54 = vpop.eup %11640 }
 0xa2a   :  { %8934 = vperm.xlu1 %11359, %v11619_v7   ;;  %v19574_v7 = vld [vmem:[#allocation68_spill] sm:$0xff]  ;;  %v11643_v26 = vpop.eup %11642 }
 0xa2b   :  { %v7803_v8 = vsub.f32 %v19574_v7, %v7247_v17  ;;  %v7786_v40 = vsub.f32 %v19577_v0, %v7215_v24  ;;  %11654 = vpow2.f32 %v8138_v51  ;;  %v11645_v2 = vpop.eup %11644  ;;  %v7787_v5 = vsub.f32 %v19584_v42, %v7215_v24 }
 0xa2d   :  { %8853 = vperm.xlu0 %11358, %v11621_v41   ;;  %v16420_v41 = vpop.xlane.xlu1 %7053  ;;  %v8142_v17 = vmul.f32 1.442695, %v7803_v8  ;;  %v8108_v56 = vmul.f32 1.442695, %v7786_v40  ;;  %v8116_v8 = vmul.f32 1.442695, %v7790_v4 }
 0xa2e   :  { %8844 = vperm.xlu1 %11359, %v11623_v32   ;;  %19576 = vst [vmem:[#allocation261_spill] sm:$0xff] %v16420_v41  ;;  %v8104_v32 = vmul.f32 1.442695, %v7784_v27  ;;  %v7231_v27 = vrot.slane %v16383_v37, %v19499_v15  ;;  %v8110_v24 = vmul.f32 1.442695, %v7787_v5 }
 0xa30   :  { %11656 = vpow2.f32 %v8104_v32 }
 0xa31   :  { %8859 = vperm.xlu0 %11358, %v11625_v44   ;;  %v16426_v44 = vpop.xlane.xlu0 %7062  ;;  %v16428_v61 = vpop.xlane.xlu1 %7059  ;;  %11658 = vpow2.f32 %v8142_v17 }
 0xa32   :  { %8850 = vperm.xlu1 %11359, %v11627_v47   ;;  %19579 = vst [vmem:[#allocation265_spill] sm:$0xff] %v16426_v44  ;;  %19580 = vst [vmem:[#allocation81_spill] sm:$0xff] %v16428_v61  ;;  %v19581_v47 = vld [vmem:[#allocation250_spill] sm:$0xff]  ;;  %v11647_v31 = vpop.eup %11646  ;;  %11660 = vpow2.f32 %v8108_v56 }
 0xa33   :  { %v7788_v29 = vsub.f32 %v19581_v47, %v7219_v1 }
 0xa34   :  { %v11649_v55 = vpop.eup %11648 }
 0xa35   :  { %8865 = vperm.xlu0 %11358, %v11629_v57   ;;  %v8146_v57 = vmul.f32 1.442695, %v7805_v28  ;;  %v11651_v60 = vpop.eup %11650  ;;  %v19587_v28 = vld [vmem:[#allocation255_spill] sm:$0xff] }
 0xa36   :  { %8856 = vperm.xlu1 %11359, %v11631_v19   ;;  %v11653_v51 = vpop.eup %11652  ;;  %v7794_v17 = vsub.f32 %v19587_v28, %v7231_v27 }
 0xa37   :  { %11662 = vpow2.f32 %v8146_v57 }
 0xa38   :  { %v11655_v32 = vpop.eup %11654  ;;  %v8124_v4 = vmul.f32 1.442695, %v7794_v17 }
 0xa39   :  { %8871 = vperm.xlu0 %11358, %v11633_v25   ;;  %v8112_v25 = vmul.f32 1.442695, %v7788_v29  ;;  %v19588_v29 = vld [vmem:[#allocation88_spill] sm:$0xff] }
 0xa3a   :  { %8862 = vperm.xlu1 %11359, %v11635_v36   ;;  %v8106_v36 = vmul.f32 1.442695, %v7785_v50  ;;  %v7791_v56 = vsub.f32 %v19588_v29, %v7223_v6  ;;  %v7239_v50 = vrot.slane %v16383_v37, %v19505_v48 }
 0xa3b   :  { %11664 = vpow2.f32 %v8112_v25 }
 0xa3c   :  { %11666 = vpow2.f32 %v8106_v36  ;;  %v8118_v6 = vmul.f32 1.442695, %v7791_v56 }
 0xa3d   :  { %8877 = vperm.xlu0 %11358, %v11637_v49   ;;  %v19585_v49 = vld [vmem:[#allocation254_spill] sm:$0xff]  ;;  %11668 = vpow2.f32 %v8116_v8  ;;  %v11657_v47 = vpop.eup %11656 }
 0xa3e   :  { %8868 = vperm.xlu1 %11359, %v11639_v13   ;;  %v7792_v7 = vsub.f32 %v19585_v49, %v7227_v35  ;;  %v19586_v13 = vld [vmem:[#allocation86_spill] sm:$0xff]  ;;  %11670 = vpow2.f32 %v8110_v24  ;;  %v11659_v57 = vpop.eup %11658  ;;  %v7255_v49 = vrot.slane %v16378_v16, %v19493_v52 }
 0xa3f   :  { %v7789_v0 = vsub.f32 %v19586_v13, %v7219_v1  ;;  %v11661_v25 = vpop.eup %11660 }
 0xa41   :  { %8883 = vperm.xlu0 %11358, %v11641_v54   ;;  %v8114_v1 = vmul.f32 1.442695, %v7789_v0  ;;  %v19592_v0 = vld [vmem:[#allocation12_spill] sm:$0xff] }
 0xa42   :  { %8874 = vperm.xlu1 %11359, %v11643_v26   ;;  %v8120_v26 = vmul.f32 1.442695, %v7792_v7  ;;  %v19591_v7 = vld [vmem:[#allocation260_spill] sm:$0xff]  ;;  %v7795_v24 = vsub.f32 %v19592_v0, %v7231_v27 }
 0xa43   :  { %v7798_v8 = vsub.f32 %v19591_v7, %v7239_v50 }
 0xa44   :  { %v16434_v45 = vpop.permute.xlu0 %8793  ;;  %11672 = vpow2.f32 %v8120_v26  ;;  %v11663_v36 = vpop.eup %11662  ;;  %v7259_v26 = vrot.slane %v16378_v16, %v19496_v3  ;;  %v8126_v27 = vmul.f32 1.442695, %v7795_v24 }
 0xa45   :  { %v16436_v19 = vpop.permute.xlu1 %8796  ;;  %8985 = vperm.xlu0 %11358, %v11645_v2   ;;  %11674 = vpow2.f32 %v8114_v1  ;;  %v8132_v56 = vmul.f32 1.442695, %v7798_v8  ;;  %v19596_v8 = vld [vmem:[#allocation94_spill] sm:$0xff] }
 0xa46   :  { %8880 = vperm.xlu1 %11359, %v11647_v31   ;;  %v19589_v31 = vld [vmem:[#allocation257_spill] sm:$0xff]  ;;  %11676 = vpow2.f32 %v8124_v4 }
 0xa47   :  { %v7796_v59 = vsub.f32 %v19589_v31, %v7235_v53  ;;  %11678 = vpow2.f32 %v8118_v6 }
 0xa48   :  { %v16442_v34 = vpop.permute.xlu0 %8799  ;;  %v11665_v13 = vpop.eup %11664 }
 0xa49   :  { %v16444_v30 = vpop.permute.xlu1 %8802  ;;  %8991 = vperm.xlu0 %11358, %v11649_v55   ;;  %v19590_v55 = vld [vmem:[#allocation258_spill] sm:$0xff]  ;;  %v11667_v28 = vpop.eup %11666 }
 0xa4a   :  { %8886 = vperm.xlu1 %11359, %v11651_v60   ;;  %v7793_v42 = vsub.f32 %v19590_v55, %v7227_v35  ;;  %v11669_v1 = vpop.eup %11668  ;;  %v7263_v55 = vrot.slane %v16378_v16, %v19499_v15 }
 0xa4b   :  { %v11671_v4 = vpop.eup %11670 }
 0xa4c   :  { %v16450_v40 = vpop.permute.xlu0 %8805  ;;  %v8122_v35 = vmul.f32 1.442695, %v7793_v42  ;;  %v19595_v42 = vld [vmem:[#allocation238_spill] sm:$0xff] }
 0xa4d   :  { %v16452_v54 = vpop.permute.xlu1 %8808  ;;  %8997 = vperm.xlu0 %11358, %v11653_v51   ;;  %v8128_v51 = vmul.f32 1.442695, %v7796_v59  ;;  %v7808_v6 = vsub.f32 %v19595_v42, %v7259_v26  ;;  %v7271_v42 = vrot.slane %v16378_v16, %v19505_v48 }
 0xa4e   :  { %8988 = vperm.xlu1 %11359, %v11655_v32  }
 0xa4f   :  { %11680 = vpow2.f32 %v8128_v51  ;;  %v7799_v51 = vsub.f32 %v19596_v8, %v7239_v50  ;;  %v7815_v10 = vsub.f32 %v19608_v62, %v7271_v42  ;;  %v19612_v62 = vld [vmem:[#allocation112_spill] sm:$0xff] }
 0xa50   :  { %v16458_v2 = vpop.permute.xlu0 %8811  ;;  %11682 = vpow2.f32 %v8122_v35  ;;  %v7267_v35 = vrot.slane %v16378_v16, %v19502_v20 }
 0xa51   :  { %v16460_v58 = vpop.permute.xlu1 %8814  ;;  %8937 = vperm.xlu0 %11358, %v11657_v47   ;;  %v19593_v47 = vld [vmem:[#allocation236_spill] sm:$0xff]  ;;  %11684 = vpow2.f32 %v8132_v56  ;;  %v11673_v7 = vpop.eup %11672  ;;  %v8134_v50 = vmul.f32 1.442695, %v7799_v51 }
 0xa52   :  { %8994 = vperm.xlu1 %11359, %v11659_v57   ;;  %v7806_v29 = vsub.f32 %v19593_v47, %v7255_v49  ;;  %v19594_v57 = vld [vmem:[#allocation92_spill] sm:$0xff]  ;;  %11686 = vpow2.f32 %v8126_v27  ;;  %v11675_v0 = vpop.eup %11674  ;;  %v7813_v37 = vsub.f32 %v19605_v46, %v7267_v35 }
 0xa53   :  { %v7797_v31 = vsub.f32 %v19594_v57, %v7235_v53  ;;  %v11677_v56 = vpop.eup %11676 }
 0xa54   :  { %v16466_v5 = vpop.permute.xlu0 %8817  ;;  %v11679_v27 = vpop.eup %11678  ;;  %v8162_v46 = vmul.f32 1.442695, %v7813_v37 }
 0xa55   :  { %v16468_v60 = vpop.permute.xlu1 %8820  ;;  %8943 = vperm.xlu0 %11358, %v11661_v25   ;;  %v8130_v53 = vmul.f32 1.442695, %v7797_v31 }
 0xa56   :  { %9000 = vperm.xlu1 %11359, %v11663_v36   ;;  %v8148_v36 = vmul.f32 1.442695, %v7806_v29  ;;  %v8152_v29 = vmul.f32 1.442695, %v7808_v6 }
 0xa58   :  { %v16474_v32 = vpop.permute.xlu0 %8823  ;;  %11688 = vpow2.f32 %v8148_v36 }
 0xa59   :  { %v16476_v17 = vpop.permute.xlu1 %8826  ;;  %8949 = vperm.xlu0 %11358, %v11665_v13   ;;  %11690 = vpow2.f32 %v8130_v53 }
 0xa5a   :  { %8940 = vperm.xlu1 %11359, %v11667_v28   ;;  %v19597_v28 = vld [vmem:[#allocation240_spill] sm:$0xff]  ;;  %11692 = vpow2.f32 %v8152_v29  ;;  %v7275_v29 = vrot.slane %v16392_v33, %v19486_v12 }
 0xa5b   :  { %v7810_v47 = vsub.f32 %v19597_v28, %v7263_v55  ;;  %11694 = vpow2.f32 %v8134_v50 }
 0xa5c   :  { %v16482_v59 = vpop.permute.xlu0 %8829  ;;  %v11681_v6 = vpop.eup %11680 }
 0xa5d   :  { %v16484_v25 = vpop.permute.xlu1 %8832  ;;  %8955 = vperm.xlu0 %11358, %v11669_v1   ;;  %v19598_v1 = vld [vmem:[#allocation72_spill] sm:$0xff]  ;;  %v8156_v36 = vmul.f32 1.442695, %v7810_v47  ;;  %v11683_v53 = vpop.eup %11682 }
 0xa5e   :  { %8946 = vperm.xlu1 %11359, %v11671_v4   ;;  %v7807_v57 = vsub.f32 %v19598_v1, %v7255_v49  ;;  %v11685_v47 = vpop.eup %11684 }
 0xa5f   :  { %11696 = vpow2.f32 %v8156_v36  ;;  %v11687_v50 = vpop.eup %11686  ;;  %v19604_v36 = vld [vmem:[#allocation276_spill] sm:$0xff] }
 0xa60   :  { %v16490_v13 = vpop.permute.xlu0 %8835  ;;  %v8150_v49 = vmul.f32 1.442695, %v7807_v57 }
 0xa61   :  { %v16492_v24 = vpop.permute.xlu1 %8838  ;;  %8961 = vperm.xlu0 %11358, %v11673_v7   ;;  %v19599_v7 = vld [vmem:[#allocation242_spill] sm:$0xff] }
 0xa62   :  { %8952 = vperm.xlu1 %11359, %v11675_v0   ;;  %v7812_v8 = vsub.f32 %v19599_v7, %v7267_v35  ;;  %v19600_v0 = vld [vmem:[#allocation74_spill] sm:$0xff]  ;;  %v19602_v7 = vld [vmem:[#allocation76_spill] sm:$0xff]  ;;  %11698 = vpow2.f32 %v8150_v49 }
 0xa63   :  { %v7809_v28 = vsub.f32 %v19600_v0, %v7259_v26  ;;  %v7811_v14 = vsub.f32 %v19602_v7, %v7263_v55 }
 0xa64   :  { %v16498_v31 = vpop.permute.xlu0 %8748  ;;  %v8160_v16 = vmul.f32 1.442695, %v7812_v8  ;;  %v7279_v8 = vrot.slane %v16392_v33, %v19487_v18 }
 0xa65   :  { %v16500_v4 = vpop.permute.xlu1 %8745  ;;  %8967 = vperm.xlu0 %11358, %v11677_v56   ;;  %v19601_v56 = vld [vmem:[#allocation244_spill] sm:$0xff]  ;;  %v8154_v26 = vmul.f32 1.442695, %v7809_v28  ;;  %v8158_v55 = vmul.f32 1.442695, %v7811_v14 }
 0xa66   :  { %8958 = vperm.xlu1 %11359, %v11679_v27   ;;  %v7814_v27 = vsub.f32 %v19601_v56, %v7271_v42  ;;  %11700 = vpow2.f32 %v8160_v16  ;;  %v11689_v56 = vpop.eup %11688  ;;  %v7283_v16 = vrot.slane %v16392_v33, %v19490_v63  ;;  %v7817_v42 = vsub.f32 %v19612_v62, %v7275_v29 }
 0xa67   :  { %11702 = vpow2.f32 %v8154_v26  ;;  %v11691_v49 = vpop.eup %11690 }
 0xa68   :  { %v16506_v51 = vpop.permute.xlu0 %8757 }
 0xa69   :  { %v16508_v1 = vpop.permute.xlu1 %8751  ;;  %8973 = vperm.xlu0 %11358, %v11681_v6   ;;  %v8164_v6 = vmul.f32 1.442695, %v7814_v27  ;;  %v19607_v27 = vld [vmem:[#allocation278_spill] sm:$0xff] }
 0xa6a   :  { %8964 = vperm.xlu1 %11359, %v11683_v53   ;;  %v7816_v53 = vsub.f32 %v19604_v36, %v7275_v29  ;;  %v11693_v36 = vpop.eup %11692 }
 0xa6b   :  { %11704 = vpow2.f32 %v8164_v6  ;;  %v11695_v35 = vpop.eup %11694  ;;  %v7287_v6 = vrot.slane %v16392_v33, %v19493_v52 }
 0xa6c   :  { %v16514_v57 = vpop.permute.xlu0 %8763  ;;  %11706 = vpow2.f32 %v8158_v55 }
 0xa6d   :  { %19603 = vst [vmem:[#allocation83_spill] sm:$0xff] %v16514_v57  ;;  %v16516_v0 = vpop.permute.xlu1 %8754  ;;  %8979 = vperm.xlu0 %11358, %v11685_v47   ;;  %v7818_v47 = vsub.f32 %v19607_v27, %v7279_v8 }
 0xa6e   :  { %8970 = vperm.xlu1 %11359, %v11687_v50   ;;  %v8168_v50 = vmul.f32 1.442695, %v7816_v53  ;;  %v11697_v53 = vpop.eup %11696 }
 0xa6f   :  { %v8172_v27 = vmul.f32 1.442695, %v7818_v47  ;;  %v11699_v55 = vpop.eup %11698 }
 0xa70   :  { %v16522_v28 = vpop.permute.xlu0 %8769  ;;  %11708 = vpow2.f32 %v8168_v50 }
 0xa71   :  { %19606 = vst [vmem:[#allocation267_spill] sm:$0xff] %v16522_v28  ;;  %v16524_v7 = vpop.permute.xlu1 %8760  ;;  %9003 = vperm.xlu0 %11358, %v11689_v56   ;;  %v19611_v56 = vld [vmem:[#allocation280_spill] sm:$0xff]  ;;  %11710 = vpow2.f32 %v8162_v46  ;;  %v8166_v28 = vmul.f32 1.442695, %v7815_v10  ;;  %v19616_v46 = vld [vmem:[#allocation114_spill] sm:$0xff] }
 0xa72   :  { %8976 = vperm.xlu1 %11359, %v11691_v49   ;;  %v7820_v49 = vsub.f32 %v19611_v56, %v7283_v16  ;;  %11712 = vpow2.f32 %v8172_v27  ;;  %v7819_v10 = vsub.f32 %v19616_v46, %v7279_v8  ;;  %v8170_v56 = vmul.f32 1.442695, %v7817_v42 }
 0xa73   :  { %v11701_v47 = vpop.eup %11700  ;;  %11714 = vpow2.f32 %v8166_v28 }
 0xa74   :  { %v16530_v14 = vpop.permute.xlu0 %8775  ;;  %v8176_v50 = vmul.f32 1.442695, %v7820_v49  ;;  %v11703_v62 = vpop.eup %11702  ;;  %v8174_v8 = vmul.f32 1.442695, %v7819_v10 }
 0xa75   :  { %19609 = vst [vmem:[#allocation87_spill] sm:$0xff] %v16530_v14  ;;  %v16532_v26 = vpop.permute.xlu1 %8766  ;;  %9009 = vperm.xlu0 %11358, %v11693_v36   ;;  %v7291_v36 = vrot.slane %v16392_v33, %v19496_v3 }
 0xa76   :  { %19610 = vst [vmem:[#allocation89_spill] sm:$0xff] %v16532_v26  ;;  %8982 = vperm.xlu1 %11359, %v11695_v35   ;;  %v19615_v35 = vld [vmem:[#allocation282_spill] sm:$0xff]  ;;  %11716 = vpow2.f32 %v8176_v50 }
 0xa77   :  { %v7822_v57 = vsub.f32 %v19615_v35, %v7287_v6  ;;  %v19620_v35 = vld [vmem:[#allocation116_spill] sm:$0xff]  ;;  %11718 = vpow2.f32 %v8170_v56 }
 0xa78   :  { %v16538_v37 = vpop.permute.xlu0 %8781  ;;  %v11705_v49 = vpop.eup %11704  ;;  %v7821_v28 = vsub.f32 %v19620_v35, %v7283_v16 }
 0xa79   :  { %19613 = vst [vmem:[#allocation269_spill] sm:$0xff] %v16538_v37  ;;  %v16540_v14 = vpop.permute.xlu1 %8772  ;;  %9015 = vperm.xlu0 %11358, %v11697_v53   ;;  %v7295_v53 = vrot.slane %v16392_v33, %v19499_v15  ;;  %v8180_v27 = vmul.f32 1.442695, %v7822_v57  ;;  %v11707_v46 = vpop.eup %11706 }
 0xa7a   :  { %19614 = vst [vmem:[#allocation85_spill] sm:$0xff] %v16540_v14  ;;  %9006 = vperm.xlu1 %11359, %v11699_v55   ;;  %v19619_v55 = vld [vmem:[#allocation284_spill] sm:$0xff]  ;;  %v8178_v16 = vmul.f32 1.442695, %v7821_v28 }
 0xa7b   :  { %v7824_v14 = vsub.f32 %v19619_v55, %v7291_v36  ;;  %11720 = vpow2.f32 %v8180_v27  ;;  %v19624_v55 = vld [vmem:[#allocation118_spill] sm:$0xff] }
 0xa7c   :  { %v16546_v29 = vpop.permute.xlu0 %8787  ;;  %v7823_v26 = vsub.f32 %v19624_v55, %v7287_v6  ;;  %11722 = vpow2.f32 %v8174_v8 }
 0xa7d   :  { %19617 = vst [vmem:[#allocation11_spill] sm:$0xff] %v16546_v29  ;;  %v16548_v37 = vpop.permute.xlu1 %8778  ;;  %9021 = vperm.xlu0 %11358, %v11701_v47   ;;  %v7299_v47 = vrot.slane %v16392_v33, %v19502_v20  ;;  %v8184_v50 = vmul.f32 1.442695, %v7824_v14  ;;  %v11709_v57 = vpop.eup %11708 }
 0xa7e   :  { %19618 = vst [vmem:[#allocation90_spill] sm:$0xff] %v16548_v37  ;;  %9012 = vperm.xlu1 %11359, %v11703_v62   ;;  %v19623_v62 = vld [vmem:[#allocation285_spill] sm:$0xff]  ;;  %v11711_v56 = vpop.eup %11710  ;;  %v8182_v6 = vmul.f32 1.442695, %v7823_v26 }
 0xa7f   :  { %v7826_v37 = vsub.f32 %v19623_v62, %v7295_v53  ;;  %11724 = vpow2.f32 %v8184_v50  ;;  %v11713_v14 = vpop.eup %11712  ;;  %v19628_v62 = vld [vmem:[#allocation288_spill] sm:$0xff] }
 0xa80   :  { %v16554_v42 = vpop.permute.xlu0 %8889  ;;  %11726 = vpow2.f32 %v8178_v16  ;;  %v11715_v8 = vpop.eup %11714 }
 0xa81   :  { %19621 = vst [vmem:[#allocation271_spill] sm:$0xff] %v16554_v42  ;;  %v16556_v29 = vpop.permute.xlu1 %8784  ;;  %9027 = vperm.xlu0 %11358, %v11705_v49   ;;  %v7303_v49 = vrot.slane %v16392_v33, %v19505_v48  ;;  %v8188_v27 = vmul.f32 1.442695, %v7826_v37 }
 0xa82   :  { %19622 = vst [vmem:[#allocation91_spill] sm:$0xff] %v16556_v29  ;;  %9018 = vperm.xlu1 %11359, %v11707_v46   ;;  %v19627_v46 = vld [vmem:[#allocation287_spill] sm:$0xff]  ;;  %v7825_v29 = vsub.f32 %v19628_v62, %v7291_v36 }
 0xa83   :  { %v7828_v42 = vsub.f32 %v19627_v46, %v7299_v47  ;;  %11728 = vpow2.f32 %v8188_v27  ;;  %v11717_v37 = vpop.eup %11716  ;;  %v19632_v46 = vld [vmem:[#allocation13_spill] sm:$0xff] }
 0xa84   :  { %v16562_v10 = vpop.permute.xlu0 %8895  ;;  %11730 = vpow2.f32 %v8182_v6  ;;  %v8186_v36 = vmul.f32 1.442695, %v7825_v29  ;;  %v11719_v16 = vpop.eup %11718 }
 0xa85   :  { %19625 = vst [vmem:[#allocation93_spill] sm:$0xff] %v16562_v10  ;;  %v16564_v35 = vpop.permute.xlu1 %8790  ;;  %9033 = vperm.xlu0 %11358, %v11709_v57   ;;  %v7307_v57 = vrot.slane %v16386_v38, %v19486_v12  ;;  %v8192_v50 = vmul.f32 1.442695, %v7828_v42 }
 0xa86   :  { %19626 = vst [vmem:[#allocation281_spill] sm:$0xff] %v16564_v35  ;;  %9024 = vperm.xlu1 %11359, %v11711_v56   ;;  %v19631_v56 = vld [vmem:[#allocation290_spill] sm:$0xff]  ;;  %v7827_v35 = vsub.f32 %v19632_v46, %v7295_v53 }
 0xa87   :  { %v7830_v33 = vsub.f32 %v19631_v56, %v7303_v49  ;;  %11732 = vpow2.f32 %v8192_v50  ;;  %v19635_v56 = vld [vmem:[#allocation122_spill] sm:$0xff]  ;;  %v19639_v50 = vld [vmem:[#allocation124_spill] sm:$0xff] }
 0xa88   :  { %v16570_v28 = vpop.permute.xlu0 %8901  ;;  %v11721_v42 = vpop.eup %11720  ;;  %11734 = vpow2.f32 %v8186_v36  ;;  %v8190_v53 = vmul.f32 1.442695, %v7827_v35  ;;  %v7831_v10 = vsub.f32 %v19639_v50, %v7303_v49 }
 0xa89   :  { %19629 = vst [vmem:[#allocation95_spill] sm:$0xff] %v16570_v28  ;;  %v16572_v55 = vpop.permute.xlu1 %8892  ;;  %9039 = vperm.xlu0 %11358, %v11713_v14   ;;  %v7311_v14 = vrot.slane %v16386_v38, %v19487_v18  ;;  %v8196_v27 = vmul.f32 1.442695, %v7830_v33  ;;  %v11723_v6 = vpop.eup %11722 }
 0xa8a   :  { %19630 = vst [vmem:[#allocation273_spill] sm:$0xff] %v16572_v55  ;;  %9030 = vperm.xlu1 %11359, %v11715_v8   ;;  %v19634_v8 = vld [vmem:[#allocation262_spill] sm:$0xff]  ;;  %v7829_v55 = vsub.f32 %v19635_v56, %v7299_v47  ;;  %v8198_v49 = vmul.f32 1.442695, %v7831_v10 }
 0xa8b   :  { %v7832_v28 = vsub.f32 %v19634_v8, %v7307_v57  ;;  %11736 = vpow2.f32 %v8196_v27 }
 0xa8c   :  { %v16578_v26 = vpop.permute.xlu0 %8907  ;;  %v11725_v33 = vpop.eup %11724  ;;  %11738 = vpow2.f32 %v8190_v53  ;;  %v8194_v47 = vmul.f32 1.442695, %v7829_v55 }
 0xa8d   :  { %19633 = vst [vmem:[#allocation283_spill] sm:$0xff] %v16578_v26  ;;  %v16580_v62 = vpop.permute.xlu1 %8898  ;;  %9045 = vperm.xlu0 %11358, %v11717_v37   ;;  %v7315_v37 = vrot.slane %v16386_v38, %v19490_v63  ;;  %v8200_v8 = vmul.f32 1.442695, %v7832_v28  ;;  %v11727_v36 = vpop.eup %11726 }
 0xa8e   :  { %9036 = vperm.xlu1 %11359, %v11719_v16   ;;  %v19638_v16 = vld [vmem:[#allocation263_spill] sm:$0xff] }
 0xa8f   :  { %v7834_v26 = vsub.f32 %v19638_v16, %v7311_v14  ;;  %11740 = vpow2.f32 %v8200_v8  ;;  %v19643_v16 = vld [vmem:[#allocation96_spill] sm:$0xff] }
 0xa90   :  { %v16586_v29 = vpop.permute.xlu0 %8913  ;;  %v11729_v27 = vpop.eup %11728  ;;  %11742 = vpow2.f32 %v8194_v47 }
 0xa91   :  { %19636 = vst [vmem:[#allocation275_spill] sm:$0xff] %v16586_v29  ;;  %v16588_v46 = vpop.permute.xlu1 %8904  ;;  %9051 = vperm.xlu0 %11358, %v11721_v42   ;;  %v7319_v42 = vrot.slane %v16386_v38, %v19493_v52  ;;  %v8204_v28 = vmul.f32 1.442695, %v7834_v26  ;;  %v11731_v53 = vpop.eup %11730 }
 0xa92   :  { %19637 = vst [vmem:[#allocation101_spill] sm:$0xff] %v16588_v46  ;;  %9042 = vperm.xlu1 %11359, %v11723_v6   ;;  %v19642_v6 = vld [vmem:[#allocation264_spill] sm:$0xff]  ;;  %v7833_v46 = vsub.f32 %v19643_v16, %v7307_v57 }
 0xa93   :  { %v7836_v29 = vsub.f32 %v19642_v6, %v7315_v37  ;;  %11744 = vpow2.f32 %v8204_v28  ;;  %v19647_v6 = vld [vmem:[#allocation98_spill] sm:$0xff] }
 0xa94   :  { %v16594_v35 = vpop.permute.xlu0 %8919  ;;  %v11733_v26 = vpop.eup %11732  ;;  %v8202_v57 = vmul.f32 1.442695, %v7833_v46  ;;  %11746 = vpow2.f32 %v8198_v49 }
 0xa95   :  { %19640 = vst [vmem:[#allocation279_spill] sm:$0xff] %v16594_v35  ;;  %v16596_v56 = vpop.permute.xlu1 %8910  ;;  %9057 = vperm.xlu0 %11358, %v11725_v33   ;;  %v7323_v33 = vrot.slane %v16386_v38, %v19496_v3  ;;  %v8208_v8 = vmul.f32 1.442695, %v7836_v29  ;;  %v11735_v47 = vpop.eup %11734 }
 0xa96   :  { %19641 = vst [vmem:[#allocation97_spill] sm:$0xff] %v16596_v56  ;;  %9048 = vperm.xlu1 %11359, %v11727_v36   ;;  %v19646_v36 = vld [vmem:[#allocation266_spill] sm:$0xff]  ;;  %v7835_v56 = vsub.f32 %v19647_v6, %v7311_v14 }
 0xa97   :  { %v7838_v35 = vsub.f32 %v19646_v36, %v7319_v42  ;;  %11748 = vpow2.f32 %v8208_v8  ;;  %v19651_v36 = vld [vmem:[#allocation100_spill] sm:$0xff] }
 0xa98   :  { %v16602_v55 = vpop.permute.xlu0 %8925  ;;  %v11737_v29 = vpop.eup %11736  ;;  %11750 = vpow2.f32 %v8202_v57  ;;  %v8206_v14 = vmul.f32 1.442695, %v7835_v56 }
 0xa99   :  { %19644 = vst [vmem:[#allocation103_spill] sm:$0xff] %v16602_v55  ;;  %v16604_v50 = vpop.permute.xlu1 %8916  ;;  %9063 = vperm.xlu0 %11358, %v11729_v27   ;;  %v7327_v27 = vrot.slane %v16386_v38, %v19499_v15  ;;  %v8212_v28 = vmul.f32 1.442695, %v7838_v35  ;;  %v11739_v49 = vpop.eup %11738 }
 0xa9a   :  { %19645 = vst [vmem:[#allocation286_spill] sm:$0xff] %v16604_v50  ;;  %9054 = vperm.xlu1 %11359, %v11731_v53   ;;  %v19650_v53 = vld [vmem:[#allocation268_spill] sm:$0xff]  ;;  %v7837_v50 = vsub.f32 %v19651_v36, %v7315_v37 }
 0xa9b   :  { %v7840_v55 = vsub.f32 %v19650_v53, %v7323_v33  ;;  %11752 = vpow2.f32 %v8212_v28  ;;  %v19655_v53 = vld [vmem:[#allocation102_spill] sm:$0xff] }
 0xa9c   :  { %v16610_v10 = vpop.permute.xlu0 %8931  ;;  %v11741_v35 = vpop.eup %11740  ;;  %11754 = vpow2.f32 %v8206_v14  ;;  %v8210_v37 = vmul.f32 1.442695, %v7837_v50 }
 0xa9d   :  { %19648 = vst [vmem:[#allocation99_spill] sm:$0xff] %v16610_v10  ;;  %v16612_v16 = vpop.permute.xlu1 %8922  ;;  %9069 = vperm.xlu0 %11358, %v11733_v26   ;;  %v7331_v26 = vrot.slane %v16386_v38, %v19502_v20  ;;  %v8216_v8 = vmul.f32 1.442695, %v7840_v55  ;;  %v11743_v57 = vpop.eup %11742 }
 0xa9e   :  { %19649 = vst [vmem:[#allocation277_spill] sm:$0xff] %v16612_v16  ;;  %9060 = vperm.xlu1 %11359, %v11735_v47   ;;  %v19654_v47 = vld [vmem:[#allocation270_spill] sm:$0xff]  ;;  %v7839_v16 = vsub.f32 %v19655_v53, %v7319_v42 }
 0xa9f   :  { %v7842_v10 = vsub.f32 %v19654_v47, %v7327_v27  ;;  %11756 = vpow2.f32 %v8216_v8  ;;  %v19659_v47 = vld [vmem:[#allocation104_spill] sm:$0xff]  ;;  %v7339_v8 = vrot.slane %v16403_v43, %v19486_v12 }
 0xaa0   :  { %v16618_v46 = vpop.permute.xlu0 %8841  ;;  %v11745_v55 = vpop.eup %11744  ;;  %11758 = vpow2.f32 %v8210_v37  ;;  %v8214_v42 = vmul.f32 1.442695, %v7839_v16 }
 0xaa1   :  { %19652 = vst [vmem:[#allocation105_spill] sm:$0xff] %v16618_v46  ;;  %v16620_v6 = vpop.permute.xlu1 %8928  ;;  %9075 = vperm.xlu0 %11358, %v11737_v29   ;;  %v7335_v29 = vrot.slane %v16386_v38, %v19505_v48  ;;  %v8220_v28 = vmul.f32 1.442695, %v7842_v10  ;;  %v11747_v14 = vpop.eup %11746 }
 0xaa2   :  { %19653 = vst [vmem:[#allocation107_spill] sm:$0xff] %v16620_v6  ;;  %9066 = vperm.xlu1 %11359, %v11739_v49   ;;  %v19658_v49 = vld [vmem:[#allocation272_spill] sm:$0xff]  ;;  %v7841_v6 = vsub.f32 %v19659_v47, %v7323_v33 }
 0xaa3   :  { %v7844_v46 = vsub.f32 %v19658_v49, %v7331_v26  ;;  %11760 = vpow2.f32 %v8220_v28  ;;  %v19663_v49 = vld [vmem:[#allocation106_spill] sm:$0xff] }
 0xaa4   :  { %v16626_v56 = vpop.permute.xlu0 %8847  ;;  %v11749_v10 = vpop.eup %11748  ;;  %11762 = vpow2.f32 %v8214_v42  ;;  %v8218_v33 = vmul.f32 1.442695, %v7841_v6  ;;  %v19666_v28 = vld [vmem:[#allocation306_spill] sm:$0xff] }
 0xaa5   :  { %19656 = vst [vmem:[#allocation289_spill] sm:$0xff] %v16626_v56  ;;  %v16628_v36 = vpop.permute.xlu1 %8934  ;;  %9081 = vperm.xlu0 %11358, %v11741_v35   ;;  %v19662_v35 = vld [vmem:[#allocation274_spill] sm:$0xff]  ;;  %v8224_v38 = vmul.f32 1.442695, %v7844_v46  ;;  %v11751_v37 = vpop.eup %11750  ;;  %v7343_v46 = vrot.slane %v16403_v43, %v19487_v18 }
 0xaa6   :  { %19657 = vst [vmem:[#allocation291_spill] sm:$0xff] %v16628_v36  ;;  %9072 = vperm.xlu1 %11359, %v11743_v57   ;;  %v7846_v57 = vsub.f32 %v19662_v35, %v7335_v29  ;;  %v7843_v36 = vsub.f32 %v19663_v49, %v7327_v27 }
 0xaa7   :  { %11764 = vpow2.f32 %v8224_v38  ;;  %v7347_v38 = vrot.slane %v16403_v43, %v19490_v63 }
 0xaa8   :  { %v16634_v50 = vpop.permute.xlu0 %8853  ;;  %v11753_v35 = vpop.eup %11752  ;;  %11766 = vpow2.f32 %v8218_v33  ;;  %v8222_v27 = vmul.f32 1.442695, %v7843_v36 }
 0xaa9   :  { %19660 = vst [vmem:[#allocation109_spill] sm:$0xff] %v16634_v50  ;;  %v16636_v53 = vpop.permute.xlu1 %8844  ;;  %9087 = vperm.xlu0 %11358, %v11745_v55   ;;  %v8228_v55 = vmul.f32 1.442695, %v7846_v57  ;;  %v19667_v50 = vld [vmem:[#allocation108_spill] sm:$0xff]  ;;  %v11755_v42 = vpop.eup %11754 }
 0xaaa   :  { %19661 = vst [vmem:[#allocation111_spill] sm:$0xff] %v16636_v53  ;;  %9078 = vperm.xlu1 %11359, %v11747_v14   ;;  %v7848_v14 = vsub.f32 %v19666_v28, %v7339_v8  ;;  %v7845_v53 = vsub.f32 %v19667_v50, %v7331_v26  ;;  %v19670_v57 = vld [vmem:[#allocation308_spill] sm:$0xff] }
 0xaab   :  { %11768 = vpow2.f32 %v8228_v55  ;;  %v7351_v55 = vrot.slane %v16403_v43, %v19493_v52 }
 0xaac   :  { %v16642_v16 = vpop.permute.xlu0 %8859  ;;  %v11757_v28 = vpop.eup %11756  ;;  %11770 = vpow2.f32 %v8222_v27  ;;  %v8226_v26 = vmul.f32 1.442695, %v7845_v53 }
 0xaad   :  { %19664 = vst [vmem:[#allocation113_spill] sm:$0xff] %v16642_v16  ;;  %v16644_v47 = vpop.permute.xlu1 %8850  ;;  %9093 = vperm.xlu0 %11358, %v11749_v10   ;;  %v7850_v10 = vsub.f32 %v19670_v57, %v7343_v46  ;;  %v19671_v16 = vld [vmem:[#allocation110_spill] sm:$0xff]  ;;  %v11759_v50 = vpop.eup %11758 }
 0xaae   :  { %19665 = vst [vmem:[#allocation295_spill] sm:$0xff] %v16644_v47  ;;  %9084 = vperm.xlu1 %11359, %v11751_v37   ;;  %v8232_v37 = vmul.f32 1.442695, %v7848_v14  ;;  %v7847_v56 = vsub.f32 %v19671_v16, %v7335_v29  ;;  %v19675_v29 = vld [vmem:[#allocation141_spill] sm:$0xff] }
 0xaaf   :  { %v8236_v57 = vmul.f32 1.442695, %v7850_v10  ;;  %v7849_v16 = vsub.f32 %v19675_v29, %v7339_v8 }
 0xab0   :  { %v16650_v6 = vpop.permute.xlu0 %8865  ;;  %11772 = vpow2.f32 %v8232_v37  ;;  %v11761_v14 = vpop.eup %11760 }
 0xab1   :  { %19668 = vst [vmem:[#allocation297_spill] sm:$0xff] %v16650_v6  ;;  %v16652_v49 = vpop.permute.xlu1 %8856  ;;  %9099 = vperm.xlu0 %11358, %v11753_v35   ;;  %v19674_v35 = vld [vmem:[#allocation310_spill] sm:$0xff]  ;;  %11774 = vpow2.f32 %v8226_v26  ;;  %v8230_v6 = vmul.f32 1.442695, %v7847_v56  ;;  %v11763_v27 = vpop.eup %11762  ;;  %v19679_v26 = vld [vmem:[#allocation143_spill] sm:$0xff] }
 0xab2   :  { %19669 = vst [vmem:[#allocation117_spill] sm:$0xff] %v16652_v49  ;;  %9090 = vperm.xlu1 %11359, %v11755_v42   ;;  %v7852_v42 = vsub.f32 %v19674_v35, %v7347_v38  ;;  %11776 = vpow2.f32 %v8236_v57  ;;  %v7851_v56 = vsub.f32 %v19679_v26, %v7343_v46  ;;  %v8234_v35 = vmul.f32 1.442695, %v7849_v16 }
 0xab3   :  { %11778 = vpow2.f32 %v8230_v6 }
 0xab4   :  { %v16658_v36 = vpop.permute.xlu0 %8871  ;;  %v8240_v37 = vmul.f32 1.442695, %v7852_v42  ;;  %v11765_v10 = vpop.eup %11764  ;;  %v8238_v46 = vmul.f32 1.442695, %v7851_v56 }
 0xab5   :  { %19672 = vst [vmem:[#allocation119_spill] sm:$0xff] %v16658_v36  ;;  %v16660_v33 = vpop.permute.xlu1 %8862  ;;  %9105 = vperm.xlu0 %11358, %v11757_v28   ;;  %v7355_v28 = vrot.slane %v16403_v43, %v19496_v3  ;;  %v11767_v29 = vpop.eup %11766 }
 0xab6   :  { %19673 = vst [vmem:[#allocation299_spill] sm:$0xff] %v16660_v33  ;;  %9096 = vperm.xlu1 %11359, %v11759_v50   ;;  %v19678_v50 = vld [vmem:[#allocation312_spill] sm:$0xff]  ;;  %11780 = vpow2.f32 %v8240_v37 }
 0xab7   :  { %v7854_v33 = vsub.f32 %v19678_v50, %v7351_v55  ;;  %v19683_v50 = vld [vmem:[#allocation145_spill] sm:$0xff]  ;;  %11782 = vpow2.f32 %v8234_v35 }
 0xab8   :  { %v16666_v53 = vpop.permute.xlu0 %8877  ;;  %v11769_v42 = vpop.eup %11768  ;;  %v7853_v6 = vsub.f32 %v19683_v50, %v7347_v38 }
 0xab9   :  { %19676 = vst [vmem:[#allocation115_spill] sm:$0xff] %v16666_v53  ;;  %v16668_v36 = vpop.permute.xlu1 %8868  ;;  %9111 = vperm.xlu0 %11358, %v11761_v14   ;;  %v7359_v14 = vrot.slane %v16403_v43, %v19499_v15  ;;  %v8244_v57 = vmul.f32 1.442695, %v7854_v33  ;;  %v11771_v26 = vpop.eup %11770 }
 0xaba   :  { %19677 = vst [vmem:[#allocation15_spill] sm:$0xff] %v16668_v36  ;;  %9102 = vperm.xlu1 %11359, %v11763_v27   ;;  %v19682_v27 = vld [vmem:[#allocation313_spill] sm:$0xff]  ;;  %v8242_v38 = vmul.f32 1.442695, %v7853_v6 }
 0xabb   :  { %v7856_v36 = vsub.f32 %v19682_v27, %v7355_v28  ;;  %11784 = vpow2.f32 %v8244_v57  ;;  %v19687_v27 = vld [vmem:[#allocation315_spill] sm:$0xff] }
 0xabc   :  { %v16674_v8 = vpop.permute.xlu0 %8883  ;;  %v7855_v49 = vsub.f32 %v19687_v27, %v7351_v55  ;;  %11786 = vpow2.f32 %v8238_v46 }
 0xabd   :  { %19680 = vst [vmem:[#allocation120_spill] sm:$0xff] %v16674_v8  ;;  %v16676_v53 = vpop.permute.xlu1 %8874  ;;  %9117 = vperm.xlu0 %11358, %v11765_v10   ;;  %v7363_v10 = vrot.slane %v16403_v43, %v19502_v20  ;;  %v8248_v37 = vmul.f32 1.442695, %v7856_v36  ;;  %v11773_v33 = vpop.eup %11772 }
 0xabe   :  { %19681 = vst [vmem:[#allocation302_spill] sm:$0xff] %v16676_v53  ;;  %9108 = vperm.xlu1 %11359, %v11767_v29   ;;  %v19686_v29 = vld [vmem:[#allocation314_spill] sm:$0xff]  ;;  %v11775_v35 = vpop.eup %11774  ;;  %v8246_v55 = vmul.f32 1.442695, %v7855_v49 }
 0xabf   :  { %v7858_v53 = vsub.f32 %v19686_v29, %v7359_v14  ;;  %11788 = vpow2.f32 %v8248_v37  ;;  %v11777_v36 = vpop.eup %11776  ;;  %v19691_v29 = vld [vmem:[#allocation318_spill] sm:$0xff] }
 0xac0   :  { %v16682_v16 = vpop.permute.xlu0 %8985  ;;  %11790 = vpow2.f32 %v8242_v38  ;;  %v11779_v46 = vpop.eup %11778 }
 0xac1   :  { %19684 = vst [vmem:[#allocation121_spill] sm:$0xff] %v16682_v16  ;;  %v16684_v8 = vpop.permute.xlu1 %8880  ;;  %9123 = vperm.xlu0 %11358, %v11769_v42   ;;  %v7367_v42 = vrot.slane %v16403_v43, %v19505_v48  ;;  %v8252_v57 = vmul.f32 1.442695, %v7858_v53 }
 0xac2   :  { %19685 = vst [vmem:[#allocation305_spill] sm:$0xff] %v16684_v8  ;;  %9114 = vperm.xlu1 %11359, %v11771_v26   ;;  %v19690_v26 = vld [vmem:[#allocation317_spill] sm:$0xff]  ;;  %v7857_v8 = vsub.f32 %v19691_v29, %v7355_v28 }
 0xac3   :  { %v7860_v16 = vsub.f32 %v19690_v26, %v7363_v10  ;;  %11792 = vpow2.f32 %v8252_v57  ;;  %v11781_v53 = vpop.eup %11780  ;;  %v19695_v26 = vld [vmem:[#allocation14_spill] sm:$0xff] }
 0xac4   :  { %v16690_v56 = vpop.permute.xlu0 %8991  ;;  %11794 = vpow2.f32 %v8246_v55  ;;  %v8250_v28 = vmul.f32 1.442695, %v7857_v8  ;;  %v11783_v38 = vpop.eup %11782 }
 0xac5   :  { %19688 = vst [vmem:[#allocation123_spill] sm:$0xff] %v16690_v56  ;;  %v16692_v50 = vpop.permute.xlu1 %8886  ;;  %9129 = vperm.xlu0 %11358, %v11773_v33   ;;  %v7371_v33 = vrot.slane %v16398_v11, %v19486_v12  ;;  %v8256_v37 = vmul.f32 1.442695, %v7860_v16  ;;  %v7859_v56 = vsub.f32 %v19695_v26, %v7359_v14 }
 0xac6   :  { %19689 = vst [vmem:[#allocation125_spill] sm:$0xff] %v16692_v50  ;;  %9120 = vperm.xlu1 %11359, %v11775_v35   ;;  %v19694_v35 = vld [vmem:[#allocation320_spill] sm:$0xff] }
 0xac7   :  { %v7862_v43 = vsub.f32 %v19694_v35, %v7367_v42  ;;  %11796 = vpow2.f32 %v8256_v37  ;;  %v19699_v35 = vld [vmem:[#allocation150_spill] sm:$0xff]  ;;  %v8254_v14 = vmul.f32 1.442695, %v7859_v56  ;;  %v19703_v37 = vld [vmem:[#allocation152_spill] sm:$0xff] }
 0xac8   :  { %v16698_v6 = vpop.permute.xlu0 %8997  ;;  %v11785_v16 = vpop.eup %11784  ;;  %11798 = vpow2.f32 %v8250_v28 }
 0xac9   :  { %19692 = vst [vmem:[#allocation311_spill] sm:$0xff] %v16698_v6  ;;  %v16700_v27 = vpop.permute.xlu1 %8988  ;;  %9135 = vperm.xlu0 %11358, %v11777_v36   ;;  %v7375_v36 = vrot.slane %v16398_v11, %v19487_v18  ;;  %v8260_v57 = vmul.f32 1.442695, %v7862_v43  ;;  %v11787_v55 = vpop.eup %11786 }
 0xaca   :  { %19693 = vst [vmem:[#allocation131_spill] sm:$0xff] %v16700_v27  ;;  %9126 = vperm.xlu1 %11359, %v11779_v46   ;;  %v19698_v46 = vld [vmem:[#allocation292_spill] sm:$0xff]  ;;  %v7861_v27 = vsub.f32 %v19699_v35, %v7363_v10 }
 0xacb   :  { %v7864_v6 = vsub.f32 %v19698_v46, %v7371_v33  ;;  %11800 = vpow2.f32 %v8260_v57 }
 0xacc   :  { %v16706_v49 = vpop.permute.xlu0 %8937  ;;  %v11789_v43 = vpop.eup %11788  ;;  %11802 = vpow2.f32 %v8254_v14  ;;  %v8258_v10 = vmul.f32 1.442695, %v7861_v27 }
 0xacd   :  { %19696 = vst [vmem:[#allocation307_spill] sm:$0xff] %v16706_v49  ;;  %v16708_v29 = vpop.permute.xlu1 %8994  ;;  %9141 = vperm.xlu0 %11358, %v11781_v53   ;;  %v7379_v53 = vrot.slane %v16398_v11, %v19490_v63  ;;  %v8264_v46 = vmul.f32 1.442695, %v7864_v6  ;;  %v11791_v28 = vpop.eup %11790 }
 0xace   :  { %19697 = vst [vmem:[#allocation309_spill] sm:$0xff] %v16708_v29  ;;  %9132 = vperm.xlu1 %11359, %v11783_v38   ;;  %v19702_v38 = vld [vmem:[#allocation293_spill] sm:$0xff]  ;;  %v7863_v29 = vsub.f32 %v19703_v37, %v7367_v42 }
 0xacf   :  { %v7866_v49 = vsub.f32 %v19702_v38, %v7375_v36  ;;  %11804 = vpow2.f32 %v8264_v46  ;;  %v19707_v38 = vld [vmem:[#allocation126_spill] sm:$0xff] }
 0xad0   :  { %v16714_v8 = vpop.permute.xlu0 %8943  ;;  %v11793_v57 = vpop.eup %11792  ;;  %11806 = vpow2.f32 %v8258_v10  ;;  %v8262_v42 = vmul.f32 1.442695, %v7863_v29 }
 0xad1   :  { %19700 = vst [vmem:[#allocation127_spill] sm:$0xff] %v16714_v8  ;;  %v16716_v26 = vpop.permute.xlu1 %9000  ;;  %9147 = vperm.xlu0 %11358, %v11785_v16   ;;  %v7383_v16 = vrot.slane %v16398_v11, %v19493_v52  ;;  %v8268_v6 = vmul.f32 1.442695, %v7866_v49  ;;  %v11795_v14 = vpop.eup %11794 }
 0xad2   :  { %19701 = vst [vmem:[#allocation133_spill] sm:$0xff] %v16716_v26  ;;  %9138 = vperm.xlu1 %11359, %v11787_v55   ;;  %v19706_v55 = vld [vmem:[#allocation294_spill] sm:$0xff]  ;;  %v7865_v26 = vsub.f32 %v19707_v38, %v7371_v33 }
 0xad3   :  { %v7868_v8 = vsub.f32 %v19706_v55, %v7379_v53  ;;  %11808 = vpow2.f32 %v8268_v6  ;;  %v19711_v55 = vld [vmem:[#allocation128_spill] sm:$0xff] }
 0xad4   :  { %v16722_v56 = vpop.permute.xlu0 %8949  ;;  %v11797_v49 = vpop.eup %11796  ;;  %v8266_v33 = vmul.f32 1.442695, %v7865_v26  ;;  %11810 = vpow2.f32 %v8262_v42 }
 0xad5   :  { %19704 = vst [vmem:[#allocation129_spill] sm:$0xff] %v16722_v56  ;;  %v16724_v35 = vpop.permute.xlu1 %8940  ;;  %9153 = vperm.xlu0 %11358, %v11789_v43   ;;  %v7387_v43 = vrot.slane %v16398_v11, %v19496_v3  ;;  %v8272_v46 = vmul.f32 1.442695, %v7868_v8  ;;  %v11799_v10 = vpop.eup %11798 }
 0xad6   :  { %19705 = vst [vmem:[#allocation316_spill] sm:$0xff] %v16724_v35  ;;  %9144 = vperm.xlu1 %11359, %v11791_v28   ;;  %v19710_v28 = vld [vmem:[#allocation296_spill] sm:$0xff]  ;;  %v7867_v35 = vsub.f32 %v19711_v55, %v7375_v36 }
 0xad7   :  { %v7870_v56 = vsub.f32 %v19710_v28, %v7383_v16  ;;  %11812 = vpow2.f32 %v8272_v46  ;;  %v19715_v28 = vld [vmem:[#allocation130_spill] sm:$0xff] }
 0xad8   :  { %v16730_v27 = vpop.permute.xlu0 %8955  ;;  %v11801_v8 = vpop.eup %11800  ;;  %11814 = vpow2.f32 %v8266_v33  ;;  %v8270_v36 = vmul.f32 1.442695, %v7867_v35 }
 0xad9   :  { %19708 = vst [vmem:[#allocation135_spill] sm:$0xff] %v16730_v27  ;;  %v16732_v37 = vpop.permute.xlu1 %8946  ;;  %9159 = vperm.xlu0 %11358, %v11793_v57   ;;  %v7391_v57 = vrot.slane %v16398_v11, %v19499_v15  ;;  %v8276_v6 = vmul.f32 1.442695, %v7870_v56  ;;  %v11803_v42 = vpop.eup %11802 }
 0xada   :  { %19709 = vst [vmem:[#allocation319_spill] sm:$0xff] %v16732_v37  ;;  %9150 = vperm.xlu1 %11359, %v11795_v14   ;;  %v19714_v14 = vld [vmem:[#allocation298_spill] sm:$0xff]  ;;  %v7869_v37 = vsub.f32 %v19715_v28, %v7379_v53 }
 0xadb   :  { %v7872_v27 = vsub.f32 %v19714_v14, %v7387_v43  ;;  %11816 = vpow2.f32 %v8276_v6  ;;  %v19719_v14 = vld [vmem:[#allocation132_spill] sm:$0xff] }
 0xadc   :  { %v16738_v29 = vpop.permute.xlu0 %8961  ;;  %v11805_v56 = vpop.eup %11804  ;;  %11818 = vpow2.f32 %v8270_v36  ;;  %v8274_v53 = vmul.f32 1.442695, %v7869_v37 }
 0xadd   :  { %19712 = vst [vmem:[#allocation136_spill] sm:$0xff] %v16738_v29  ;;  %v16740_v38 = vpop.permute.xlu1 %8952  ;;  %9165 = vperm.xlu0 %11358, %v11797_v49   ;;  %v7395_v49 = vrot.slane %v16398_v11, %v19502_v20  ;;  %v8280_v46 = vmul.f32 1.442695, %v7872_v27  ;;  %v11807_v33 = vpop.eup %11806 }
 0xade   :  { %19713 = vst [vmem:[#allocation321_spill] sm:$0xff] %v16740_v38  ;;  %9156 = vperm.xlu1 %11359, %v11799_v10   ;;  %v19718_v10 = vld [vmem:[#allocation300_spill] sm:$0xff]  ;;  %v7871_v38 = vsub.f32 %v19719_v14, %v7383_v16 }
 0xadf   :  { %v7874_v29 = vsub.f32 %v19718_v10, %v7391_v57  ;;  %11820 = vpow2.f32 %v8280_v46  ;;  %v19723_v10 = vld [vmem:[#allocation134_spill] sm:$0xff]  ;;  %v7403_v46 = vrot.slane %v16412_v23, %v19486_v12 }
 0xae0   :  { %v16746_v26 = vpop.permute.xlu0 %8967  ;;  %v11809_v27 = vpop.eup %11808  ;;  %11822 = vpow2.f32 %v8274_v53  ;;  %v8278_v16 = vmul.f32 1.442695, %v7871_v38 }
 0xae1   :  { %19716 = vst [vmem:[#allocation138_spill] sm:$0xff] %v16746_v26  ;;  %v16748_v55 = vpop.permute.xlu1 %8958  ;;  %9171 = vperm.xlu0 %11358, %v11801_v8   ;;  %v7399_v8 = vrot.slane %v16398_v11, %v19505_v48  ;;  %v8284_v6 = vmul.f32 1.442695, %v7874_v29  ;;  %v11811_v36 = vpop.eup %11810 }
 0xae2   :  { %19717 = vst [vmem:[#allocation140_spill] sm:$0xff] %v16748_v55  ;;  %9162 = vperm.xlu1 %11359, %v11803_v42   ;;  %v19722_v42 = vld [vmem:[#allocation301_spill] sm:$0xff]  ;;  %v7873_v55 = vsub.f32 %v19723_v10, %v7387_v43 }
 0xae3   :  { %v7876_v26 = vsub.f32 %v19722_v42, %v7395_v49  ;;  %11824 = vpow2.f32 %v8284_v6  ;;  %v19727_v42 = vld [vmem:[#allocation304_spill] sm:$0xff]  ;;  %v19730_v6 = vld [vmem:[#allocation334_spill] sm:$0xff] }
 0xae4   :  { %v16754_v35 = vpop.permute.xlu0 %8973  ;;  %v11813_v29 = vpop.eup %11812  ;;  %11826 = vpow2.f32 %v8278_v16  ;;  %v8282_v43 = vmul.f32 1.442695, %v7873_v55 }
 0xae5   :  { %19720 = vst [vmem:[#allocation327_spill] sm:$0xff] %v16754_v35  ;;  %v16756_v28 = vpop.permute.xlu1 %8964  ;;  %9177 = vperm.xlu0 %11358, %v11805_v56   ;;  %v19726_v56 = vld [vmem:[#allocation303_spill] sm:$0xff]  ;;  %v8288_v11 = vmul.f32 1.442695, %v7876_v26  ;;  %v7875_v35 = vsub.f32 %v19727_v42, %v7391_v57  ;;  %v11815_v53 = vpop.eup %11814  ;;  %v7407_v26 = vrot.slane %v16412_v23, %v19487_v18 }
 0xae6   :  { %19721 = vst [vmem:[#allocation146_spill] sm:$0xff] %v16756_v28  ;;  %9168 = vperm.xlu1 %11359, %v11807_v33   ;;  %v7878_v33 = vsub.f32 %v19726_v56, %v7399_v8 }
 0xae7   :  { %11828 = vpow2.f32 %v8288_v11  ;;  %v8286_v57 = vmul.f32 1.442695, %v7875_v35  ;;  %v7411_v11 = vrot.slane %v16412_v23, %v19490_v63 }
 0xae8   :  { %v16762_v37 = vpop.permute.xlu0 %8979  ;;  %v11817_v56 = vpop.eup %11816  ;;  %11830 = vpow2.f32 %v8282_v43 }
 0xae9   :  { %19724 = vst [vmem:[#allocation147_spill] sm:$0xff] %v16762_v37  ;;  %v16764_v14 = vpop.permute.xlu1 %8970  ;;  %9183 = vperm.xlu0 %11358, %v11809_v27   ;;  %v8292_v27 = vmul.f32 1.442695, %v7878_v33  ;;  %v19731_v37 = vld [vmem:[#allocation137_spill] sm:$0xff]  ;;  %v11819_v16 = vpop.eup %11818  ;;  %v19734_v33 = vld [vmem:[#allocation159_spill] sm:$0xff] }
 0xaea   :  { %19725 = vst [vmem:[#allocation329_spill] sm:$0xff] %v16764_v14  ;;  %9174 = vperm.xlu1 %11359, %v11811_v36   ;;  %v7880_v36 = vsub.f32 %v19730_v6, %v7403_v46  ;;  %v7877_v14 = vsub.f32 %v19731_v37, %v7395_v49 }
 0xaeb   :  { %11832 = vpow2.f32 %v8292_v27  ;;  %v7415_v27 = vrot.slane %v16412_v23, %v19493_v52 }
 0xaec   :  { %v16770_v38 = vpop.permute.xlu0 %9003  ;;  %v11821_v6 = vpop.eup %11820  ;;  %11834 = vpow2.f32 %v8286_v57  ;;  %v8290_v49 = vmul.f32 1.442695, %v7877_v14 }
 0xaed   :  { %19728 = vst [vmem:[#allocation323_spill] sm:$0xff] %v16770_v38  ;;  %v16772_v10 = vpop.permute.xlu1 %8976  ;;  %9189 = vperm.xlu0 %11358, %v11813_v29   ;;  %v7882_v29 = vsub.f32 %v19734_v33, %v7407_v26  ;;  %v19735_v38 = vld [vmem:[#allocation139_spill] sm:$0xff]  ;;  %v11823_v37 = vpop.eup %11822 }
 0xaee   :  { %19729 = vst [vmem:[#allocation17_spill] sm:$0xff] %v16772_v10  ;;  %9180 = vperm.xlu1 %11359, %v11815_v53   ;;  %v8296_v53 = vmul.f32 1.442695, %v7880_v36  ;;  %v7879_v10 = vsub.f32 %v19735_v38, %v7399_v8  ;;  %v19739_v8 = vld [vmem:[#allocation338_spill] sm:$0xff] }
 0xaef   :  { %v8300_v33 = vmul.f32 1.442695, %v7882_v29  ;;  %v7881_v38 = vsub.f32 %v19739_v8, %v7403_v46 }
 0xaf0   :  { %v16778_v55 = vpop.permute.xlu0 %9009  ;;  %11836 = vpow2.f32 %v8296_v53  ;;  %v11825_v36 = vpop.eup %11824 }
 0xaf1   :  { %19732 = vst [vmem:[#allocation144_spill] sm:$0xff] %v16778_v55  ;;  %v16780_v42 = vpop.permute.xlu1 %8982  ;;  %9195 = vperm.xlu0 %11358, %v11817_v56   ;;  %v19738_v56 = vld [vmem:[#allocation337_spill] sm:$0xff]  ;;  %11838 = vpow2.f32 %v8290_v49  ;;  %v8294_v55 = vmul.f32 1.442695, %v7879_v10  ;;  %v11827_v57 = vpop.eup %11826 }
 0xaf2   :  { %19733 = vst [vmem:[#allocation148_spill] sm:$0xff] %v16780_v42  ;;  %9186 = vperm.xlu1 %11359, %v11819_v16   ;;  %v7884_v16 = vsub.f32 %v19738_v56, %v7411_v11  ;;  %11840 = vpow2.f32 %v8300_v33  ;;  %v19743_v49 = vld [vmem:[#allocation341_spill] sm:$0xff]  ;;  %v8298_v56 = vmul.f32 1.442695, %v7881_v38 }
 0xaf3   :  { %11842 = vpow2.f32 %v8294_v55  ;;  %v7883_v10 = vsub.f32 %v19743_v49, %v7407_v26 }
 0xaf4   :  { %v16786_v35 = vpop.permute.xlu0 %9015  ;;  %v8304_v53 = vmul.f32 1.442695, %v7884_v16  ;;  %v11829_v29 = vpop.eup %11828 }
 0xaf5   :  { %19736 = vst [vmem:[#allocation142_spill] sm:$0xff] %v16786_v35  ;;  %v16788_v43 = vpop.permute.xlu1 %9006  ;;  %9201 = vperm.xlu0 %11358, %v11821_v6   ;;  %v7419_v6 = vrot.slane %v16412_v23, %v19496_v3  ;;  %v11831_v8 = vpop.eup %11830  ;;  %v8302_v26 = vmul.f32 1.442695, %v7883_v10 }
 0xaf6   :  { %19737 = vst [vmem:[#allocation149_spill] sm:$0xff] %v16788_v43  ;;  %9192 = vperm.xlu1 %11359, %v11823_v37   ;;  %v19742_v37 = vld [vmem:[#allocation340_spill] sm:$0xff]  ;;  %11844 = vpow2.f32 %v8304_v53 }
 0xaf7   :  { %v7886_v42 = vsub.f32 %v19742_v37, %v7415_v27  ;;  %v19747_v37 = vld [vmem:[#allocation344_spill] sm:$0xff]  ;;  %11846 = vpow2.f32 %v8298_v56 }
 0xaf8   :  { %v16794_v14 = vpop.permute.xlu0 %9021  ;;  %v11833_v16 = vpop.eup %11832  ;;  %v7885_v55 = vsub.f32 %v19747_v37, %v7411_v11 }
 0xaf9   :  { %19740 = vst [vmem:[#allocation151_spill] sm:$0xff] %v16794_v14  ;;  %v16796_v35 = vpop.permute.xlu1 %9012  ;;  %9207 = vperm.xlu0 %11358, %v11825_v36   ;;  %v7423_v36 = vrot.slane %v16412_v23, %v19499_v15  ;;  %v8308_v33 = vmul.f32 1.442695, %v7886_v42  ;;  %v11835_v49 = vpop.eup %11834 }
 0xafa   :  { %19741 = vst [vmem:[#allocation153_spill] sm:$0xff] %v16796_v35  ;;  %9198 = vperm.xlu1 %11359, %v11827_v57   ;;  %v19746_v57 = vld [vmem:[#allocation343_spill] sm:$0xff]  ;;  %v8306_v11 = vmul.f32 1.442695, %v7885_v55 }
 0xafb   :  { %v7888_v35 = vsub.f32 %v19746_v57, %v7419_v6  ;;  %11848 = vpow2.f32 %v8308_v33  ;;  %v19751_v57 = vld [vmem:[#allocation346_spill] sm:$0xff] }
 0xafc   :  { %v16802_v46 = vpop.permute.xlu0 %9027  ;;  %v7887_v43 = vsub.f32 %v19751_v57, %v7415_v27  ;;  %11850 = vpow2.f32 %v8302_v26 }
 0xafd   :  { %19744 = vst [vmem:[#allocation155_spill] sm:$0xff] %v16802_v46  ;;  %v16804_v14 = vpop.permute.xlu1 %9018  ;;  %9213 = vperm.xlu0 %11358, %v11829_v29   ;;  %v7427_v29 = vrot.slane %v16412_v23, %v19502_v20  ;;  %v8312_v53 = vmul.f32 1.442695, %v7888_v35  ;;  %v11837_v42 = vpop.eup %11836 }
 0xafe   :  { %19745 = vst [vmem:[#allocation161_spill] sm:$0xff] %v16804_v14  ;;  %9204 = vperm.xlu1 %11359, %v11831_v8   ;;  %v19750_v8 = vld [vmem:[#allocation345_spill] sm:$0xff]  ;;  %v11839_v56 = vpop.eup %11838  ;;  %v8310_v27 = vmul.f32 1.442695, %v7887_v43 }
 0xaff   :  { %v7890_v14 = vsub.f32 %v19750_v8, %v7423_v36  ;;  %11852 = vpow2.f32 %v8312_v53  ;;  %v11841_v35 = vpop.eup %11840  ;;  %v19755_v8 = vld [vmem:[#allocation349_spill] sm:$0xff] }
 0xb00   :  { %v16810_v38 = vpop.permute.xlu0 %9033  ;;  %11854 = vpow2.f32 %v8306_v11  ;;  %v11843_v26 = vpop.eup %11842 }
 0xb01   :  { %19748 = vst [vmem:[#allocation347_spill] sm:$0xff] %v16810_v38  ;;  %v16812_v46 = vpop.permute.xlu1 %9024  ;;  %9219 = vperm.xlu0 %11358, %v11833_v16   ;;  %v7431_v16 = vrot.slane %v16412_v23, %v19505_v48  ;;  %v8316_v33 = vmul.f32 1.442695, %v7890_v14 }
 0xb02   :  { %19749 = vst [vmem:[#allocation157_spill] sm:$0xff] %v16812_v46  ;;  %9210 = vperm.xlu1 %11359, %v11835_v49   ;;  %v19754_v49 = vld [vmem:[#allocation348_spill] sm:$0xff]  ;;  %v7889_v46 = vsub.f32 %v19755_v8, %v7419_v6 }
 0xb03   :  { %v7892_v38 = vsub.f32 %v19754_v49, %v7427_v29  ;;  %11856 = vpow2.f32 %v8316_v33  ;;  %v11845_v14 = vpop.eup %11844  ;;  %v19759_v49 = vld [vmem:[#allocation16_spill] sm:$0xff] }
 0xb04   :  { %v16818_v10 = vpop.permute.xlu0 %9039  ;;  %11858 = vpow2.f32 %v8310_v27  ;;  %v8314_v6 = vmul.f32 1.442695, %v7889_v46  ;;  %v11847_v11 = vpop.eup %11846 }
 0xb05   :  { %19752 = vst [vmem:[#allocation339_spill] sm:$0xff] %v16818_v10  ;;  %v16820_v37 = vpop.permute.xlu1 %9030  ;;  %9225 = vperm.xlu0 %11358, %v11837_v42   ;;  %v7435_v42 = vrot.slane %v16406_v21, %v19486_v12  ;;  %v8320_v53 = vmul.f32 1.442695, %v7892_v38  ;;  %v7891_v10 = vsub.f32 %v19759_v49, %v7423_v36 }
 0xb06   :  { %19753 = vst [vmem:[#allocation342_spill] sm:$0xff] %v16820_v37  ;;  %9216 = vperm.xlu1 %11359, %v11839_v56   ;;  %v19758_v56 = vld [vmem:[#allocation351_spill] sm:$0xff] }
 0xb07   :  { %v7894_v23 = vsub.f32 %v19758_v56, %v7431_v16  ;;  %11860 = vpow2.f32 %v8320_v53  ;;  %v19763_v56 = vld [vmem:[#allocation354_spill] sm:$0xff]  ;;  %v8318_v36 = vmul.f32 1.442695, %v7891_v10  ;;  %v19767_v53 = vld [vmem:[#allocation357_spill] sm:$0xff] }
 0xb08   :  { %v16826_v55 = vpop.permute.xlu0 %9045  ;;  %v11849_v38 = vpop.eup %11848  ;;  %11862 = vpow2.f32 %v8314_v6 }
 0xb09   :  { %19756 = vst [vmem:[#allocation350_spill] sm:$0xff] %v16826_v55  ;;  %v16828_v57 = vpop.permute.xlu1 %9036  ;;  %9231 = vperm.xlu0 %11358, %v11841_v35   ;;  %v7439_v35 = vrot.slane %v16406_v21, %v19487_v18  ;;  %v8324_v33 = vmul.f32 1.442695, %v7894_v23  ;;  %v11851_v27 = vpop.eup %11850 }
 0xb0a   :  { %19757 = vst [vmem:[#allocation163_spill] sm:$0xff] %v16828_v57  ;;  %9222 = vperm.xlu1 %11359, %v11843_v26   ;;  %v19762_v26 = vld [vmem:[#allocation322_spill] sm:$0xff]  ;;  %v7893_v57 = vsub.f32 %v19763_v56, %v7427_v29 }
 0xb0b   :  { %v7896_v55 = vsub.f32 %v19762_v26, %v7435_v42  ;;  %11864 = vpow2.f32 %v8324_v33 }
 0xb0c   :  { %v16834_v43 = vpop.permute.xlu0 %9051  ;;  %v11853_v23 = vpop.eup %11852  ;;  %11866 = vpow2.f32 %v8318_v36  ;;  %v8322_v29 = vmul.f32 1.442695, %v7893_v57 }
 0xb0d   :  { %19760 = vst [vmem:[#allocation361_spill] sm:$0xff] %v16834_v43  ;;  %v16836_v8 = vpop.permute.xlu1 %9042  ;;  %9237 = vperm.xlu0 %11358, %v11845_v14   ;;  %v7443_v14 = vrot.slane %v16406_v21, %v19490_v63  ;;  %v8328_v26 = vmul.f32 1.442695, %v7896_v55  ;;  %v11855_v6 = vpop.eup %11854 }
 0xb0e   :  { %19761 = vst [vmem:[#allocation164_spill] sm:$0xff] %v16836_v8  ;;  %9228 = vperm.xlu1 %11359, %v11847_v11   ;;  %v19766_v11 = vld [vmem:[#allocation324_spill] sm:$0xff]  ;;  %v7895_v8 = vsub.f32 %v19767_v53, %v7431_v16 }
 0xb0f   :  { %v7898_v43 = vsub.f32 %v19766_v11, %v7439_v35  ;;  %11868 = vpow2.f32 %v8328_v26  ;;  %v19771_v11 = vld [vmem:[#allocation154_spill] sm:$0xff] }
 0xb10   :  { %v16842_v46 = vpop.permute.xlu0 %9057  ;;  %v11857_v33 = vpop.eup %11856  ;;  %11870 = vpow2.f32 %v8322_v29  ;;  %v8326_v16 = vmul.f32 1.442695, %v7895_v8 }
 0xb11   :  { %19764 = vst [vmem:[#allocation165_spill] sm:$0xff] %v16842_v46  ;;  %v16844_v49 = vpop.permute.xlu1 %9048  ;;  %9243 = vperm.xlu0 %11358, %v11849_v38   ;;  %v7447_v38 = vrot.slane %v16406_v21, %v19493_v52  ;;  %v8332_v55 = vmul.f32 1.442695, %v7898_v43  ;;  %v11859_v36 = vpop.eup %11858 }
 0xb12   :  { %19765 = vst [vmem:[#allocation365_spill] sm:$0xff] %v16844_v49  ;;  %9234 = vperm.xlu1 %11359, %v11851_v27   ;;  %v19770_v27 = vld [vmem:[#allocation325_spill] sm:$0xff]  ;;  %v7897_v49 = vsub.f32 %v19771_v11, %v7435_v42 }
 0xb13   :  { %v7900_v46 = vsub.f32 %v19770_v27, %v7443_v14  ;;  %11872 = vpow2.f32 %v8332_v55  ;;  %v19775_v27 = vld [vmem:[#allocation156_spill] sm:$0xff] }
 0xb14   :  { %v16850_v10 = vpop.permute.xlu0 %9063  ;;  %v11861_v43 = vpop.eup %11860  ;;  %v8330_v42 = vmul.f32 1.442695, %v7897_v49  ;;  %11874 = vpow2.f32 %v8326_v16 }
 0xb15   :  { %19768 = vst [vmem:[#allocation167_spill] sm:$0xff] %v16850_v10  ;;  %v16852_v56 = vpop.permute.xlu1 %9054  ;;  %9249 = vperm.xlu0 %11358, %v11853_v23   ;;  %v7451_v23 = vrot.slane %v16406_v21, %v19496_v3  ;;  %v8336_v26 = vmul.f32 1.442695, %v7900_v46  ;;  %v11863_v29 = vpop.eup %11862 }
 0xb16   :  { %19769 = vst [vmem:[#allocation168_spill] sm:$0xff] %v16852_v56  ;;  %9240 = vperm.xlu1 %11359, %v11855_v6   ;;  %v19774_v6 = vld [vmem:[#allocation326_spill] sm:$0xff]  ;;  %v7899_v56 = vsub.f32 %v19775_v27, %v7439_v35 }
 0xb17   :  { %v7902_v10 = vsub.f32 %v19774_v6, %v7447_v38  ;;  %11876 = vpow2.f32 %v8336_v26  ;;  %v19779_v6 = vld [vmem:[#allocation158_spill] sm:$0xff] }
 0xb18   :  { %v16858_v57 = vpop.permute.xlu0 %9069  ;;  %v11865_v46 = vpop.eup %11864  ;;  %11878 = vpow2.f32 %v8330_v42  ;;  %v8334_v35 = vmul.f32 1.442695, %v7899_v56 }
 0xb19   :  { %19772 = vst [vmem:[#allocation369_spill] sm:$0xff] %v16858_v57  ;;  %v16860_v53 = vpop.permute.xlu1 %9060  ;;  %9255 = vperm.xlu0 %11358, %v11857_v33   ;;  %v7455_v33 = vrot.slane %v16406_v21, %v19499_v15  ;;  %v8340_v55 = vmul.f32 1.442695, %v7902_v10  ;;  %v11867_v16 = vpop.eup %11866 }
 0xb1a   :  { %19773 = vst [vmem:[#allocation352_spill] sm:$0xff] %v16860_v53  ;;  %9246 = vperm.xlu1 %11359, %v11859_v36   ;;  %v19778_v36 = vld [vmem:[#allocation328_spill] sm:$0xff]  ;;  %v7901_v53 = vsub.f32 %v19779_v6, %v7443_v14 }
 0xb1b   :  { %v7904_v57 = vsub.f32 %v19778_v36, %v7451_v23  ;;  %11880 = vpow2.f32 %v8340_v55  ;;  %v19783_v36 = vld [vmem:[#allocation160_spill] sm:$0xff] }
 0xb1c   :  { %v16866_v8 = vpop.permute.xlu0 %9075  ;;  %v11869_v10 = vpop.eup %11868  ;;  %11882 = vpow2.f32 %v8334_v35  ;;  %v8338_v14 = vmul.f32 1.442695, %v7901_v53 }
 0xb1d   :  { %19776 = vst [vmem:[#allocation19_spill] sm:$0xff] %v16866_v8  ;;  %v16868_v11 = vpop.permute.xlu1 %9066  ;;  %9261 = vperm.xlu0 %11358, %v11861_v43   ;;  %v7459_v43 = vrot.slane %v16406_v21, %v19502_v20  ;;  %v8344_v26 = vmul.f32 1.442695, %v7904_v57  ;;  %v11871_v42 = vpop.eup %11870 }
 0xb1e   :  { %19777 = vst [vmem:[#allocation373_spill] sm:$0xff] %v16868_v11  ;;  %9252 = vperm.xlu1 %11359, %v11863_v29   ;;  %v19782_v29 = vld [vmem:[#allocation330_spill] sm:$0xff]  ;;  %v7903_v11 = vsub.f32 %v19783_v36, %v7447_v38 }
 0xb1f   :  { %v7906_v8 = vsub.f32 %v19782_v29, %v7455_v33  ;;  %11884 = vpow2.f32 %v8344_v26  ;;  %v19787_v29 = vld [vmem:[#allocation162_spill] sm:$0xff]  ;;  %v7467_v26 = vrot.slane %v16420_v41, %v19486_v12 }
 0xb20   :  { %v16874_v49 = vpop.permute.xlu0 %9081  ;;  %v11873_v57 = vpop.eup %11872  ;;  %11886 = vpow2.f32 %v8338_v14  ;;  %v8342_v38 = vmul.f32 1.442695, %v7903_v11 }
 0xb21   :  { %19780 = vst [vmem:[#allocation166_spill] sm:$0xff] %v16874_v49  ;;  %v16876_v27 = vpop.permute.xlu1 %9072  ;;  %9267 = vperm.xlu0 %11358, %v11865_v46   ;;  %v7463_v46 = vrot.slane %v16406_v21, %v19505_v48  ;;  %v8348_v55 = vmul.f32 1.442695, %v7906_v8  ;;  %v11875_v35 = vpop.eup %11874 }
 0xb22   :  { %19781 = vst [vmem:[#allocation360_spill] sm:$0xff] %v16876_v27  ;;  %9258 = vperm.xlu1 %11359, %v11867_v16   ;;  %v19786_v16 = vld [vmem:[#allocation331_spill] sm:$0xff]  ;;  %v7905_v27 = vsub.f32 %v19787_v29, %v7451_v23 }
 0xb23   :  { %v7908_v49 = vsub.f32 %v19786_v16, %v7459_v43  ;;  %11888 = vpow2.f32 %v8348_v55  ;;  %v19791_v16 = vld [vmem:[#allocation333_spill] sm:$0xff]  ;;  %v19794_v55 = vld [vmem:[#allocation382_spill] sm:$0xff] }
 0xb24   :  { %v16882_v56 = vpop.permute.xlu0 %9087  ;;  %v11877_v8 = vpop.eup %11876  ;;  %11890 = vpow2.f32 %v8342_v38  ;;  %v8346_v23 = vmul.f32 1.442695, %v7905_v27 }
 0xb25   :  { %19784 = vst [vmem:[#allocation377_spill] sm:$0xff] %v16882_v56  ;;  %v16884_v6 = vpop.permute.xlu1 %9078  ;;  %9273 = vperm.xlu0 %11358, %v11869_v10   ;;  %v19790_v10 = vld [vmem:[#allocation332_spill] sm:$0xff]  ;;  %v8352_v21 = vmul.f32 1.442695, %v7908_v49  ;;  %v11879_v14 = vpop.eup %11878  ;;  %v7471_v49 = vrot.slane %v16420_v41, %v19487_v18 }
 0xb26   :  { %19785 = vst [vmem:[#allocation355_spill] sm:$0xff] %v16884_v6  ;;  %9264 = vperm.xlu1 %11359, %v11871_v42   ;;  %v7910_v42 = vsub.f32 %v19790_v10, %v7463_v46  ;;  %v7907_v6 = vsub.f32 %v19791_v16, %v7455_v33 }
 0xb27   :  { %11892 = vpow2.f32 %v8352_v21  ;;  %v7475_v21 = vrot.slane %v16420_v41, %v19490_v63 }
 0xb28   :  { %v16890_v53 = vpop.permute.xlu0 %9093  ;;  %v11881_v10 = vpop.eup %11880  ;;  %11894 = vpow2.f32 %v8346_v23  ;;  %v8350_v33 = vmul.f32 1.442695, %v7907_v6 }
 0xb29   :  { %19788 = vst [vmem:[#allocation364_spill] sm:$0xff] %v16890_v53  ;;  %v16892_v36 = vpop.permute.xlu1 %9084  ;;  %9279 = vperm.xlu0 %11358, %v11873_v57   ;;  %v8356_v57 = vmul.f32 1.442695, %v7910_v42  ;;  %v19795_v53 = vld [vmem:[#allocation335_spill] sm:$0xff]  ;;  %v11883_v38 = vpop.eup %11882  ;;  %v19798_v42 = vld [vmem:[#allocation386_spill] sm:$0xff] }
 0xb2a   :  { %19789 = vst [vmem:[#allocation381_spill] sm:$0xff] %v16892_v36  ;;  %9270 = vperm.xlu1 %11359, %v11875_v35   ;;  %v7912_v35 = vsub.f32 %v19794_v55, %v7467_v26  ;;  %v7909_v36 = vsub.f32 %v19795_v53, %v7459_v43 }
 0xb2b   :  { %11896 = vpow2.f32 %v8356_v57  ;;  %v7479_v57 = vrot.slane %v16420_v41, %v19493_v52 }
 0xb2c   :  { %v16898_v11 = vpop.permute.xlu0 %9099  ;;  %v11885_v55 = vpop.eup %11884  ;;  %11898 = vpow2.f32 %v8350_v33  ;;  %v8354_v43 = vmul.f32 1.442695, %v7909_v36 }
 0xb2d   :  { %19792 = vst [vmem:[#allocation368_spill] sm:$0xff] %v16898_v11  ;;  %v16900_v29 = vpop.permute.xlu1 %9090  ;;  %9285 = vperm.xlu0 %11358, %v11877_v8   ;;  %v7914_v8 = vsub.f32 %v19798_v42, %v7471_v49  ;;  %v19799_v11 = vld [vmem:[#allocation336_spill] sm:$0xff]  ;;  %v11887_v53 = vpop.eup %11886 }
 0xb2e   :  { %19793 = vst [vmem:[#allocation385_spill] sm:$0xff] %v16900_v29  ;;  %9276 = vperm.xlu1 %11359, %v11879_v14   ;;  %v8360_v14 = vmul.f32 1.442695, %v7912_v35  ;;  %v7911_v56 = vsub.f32 %v19799_v11, %v7463_v46  ;;  %v19803_v46 = vld [vmem:[#allocation391_spill] sm:$0xff] }
 0xb2f   :  { %v8364_v42 = vmul.f32 1.442695, %v7914_v8  ;;  %v7913_v11 = vsub.f32 %v19803_v46, %v7467_v26 }
 0xb30   :  { %v16906_v27 = vpop.permute.xlu0 %9105  ;;  %11900 = vpow2.f32 %v8360_v14  ;;  %v11889_v35 = vpop.eup %11888 }
 0xb31   :  { %19796 = vst [vmem:[#allocation372_spill] sm:$0xff] %v16906_v27  ;;  %v16908_v16 = vpop.permute.xlu1 %9096  ;;  %9291 = vperm.xlu0 %11358, %v11881_v10   ;;  %v19802_v10 = vld [vmem:[#allocation390_spill] sm:$0xff]  ;;  %11902 = vpow2.f32 %v8354_v43  ;;  %v8358_v27 = vmul.f32 1.442695, %v7911_v56  ;;  %v11891_v33 = vpop.eup %11890  ;;  %v19807_v43 = vld [vmem:[#allocation395_spill] sm:$0xff] }
 0xb32   :  { %19797 = vst [vmem:[#allocation376_spill] sm:$0xff] %v16908_v16  ;;  %9282 = vperm.xlu1 %11359, %v11883_v38   ;;  %v7916_v38 = vsub.f32 %v19802_v10, %v7475_v21  ;;  %11904 = vpow2.f32 %v8364_v42  ;;  %v7915_v56 = vsub.f32 %v19807_v43, %v7471_v49  ;;  %v8362_v10 = vmul.f32 1.442695, %v7913_v11 }
 0xb33   :  { %11906 = vpow2.f32 %v8358_v27  ;;  %v19811_v27 = vld [vmem:[#allocation399_spill] sm:$0xff] }
 0xb34   :  { %v16914_v6 = vpop.permute.xlu0 %9111  ;;  %v8368_v14 = vmul.f32 1.442695, %v7916_v38  ;;  %v11893_v8 = vpop.eup %11892  ;;  %v8366_v49 = vmul.f32 1.442695, %v7915_v56 }
 0xb35   :  { %19800 = vst [vmem:[#allocation393_spill] sm:$0xff] %v16914_v6  ;;  %v16916_v23 = vpop.permute.xlu1 %9102  ;;  %9297 = vperm.xlu0 %11358, %v11885_v55   ;;  %v7483_v55 = vrot.slane %v16420_v41, %v19496_v3  ;;  %v11895_v46 = vpop.eup %11894 }
 0xb36   :  { %19801 = vst [vmem:[#allocation397_spill] sm:$0xff] %v16916_v23  ;;  %9288 = vperm.xlu1 %11359, %v11887_v53   ;;  %v19806_v53 = vld [vmem:[#allocation394_spill] sm:$0xff]  ;;  %11908 = vpow2.f32 %v8368_v14 }
 0xb37   :  { %v7918_v23 = vsub.f32 %v19806_v53, %v7479_v57  ;;  %11910 = vpow2.f32 %v8362_v10 }
 0xb38   :  { %v16922_v36 = vpop.permute.xlu0 %9117  ;;  %v11897_v42 = vpop.eup %11896 }
 0xb39   :  { %19804 = vst [vmem:[#allocation384_spill] sm:$0xff] %v16922_v36  ;;  %v16924_v6 = vpop.permute.xlu1 %9108  ;;  %9303 = vperm.xlu0 %11358, %v11889_v35   ;;  %v16936_v35 = vrot.slane %v16420_v41, %v19499_v15  ;;  %v8372_v38 = vmul.f32 1.442695, %v7918_v23  ;;  %v11899_v43 = vpop.eup %11898 }
 0xb3a   :  { %19805 = vst [vmem:[#allocation389_spill] sm:$0xff] %v16924_v6  ;;  %9294 = vperm.xlu1 %11359, %v11891_v33   ;;  %v19810_v33 = vld [vmem:[#allocation398_spill] sm:$0xff]  ;;  %v7917_v6 = vsub.f32 %v19811_v27, %v7475_v21 }
 0xb3b   :  { %v7920_v53 = vsub.f32 %v19810_v33, %v7483_v55  ;;  %11912 = vpow2.f32 %v8372_v38 }
 0xb3c   :  { %v16930_v26 = vpop.permute.xlu0 %9123  ;;  %11914 = vpow2.f32 %v8366_v49  ;;  %v8370_v56 = vmul.f32 1.442695, %v7917_v6 }
 0xb3d   :  { %19808 = vst [vmem:[#allocation401_spill] sm:$0xff] %v16930_v26  ;;  %v16932_v36 = vpop.permute.xlu1 %9114  ;;  %9309 = vperm.xlu0 %11358, %v11893_v8   ;;  %v7499_v8 = vrot.slane %v16418_v39, %v19486_v12  ;;  %v8376_v23 = vmul.f32 1.442695, %v7920_v53  ;;  %v11901_v14 = vpop.eup %11900 }
 0xb3e   :  { %19809 = vst [vmem:[#allocation388_spill] sm:$0xff] %v16932_v36  ;;  %9300 = vperm.xlu1 %11359, %v11895_v46   ;;  %v19814_v46 = vld [vmem:[#allocation402_spill] sm:$0xff]  ;;  %v19815_v36 = vld [vmem:[#allocation403_spill] sm:$0xff]  ;;  %v11903_v27 = vpop.eup %11902 }
 0xb3f   :  { %v7922_v33 = vsub.f32 %v19814_v46, %v16936_v35  ;;  %v7919_v21 = vsub.f32 %v19815_v36, %v7479_v57  ;;  %11916 = vpow2.f32 %v8376_v23  ;;  %v11905_v53 = vpop.eup %11904  ;;  %v19819_v46 = vld [vmem:[#allocation202_spill] sm:$0xff]  ;;  %v19823_v23 = vld [vmem:[#allocation353_spill] sm:$0xff] }
 0xb40   :  { %v16940_v11 = vpop.permute.xlu0 %9129  ;;  %v7921_v16 = vsub.f32 %v19819_v46, %v7483_v55  ;;  %11918 = vpow2.f32 %v8370_v56  ;;  %v11907_v36 = vpop.eup %11906 }
 0xb41   :  { %19812 = vst [vmem:[#allocation405_spill] sm:$0xff] %v16940_v11  ;;  %v16942_v26 = vpop.permute.xlu1 %9120  ;;  %9315 = vperm.xlu0 %11358, %v11897_v42   ;;  %v7503_v42 = vrot.slane %v16418_v39, %v19487_v18  ;;  %v8380_v38 = vmul.f32 1.442695, %v7922_v33  ;;  %v8374_v57 = vmul.f32 1.442695, %v7919_v21 }
 0xb42   :  { %19813 = vst [vmem:[#allocation380_spill] sm:$0xff] %v16942_v26  ;;  %9306 = vperm.xlu1 %11359, %v11899_v43   ;;  %v19818_v43 = vld [vmem:[#allocation359_spill] sm:$0xff]  ;;  %v8378_v55 = vmul.f32 1.442695, %v7921_v16 }
 0xb43   :  { %v7929_v26 = vsub.f32 %v19818_v43, %v7499_v8  ;;  %11920 = vpow2.f32 %v8380_v38  ;;  %v11909_v33 = vpop.eup %11908 }
 0xb44   :  { %v16949_v10 = vpop.permute.xlu0 %9135  ;;  %11922 = vpow2.f32 %v8374_v57  ;;  %v11911_v56 = vpop.eup %11910 }
 0xb45   :  { %19816 = vst [vmem:[#allocation392_spill] sm:$0xff] %v16949_v10  ;;  %v16951_v11 = vpop.permute.xlu1 %9126  ;;  %9321 = vperm.xlu0 %11358, %v11901_v14   ;;  %v7507_v14 = vrot.slane %v16418_v39, %v19490_v63  ;;  %v8394_v43 = vmul.f32 1.442695, %v7929_v26  ;;  %v7531_v26 = vrot.slane %v16428_v61, %v19486_v12 }
 0xb46   :  { %19817 = vst [vmem:[#allocation396_spill] sm:$0xff] %v16951_v11  ;;  %9312 = vperm.xlu1 %11359, %v11903_v27   ;;  %v19822_v27 = vld [vmem:[#allocation363_spill] sm:$0xff]  ;;  %v7928_v11 = vsub.f32 %v19823_v23, %v7499_v8 }
 0xb47   :  { %v7931_v10 = vsub.f32 %v19822_v27, %v7503_v42  ;;  %11924 = vpow2.f32 %v8394_v43  ;;  %v19827_v27 = vld [vmem:[#allocation356_spill] sm:$0xff] }
 0xb48   :  { %v16957_v6 = vpop.permute.xlu0 %9141  ;;  %v11913_v38 = vpop.eup %11912  ;;  %v8392_v8 = vmul.f32 1.442695, %v7928_v11  ;;  %11926 = vpow2.f32 %v8378_v55  ;;  %v19830_v43 = vld [vmem:[#allocation220_spill] sm:$0xff] }
 0xb49   :  { %19820 = vst [vmem:[#allocation407_spill] sm:$0xff] %v16957_v6  ;;  %v16959_v49 = vpop.permute.xlu1 %9132  ;;  %9327 = vperm.xlu0 %11358, %v11905_v53   ;;  %v19826_v53 = vld [vmem:[#allocation367_spill] sm:$0xff]  ;;  %v8398_v6 = vmul.f32 1.442695, %v7931_v10  ;;  %v11915_v57 = vpop.eup %11914  ;;  %v7535_v10 = vrot.slane %v16428_v61, %v19487_v18 }
 0xb4a   :  { %19821 = vst [vmem:[#allocation400_spill] sm:$0xff] %v16959_v49  ;;  %9318 = vperm.xlu1 %11359, %v11907_v36   ;;  %v7933_v36 = vsub.f32 %v19826_v53, %v7507_v14  ;;  %v7930_v49 = vsub.f32 %v19827_v27, %v7503_v42 }
 0xb4b   :  { %11928 = vpow2.f32 %v8398_v6  ;;  %v19834_v6 = vld [vmem:[#allocation410_spill] sm:$0xff] }
 0xb4c   :  { %v16965_v21 = vpop.permute.xlu0 %9147  ;;  %v11917_v53 = vpop.eup %11916  ;;  %11930 = vpow2.f32 %v8392_v8  ;;  %v8396_v11 = vmul.f32 1.442695, %v7930_v49 }
 0xb4d   :  { %19824 = vst [vmem:[#allocation20_spill] sm:$0xff] %v16965_v21  ;;  %v16967_v46 = vpop.permute.xlu1 %9138  ;;  %9333 = vperm.xlu0 %11358, %v11909_v33   ;;  %v8402_v33 = vmul.f32 1.442695, %v7933_v36  ;;  %v19831_v21 = vld [vmem:[#allocation358_spill] sm:$0xff]  ;;  %v11919_v55 = vpop.eup %11918  ;;  %v7947_v36 = vsub.f32 %v19834_v6, %v7535_v10 }
 0xb4e   :  { %19825 = vst [vmem:[#allocation3_spill] sm:$0xff] %v16967_v46  ;;  %9324 = vperm.xlu1 %11359, %v11911_v56   ;;  %v7945_v56 = vsub.f32 %v19830_v43, %v7531_v26  ;;  %v7932_v46 = vsub.f32 %v19831_v21, %v7507_v14  ;;  %v19835_v14 = vld [vmem:[#allocation45_spill] sm:$0xff] }
 0xb4f   :  { %11932 = vpow2.f32 %v8402_v33  ;;  %v7944_v21 = vsub.f32 %v19835_v14, %v7531_v26  ;;  %v8430_v33 = vmul.f32 1.442695, %v7947_v36  ;;  %v7511_v36 = vrot.slane %v16418_v39, %v19493_v52 }
 0xb50   :  { %v16973_v16 = vpop.permute.xlu0 %9153  ;;  %v11921_v43 = vpop.eup %11920  ;;  %11934 = vpow2.f32 %v8396_v11  ;;  %v19839_v11 = vld [vmem:[#allocation412_spill] sm:$0xff] }
 0xb51   :  { %19828 = vst [vmem:[#allocation404_spill] sm:$0xff] %v16973_v16  ;;  %v16975_v23 = vpop.permute.xlu1 %9144  ;;  %9339 = vperm.xlu0 %11358, %v11913_v38   ;;  %v8426_v38 = vmul.f32 1.442695, %v7945_v56  ;;  %v8400_v16 = vmul.f32 1.442695, %v7932_v46  ;;  %v11923_v8 = vpop.eup %11922  ;;  %v7567_v56 = vrot.slane %v16426_v44, %v19487_v18  ;;  %v7946_v46 = vsub.f32 %v19839_v11, %v7535_v10 }
 0xb52   :  { %19829 = vst [vmem:[#allocation193_spill] sm:$0xff] %v16975_v23  ;;  %9330 = vperm.xlu1 %11359, %v11915_v57   ;;  %v7563_v57 = vrot.slane %v16426_v44, %v19486_v12  ;;  %v8424_v6 = vmul.f32 1.442695, %v7944_v21 }
 0xb53   :  { %11936 = vpow2.f32 %v8426_v38  ;;  %v19842_v38 = vld [vmem:[#allocation30_spill] sm:$0xff] }
 0xb54   :  { %v16981_v42 = vpop.permute.xlu0 %9159  ;;  %v11925_v12 = vpop.eup %11924  ;;  %11938 = vpow2.f32 %v8400_v16  ;;  %v7963_v18 = vsub.f32 %v19842_v38, %v7567_v56  ;;  %v8428_v16 = vmul.f32 1.442695, %v7946_v46 }
 0xb55   :  { %19832 = vst [vmem:[#allocation10_spill] sm:$0xff] %v16981_v42  ;;  %v16983_v27 = vpop.permute.xlu1 %9150  ;;  %9345 = vperm.xlu0 %11358, %v11917_v53   ;;  %v19838_v53 = vld [vmem:[#allocation29_spill] sm:$0xff]  ;;  %v11927_v14 = vpop.eup %11926  ;;  %11940 = vpow2.f32 %v8430_v33  ;;  %v7539_v33 = vrot.slane %v16428_v61, %v19490_v63 }
 0xb56   :  { %19833 = vst [vmem:[#allocation31_spill] sm:$0xff] %v16983_v27  ;;  %9336 = vperm.xlu1 %11359, %v11919_v55   ;;  %v7961_v55 = vsub.f32 %v19838_v53, %v7563_v57  ;;  %11942 = vpow2.f32 %v8424_v6  ;;  %v19843_v53 = vld [vmem:[#allocation8_spill] sm:$0xff]  ;;  %v8462_v38 = vmul.f32 1.442695, %v7963_v18 }
 0xb57   :  { %v7960_v10 = vsub.f32 %v19843_v53, %v7563_v57  ;;  %v19847_v6 = vld [vmem:[#allocation208_spill] sm:$0xff] }
 0xb58   :  { %v16989_v49 = vpop.permute.xlu0 %9165  ;;  %v7962_v46 = vsub.f32 %v19847_v6, %v7567_v56 }
 0xb59   :  { %19836 = vst [vmem:[#allocation41_spill] sm:$0xff] %v16989_v49  ;;  %v16991_v42 = vpop.permute.xlu1 %9156  ;;  %9351 = vperm.xlu0 %11358, %v11921_v43   ;;  %v8458_v43 = vmul.f32 1.442695, %v7961_v55 }
 0xb5a   :  { %19837 = vst [vmem:[#allocation60_spill] sm:$0xff] %v16991_v42  ;;  %9342 = vperm.xlu1 %11359, %v11923_v8   ;;  %v11929_v8 = vpop.eup %11928  ;;  %v8460_v56 = vmul.f32 1.442695, %v7962_v46 }
 0xb5b   :  { %v11931_v11 = vpop.eup %11930  ;;  %11944 = vpow2.f32 %v8458_v43  ;;  %v19851_v43 = vld [vmem:[#allocation362_spill] sm:$0xff] }
 0xb5c   :  { %v16997_v26 = vpop.permute.xlu0 %9171  ;;  %v11933_v55 = vpop.eup %11932  ;;  %11946 = vpow2.f32 %v8428_v16  ;;  %v7934_v16 = vsub.f32 %v19851_v43, %v7511_v36 }
 0xb5d   :  { %19840 = vst [vmem:[#allocation18_spill] sm:$0xff] %v16997_v26  ;;  %v16999_v49 = vpop.permute.xlu1 %9162  ;;  %9372 = vperm.xlu0 %11358, %v11925_v12   ;;  %v19846_v12 = vld [vmem:[#allocation371_spill] sm:$0xff]  ;;  %v11935_v53 = vpop.eup %11934  ;;  %11948 = vpow2.f32 %v8462_v38 }
 0xb5e   :  { %19841 = vst [vmem:[#allocation212_spill] sm:$0xff] %v16999_v49  ;;  %9348 = vperm.xlu1 %11359, %v11927_v14   ;;  %v7935_v14 = vsub.f32 %v19846_v12, %v7511_v36  ;;  %v8456_v49 = vmul.f32 1.442695, %v7960_v10 }
 0xb60   :  { %v17005_v21 = vpop.permute.xlu0 %9177  ;;  %v11937_v18 = vpop.eup %11936  ;;  %11950 = vpow2.f32 %v8456_v49 }
 0xb61   :  { %19844 = vst [vmem:[#allocation61_spill] sm:$0xff] %v17005_v21  ;;  %v17007_v26 = vpop.permute.xlu1 %9168  ;;  %9378 = vperm.xlu0 %11358, %v11929_v8   ;;  %v8406_v8 = vmul.f32 1.442695, %v7935_v14  ;;  %v11939_v6 = vpop.eup %11938  ;;  %v7515_v14 = vrot.slane %v16418_v39, %v19496_v3 }
 0xb62   :  { %19845 = vst [vmem:[#allocation47_spill] sm:$0xff] %v17007_v26  ;;  %9369 = vperm.xlu1 %11359, %v11931_v11   ;;  %v19850_v11 = vld [vmem:[#allocation411_spill] sm:$0xff]  ;;  %v7571_v26 = vrot.slane %v16426_v44, %v19490_v63  ;;  %v11941_v38 = vpop.eup %11940 }
 0xb63   :  { %v7949_v12 = vsub.f32 %v19850_v11, %v7539_v33  ;;  %11952 = vpow2.f32 %v8406_v8  ;;  %v8404_v11 = vmul.f32 1.442695, %v7934_v16  ;;  %v11943_v46 = vpop.eup %11942  ;;  %v17038_v8 = vrot.slane %v16428_v61, %v19493_v52 }
 0xb64   :  { %v17013_v57 = vpop.permute.xlu0 %9183  ;;  %11954 = vpow2.f32 %v8460_v56  ;;  %v19859_v56 = vld [vmem:[#allocation409_spill] sm:$0xff] }
 0xb65   :  { %19848 = vst [vmem:[#allocation33_spill] sm:$0xff] %v17013_v57  ;;  %v17015_v21 = vpop.permute.xlu1 %9174  ;;  %9384 = vperm.xlu0 %11358, %v11933_v55   ;;  %v8434_v55 = vmul.f32 1.442695, %v7949_v12 }
 0xb66   :  { %19849 = vst [vmem:[#allocation51_spill] sm:$0xff] %v17015_v21  ;;  %9375 = vperm.xlu1 %11359, %v11935_v53   ;;  %v19854_v53 = vld [vmem:[#allocation206_spill] sm:$0xff] }
 0xb67   :  { %v7965_v63 = vsub.f32 %v19854_v53, %v7571_v26  ;;  %v19855_v21 = vld [vmem:[#allocation414_spill] sm:$0xff]  ;;  %11956 = vpow2.f32 %v8434_v55  ;;  %v7964_v53 = vsub.f32 %v19859_v56, %v7571_v26  ;;  %v7491_v26 = vrot.slane %v16420_v41, %v19502_v20 }
 0xb68   :  { %v17021_v10 = vpop.permute.xlu0 %9189  ;;  %v7948_v36 = vsub.f32 %v19855_v21, %v7539_v33  ;;  %v11945_v21 = vpop.eup %11944  ;;  %v7523_v33 = vrot.slane %v16418_v39, %v19502_v20  ;;  %11958 = vpow2.f32 %v8404_v11  ;;  %v19865_v11 = vld [vmem:[#allocation413_spill] sm:$0xff]  ;;  %v17058_v56 = vrot.slane %v16426_v44, %v19493_v52 }
 0xb69   :  { %19852 = vst [vmem:[#allocation55_spill] sm:$0xff] %v17021_v10  ;;  %v17023_v42 = vpop.permute.xlu1 %9180  ;;  %9420 = vperm.xlu0 %11358, %v11937_v18   ;;  %v7519_v18 = vrot.slane %v16418_v39, %v19499_v15  ;;  %v19858_v10 = vld [vmem:[#allocation375_spill] sm:$0xff]  ;;  %v8466_v12 = vmul.f32 1.442695, %v7965_v63  ;;  %v19863_v63 = vld [vmem:[#allocation370_spill] sm:$0xff] }
 0xb6a   :  { %19853 = vst [vmem:[#allocation57_spill] sm:$0xff] %v17023_v42  ;;  %9381 = vperm.xlu1 %11359, %v11939_v6   ;;  %v7937_v6 = vsub.f32 %v19858_v10, %v7515_v14  ;;  %v8432_v16 = vmul.f32 1.442695, %v7948_v36  ;;  %v7527_v10 = vrot.slane %v16418_v39, %v19505_v48  ;;  %v19862_v42 = vld [vmem:[#allocation366_spill] sm:$0xff]  ;;  %v7951_v36 = vsub.f32 %v19865_v11, %v17038_v8 }
 0xb6b   :  { %v7936_v55 = vsub.f32 %v19862_v42, %v7515_v14  ;;  %v7938_v57 = vsub.f32 %v19863_v63, %v7519_v18  ;;  %11960 = vpow2.f32 %v8466_v12  ;;  %v19866_v39 = vld [vmem:[#allocation374_spill] sm:$0xff]  ;;  %v19867_v14 = vld [vmem:[#allocation383_spill] sm:$0xff]  ;;  %v17068_v11 = vrot.slane %v16420_v41, %v19505_v48 }
 0xb6c   :  { %v17029_v49 = vpop.permute.xlu0 %9195  ;;  %v8410_v23 = vmul.f32 1.442695, %v7937_v6  ;;  %v7940_v42 = vsub.f32 %v19866_v39, %v7523_v33  ;;  %v7941_v63 = vsub.f32 %v19867_v14, %v7523_v33  ;;  %11962 = vpow2.f32 %v8432_v16  ;;  %v19869_v6 = vld [vmem:[#allocation378_spill] sm:$0xff]  ;;  %v19872_v33 = vld [vmem:[#allocation199_spill] sm:$0xff] }
 0xb6d   :  { %19856 = vst [vmem:[#allocation239_spill] sm:$0xff] %v17029_v49  ;;  %v17031_v43 = vpop.permute.xlu1 %9186  ;;  %9426 = vperm.xlu0 %11358, %v11941_v38   ;;  %v11947_v49 = vpop.eup %11946  ;;  %v8408_v12 = vmul.f32 1.442695, %v7936_v55  ;;  %v8412_v39 = vmul.f32 1.442695, %v7938_v57  ;;  %v7923_v16 = vsub.f32 %v19872_v33, %v16936_v35  ;;  %v19877_v35 = vld [vmem:[#allocation7_spill] sm:$0xff] }
 0xb6e   :  { %19857 = vst [vmem:[#allocation53_spill] sm:$0xff] %v17031_v43  ;;  %9417 = vperm.xlu1 %11359, %v11943_v46   ;;  %v19864_v43 = vld [vmem:[#allocation379_spill] sm:$0xff]  ;;  %11964 = vpow2.f32 %v8410_v23  ;;  %v8416_v41 = vmul.f32 1.442695, %v7940_v42  ;;  %v8418_v28 = vmul.f32 1.442695, %v7941_v63 }
 0xb6f   :  { %v7939_v27 = vsub.f32 %v19864_v43, %v7519_v18  ;;  %v8464_v43 = vmul.f32 1.442695, %v7964_v53  ;;  %v19873_v53 = vld [vmem:[#allocation406_spill] sm:$0xff]  ;;  %v19878_v23 = vld [vmem:[#allocation196_spill] sm:$0xff] }
 0xb70   :  { %v17043_v38 = vpop.permute.xlu0 %9201  ;;  %v7924_v14 = vsub.f32 %v19873_v53, %v7491_v26  ;;  %v7926_v33 = vsub.f32 %v19878_v23, %v17068_v11 }
 0xb71   :  { %19860 = vst [vmem:[#allocation231_spill] sm:$0xff] %v17043_v38  ;;  %v17047_v46 = vpop.permute.xlu1 %9192  ;;  %9468 = vperm.xlu0 %11358, %v11945_v21   ;;  %v11949_v21 = vpop.eup %11948  ;;  %v7942_v38 = vsub.f32 %v19869_v6, %v7527_v10  ;;  %v8414_v37 = vmul.f32 1.442695, %v7939_v27  ;;  %v8438_v6 = vmul.f32 1.442695, %v7951_v36  ;;  %11966 = vpow2.f32 %v8464_v43 }
 0xb72   :  { %19861 = vst [vmem:[#allocation65_spill] sm:$0xff] %v17047_v46  ;;  %9423 = vperm.xlu1 %11359, %v11947_v49   ;;  %v11951_v49 = vpop.eup %11950  ;;  %v19870_v46 = vld [vmem:[#allocation387_spill] sm:$0xff]  ;;  %v7547_v36 = vrot.slane %v16428_v61, %v19496_v3  ;;  %v17092_v43 = vmul.f32 1.442695, %v7923_v16 }
 0xb73   :  { %v7943_v29 = vsub.f32 %v19870_v46, %v7527_v10  ;;  %v19874_v10 = vld [vmem:[#allocation408_spill] sm:$0xff]  ;;  %v8420_v55 = vmul.f32 1.442695, %v7942_v38  ;;  %v7551_v38 = vrot.slane %v16428_v61, %v19499_v15  ;;  %11968 = vpow2.f32 %v8438_v6 }
 0xb74   :  { %v17062_v18 = vpop.permute.xlu0 %9207  ;;  %v7967_v46 = vsub.f32 %v19874_v10, %v17058_v56  ;;  %11970 = vpow2.f32 %v8408_v12  ;;  %v19885_v12 = vld [vmem:[#allocation49_spill] sm:$0xff] }
 0xb75   :  { %19868 = vst [vmem:[#allocation251_spill] sm:$0xff] %v17062_v18  ;;  %v17070_v52 = vpop.permute.xlu1 %9198  ;;  %9474 = vperm.xlu0 %11358, %v11949_v21   ;;  %v11953_v18 = vpop.eup %11952  ;;  %v17088_v42 = vmul.f32 1.442695, %v7943_v29  ;;  %v7559_v29 = vrot.slane %v16428_v61, %v19505_v48  ;;  %11972 = vpow2.f32 %v8412_v39  ;;  %v19887_v39 = vld [vmem:[#allocation235_spill] sm:$0xff] }
 0xb76   :  { %19871 = vst [vmem:[#allocation243_spill] sm:$0xff] %v17070_v52  ;;  %9465 = vperm.xlu1 %11359, %v11951_v49   ;;  %v19875_v52 = vld [vmem:[#allocation225_spill] sm:$0xff]  ;;  %v11955_v27 = vpop.eup %11954  ;;  %v7925_v49 = vsub.f32 %v19877_v35, %v7491_v26  ;;  %v17096_v26 = vmul.f32 1.442695, %v7924_v14  ;;  %v8470_v10 = vmul.f32 1.442695, %v7967_v46  ;;  %11974 = vpow2.f32 %v8414_v37 }
 0xb77   :  { %v7950_v21 = vsub.f32 %v19875_v52, %v17038_v8  ;;  %v19880_v8 = vld [vmem:[#allocation28_spill] sm:$0xff]  ;;  %v7555_v52 = vrot.slane %v16428_v61, %v19502_v20  ;;  %v11957_v35 = vpop.eup %11956  ;;  %v7953_v61 = vsub.f32 %v19885_v12, %v7547_v36  ;;  %v19891_v37 = vld [vmem:[#allocation227_spill] sm:$0xff] }
 0xb78   :  { %v17079_v57 = vpop.permute.xlu0 %9213  ;;  %v7927_v63 = vsub.f32 %v19880_v8, %v17068_v11  ;;  %v19881_v11 = vld [vmem:[#allocation35_spill] sm:$0xff]  ;;  %v11959_v8 = vpop.eup %11958  ;;  %v17106_v14 = vmul.f32 1.442695, %v7925_v49  ;;  %v7955_v49 = vsub.f32 %v19887_v39, %v7551_v38  ;;  %11976 = vpow2.f32 %v8470_v10 }
 0xb79   :  { %19876 = vst [vmem:[#allocation5_spill] sm:$0xff] %v17079_v57  ;;  %v17086_v53 = vpop.permute.xlu1 %9204  ;;  %9390 = vperm.xlu0 %11358, %v11953_v18   ;;  %v8436_v18 = vmul.f32 1.442695, %v7950_v21  ;;  %v7966_v16 = vsub.f32 %v19881_v11, %v17058_v56  ;;  %v19883_v57 = vld [vmem:[#allocation233_spill] sm:$0xff]  ;;  %v17117_v56 = vrot.slane %v16426_v44, %v19496_v3  ;;  %v19888_v11 = vld [vmem:[#allocation63_spill] sm:$0xff]  ;;  %v7959_v47 = vsub.f32 %v19891_v37, %v7559_v29 }
 0xb7a   :  { %19879 = vst [vmem:[#allocation21_spill] sm:$0xff] %v17086_v53  ;;  %9471 = vperm.xlu1 %11359, %v11955_v27   ;;  %v17108_v27 = vmul.f32 1.442695, %v7926_v33  ;;  %v7952_v6 = vsub.f32 %v19883_v57, %v7547_v36  ;;  %v19886_v21 = vld [vmem:[#allocation237_spill] sm:$0xff]  ;;  %v7956_v33 = vsub.f32 %v19888_v11, %v7555_v52  ;;  %v11961_v57 = vpop.eup %11960  ;;  %v17126_v3 = vmul.f32 1.442695, %v7927_v63 }
 0xb7b   :  { %v7954_v53 = vsub.f32 %v19886_v21, %v7551_v38  ;;  %11978 = vpow2.f32 %v8436_v18  ;;  %v8468_v36 = vmul.f32 1.442695, %v7966_v16  ;;  %v11963_v21 = vpop.eup %11962  ;;  %v7583_v38 = vrot.slane %v16426_v44, %v19499_v15 }
 0xb7c   :  { %v17104_v23 = vpop.permute.xlu0 %9219  ;;  %11980 = vpow2.f32 %v8416_v41  ;;  %v17136_v10 = vrot.slane %v16426_v44, %v19502_v20  ;;  %v17142_v63 = vmul.f32 1.442695, %v7955_v49  ;;  %v17144_v15 = vmul.f32 1.442695, %v7956_v33  ;;  %v11965_v16 = vpop.eup %11964  ;;  %v19894_v49 = vld [vmem:[#allocation218_spill] sm:$0xff]  ;;  %v19895_v33 = vld [vmem:[#allocation37_spill] sm:$0xff] }
 0xb7d   :  { %19882 = vst [vmem:[#allocation169_spill] sm:$0xff] %v17104_v23  ;;  %v17111_v46 = vpop.permute.xlu1 %9210  ;;  %9432 = vperm.xlu0 %11358, %v11957_v35   ;;  %v19889_v23 = vld [vmem:[#allocation2_spill] sm:$0xff]  ;;  %11982 = vpow2.f32 %v8418_v28  ;;  %v17140_v41 = vmul.f32 1.442695, %v7954_v53  ;;  %v17150_v28 = vmul.f32 1.442695, %v7959_v47  ;;  %v7970_v11 = vsub.f32 %v19894_v49, %v7583_v38 }
 0xb7e   :  { %19884 = vst [vmem:[#allocation170_spill] sm:$0xff] %v17111_v46  ;;  %9387 = vperm.xlu1 %11359, %v11959_v8   ;;  %v7957_v50 = vsub.f32 %v19889_v23, %v7555_v52  ;;  %v19890_v46 = vld [vmem:[#allocation241_spill] sm:$0xff]  ;;  %v8440_v8 = vmul.f32 1.442695, %v7952_v6  ;;  %v17132_v52 = vmul.f32 1.442695, %v7953_v61  ;;  %11984 = vpow2.f32 %v8420_v55  ;;  %v11967_v6 = vpop.eup %11966 }
 0xb7f   :  { %v7958_v35 = vsub.f32 %v19890_v46, %v7559_v29  ;;  %v19892_v29 = vld [vmem:[#allocation214_spill] sm:$0xff]  ;;  %11986 = vpow2.f32 %v8468_v36  ;;  %v17156_v55 = vrot.slane %v16426_v44, %v19505_v48  ;;  %v19896_v47 = vld [vmem:[#allocation43_spill] sm:$0xff]  ;;  %v9596_v36 = vrot.slane %v16442_v34, %v19301_v22 }
 0xb80   :  { %v17124_v12 = vpop.permute.xlu0 %9225  ;;  %v7968_v18 = vsub.f32 %v19892_v29, %v17117_v56  ;;  %v17146_v23 = vmul.f32 1.442695, %v7957_v50  ;;  %v19893_v53 = vld [vmem:[#allocation210_spill] sm:$0xff]  ;;  %v7971_v50 = vsub.f32 %v19895_v33, %v7583_v38  ;;  %v9600_v48 = vrot.slane %v16444_v30, %v19293_v9  ;;  %v11969_v29 = vpop.eup %11968 }
 0xb81   :  { %v17130_v39 = vpop.permute.xlu1 %9216  ;;  %9480 = vperm.xlu0 %11358, %v11961_v57   ;;  %v17148_v61 = vmul.f32 1.442695, %v7958_v35  ;;  %v7969_v46 = vsub.f32 %v19893_v53, %v17117_v56  ;;  %v7972_v35 = vsub.f32 %v19896_v47, %v17136_v10  ;;  %11988 = vpow2.f32 %v8440_v8 }
 0xb82   :  { %9429 = vperm.xlu1 %11359, %v11963_v21   ;;  %v8472_v37 = vmul.f32 1.442695, %v7968_v18  ;;  %v9587_v56 = vrot.slane %v16434_v45, %v19301_v22  ;;  %v9605_v21 = vrot.slane %v16450_v40, %v19301_v22  ;;  %v9609_v38 = vrot.slane %v16452_v54, %v19293_v9  ;;  %v11971_v45 = vpop.eup %11970  ;;  %v19897_v40 = vld [vmem:[#allocation39_spill] sm:$0xff] }
 0xb83   :  { %11990 = vpow2.f32 %v17092_v43  ;;  %v9591_v34 = vrot.slane %v16436_v19, %v19293_v9  ;;  %v9614_v30 = vrot.slane %v16458_v2, %v19301_v22  ;;  %v9618_v8 = vrot.slane %v16460_v58, %v19293_v9  ;;  %v11973_v2 = vpop.eup %11972 }
 0xb84   :  { %v17152_v20 = vpop.permute.xlu0 %9231  ;;  %11992 = vpow2.f32 %v17088_v42  ;;  %v7973_v54 = vsub.f32 %v19897_v40, %v17136_v10  ;;  %v8474_v49 = vmul.f32 1.442695, %v7969_v46  ;;  %v9601_v58 = vsel %vm1210_vm7, %v9600_v48, %v9596_v36  ;;  %v17199_v10 = vpop.eup %11974 }
 0xb85   :  { %v17162_v57 = vpop.permute.xlu1 %9222  ;;  %9396 = vperm.xlu0 %11358, %v11965_v16   ;;  %v19898_v16 = vld [vmem:[#allocation222_spill] sm:$0xff]  ;;  %v9623_v33 = vrot.slane %v16466_v5, %v19301_v22  ;;  %v9627_v42 = vrot.slane %v16468_v60, %v19293_v9  ;;  %11994 = vpow2.f32 %v8472_v37  ;;  %v17201_v47 = vmul.f32 1.442695, %v7970_v11  ;;  %v11977_v19 = vpop.eup %11976 }
 0xb86   :  { %9477 = vperm.xlu1 %11359, %v11967_v6   ;;  %v7974_v43 = vsub.f32 %v19898_v16, %v17156_v55  ;;  %v19899_v6 = vld [vmem:[#allocation216_spill] sm:$0xff]  ;;  %v17203_v40 = vmul.f32 1.442695, %v7971_v50  ;;  %11996 = vpow2.f32 %v17096_v26  ;;  %v17207_v46 = vmul.f32 1.442695, %v7972_v35 }
 0xb87   :  { %v9592_v5 = vsel %vm1210_vm7, %v9591_v34, %v9587_v56  ;;  %v9619_v36 = vsel %vm1210_vm7, %v9618_v8, %v9614_v30  ;;  %11998 = vpow2.f32 %v17106_v14  ;;  %v9632_v50 = vrot.slane %v16474_v32, %v19301_v22 }
 0xb88   :  { %v17183_v18 = vpop.permute.xlu0 %9237  ;;  %v11979_v48 = vpop.eup %11978  ;;  %v10671_v11 = vsel %vm1275_vm8, %v9601_v58, %v9592_v5  ;;  %v9636_v37 = vrot.slane %v16476_v17, %v19293_v9  ;;  %12000 = vpow2.f32 %v17108_v27  ;;  %v17224_v56 = vmul.f32 1.442695, %v7973_v54  ;;  %v19903_v5 = vld [vmem:[#allocation85_spill] sm:$0xff] }
 0xb89   :  { %v17192_v53 = vpop.permute.xlu1 %9228  ;;  %9438 = vperm.xlu0 %11358, %v11969_v29   ;;  %v9610_v29 = vsel %vm1210_vm7, %v9609_v38, %v9605_v21  ;;  %v17221_v35 = vpop.eup %11980  ;;  %v9628_v14 = vsel %vm1210_vm7, %v9627_v42, %v9623_v33  ;;  %12002 = vpow2.f32 %v17126_v3  ;;  %v9641_v17 = vrot.slane %v16482_v59, %v19301_v22 }
 0xb8a   :  { %9393 = vperm.xlu1 %11359, %v11971_v45   ;;  %v10672_v21 = vsel %vm1277_vm9, %v9610_v29, %v10671_v11  ;;  %v17228_v38 = vpop.eup %11982  ;;  %v9645_v34 = vrot.slane %v16484_v25, %v19293_v9  ;;  %12004 = vpow2.f32 %v17132_v52  ;;  %v9650_v30 = vrot.slane %v16490_v13, %v19301_v22 }
 0xb8b   :  { %v10673_v32 = vsel %vm1279_vm10, %v9619_v36, %v10672_v21  ;;  %v17236_v27 = vpop.eup %11984  ;;  %v9654_v8 = vrot.slane %v16492_v24, %v19293_v9  ;;  %v9528_v3 = vrot.slane %v16516_v0, %v19293_v9  ;;  %12006 = vpow2.f32 %v17140_v41  ;;  %v19904_v21 = vld [vmem:[#allocation267_spill] sm:$0xff] }
 0xb8c   :  { %v17211_v60 = vpop.permute.xlu0 %9243  ;;  %v11987_v54 = vpop.eup %11986  ;;  %v10674_v59 = vsel %vm1281_vm11, %v9628_v14, %v10673_v32  ;;  %v9637_v25 = vsel %vm1210_vm7, %v9636_v37, %v9632_v50  ;;  %v9537_v52 = vrot.slane %v16524_v7, %v19293_v9  ;;  %12008 = vpow2.f32 %v17142_v63 }
 0xb8d   :  { %v17219_v26 = vpop.permute.xlu1 %9234  ;;  %9486 = vperm.xlu0 %11358, %v11977_v19   ;;  %v9519_v13 = vrot.slane %v16498_v31, %v19293_v9  ;;  %v9515_v24 = vrot.slane %v16500_v4, %v19301_v22  ;;  %v9524_v0 = vrot.slane %v16508_v1, %v19301_v22  ;;  %12010 = vpow2.f32 %v17144_v15  ;;  %v19902_v15 = vld [vmem:[#allocation83_spill] sm:$0xff] }
 0xb8e   :  { %9435 = vperm.xlu1 %11359, %v11979_v48   ;;  %v9646_v41 = vsel %vm1210_vm7, %v9645_v34, %v9641_v17  ;;  %v9533_v7 = vrot.slane %v16506_v51, %v19301_v22  ;;  %v11989_v58 = vpop.eup %11988  ;;  %12012 = vpow2.f32 %v8474_v49  ;;  %v9655_v4 = vsel %vm1210_vm7, %v9654_v8, %v9650_v30  ;;  %v19905_v17 = vld [vmem:[#allocation90_spill] sm:$0xff] }
 0xb8f   :  { %v9529_v31 = vsel %vm1210_vm7, %v9528_v3, %v9524_v0  ;;  %v10675_v1 = vsel %vm1283_vm12, %v9637_v25, %v10674_v59  ;;  %12014 = vpow2.f32 %v17146_v23  ;;  %v9542_v29 = vrot.slane %v19902_v15, %v19301_v22  ;;  %v19908_v59 = vld [vmem:[#allocation87_spill] sm:$0xff] }
 0xb90   :  { %v17245_v45 = vpop.permute.xlu0 %9249  ;;  %v11991_v42 = vpop.eup %11990  ;;  %v9538_v51 = vsel %vm1210_vm7, %v9537_v52, %v9533_v7  ;;  %v9555_v36 = vrot.slane %v19903_v5, %v19293_v9  ;;  %12016 = vpow2.f32 %v17148_v61  ;;  %v17286_v11 = vmul.f32 1.442695, %v7974_v43 }
 0xb91   :  { %v17252_v19 = vpop.permute.xlu1 %9240  ;;  %9399 = vperm.xlu0 %11358, %v11973_v2   ;;  %v19900_v2 = vld [vmem:[#allocation89_spill] sm:$0xff]  ;;  %v17280_v48 = vpop.eup %11992  ;;  %v9520_v23 = vsel %vm1210_vm7, %v9519_v13, %v9515_v24  ;;  %v10676_v50 = vsel %vm1285_vm13, %v9646_v41, %v10675_v1  ;;  %v9551_v14 = vrot.slane %v19904_v21, %v19301_v22  ;;  %v9564_v61 = vrot.slane %v19905_v17, %v19293_v9 }
 0xb92   :  { %9483 = vperm.xlu1 %11359, %v11987_v54   ;;  %v9546_v63 = vrot.slane %v19900_v2, %v19293_v9  ;;  %v10664_v37 = vsel %vm1275_vm8, %v9529_v31, %v9520_v23  ;;  %v11995_v34 = vpop.eup %11994  ;;  %12018 = vpow2.f32 %v17150_v28  ;;  %v19906_v16 = vsub.f32 %v19899_v6, %v17156_v55  ;;  %v19909_v28 = vld [vmem:[#allocation91_spill] sm:$0xff]  ;;  %v19910_v41 = vld [vmem:[#allocation269_spill] sm:$0xff] }
 0xb93   :  { %v10665_v30 = vsel %vm1277_vm9, %v9538_v51, %v10664_v37  ;;  %v17306_v3 = vsel %vm1287_vm14, %v9655_v4, %v10676_v50  ;;  %v11997_v54 = vpop.eup %11996  ;;  %v9560_v25 = vrot.slane %v19908_v59, %v19301_v22  ;;  %v9556_v52 = vsel %vm1210_vm7, %v9555_v36, %v9551_v14  ;;  %v19911_v2 = vld [vmem:[#allocation101_spill] sm:$0xff]  ;;  %v19916_v36 = vld [vmem:[#allocation95_spill] sm:$0xff] }
 0xb94   :  { %v17268_v33 = vpop.permute.xlu0 %9255  ;;  %v9547_v32 = vsel %vm1210_vm7, %v9546_v63, %v9542_v29  ;;  %v17300_v43 = vmul.f32 1.442695, %v19906_v16  ;;  %v9573_v13 = vrot.slane %v19909_v28, %v19293_v9  ;;  %v9744_v55 = vrot.slane %v16580_v62, %v19293_v9  ;;  %v17317_v24 = vpop.eup %11998  ;;  %v19912_v31 = vld [vmem:[#allocation93_spill] sm:$0xff]  ;;  %v19918_v14 = vld [vmem:[#allocation283_spill] sm:$0xff] }
 0xb95   :  { %19901 = vst [vmem:[#allocation22_spill] sm:$0xff] %v17268_v33  ;;  %v17278_v49 = vpop.permute.xlu1 %9246  ;;  %9441 = vperm.xlu0 %11358, %v11989_v58   ;;  %12020 = vpow2.f32 %v17201_v47  ;;  %v10666_v0 = vsel %vm1279_vm10, %v9547_v32, %v10665_v30  ;;  %v9569_v7 = vrot.slane %v19910_v41, %v19301_v22  ;;  %v9753_v63 = vrot.slane %v19911_v2, %v19293_v9  ;;  %v17326_v58 = vpop.eup %12000  ;;  %v19913_v1 = vld [vmem:[#allocation273_spill] sm:$0xff]  ;;  %v19924_v2 = vld [vmem:[#allocation11_spill] sm:$0xff] }
 0xb96   :  { %9354 = vperm.xlu1 %11359, %v11991_v42   ;;  %v9565_v62 = vsel %vm1210_vm7, %v9564_v61, %v9560_v25  ;;  %v9740_v4 = vrot.slane %v19912_v31, %v19301_v22  ;;  %v9735_v47 = vrot.slane %v19913_v1, %v19293_v9  ;;  %v19914_v42 = vld [vmem:[#allocation97_spill] sm:$0xff]  ;;  %v17335_v29 = vpop.eup %12002  ;;  %12022 = vpow2.f32 %v17203_v40  ;;  %v19919_v40 = vld [vmem:[#allocation286_spill] sm:$0xff] }
 0xb97   :  { %v9762_v15 = vrot.slane %v19914_v42, %v19293_v9  ;;  %v10667_v51 = vsel %vm1281_vm11, %v9556_v52, %v10666_v0  ;;  %v9749_v23 = vrot.slane %v19916_v36, %v19301_v22  ;;  %v12005_v37 = vpop.eup %12004  ;;  %v9574_v21 = vsel %vm1210_vm7, %v9573_v13, %v9569_v7  ;;  %v19921_v30 = vld [vmem:[#allocation281_spill] sm:$0xff]  ;;  %v19925_v42 = vld [vmem:[#allocation279_spill] sm:$0xff] }
 0xb98   :  { %v17303_v8 = vpop.permute.xlu0 %9261  ;;  %v9758_v32 = vrot.slane %v19918_v14, %v19301_v22  ;;  %v9745_v17 = vsel %vm1210_vm7, %v9744_v55, %v9740_v4  ;;  %v9771_v61 = vrot.slane %v19919_v40, %v19293_v9  ;;  %v12007_v16 = vpop.eup %12006  ;;  %12024 = vpow2.f32 %v17207_v46  ;;  %v19922_v55 = vld [vmem:[#allocation275_spill] sm:$0xff]  ;;  %v19923_v41 = vld [vmem:[#allocation277_spill] sm:$0xff] }
 0xb99   :  { %19907 = vst [vmem:[#allocation171_spill] sm:$0xff] %v17303_v8  ;;  %v17315_v6 = vpop.permute.xlu1 %9252  ;;  %9489 = vperm.xlu0 %11358, %v11995_v34   ;;  %v9582_v59 = vrot.slane %v19921_v30, %v19293_v9  ;;  %v9754_v25 = vsel %vm1210_vm7, %v9753_v63, %v9749_v23  ;;  %v10668_v52 = vsel %vm1283_vm12, %v9565_v62, %v10667_v51  ;;  %v17358_v28 = vpop.eup %12008  ;;  %12026 = vpow2.f32 %v17224_v56  ;;  %v19929_v14 = vld [vmem:[#allocation117_spill] sm:$0xff]  ;;  %v19930_v30 = vld [vmem:[#allocation107_spill] sm:$0xff]  ;;  %v19985_v8 = vld [vmem:[#allocation350_spill] sm:$0xff] }
 0xb9a   :  { %9402 = vperm.xlu1 %11359, %v17199_v10   ;;  %v19915_v10 = vld [vmem:[#allocation271_spill] sm:$0xff]  ;;  %v9767_v0 = vrot.slane %v19922_v55, %v19301_v22  ;;  %v9780_v46 = vrot.slane %v19923_v41, %v19293_v9  ;;  %v17366_v7 = vpop.eup %12010  ;;  %v9578_v63 = vrot.slane %v19924_v2, %v19301_v22  ;;  %v10669_v4 = vsel %vm1285_vm13, %v9574_v21, %v10668_v52 }
 0xb9b   :  { %v9731_v5 = vrot.slane %v19915_v10, %v19301_v22  ;;  %v12013_v1 = vpop.eup %12012  ;;  %v19926_v10 = vld [vmem:[#allocation295_spill] sm:$0xff]  ;;  %12028 = vpow2.f32 %v17286_v11 }
 0xb9c   :  { %v17343_v50 = vpop.permute.xlu0 %9267  ;;  %v9772_v51 = vsel %vm1210_vm7, %v9771_v61, %v9767_v0  ;;  %v9672_v56 = vrot.slane %v19926_v10, %v19293_v9  ;;  %v17384_v36 = vpop.eup %12014  ;;  %12030 = vpow2.f32 %v17300_v43 }
 0xb9d   :  { %19917 = vst [vmem:[#allocation172_spill] sm:$0xff] %v17343_v50  ;;  %v17351_v34 = vpop.permute.xlu1 %9258  ;;  %9357 = vperm.xlu0 %11358, %v11997_v54   ;;  %v9736_v13 = vsel %vm1210_vm7, %v9735_v47, %v9731_v5  ;;  %v9763_v54 = vsel %vm1210_vm7, %v9762_v15, %v9758_v32  ;;  %v9776_v15 = vrot.slane %v19925_v42, %v19301_v22  ;;  %v17392_v40 = vpop.eup %12016 }
 0xb9e   :  { %19920 = vst [vmem:[#allocation23_spill] sm:$0xff] %v17351_v34  ;;  %9444 = vperm.xlu1 %11359, %v12005_v37   ;;  %v10685_v62 = vsel %vm1275_vm8, %v9745_v17, %v9736_v13  ;;  %v19928_v37 = vld [vmem:[#allocation103_spill] sm:$0xff]  ;;  %v9681_v32 = vrot.slane %v19929_v14, %v19293_v9  ;;  %v9583_v17 = vsel %vm1210_vm7, %v9582_v59, %v9578_v63  ;;  %v19934_v59 = vld [vmem:[#allocation109_spill] sm:$0xff] }
 0xb9f   :  { %v10686_v47 = vsel %vm1277_vm9, %v9754_v25, %v10685_v62  ;;  %v9785_v21 = vrot.slane %v19928_v37, %v19301_v22  ;;  %v9781_v61 = vsel %vm1210_vm7, %v9780_v46, %v9776_v15  ;;  %v19931_v25 = vld [vmem:[#allocation289_spill] sm:$0xff]  ;;  %v19932_v13 = vld [vmem:[#allocation111_spill] sm:$0xff]  ;;  %v9677_v2 = vrot.slane %v19934_v59, %v19301_v22 }
 0xba0   :  { %v17372_v31 = vpop.permute.xlu0 %9273  ;;  %v10687_v23 = vsel %vm1279_vm10, %v9763_v54, %v10686_v47  ;;  %v9668_v52 = vrot.slane %v19931_v25, %v19301_v22  ;;  %v9663_v55 = vrot.slane %v19932_v13, %v19293_v9  ;;  %v19933_v54 = vld [vmem:[#allocation99_spill] sm:$0xff]  ;;  %v19936_v47 = vld [vmem:[#allocation105_spill] sm:$0xff] }
 0xba1   :  { %v17381_v5 = vpop.permute.xlu1 %9264  ;;  %9405 = vperm.xlu0 %11358, %v17221_v35   ;;  %v9789_v35 = vrot.slane %v19930_v30, %v19293_v9  ;;  %v10688_v0 = vsel %vm1281_vm11, %v9772_v51, %v10687_v23  ;;  %v9794_v41 = vrot.slane %v19933_v54, %v19301_v22  ;;  %v19935_v63 = vld [vmem:[#allocation299_spill] sm:$0xff]  ;;  %v9659_v42 = vrot.slane %v19936_v47, %v19301_v22  ;;  %v19940_v30 = vld [vmem:[#allocation113_spill] sm:$0xff]  ;;  %v19941_v54 = vld [vmem:[#allocation302_spill] sm:$0xff] }
 0xba2   :  { %19927 = vst [vmem:[#allocation173_spill] sm:$0xff] %v17381_v5  ;;  %9492 = vperm.xlu1 %11359, %v12013_v1   ;;  %v9690_v46 = vrot.slane %v19935_v63, %v19293_v9  ;;  %v17410_v1 = vpop.eup %12018  ;;  %v19937_v15 = vld [vmem:[#allocation291_spill] sm:$0xff]  ;;  %v9673_v51 = vsel %vm1210_vm7, %v9672_v56, %v9668_v52  ;;  %v9686_v25 = vrot.slane %v19940_v30, %v19301_v22 }
 0xba3   :  { %v9798_v10 = vrot.slane %v19937_v15, %v19293_v9  ;;  %v19938_v23 = vld [vmem:[#allocation15_spill] sm:$0xff]  ;;  %v9682_v13 = vsel %vm1210_vm7, %v9681_v32, %v9677_v2  ;;  %v9708_v59 = vrot.slane %v19941_v54, %v19293_v9  ;;  %v10689_v63 = vsel %vm1283_vm12, %v9781_v61, %v10688_v0  ;;  %v12021_v47 = vpop.eup %12020  ;;  %v19942_v15 = vld [vmem:[#allocation297_spill] sm:$0xff] }
 0xba4   :  { %v17408_v62 = vpop.permute.xlu0 %9279  ;;  %v9699_v37 = vrot.slane %v19938_v23, %v19293_v9  ;;  %v9790_v56 = vsel %vm1210_vm7, %v9789_v35, %v9785_v21  ;;  %v9664_v52 = vsel %vm1210_vm7, %v9663_v55, %v9659_v42  ;;  %v19943_v23 = vld [vmem:[#allocation305_spill] sm:$0xff]  ;;  %v19944_v2 = vld [vmem:[#allocation119_spill] sm:$0xff]  ;;  %v12023_v21 = vpop.eup %12022 }
 0xba5   :  { %v17419_v14 = vpop.permute.xlu1 %9270  ;;  %9447 = vperm.xlu0 %11358, %v12007_v16   ;;  %v9695_v16 = vrot.slane %v19942_v15, %v19301_v22  ;;  %v9717_v30 = vrot.slane %v19943_v23, %v19293_v9  ;;  %v10678_v32 = vsel %vm1275_vm8, %v9673_v51, %v9664_v52  ;;  %v9704_v54 = vrot.slane %v19944_v2, %v19301_v22  ;;  %v19945_v61 = vld [vmem:[#allocation125_spill] sm:$0xff]  ;;  %v19946_v55 = vld [vmem:[#allocation115_spill] sm:$0xff]  ;;  %v19947_v52 = vld [vmem:[#allocation120_spill] sm:$0xff] }
 0xba6   :  { %19939 = vst [vmem:[#allocation174_spill] sm:$0xff] %v17419_v14  ;;  %9360 = vperm.xlu1 %11359, %v17317_v24   ;;  %v9691_v24 = vsel %vm1210_vm7, %v9690_v46, %v9686_v25  ;;  %v9726_v0 = vrot.slane %v19945_v61, %v19293_v9  ;;  %v10679_v35 = vsel %vm1277_vm9, %v9682_v13, %v10678_v32  ;;  %v17454_v13 = vpop.eup %12024 }
 0xba7   :  { %v9713_v42 = vrot.slane %v19946_v55, %v19301_v22  ;;  %v9700_v15 = vsel %vm1210_vm7, %v9699_v37, %v9695_v16  ;;  %v9799_v51 = vsel %vm1210_vm7, %v9798_v10, %v9794_v41  ;;  %v9722_v46 = vrot.slane %v19947_v52, %v19301_v22 }
 0xba8   :  { %v17440_v44 = vpop.permute.xlu0 %9285  ;;  %v9709_v25 = vsel %vm1210_vm7, %v9708_v59, %v9704_v54  ;;  %v10307_v2 = vrot.slane %v17372_v31, %v19301_v22  ;;  %v10680_v37 = vsel %vm1279_vm10, %v9691_v24, %v10679_v35  ;;  %v10670_v41 = vsel %vm1287_vm14, %v9583_v17, %v10669_v4  ;;  %v17468_v54 = vpop.eup %12026  ;;  %v19949_v24 = vld [vmem:[#allocation131_spill] sm:$0xff] }
 0xba9   :  { %v9277_v23 = vpop.permute.xlu1 %9276  ;;  %9495 = vperm.xlu0 %11358, %v12021_v47   ;;  %v9718_v47 = vsel %vm1210_vm7, %v9717_v30, %v9713_v42  ;;  %v10690_v10 = vsel %vm1285_vm13, %v9790_v56, %v10689_v63  ;;  %v10681_v16 = vsel %vm1281_vm11, %v9700_v15, %v10680_v37  ;;  %v9727_v32 = vsel %vm1210_vm7, %v9726_v0, %v9722_v46  ;;  %v19948_v30 = vld [vmem:[#allocation309_spill] sm:$0xff]  ;;  %v19951_v42 = vld [vmem:[#allocation319_spill] sm:$0xff] }
 0xbaa   :  { %v10311_v61 = vrot.slane %v9277_v23, %v19293_v9  ;;  %9408 = vperm.xlu1 %11359, %v17228_v38   ;;  %v10691_v38 = vsel %vm1287_vm14, %v9799_v51, %v10690_v10  ;;  %v9888_v4 = vrot.slane %v19948_v30, %v19293_v9  ;;  %v10682_v63 = vsel %vm1283_vm12, %v9709_v25, %v10681_v16  ;;  %v19952_v23 = vld [vmem:[#allocation121_spill] sm:$0xff]  ;;  %v19957_v16 = vld [vmem:[#allocation316_spill] sm:$0xff] }
 0xbab   :  { %v17479_v56 = vsel %vm1290_vm6, %v17306_v3, 0.0  ;;  %v9879_v0 = vrot.slane %v19949_v24, %v19293_v9  ;;  %v17486_v11 = vsel %vm1290_vm6, %v10670_v41, 0.0  ;;  %v10683_v35 = vsel %vm1285_vm13, %v9718_v47, %v10682_v63  ;;  %v19954_v46 = vld [vmem:[#allocation133_spill] sm:$0xff]  ;;  %v19956_v41 = vld [vmem:[#allocation127_spill] sm:$0xff] }
 0xbac   :  { %v17462_v59 = vsel %vm1210_vm7, %v10311_v61, %v10307_v2  ;;  %v17464_v31 = vpop.permute.xlu0 %9291  ;;  %v9816_v15 = vrot.slane %v19951_v42, %v19293_v9  ;;  %v10684_v3 = vsel %vm1287_vm14, %v9727_v32, %v10683_v35  ;;  %v17495_v43 = vsel %vm1290_vm6, %v10691_v38, 0.0  ;;  %v19955_v2 = vld [vmem:[#allocation321_spill] sm:$0xff]  ;;  %v19958_v38 = vld [vmem:[#allocation140_spill] sm:$0xff] }
 0xbad   :  { %v17473_v17 = vpop.permute.xlu1 %9282  ;;  %9363 = vperm.xlu0 %11358, %v17326_v58   ;;  %v19950_v58 = vld [vmem:[#allocation123_spill] sm:$0xff]  ;;  %v9875_v51 = vrot.slane %v19952_v23, %v19301_v22  ;;  %v9897_v25 = vrot.slane %v19954_v46, %v19293_v9  ;;  %v9825_v61 = vrot.slane %v19955_v2, %v19293_v9  ;;  %v9812_v10 = vrot.slane %v19956_v41, %v19301_v22  ;;  %v19959_v35 = vld [vmem:[#allocation129_spill] sm:$0xff] }
 0xbae   :  { %9450 = vperm.xlu1 %11359, %v17358_v28   ;;  %v9884_v55 = vrot.slane %v19950_v58, %v19301_v22  ;;  %v19953_v28 = vld [vmem:[#allocation311_spill] sm:$0xff]  ;;  %v9807_v32 = vrot.slane %v19957_v16, %v19293_v9  ;;  %v9834_v30 = vrot.slane %v19958_v38, %v19293_v9  ;;  %v9821_v58 = vrot.slane %v19959_v35, %v19301_v22 }
 0xbaf   :  { %v9893_v52 = vrot.slane %v19953_v28, %v19301_v22  ;;  %v9880_v24 = vsel %vm1210_vm7, %v9879_v0, %v9875_v51  ;;  %v17523_v42 = vsel %vm1290_vm6, %v10684_v3, 0.0  ;;  %v19961_v23 = vld [vmem:[#allocation307_spill] sm:$0xff]  ;;  %v19963_v0 = vld [vmem:[#allocation329_spill] sm:$0xff] }
 0xbb0   :  { %v17505_v37 = vpop.permute.xlu0 %9297  ;;  %v9889_v47 = vsel %vm1210_vm7, %v9888_v4, %v9884_v55  ;;  %v19960_v4 = vld [vmem:[#allocation146_spill] sm:$0xff]  ;;  %v9803_v28 = vrot.slane %v19961_v23, %v19301_v22  ;;  %v19962_v46 = vld [vmem:[#allocation135_spill] sm:$0xff]  ;;  %v9852_v51 = vrot.slane %v19963_v0, %v19293_v9  ;;  %v9826_v3 = vsel %vm1210_vm7, %v9825_v61, %v9821_v58  ;;  %v19967_v61 = vld [vmem:[#allocation17_spill] sm:$0xff] }
 0xbb1   :  { %v17514_v63 = vpop.permute.xlu1 %9288  ;;  %9411 = vperm.xlu0 %11358, %v17236_v27   ;;  %v9843_v55 = vrot.slane %v19960_v4, %v19293_v9  ;;  %v9830_v2 = vrot.slane %v19962_v46, %v19301_v22  ;;  %v9817_v27 = vsel %vm1210_vm7, %v9816_v15, %v9812_v10  ;;  %v10699_v41 = vsel %vm1275_vm8, %v9889_v47, %v9880_v24  ;;  %v19965_v23 = vld [vmem:[#allocation138_spill] sm:$0xff]  ;;  %v19966_v10 = vld [vmem:[#allocation149_spill] sm:$0xff] }
 0xbb2   :  { %9498 = vperm.xlu1 %11359, %v12023_v21   ;;  %v9898_v16 = vsel %vm1210_vm7, %v9897_v25, %v9893_v52  ;;  %v19964_v21 = vld [vmem:[#allocation136_spill] sm:$0xff]  ;;  %v9808_v4 = vsel %vm1210_vm7, %v9807_v32, %v9803_v28  ;;  %v9848_v46 = vrot.slane %v19965_v23, %v19301_v22  ;;  %v9906_v0 = vrot.slane %v19966_v10, %v19293_v9  ;;  %v19972_v10 = vld [vmem:[#allocation147_spill] sm:$0xff] }
 0xbb3   :  { %v9839_v38 = vrot.slane %v19964_v21, %v19301_v22  ;;  %v9835_v15 = vsel %vm1210_vm7, %v9834_v30, %v9830_v2  ;;  %v10692_v52 = vsel %vm1275_vm8, %v9817_v27, %v9808_v4  ;;  %v9861_v24 = vrot.slane %v19967_v61, %v19293_v9  ;;  %v19968_v32 = vld [vmem:[#allocation148_spill] sm:$0xff]  ;;  %v19969_v2 = vld [vmem:[#allocation323_spill] sm:$0xff] }
 0xbb4   :  { %v17537_v35 = vpop.permute.xlu0 %9303  ;;  %v9870_v58 = vrot.slane %v19968_v32, %v19293_v9  ;;  %v10693_v30 = vsel %vm1277_vm9, %v9826_v3, %v10692_v52  ;;  %v9853_v28 = vsel %vm1210_vm7, %v9852_v51, %v9848_v46  ;;  %v9902_v21 = vrot.slane %v19969_v2, %v19301_v22  ;;  %v19971_v4 = vld [vmem:[#allocation327_spill] sm:$0xff]  ;;  %v19973_v3 = vld [vmem:[#allocation144_spill] sm:$0xff]  ;;  %v19974_v32 = vld [vmem:[#allocation161_spill] sm:$0xff] }
 0xbb5   :  { %v17545_v47 = vpop.permute.xlu1 %9294  ;;  %9453 = vperm.xlu0 %11358, %v17366_v7   ;;  %v9844_v25 = vsel %vm1210_vm7, %v9843_v55, %v9839_v38  ;;  %v19970_v7 = vld [vmem:[#allocation153_spill] sm:$0xff]  ;;  %v10700_v55 = vsel %vm1277_vm9, %v9898_v16, %v10699_v41  ;;  %v10694_v38 = vsel %vm1279_vm10, %v9835_v15, %v10693_v30  ;;  %v9857_v23 = vrot.slane %v19971_v4, %v19301_v22  ;;  %v12029_v15 = vpop.eup %12028 }
 0xbb6   :  { %9366 = vperm.xlu1 %11359, %v17335_v29   ;;  %v9915_v27 = vrot.slane %v19970_v7, %v19293_v9  ;;  %v9866_v29 = vrot.slane %v19972_v10, %v19301_v22  ;;  %v10695_v51 = vsel %vm1281_vm11, %v9844_v25, %v10694_v38  ;;  %v9911_v46 = vrot.slane %v19973_v3, %v19301_v22  ;;  %v19975_v2 = vld [vmem:[#allocation157_spill] sm:$0xff] }
 0xbb7   :  { %v9907_v52 = vsel %vm1210_vm7, %v9906_v0, %v9902_v21  ;;  %v9924_v41 = vrot.slane %v19974_v32, %v19293_v9  ;;  %v9862_v30 = vsel %vm1210_vm7, %v9861_v24, %v9857_v23  ;;  %v9933_v7 = vrot.slane %v19975_v2, %v19293_v9  ;;  %v17584_v0 = vpop.eup %12030  ;;  %v19976_v21 = vld [vmem:[#allocation142_spill] sm:$0xff]  ;;  %v19978_v24 = vld [vmem:[#allocation164_spill] sm:$0xff] }
 0xbb8   :  { %v17567_v61 = vpop.permute.xlu0 %9309  ;;  %v9871_v25 = vsel %vm1210_vm7, %v9870_v58, %v9866_v29  ;;  %v10696_v38 = vsel %vm1283_vm12, %v9853_v28, %v10695_v51  ;;  %v9920_v4 = vrot.slane %v19976_v21, %v19301_v22  ;;  %v9916_v10 = vsel %vm1210_vm7, %v9915_v27, %v9911_v46  ;;  %v19980_v28 = vld [vmem:[#allocation155_spill] sm:$0xff]  ;;  %v19981_v51 = vld [vmem:[#allocation365_spill] sm:$0xff] }
 0xbb9   :  { %v17575_v16 = vpop.permute.xlu1 %9300  ;;  %9501 = vperm.xlu0 %11358, %v17454_v13   ;;  %v19977_v13 = vld [vmem:[#allocation342_spill] sm:$0xff]  ;;  %v9960_v23 = vrot.slane %v19978_v24, %v19293_v9  ;;  %v10701_v32 = vsel %vm1279_vm10, %v9907_v52, %v10700_v55  ;;  %v9938_v29 = vrot.slane %v19980_v28, %v19301_v22  ;;  %v9969_v2 = vrot.slane %v19981_v51, %v19293_v9  ;;  %v19982_v46 = vld [vmem:[#allocation339_spill] sm:$0xff]  ;;  %v19984_v55 = vld [vmem:[#allocation168_spill] sm:$0xff] }
 0xbba   :  { %9414 = vperm.xlu1 %11359, %v17280_v48   ;;  %v9942_v3 = vrot.slane %v19977_v13, %v19293_v9  ;;  %v19979_v48 = vld [vmem:[#allocation151_spill] sm:$0xff]  ;;  %v9925_v27 = vsel %vm1210_vm7, %v9924_v41, %v9920_v4  ;;  %v9956_v13 = vrot.slane %v19982_v46, %v19301_v22  ;;  %v9978_v52 = vrot.slane %v19984_v55, %v19293_v9  ;;  %v19986_v4 = vld [vmem:[#allocation352_spill] sm:$0xff]  ;;  %v19988_v55 = vld [vmem:[#allocation361_spill] sm:$0xff] }
 0xbbb   :  { %v9929_v58 = vrot.slane %v19979_v48, %v19301_v22  ;;  %v19983_v24 = vld [vmem:[#allocation163_spill] sm:$0xff]  ;;  %v10702_v28 = vsel %vm1281_vm11, %v9916_v10, %v10701_v32  ;;  %v9965_v41 = vrot.slane %v19985_v8, %v19301_v22  ;;  %v9987_v46 = vrot.slane %v19986_v4, %v19293_v9 }
 0xbbc   :  { %v17600_v21 = vpop.permute.xlu0 %9315  ;;  %v9951_v50 = vrot.slane %v19983_v24, %v19293_v9  ;;  %v19987_v24 = vld [vmem:[#allocation347_spill] sm:$0xff]  ;;  %v9974_v33 = vrot.slane %v19988_v55, %v19301_v22  ;;  %v9943_v10 = vsel %vm1210_vm7, %v9942_v3, %v9938_v29  ;;  %v10703_v4 = vsel %vm1283_vm12, %v9925_v27, %v10702_v28  ;;  %v19990_v27 = vld [vmem:[#allocation385_spill] sm:$0xff] }
 0xbbd   :  { %v17609_v48 = vpop.permute.xlu1 %9306  ;;  %9459 = vperm.xlu0 %11358, %v17392_v40   ;;  %v9934_v51 = vsel %vm1210_vm7, %v9933_v7, %v9929_v58  ;;  %v9947_v14 = vrot.slane %v19987_v24, %v19301_v22  ;;  %v9961_v40 = vsel %vm1210_vm7, %v9960_v23, %v9956_v13  ;;  %v19989_v7 = vld [vmem:[#allocation165_spill] sm:$0xff]  ;;  %v9970_v8 = vsel %vm1210_vm7, %v9969_v2, %v9965_v41 }
 0xbbe   :  { %9456 = vperm.xlu1 %11359, %v17384_v36   ;;  %v9983_v32 = vrot.slane %v19989_v7, %v19301_v22  ;;  %v10697_v36 = vsel %vm1285_vm13, %v9862_v30, %v10696_v38  ;;  %v9979_v24 = vsel %vm1210_vm7, %v9978_v52, %v9974_v33  ;;  %v10704_v23 = vsel %vm1285_vm13, %v9934_v51, %v10703_v4  ;;  %v19992_v30 = vld [vmem:[#allocation373_spill] sm:$0xff] }
 0xbbf   :  { %v9952_v5 = vsel %vm1210_vm7, %v9951_v50, %v9947_v14  ;;  %v17636_v3 = vsel %vm1287_vm14, %v9871_v25, %v10697_v36  ;;  %v10032_v13 = vrot.slane %v19990_v27, %v19293_v9  ;;  %v17644_v50 = vsel %vm1287_vm14, %v9943_v10, %v10704_v23  ;;  %v19991_v14 = vld [vmem:[#allocation167_spill] sm:$0xff]  ;;  %v19994_v28 = vld [vmem:[#allocation377_spill] sm:$0xff] }
 0xbc0   :  { %v9322_v58 = vpop.permute.xlu0 %9321  ;;  %v10706_v29 = vsel %vm1275_vm8, %v9961_v40, %v9952_v5  ;;  %v9988_v2 = vsel %vm1210_vm7, %v9987_v46, %v9983_v32  ;;  %v9996_v25 = vrot.slane %v19992_v30, %v19293_v9  ;;  %v19993_v5 = vld [vmem:[#allocation360_spill] sm:$0xff]  ;;  %v10028_v51 = vrot.slane %v19994_v28, %v19301_v22  ;;  %v19997_v10 = vld [vmem:[#allocation369_spill] sm:$0xff] }
 0xbc1   :  { %v17632_v34 = vpop.permute.xlu1 %9312  ;;  %9507 = vperm.xlu0 %11358, %v12029_v15   ;;  %v10707_v33 = vsel %vm1277_vm9, %v9970_v8, %v10706_v29  ;;  %v9992_v15 = vrot.slane %v19991_v14, %v19301_v22  ;;  %v10005_v38 = vrot.slane %v19993_v5, %v19293_v9  ;;  %v19996_v46 = vld [vmem:[#allocation376_spill] sm:$0xff]  ;;  %v10001_v7 = vrot.slane %v19997_v10, %v19301_v22  ;;  %v19998_v8 = vld [vmem:[#allocation19_spill] sm:$0xff]  ;;  %v19999_v36 = vld [vmem:[#allocation397_spill] sm:$0xff] }
 0xbc2   :  { %9504 = vperm.xlu1 %11359, %v17468_v54   ;;  %v10708_v52 = vsel %vm1279_vm10, %v9979_v24, %v10707_v33  ;;  %v19995_v54 = vld [vmem:[#allocation381_spill] sm:$0xff]  ;;  %v10041_v55 = vrot.slane %v19996_v46, %v19293_v9  ;;  %v10010_v4 = vrot.slane %v19998_v8, %v19301_v22  ;;  %v10050_v24 = vrot.slane %v19999_v36, %v19293_v9  ;;  %v20000_v29 = vld [vmem:[#allocation166_spill] sm:$0xff]  ;;  %v20001_v33 = vld [vmem:[#allocation364_spill] sm:$0xff] }
 0xbc3   :  { %v10023_v41 = vrot.slane %v19995_v54, %v19293_v9  ;;  %v10709_v32 = vsel %vm1281_vm11, %v9988_v2, %v10708_v52  ;;  %v10019_v27 = vrot.slane %v20000_v29, %v19301_v22  ;;  %v10037_v14 = vrot.slane %v20001_v33, %v19301_v22  ;;  %v20002_v5 = vld [vmem:[#allocation389_spill] sm:$0xff]  ;;  %v20003_v54 = vld [vmem:[#allocation355_spill] sm:$0xff]  ;;  %v20004_v10 = vld [vmem:[#allocation368_spill] sm:$0xff] }
 0xbc4   :  { %v9328_v40 = vpop.permute.xlu0 %9327  ;;  %v10033_v30 = vsel %vm1210_vm7, %v10032_v13, %v10028_v51  ;;  %v10059_v28 = vrot.slane %v20002_v5, %v19293_v9  ;;  %v9997_v2 = vsel %vm1210_vm7, %v9996_v25, %v9992_v15  ;;  %v10006_v52 = vsel %vm1210_vm7, %v10005_v38, %v10001_v7  ;;  %v20005_v29 = vld [vmem:[#allocation372_spill] sm:$0xff]  ;;  %v20007_v25 = vld [vmem:[#allocation393_spill] sm:$0xff] }
 0xbc5   :  { %v17667_v23 = vpop.permute.xlu1 %9318  ;;  %v10014_v46 = vrot.slane %v20003_v54, %v19293_v9  ;;  %v10046_v8 = vrot.slane %v20004_v10, %v19301_v22  ;;  %v10024_v36 = vsel %vm1210_vm7, %v10023_v41, %v10019_v27  ;;  %v10055_v13 = vrot.slane %v20005_v29, %v19301_v22  ;;  %v20006_v33 = vld [vmem:[#allocation388_spill] sm:$0xff] }
 0xbc6   :  { %9462 = vperm.xlu1 %11359, %v17410_v1   ;;  %v10042_v51 = vsel %vm1210_vm7, %v10041_v55, %v10037_v14  ;;  %v10068_v1 = vrot.slane %v20006_v33, %v19293_v9  ;;  %v10713_v15 = vsel %vm1275_vm8, %v10033_v30, %v10024_v36  ;;  %v10064_v38 = vrot.slane %v20007_v25, %v19301_v22  ;;  %v20008_v54 = vld [vmem:[#allocation380_spill] sm:$0xff] }
 0xbc7   :  { %v10051_v7 = vsel %vm1210_vm7, %v10050_v24, %v10046_v8  ;;  %v10077_v10 = vrot.slane %v20008_v54, %v19293_v9  ;;  %v10060_v27 = vsel %vm1210_vm7, %v10059_v28, %v10055_v13  ;;  %v20009_v29 = vld [vmem:[#allocation396_spill] sm:$0xff]  ;;  %v10379_v14 = vrot.slane %v9322_v58, %v19301_v22  ;;  %v20011_v13 = vld [vmem:[#allocation401_spill] sm:$0xff] }
 0xbc8   :  { %v9334_v5 = vpop.permute.xlu0 %9333  ;;  %v10086_v55 = vrot.slane %v20009_v29, %v19293_v9  ;;  %v10714_v30 = vsel %vm1277_vm9, %v10042_v51, %v10713_v15  ;;  %v20010_v36 = vld [vmem:[#allocation384_spill] sm:$0xff]  ;;  %v10015_v8 = vsel %vm1210_vm7, %v10014_v46, %v10010_v4  ;;  %v10710_v25 = vsel %vm1283_vm12, %v9997_v2, %v10709_v32  ;;  %v20012_v15 = vld [vmem:[#allocation3_spill] sm:$0xff]  ;;  %v20013_v2 = vld [vmem:[#allocation193_spill] sm:$0xff] }
 0xbc9   :  { %v9325_v41 = vpop.permute.xlu1 %9324  ;;  %v10073_v24 = vrot.slane %v20010_v36, %v19301_v22  ;;  %v10715_v28 = vsel %vm1279_vm10, %v10051_v7, %v10714_v30  ;;  %v10082_v54 = vrot.slane %v20011_v13, %v19301_v22  ;;  %v10069_v58 = vsel %vm1210_vm7, %v10068_v1, %v10064_v38 }
 0xbca   :  { %v10383_v33 = vrot.slane %v9325_v41, %v19293_v9  ;;  %9510 = vperm.xlu1 %11359, %v17584_v0   ;;  %v10716_v0 = vsel %vm1281_vm11, %v10060_v27, %v10715_v28  ;;  %v10104_v36 = vrot.slane %v20012_v15, %v19293_v9  ;;  %v10711_v32 = vsel %vm1285_vm13, %v10006_v52, %v10710_v25  ;;  %v20016_v52 = vld [vmem:[#allocation407_spill] sm:$0xff] }
 0xbcb   :  { %v10078_v51 = vsel %vm1210_vm7, %v10077_v10, %v10073_v24  ;;  %v10113_v46 = vrot.slane %v20013_v2, %v19293_v9  ;;  %v10388_v7 = vrot.slane %v9328_v40, %v19301_v22  ;;  %v10087_v38 = vsel %vm1210_vm7, %v10086_v55, %v10082_v54  ;;  %v20015_v10 = vld [vmem:[#allocation400_spill] sm:$0xff]  ;;  %v20017_v28 = vld [vmem:[#allocation31_spill] sm:$0xff]  ;;  %v20018_v54 = vld [vmem:[#allocation405_spill] sm:$0xff] }
 0xbcc   :  { %v10384_v41 = vsel %vm1210_vm7, %v10383_v33, %v10379_v14  ;;  %v9340_v29 = vpop.permute.xlu0 %9339  ;;  %v20014_v14 = vld [vmem:[#allocation392_spill] sm:$0xff]  ;;  %v10095_v33 = vrot.slane %v20015_v10, %v19293_v9  ;;  %v10717_v30 = vsel %vm1283_vm12, %v10069_v58, %v10716_v0  ;;  %v10712_v24 = vsel %vm1287_vm14, %v10015_v8, %v10711_v32 }
 0xbcd   :  { %v9331_v4 = vpop.permute.xlu1 %9330  ;;  %v10100_v27 = vrot.slane %v20014_v14, %v19301_v22  ;;  %v10109_v25 = vrot.slane %v20016_v52, %v19301_v22  ;;  %v10122_v40 = vrot.slane %v20017_v28, %v19293_v9  ;;  %v10718_v55 = vsel %vm1285_vm13, %v10078_v51, %v10717_v30  ;;  %v20019_v32 = vld [vmem:[#allocation20_spill] sm:$0xff] }
 0xbce   :  { %v10392_v1 = vrot.slane %v9331_v4, %v19293_v9  ;;  %v10091_v4 = vrot.slane %v20018_v54, %v19301_v22  ;;  %v10719_v8 = vsel %vm1287_vm14, %v10087_v38, %v10718_v55  ;;  %v10118_v14 = vrot.slane %v20019_v32, %v19301_v22  ;;  %v20027_v54 = vld [vmem:[#allocation57_spill] sm:$0xff]  ;;  %v20028_v32 = vld [vmem:[#allocation10_spill] sm:$0xff] }
 0xbcf   :  { %v10105_v2 = vsel %vm1210_vm7, %v10104_v36, %v10100_v27  ;;  %v10114_v10 = vsel %vm1210_vm7, %v10113_v46, %v10109_v25  ;;  %v17746_v30 = vsel %vm1290_vm6, %v17644_v50, 0.0  ;;  %v17753_v36 = vsel %vm1290_vm6, %v10712_v24, 0.0  ;;  %v20024_v50 = vld [vmem:[#allocation404_spill] sm:$0xff] }
 0xbd0   :  { %v10393_v13 = vsel %vm1210_vm7, %v10392_v1, %v10388_v7  ;;  %v9346_v15 = vpop.permute.xlu0 %9345  ;;  %v10397_v7 = vrot.slane %v9334_v5, %v19301_v22  ;;  %v10096_v51 = vsel %vm1210_vm7, %v10095_v33, %v10091_v4  ;;  %20021 = vst [vmem:[#allocation175_spill] sm:$0xff] %v17753_v36  ;;  %v10123_v46 = vsel %vm1210_vm7, %v10122_v40, %v10118_v14  ;;  %v20022_v5 = vld [vmem:[#allocation53_spill] sm:$0xff] }
 0xbd1   :  { %v10748_v58 = vsel %vm1275_vm8, %v10393_v13, %v10384_v41  ;;  %v9337_v0 = vpop.permute.xlu1 %9336  ;;  %v17750_v41 = vsel %vm1290_vm6, %v17636_v3, 0.0  ;;  %v10720_v38 = vsel %vm1275_vm8, %v10105_v2, %v10096_v51  ;;  %v10176_v27 = vrot.slane %v20022_v5, %v19293_v9  ;;  %v20026_v40 = vld [vmem:[#allocation33_spill] sm:$0xff] }
 0xbd2   :  { %v10401_v1 = vrot.slane %v9337_v0, %v19293_v9  ;;  %20020 = vst [vmem:[#allocation24_spill] sm:$0xff] %v17750_v41  ;;  %v10127_v25 = vrot.slane %v20024_v50, %v19301_v22  ;;  %v10721_v3 = vsel %vm1277_vm9, %v10114_v10, %v10720_v38  ;;  %v17767_v13 = vsel %vm1290_vm6, %v10719_v8, 0.0  ;;  %v20030_v8 = vld [vmem:[#allocation60_spill] sm:$0xff]  ;;  %v20031_v51 = vld [vmem:[#allocation61_spill] sm:$0xff] }
 0xbd3   :  { %20025 = vst [vmem:[#allocation25_spill] sm:$0xff] %v17767_v13  ;;  %v10172_v55 = vrot.slane %v20026_v40, %v19301_v22  ;;  %v10167_v4 = vrot.slane %v20027_v54, %v19293_v9  ;;  %v10406_v2 = vrot.slane %v9340_v29, %v19301_v22  ;;  %v10136_v14 = vrot.slane %v20028_v32, %v19301_v22  ;;  %v20032_v29 = vld [vmem:[#allocation65_spill] sm:$0xff]  ;;  %v20033_v40 = vld [vmem:[#allocation212_spill] sm:$0xff]  ;;  %v20035_v32 = vld [vmem:[#allocation243_spill] sm:$0xff] }
 0xbd4   :  { %v10402_v33 = vsel %vm1210_vm7, %v10401_v1, %v10397_v7  ;;  %v17760_v52 = vpop.permute.xlu0 %9351  ;;  %v10722_v10 = vsel %vm1279_vm10, %v10123_v46, %v10721_v3  ;;  %v10131_v1 = vrot.slane %v20030_v8, %v19293_v9  ;;  %v10163_v38 = vrot.slane %v20031_v51, %v19301_v22  ;;  %v20034_v3 = vld [vmem:[#allocation55_spill] sm:$0xff] }
 0xbd5   :  { %20023 = vst [vmem:[#allocation176_spill] sm:$0xff] %v17760_v52  ;;  %v10749_v28 = vsel %vm1277_vm9, %v10402_v33, %v10748_v58  ;;  %v9343_v24 = vpop.permute.xlu1 %9342  ;;  %v20029_v58 = vld [vmem:[#allocation41_spill] sm:$0xff]  ;;  %v10177_v5 = vsel %vm1210_vm7, %v10176_v27, %v10172_v55  ;;  %v10185_v33 = vrot.slane %v20032_v29, %v19293_v9  ;;  %v10140_v46 = vrot.slane %v20033_v40, %v19293_v9  ;;  %v20037_v40 = vld [vmem:[#allocation47_spill] sm:$0xff] }
 0xbd6   :  { %v10410_v0 = vrot.slane %v9343_v24, %v19293_v9  ;;  %v10145_v7 = vrot.slane %v20029_v58, %v19301_v22  ;;  %v10181_v54 = vrot.slane %v20034_v3, %v19301_v22  ;;  %v10194_v58 = vrot.slane %v20035_v32, %v19293_v9  ;;  %v20036_v55 = vld [vmem:[#allocation21_spill] sm:$0xff]  ;;  %v20038_v3 = vld [vmem:[#allocation239_spill] sm:$0xff] }
 0xbd7   :  { %v10168_v27 = vsel %vm1210_vm7, %v10167_v4, %v10163_v38  ;;  %v10203_v29 = vrot.slane %v20036_v55, %v19293_v9  ;;  %v10149_v52 = vrot.slane %v20037_v40, %v19293_v9  ;;  %v10190_v36 = vrot.slane %v20038_v3, %v19301_v22  ;;  %v20040_v4 = vld [vmem:[#allocation231_spill] sm:$0xff] }
 0xbd8   :  { %v10411_v50 = vsel %vm1210_vm7, %v10410_v0, %v10406_v2  ;;  %v9373_v24 = vpop.permute.xlu0 %9372  ;;  %v10415_v2 = vrot.slane %v9346_v15, %v19301_v22  ;;  %v10727_v32 = vsel %vm1275_vm8, %v10177_v5, %v10168_v27  ;;  %v10199_v38 = vrot.slane %v20040_v4, %v19301_v22  ;;  %v20041_v40 = vld [vmem:[#allocation251_spill] sm:$0xff] }
 0xbd9   :  { %v10750_v8 = vsel %vm1279_vm10, %v10411_v50, %v10749_v28  ;;  %v9349_v51 = vpop.permute.xlu1 %9348  ;;  %v20039_v28 = vld [vmem:[#allocation170_spill] sm:$0xff]  ;;  %v10186_v55 = vsel %vm1210_vm7, %v10185_v33, %v10181_v54  ;;  %v10221_v15 = vrot.slane %v17130_v39, %v19293_v9  ;;  %v10208_v13 = vrot.slane %v20041_v40, %v19301_v22  ;;  %v20042_v33 = vld [vmem:[#allocation5_spill] sm:$0xff] }
 0xbda   :  { %v10419_v0 = vrot.slane %v9349_v51, %v19293_v9  ;;  %v10212_v50 = vrot.slane %v20039_v28, %v19293_v9  ;;  %v10195_v3 = vsel %vm1210_vm7, %v10194_v58, %v10190_v36  ;;  %v10230_v5 = vrot.slane %v17162_v57, %v19293_v9  ;;  %v20043_v58 = vld [vmem:[#allocation169_spill] sm:$0xff] }
 0xbdb   :  { %v10217_v54 = vrot.slane %v20042_v33, %v19301_v22  ;;  %v10204_v39 = vsel %vm1210_vm7, %v10203_v29, %v10199_v38  ;;  %v10132_v4 = vsel %vm1210_vm7, %v10131_v1, %v10127_v25  ;;  %v10728_v36 = vsel %vm1277_vm9, %v10186_v55, %v10727_v32  ;;  %v20044_v1 = vld [vmem:[#allocation51_spill] sm:$0xff] }
 0xbdc   :  { %v10420_v51 = vsel %vm1210_vm7, %v10419_v0, %v10415_v2  ;;  %v9379_v41 = vpop.permute.xlu0 %9378  ;;  %v10455_v2 = vrot.slane %v9373_v24, %v19293_v9  ;;  %v10226_v57 = vrot.slane %v20043_v58, %v19301_v22  ;;  %v10729_v40 = vsel %vm1279_vm10, %v10195_v3, %v10728_v36 }
 0xbdd   :  { %v17819_v27 = vsel %vm1281_vm11, %v10420_v51, %v10750_v8  ;;  %v9370_v28 = vpop.permute.xlu1 %9369  ;;  %v10213_v8 = vsel %vm1210_vm7, %v10212_v50, %v10208_v13  ;;  %v10141_v51 = vsel %vm1210_vm7, %v10140_v46, %v10136_v14  ;;  %v10222_v33 = vsel %vm1210_vm7, %v10221_v15, %v10217_v54 }
 0xbde   :  { %v10451_v0 = vrot.slane %v9370_v28, %v19301_v22  ;;  %v10150_v25 = vsel %vm1210_vm7, %v10149_v52, %v10145_v7  ;;  %v10158_v32 = vrot.slane %v20044_v1, %v19293_v9  ;;  %v10730_v38 = vsel %vm1281_vm11, %v10204_v39, %v10729_v40  ;;  %v20045_v52 = vld [vmem:[#allocation18_spill] sm:$0xff] }
 0xbdf   :  { %v10231_v13 = vsel %vm1210_vm7, %v10230_v5, %v10226_v57  ;;  %v10248_v14 = vrot.slane %v17219_v26, %v19293_v9  ;;  %v10464_v46 = vrot.slane %v9379_v41, %v19293_v9  ;;  %v10731_v15 = vsel %vm1283_vm12, %v10213_v8, %v10730_v38 }
 0xbe0   :  { %v10456_v29 = vsel %vm1210_vm7, %v10455_v2, %v10451_v0  ;;  %v9385_v24 = vpop.permute.xlu0 %9384  ;;  %10793 = vadd.xlane.f32.xlu0 %v17486_v11  ;;  %v10723_v11 = vsel %vm1281_vm11, %v10132_v4, %v10722_v10  ;;  %v10154_v7 = vrot.slane %v20045_v52, %v19301_v22  ;;  %v10239_v3 = vrot.slane %v17192_v53, %v19293_v9 }
 0xbe1   :  { %v9376_v55 = vpop.permute.xlu1 %9375  ;;  %v10732_v28 = vsel %vm1285_vm13, %v10222_v33, %v10731_v15  ;;  %v10244_v5 = vrot.slane %v17152_v20, %v19301_v22  ;;  %v10724_v10 = vsel %vm1283_vm12, %v10141_v51, %v10723_v11  ;;  %v10235_v39 = vrot.slane %v17124_v12, %v19301_v22 }
 0xbe2   :  { %v10460_v50 = vrot.slane %v9376_v55, %v19301_v22  ;;  %v10733_v54 = vsel %vm1287_vm14, %v10231_v13, %v10732_v28  ;;  %v17862_v0 = vsel %vm1210_vm7, %v10158_v32, %v10154_v7  ;;  %v17865_v20 = vsel %vm1285_vm13, %v10150_v25, %v10724_v10 }
 0xbe3   :  { %v10249_v4 = vsel %vm1210_vm7, %v10248_v14, %v10244_v5  ;;  %v10473_v36 = vrot.slane %v9385_v24, %v19293_v9  ;;  %v10253_v12 = vrot.slane %v17183_v18, %v19301_v22  ;;  %v10240_v57 = vsel %vm1210_vm7, %v10239_v3, %v10235_v39  ;;  %v20048_v39 = vld [vmem:[#allocation173_spill] sm:$0xff] }
 0xbe4   :  { %v10465_v26 = vsel %vm1210_vm7, %v10464_v46, %v10460_v50  ;;  %v9421_v41 = vpop.permute.xlu0 %9420  ;;  %10799 = vadd.xlane.f32.xlu0 %v17523_v42  ;;  %v10320_v42 = vrot.slane %v17473_v17, %v19293_v9  ;;  %v10257_v8 = vrot.slane %v17252_v19, %v19293_v9  ;;  %v17878_v51 = vsel %vm1290_vm6, %v10733_v54, 0.0 }
 0xbe5   :  { %v10755_v2 = vsel %vm1275_vm8, %v10465_v26, %v10456_v29  ;;  %v9382_v53 = vpop.permute.xlu1 %9381  ;;  %v10262_v40 = vrot.slane %v17211_v60, %v19301_v22  ;;  %v10316_v17 = vrot.slane %v17408_v62, %v19301_v22  ;;  %v10329_v33 = vrot.slane %v17514_v63, %v19293_v9  ;;  %v20046_v26 = vld [vmem:[#allocation25_spill] sm:$0xff] }
 0xbe6   :  { %v10469_v58 = vrot.slane %v9382_v53, %v19301_v22  ;;  %v10734_v24 = vsel %vm1275_vm8, %v10249_v4, %v10240_v57  ;;  %v10325_v19 = vrot.slane %v17440_v44, %v19301_v22  ;;  %v10338_v25 = vrot.slane %v17545_v47, %v19293_v9 }
 0xbe7   :  { %v10321_v1 = vsel %vm1210_vm7, %v10320_v42, %v10316_v17  ;;  %v10347_v63 = vrot.slane %v17575_v16, %v19293_v9  ;;  %v10527_v32 = vrot.slane %v9421_v41, %v19293_v9  ;;  %v10271_v38 = vrot.slane %v17245_v45, %v19301_v22  ;;  %v20049_v42 = vld [vmem:[#allocation24_spill] sm:$0xff] }
 0xbe8   :  { %v10474_v29 = vsel %vm1210_vm7, %v10473_v36, %v10469_v58  ;;  %v9427_v18 = vpop.permute.xlu0 %9426  ;;  %10802 = vadd.xlane.f32.xlu0 %v17495_v43  ;;  %v10258_v44 = vsel %vm1210_vm7, %v10257_v8, %v10253_v12  ;;  %v10334_v47 = vrot.slane %v17464_v31, %v19301_v22  ;;  %v10356_v55 = vrot.slane %v17609_v48, %v19293_v9  ;;  %v20050_v58 = vld [vmem:[#allocation22_spill] sm:$0xff] }
 0xbe9   :  { %v17894_v60 = vsel %vm1277_vm9, %v10474_v29, %v10755_v2  ;;  %v9418_v62 = vpop.permute.xlu1 %9417  ;;  %v10343_v13 = vrot.slane %v17505_v37, %v19301_v22  ;;  %v10330_v16 = vsel %vm1210_vm7, %v10329_v33, %v10325_v19  ;;  %v10365_v14 = vrot.slane %v17632_v34, %v19293_v9  ;;  %v20051_v8 = vld [vmem:[#allocation174_spill] sm:$0xff]  ;;  %v20052_v29 = vld [vmem:[#allocation171_spill] sm:$0xff] }
 0xbea   :  { %v10523_v43 = vrot.slane %v9418_v62, %v19301_v22  ;;  %v10741_v45 = vsel %vm1275_vm8, %v10321_v1, %v17462_v59  ;;  %v10352_v31 = vrot.slane %v17537_v35, %v19301_v22  ;;  %v10339_v48 = vsel %vm1210_vm7, %v10338_v25, %v10334_v47 }
 0xbeb   :  { %v10374_v37 = vrot.slane %v17667_v23, %v19293_v9  ;;  %v10361_v34 = vrot.slane %v17567_v61, %v19301_v22  ;;  %v10348_v11 = vsel %vm1210_vm7, %v10347_v63, %v10343_v13  ;;  %v10536_v52 = vrot.slane %v9427_v18, %v19293_v9  ;;  %v20053_v63 = vld [vmem:[#allocation172_spill] sm:$0xff] }
 0xbec   :  { %v10528_v46 = vsel %vm1210_vm7, %v10527_v32, %v10523_v43  ;;  %v9469_v50 = vpop.permute.xlu0 %9468  ;;  %10808 = vadd.xlane.f32.xlu0 %v17746_v30  ;;  %v10266_v59 = vrot.slane %v17278_v49, %v19293_v9  ;;  %v10742_v35 = vsel %vm1277_vm9, %v10330_v16, %v10741_v45  ;;  %v10370_v23 = vrot.slane %v17600_v21, %v19301_v22  ;;  %v20047_v49 = vld [vmem:[#allocation23_spill] sm:$0xff] }
 0xbed   :  { %v9424_v15 = vpop.permute.xlu1 %9423  ;;  %v10357_v7 = vsel %vm1210_vm7, %v10356_v55, %v10352_v31  ;;  %v10275_v61 = vrot.slane %v17315_v6, %v19293_v9  ;;  %v10743_v3 = vsel %vm1279_vm10, %v10339_v48, %v10742_v35  ;;  %v10366_v28 = vsel %vm1210_vm7, %v10365_v14, %v10361_v34  ;;  %v20054_v14 = vld [vmem:[#allocation175_spill] sm:$0xff] }
 0xbee   :  { %v10532_v30 = vrot.slane %v9424_v15, %v19301_v22  ;;  %10796 = vadd.xlane.f32.xlu1 %v17479_v56  ;;  %v10284_v41 = vrot.slane %v20047_v49, %v19293_v9  ;;  %v10744_v54 = vsel %vm1281_vm11, %v10348_v11, %v10743_v3  ;;  %v10375_v6 = vsel %vm1210_vm7, %v10374_v37, %v10370_v23 }
 0xbef   :  { %v10293_v2 = vrot.slane %v20048_v39, %v19293_v9  ;;  %v10599_v53 = vrot.slane %v9469_v50, %v19293_v9  ;;  %v10745_v36 = vsel %vm1283_vm12, %v10357_v7, %v10744_v54  ;;  %v10280_v12 = vrot.slane %v20050_v58, %v19301_v22 }
 0xbf0   :  { %v10537_v5 = vsel %vm1210_vm7, %v10536_v52, %v10532_v30  ;;  %v9475_v56 = vpop.permute.xlu0 %9474  ;;  %10814 = vadd.xlane.f32.xlu0 %v20046_v26  ;;  %v10267_v57 = vsel %vm1210_vm7, %v10266_v59, %v10262_v40  ;;  %v10302_v17 = vrot.slane %v20051_v8, %v19293_v9  ;;  %v10746_v33 = vsel %vm1285_vm13, %v10366_v28, %v10745_v36  ;;  %v20055_v26 = vld [vmem:[#allocation176_spill] sm:$0xff] }
 0xbf1   :  { %v17944_v21 = vsel %vm1275_vm8, %v10537_v5, %v10528_v46  ;;  %v9466_v10 = vpop.permute.xlu1 %9465  ;;  %v10289_v18 = vrot.slane %v20052_v29, %v19301_v22  ;;  %v10276_v19 = vsel %vm1210_vm7, %v10275_v61, %v10271_v38  ;;  %v10747_v1 = vsel %vm1287_vm14, %v10375_v6, %v10746_v33 }
 0xbf2   :  { %v10595_v4 = vrot.slane %v9466_v10, %v19301_v22  ;;  %10805 = vadd.xlane.f32.xlu1 %v20049_v42  ;;  %v10735_v40 = vsel %vm1277_vm9, %v10258_v44, %v10734_v24  ;;  %v10298_v32 = vrot.slane %v20053_v63, %v19301_v22  ;;  %v10285_v43 = vsel %vm1210_vm7, %v10284_v41, %v10280_v12 }
 0xbf3   :  { %v10726_v38 = vsel %vm1287_vm14, %v17862_v0, %v17865_v20  ;;  %v10736_v55 = vsel %vm1279_vm10, %v10267_v57, %v10735_v40  ;;  %v10294_v13 = vsel %vm1210_vm7, %v10293_v2, %v10289_v18  ;;  %v10825_v44 = vsel %vm1290_vm6, %v10747_v1, 0.0 }
 0xbf4   :  { %v10600_v25 = vsel %vm1210_vm7, %v10599_v53, %v10595_v4  ;;  %v17963_v62 = vpop.permute.xlu0 %9390  ;;  %10820 = vadd.xlane.f32.xlu0 %v17878_v51  ;;  %v10608_v51 = vrot.slane %v9475_v56, %v19293_v9  ;;  %v10737_v24 = vsel %vm1281_vm11, %v10276_v19, %v10736_v55  ;;  %v10303_v46 = vsel %vm1210_vm7, %v10302_v17, %v10298_v32 }
 0xbf5   :  { %v9472_v47 = vpop.permute.xlu1 %9471  ;;  %v10738_v0 = vsel %vm1283_vm12, %v10285_v43, %v10737_v24  ;;  %v10816_v48 = vsel %vm1290_vm6, %v10726_v38, 0.0  ;;  %v10424_v49 = vrot.slane %v20055_v26, %v19301_v22  ;;  %v10482_v1 = vrot.slane %v17963_v62, %v19293_v9 }
 0xbf6   :  { %v10604_v16 = vrot.slane %v9472_v47, %v19301_v22  ;;  %10811 = vadd.xlane.f32.xlu1 %v20054_v14  ;;  %v10739_v37 = vsel %vm1285_vm13, %v10294_v13, %v10738_v0 }
 0xbf7   :  { %v10740_v15 = vsel %vm1287_vm14, %v10303_v46, %v10739_v37 }
 0xbf8   :  { %v10609_v50 = vsel %vm1210_vm7, %v10608_v51, %v10604_v16  ;;  %v17983_v45 = vpop.permute.xlu0 %9432  ;;  %10826 = vadd.xlane.f32.xlu0 %v10825_v44  ;;  %v10822_v52 = vsel %vm1290_vm6, %v10740_v15, 0.0 }
 0xbf9   :  { %v17987_v20 = vsel %vm1275_vm8, %v10609_v50, %v10600_v25  ;;  %v9388_v31 = vpop.permute.xlu1 %9387 }
 0xbfa   :  { %10817 = vadd.xlane.f32.xlu1 %v10816_v48 }
 0xbfc   :  { %v17992_v34 = vpop.permute.xlu0 %9480 }
 0xbfd   :  { %v17994_v11 = vpop.permute.xlu1 %9429 }
 0xbfe   :  { %10823 = vadd.xlane.f32.xlu1 %v10822_v52 }
 0xc00   :  { %v9397_v30 = vpop.permute.xlu0 %9396 }
 0xc01   :  { %v17997_v59 = vpop.permute.xlu1 %9477  ;;  %v10491_v63 = vrot.slane %v9397_v30, %v19293_v9 }
 0xc04   :  { %v17999_v35 = vpop.permute.xlu0 %9438 }
 0xc05   :  { %v9394_v23 = vpop.permute.xlu1 %9393 }
 0xc06   :  { %v10487_v19 = vrot.slane %v9394_v23, %v19301_v22  ;;  %v10541_v23 = vrot.slane %v17994_v11, %v19301_v22 }
 0xc08   :  { %v18001_v7 = vpop.permute.xlu0 %9486  ;;  %v10492_v62 = vsel %vm1210_vm7, %v10491_v63, %v10487_v19 }
 0xc09   :  { %v18003_v61 = vpop.permute.xlu1 %9435 }
 0xc0c   :  { %v9400_v3 = vpop.permute.xlu0 %9399 }
 0xc0d   :  { %v18005_v28 = vpop.permute.xlu1 %9483  ;;  %v10496_v13 = vrot.slane %v9400_v3, %v19301_v22 }
 0xc10   :  { %v18007_v5 = vpop.permute.xlu0 %9441 }
 0xc11   :  { %v9355_v56 = vpop.permute.xlu1 %9354 }
 0xc12   :  { %v10428_v41 = vrot.slane %v9355_v56, %v19293_v9 }
 0xc14   :  { %v10429_v54 = vsel %vm1210_vm7, %v10428_v41, %v10424_v49  ;;  %v18013_v10 = vpop.permute.xlu0 %9489  ;;  %v10545_v49 = vrot.slane %v17983_v45, %v19293_v9  ;;  %v10550_v41 = vrot.slane %v18003_v61, %v19301_v22  ;;  %v10613_v45 = vrot.slane %v17997_v59, %v19301_v22 }
 0xc15   :  { %v9403_v6 = vpop.permute.xlu1 %9402  ;;  %v10752_v39 = vsel %vm1283_vm12, %v10429_v54, %v17819_v27  ;;  %v10478_v27 = vrot.slane %v9388_v31, %v19301_v22 }
 0xc16   :  { %v10500_v40 = vrot.slane %v9403_v6, %v19293_v9  ;;  %v10546_v11 = vsel %vm1210_vm7, %v10545_v49, %v10541_v23 }
 0xc17   :  { %v10483_v55 = vsel %vm1210_vm7, %v10482_v1, %v10478_v27  ;;  %v10763_v59 = vsel %vm1277_vm9, %v10546_v11, %v17944_v21  ;;  %v10626_v27 = vrot.slane %v18001_v7, %v19293_v9  ;;  %v10631_v7 = vrot.slane %v18013_v10, %v19301_v22 }
 0xc18   :  { %v9358_v2 = vpop.permute.xlu0 %9357  ;;  %v10501_v24 = vsel %vm1210_vm7, %v10500_v40, %v10496_v13  ;;  %v10757_v50 = vsel %vm1279_vm10, %v10483_v55, %v17894_v60 }
 0xc19   :  { %v18017_v53 = vpop.permute.xlu1 %9444  ;;  %v10433_v25 = vrot.slane %v9358_v2, %v19301_v22  ;;  %v10758_v37 = vsel %vm1281_vm11, %v10492_v62, %v10757_v50  ;;  %v10554_v2 = vrot.slane %v17999_v35, %v19293_v9 }
 0xc1a   :  { %v10759_v60 = vsel %vm1283_vm12, %v10501_v24, %v10758_v37 }
 0xc1c   :  { %v9406_v4 = vpop.permute.xlu0 %9405 }
 0xc1d   :  { %v18019_v42 = vpop.permute.xlu1 %9492  ;;  %v10505_v14 = vrot.slane %v9406_v4, %v19301_v22  ;;  %v10563_v4 = vrot.slane %v18017_v53, %v19293_v9  ;;  %v10617_v53 = vrot.slane %v17992_v34, %v19293_v9 }
 0xc20   :  { %v18021_v36 = vpop.permute.xlu0 %9447 }
 0xc21   :  { %v9361_v58 = vpop.permute.xlu1 %9360 }
 0xc22   :  { %v10437_v29 = vrot.slane %v9361_v58, %v19293_v9  ;;  %v10555_v58 = vsel %vm1210_vm7, %v10554_v2, %v10550_v41 }
 0xc23   :  { %v10764_v34 = vsel %vm1279_vm10, %v10555_v58, %v10763_v59 }
 0xc24   :  { %v18023_v12 = vpop.permute.xlu0 %9495  ;;  %v10438_v32 = vsel %vm1210_vm7, %v10437_v29, %v10433_v25  ;;  %v10618_v25 = vsel %vm1210_vm7, %v10617_v53, %v10613_v45 }
 0xc25   :  { %v9409_v57 = vpop.permute.xlu1 %9408  ;;  %v10753_v46 = vsel %vm1285_vm13, %v10438_v32, %v10752_v39 }
 0xc26   :  { %v10509_v43 = vrot.slane %v9409_v57, %v19293_v9  ;;  %v10622_v57 = vrot.slane %v18005_v28, %v19301_v22 }
 0xc28   :  { %v9364_v8 = vpop.permute.xlu0 %9363  ;;  %v10510_v0 = vsel %vm1210_vm7, %v10509_v43, %v10505_v14  ;;  %v10640_v43 = vrot.slane %v18023_v12, %v19301_v22 }
 0xc29   :  { %v18025_v17 = vpop.permute.xlu1 %9450  ;;  %v10442_v51 = vrot.slane %v9364_v8, %v19301_v22  ;;  %v10760_v26 = vsel %vm1285_vm13, %v10510_v0, %v10759_v60  ;;  %v10559_v8 = vrot.slane %v18007_v5, %v19301_v22  ;;  %v10635_v5 = vrot.slane %v18019_v42, %v19293_v9 }
 0xc2a   :  { %v10572_v61 = vrot.slane %v18025_v17, %v19293_v9  ;;  %v10568_v17 = vrot.slane %v18021_v36, %v19301_v22  ;;  %v10627_v36 = vsel %vm1210_vm7, %v10626_v27, %v10622_v57 }
 0xc2b   :  { %v10564_v28 = vsel %vm1210_vm7, %v10563_v4, %v10559_v8 }
 0xc2c   :  { %v9412_v33 = vpop.permute.xlu0 %9411  ;;  %v10573_v1 = vsel %vm1210_vm7, %v10572_v61, %v10568_v17  ;;  %v10765_v32 = vsel %vm1281_vm11, %v10564_v28, %v10764_v34 }
 0xc2d   :  { %v18028_v18 = vpop.permute.xlu1 %9498  ;;  %v10514_v15 = vrot.slane %v9412_v33, %v19301_v22  ;;  %v10766_v10 = vsel %vm1283_vm12, %v10573_v1, %v10765_v32 }
 0xc2e   :  { %v10644_v21 = vrot.slane %v18028_v18, %v19293_v9  ;;  %v10636_v18 = vsel %vm1210_vm7, %v10635_v5, %v10631_v7 }
 0xc30   :  { %v9454_v47 = vpop.permute.xlu0 %9453 }
 0xc31   :  { %v9367_v38 = vpop.permute.xlu1 %9366  ;;  %v10577_v19 = vrot.slane %v9454_v47, %v19301_v22 }
 0xc32   :  { %v10446_v16 = vrot.slane %v9367_v38, %v19293_v9 }
 0xc34   :  { %v10447_v44 = vsel %vm1210_vm7, %v10446_v16, %v10442_v51  ;;  %v9502_v3 = vpop.permute.xlu0 %9501  ;;  %v10770_v51 = vsel %vm1277_vm9, %v10618_v25, %v17987_v20  ;;  %v10645_v16 = vsel %vm1210_vm7, %v10644_v21, %v10640_v43  ;;  %v20056_v43 = vld [vmem:[#allocation253_spill] sm:$0xff] }
 0xc35   :  { %v9415_v31 = vpop.permute.xlu1 %9414  ;;  %v10754_v48 = vsel %vm1287_vm14, %v10447_v44, %v10753_v46  ;;  %v10649_v55 = vrot.slane %v9502_v3, %v19301_v22  ;;  %v10771_v14 = vsel %vm1279_vm10, %v10627_v36, %v10770_v51 }
 0xc36   :  { %v10518_v52 = vrot.slane %v9415_v31, %v19293_v9  ;;  %v10828_v30 = vsel %vm1290_vm6, %v10754_v48, 0.0  ;;  %v10772_v50 = vsel %vm1281_vm11, %v10636_v18, %v10771_v14 }
 0xc37   :  { %10829 = vadd.xlane.f32.xlu1 %v10828_v30  ;;  %v10773_v48 = vsel %vm1283_vm12, %v10645_v16, %v10772_v50  ;;  %v20061_v50 = vld [vmem:[#allocation67_spill] sm:$0xff] }
 0xc38   :  { %v10519_v56 = vsel %vm1210_vm7, %v10518_v52, %v10514_v15  ;;  %v9460_v33 = vpop.permute.xlu0 %9459 }
 0xc39   :  { %v9457_v54 = vpop.permute.xlu1 %9456  ;;  %v10761_v6 = vsel %vm1287_vm14, %v10519_v56, %v10760_v26  ;;  %v10586_v47 = vrot.slane %v9460_v33, %v19301_v22 }
 0xc3a   :  { %v10831_v39 = vsel %vm1290_vm6, %v10761_v6, 0.0  ;;  %v10581_v35 = vrot.slane %v9457_v54, %v19293_v9 }
 0xc3b   :  { %10832 = vadd.xlane.f32.xlu0 %v10831_v39 }
 0xc3c   :  { %v10582_v40 = vsel %vm1210_vm7, %v10581_v35, %v10577_v19  ;;  %v9508_v13 = vpop.permute.xlu0 %9507 }
 0xc3d   :  { %v9505_v29 = vpop.permute.xlu1 %9504  ;;  %v10767_v12 = vsel %vm1285_vm13, %v10582_v40, %v10766_v10  ;;  %v10658_v0 = vrot.slane %v9508_v13, %v19301_v22  ;;  %v20058_v10 = vld [vmem:[#allocation73_spill] sm:$0xff] }
 0xc3e   :  { %v10653_v42 = vrot.slane %v9505_v29, %v19293_v9 }
 0xc40   :  { %v10654_v24 = vsel %vm1210_vm7, %v10653_v42, %v10649_v55  ;;  %v20057_v55 = vld [vmem:[#allocation249_spill] sm:$0xff] }
 0xc41   :  { %v9463_v63 = vpop.permute.xlu1 %9462  ;;  %v10774_v15 = vsel %vm1285_vm13, %v10654_v24, %v10773_v48  ;;  %v20060_v24 = vld [vmem:[#allocation75_spill] sm:$0xff]  ;;  %v20063_v48 = vld [vmem:[#allocation69_spill] sm:$0xff] }
 0xc42   :  { %v10590_v38 = vrot.slane %v9463_v63, %v19293_v9 }
 0xc44   :  { %v10591_v62 = vsel %vm1210_vm7, %v10590_v38, %v10586_v47 }
 0xc45   :  { %v9511_v44 = vpop.permute.xlu1 %9510  ;;  %v10768_v46 = vsel %vm1287_vm14, %v10591_v62, %v10767_v12  ;;  %v20059_v12 = vld [vmem:[#allocation247_spill] sm:$0xff] }
 0xc46   :  { %v10662_v31 = vrot.slane %v9511_v44, %v19293_v9  ;;  %v10834_v20 = vsel %vm1290_vm6, %v10768_v46, 0.0 }
 0xc47   :  { %10835 = vadd.xlane.f32.xlu1 %v10834_v20 }
 0xc48   :  { %v10663_v37 = vsel %vm1210_vm7, %v10662_v31, %v10658_v0  ;;  %v20062_v31 = vld [vmem:[#allocation245_spill] sm:$0xff] }
 0xc49   :  { %v10775_v52 = vsel %vm1287_vm14, %v10663_v37, %v10774_v15 }
 0xc4a   :  { %v10837_v30 = vsel %vm1290_vm6, %v10775_v52, 0.0 }
 0xc4b   :  { %10838 = vadd.xlane.f32.xlu0 %v10837_v30  ;;  %v20064_v30 = vld [vmem:[#allocation71_spill] sm:$0xff] }
 0xc69   :  { %v10794_v23 = vpop.xlane.xlu0 %10793 }
 0xc6a   :  { %12032 = vlog2.f32 %v10794_v23 }
 0xc6d   :  { %v10800_v3 = vpop.xlane.xlu0 %10799 }
 0xc6e   :  { %12034 = vlog2.f32 %v10800_v3  ;;  %v20065_v3 = vld [vmem:[#allocation259_spill] sm:$0xff] }
 0xc71   :  { %v10803_v60 = vpop.xlane.xlu0 %10802 }
 0xc72   :  { %12036 = vlog2.f32 %v10803_v60 }
 0xc75   :  { %v10809_v26 = vpop.xlane.xlu0 %10808 }
 0xc76   :  { %12038 = vlog2.f32 %v10809_v26 }
 0xc77   :  { %v10797_v56 = vpop.xlane.xlu1 %10796  ;;  %v12033_v61 = vpop.eup %12032 }
 0xc78   :  { %12040 = vlog2.f32 %v10797_v56  ;;  %v10841_v21 = vmul.f32 0.6931472, %v12033_v61 }
 0xc79   :  { %v10815_v41 = vpop.xlane.xlu0 %10814 }
 0xc7a   :  { %12042 = vlog2.f32 %v10815_v41  ;;  %v10872_v14 = vadd.f32 %v10841_v21, %v20059_v12  ;;  %v20071_v12 = vld [vmem:[#allocation265_spill] sm:$0xff] }
 0xc7b   :  { %v10806_v49 = vpop.xlane.xlu1 %10805  ;;  %v12035_v58 = vpop.eup %12034 }
 0xc7c   :  { %12044 = vlog2.f32 %v10806_v49  ;;  %v10845_v40 = vmul.f32 0.6931472, %v12035_v58  ;;  %v20066_v49 = vld [vmem:[#allocation256_spill] sm:$0xff] }
 0xc7d   :  { %v10821_v6 = vpop.xlane.xlu0 %10820 }
 0xc7e   :  { %12046 = vlog2.f32 %v10821_v6  ;;  %v10874_v0 = vadd.f32 %v10845_v40, %v20061_v50 }
 0xc7f   :  { %v10812_v54 = vpop.xlane.xlu1 %10811  ;;  %v12037_v57 = vpop.eup %12036 }
 0xc80   :  { %12048 = vlog2.f32 %v10812_v54  ;;  %v10847_v19 = vmul.f32 0.6931472, %v12037_v57  ;;  %v20067_v54 = vld [vmem:[#allocation79_spill] sm:$0xff]  ;;  %v11130_v61 = vadd.f32 -2.7725887, %v10874_v0 }
 0xc81   :  { %v10827_v11 = vpop.xlane.xlu0 %10826 }
 0xc82   :  { %v10875_v13 = vadd.f32 %v10847_v19, %v20057_v55 }
 0xc83   :  { %v10818_v39 = vpop.xlane.xlu1 %10817  ;;  %v12039_v8 = vpop.eup %12038 }
 0xc84   :  { %12050 = vlog2.f32 %v10818_v39  ;;  %v10851_v42 = vmul.f32 0.6931472, %v12039_v8  ;;  %v11131_v56 = vadd.f32 -2.7725887, %v10875_v13  ;;  %v11128_v39 = vadd.f32 -2.7725887, %v10872_v14 }
 0xc85   :  { %v12041_v33 = vpop.eup %12040  ;;  %v20069_v8 = vld [vmem:[#allocation261_spill] sm:$0xff] }
 0xc86   :  { %v10843_v28 = vmul.f32 0.6931472, %v12041_v33  ;;  %v10877_v20 = vadd.f32 %v10851_v42, %v20062_v31  ;;  %v10923_v19 = vrot.slane %v11128_v39, %v19301_v22 }
 0xc87   :  { %v10824_v2 = vpop.xlane.xlu1 %10823  ;;  %v12043_v35 = vpop.eup %12042 }
 0xc88   :  { %12052 = vlog2.f32 %v10824_v2  ;;  %v10873_v47 = vadd.f32 %v10843_v28, %v20056_v43  ;;  %v10855_v38 = vmul.f32 0.6931472, %v12043_v35  ;;  %v20068_v2 = vld [vmem:[#allocation77_spill] sm:$0xff]  ;;  %v11133_v58 = vadd.f32 -2.7725887, %v10877_v20 }
 0xc89   :  { %v12045_v29 = vpop.eup %12044 }
 0xc8a   :  { %v10849_v25 = vmul.f32 0.6931472, %v12045_v29  ;;  %v11129_v52 = vadd.f32 -2.7725887, %v10873_v47  ;;  %v10879_v23 = vadd.f32 %v10855_v38, %v20064_v30  ;;  %v10945_v40 = vrot.slane %v11133_v58, %v19293_v9 }
 0xc8b   :  { %v12047_v59 = vpop.eup %12046 }
 0xc8c   :  { %v10876_v51 = vadd.f32 %v10849_v25, %v20058_v10  ;;  %v10859_v16 = vmul.f32 0.6931472, %v12047_v59  ;;  %v10927_v35 = vrot.slane %v11129_v52, %v19293_v9  ;;  %v11135_v29 = vadd.f32 -2.7725887, %v10879_v23 }
 0xc8d   :  { %v12049_v17 = vpop.eup %12048 }
 0xc8e   :  { %v10853_v36 = vmul.f32 0.6931472, %v12049_v17  ;;  %v11132_v26 = vadd.f32 -2.7725887, %v10876_v51  ;;  %v10881_v41 = vadd.f32 %v10859_v16, %v20066_v49  ;;  %v10936_v17 = vrot.slane %v11131_v56, %v19293_v9 }
 0xc8f   :  { %v10954_v43 = vrot.slane %v11135_v29, %v19293_v9 }
 0xc90   :  { %v10878_v44 = vadd.f32 %v10853_v36, %v20060_v24  ;;  %v11137_v28 = vadd.f32 -2.7725887, %v10881_v41  ;;  %v20072_v41 = vld [vmem:[#allocation6_spill] sm:$0xff] }
 0xc91   :  { %v12051_v27 = vpop.eup %12050 }
 0xc92   :  { %v10857_v63 = vmul.f32 0.6931472, %v12051_v27  ;;  %v10941_v27 = vrot.slane %v11132_v26, %v19301_v22  ;;  %v10963_v13 = vrot.slane %v11137_v28, %v19293_v9 }
 0xc94   :  { %v10880_v37 = vadd.f32 %v10857_v63, %v20063_v48  ;;  %v10946_v55 = vsel %vm1210_vm7, %v10945_v40, %v10941_v27 }
 0xc95   :  { %v12053_v5 = vpop.eup %12052 }
 0xc96   :  { %v10861_v18 = vmul.f32 0.6931472, %v12053_v5  ;;  %v11136_v57 = vadd.f32 -2.7725887, %v10880_v37 }
 0xc98   :  { %v10882_v60 = vadd.f32 %v10861_v18, %v20065_v3  ;;  %v10959_v42 = vrot.slane %v11136_v57, %v19301_v22 }
 0xcc0   :  { %v10830_v45 = vpop.xlane.xlu1 %10829 }
 0xcc4   :  { %v10833_v4 = vpop.xlane.xlu0 %10832 }
 0xcc5   :  { %12054 = vlog2.f32 %v10833_v4 }
 0xcc6   :  { %12056 = vlog2.f32 %v10827_v11  ;;  %v11134_v11 = vadd.f32 -2.7725887, %v10878_v44 }
 0xcc7   :  { %12058 = vlog2.f32 %v10830_v45 }
 0xcc8   :  { %v10950_v25 = vrot.slane %v11134_v11, %v19301_v22 }
 0xcca   :  { %v10955_v51 = vsel %vm1210_vm7, %v10954_v43, %v10950_v25 }
 0xcd0   :  { %v10836_v53 = vpop.xlane.xlu1 %10835 }
 0xcd1   :  { %12060 = vlog2.f32 %v10836_v53  ;;  %v11138_v53 = vadd.f32 -2.7725887, %v10882_v60 }
 0xcd2   :  { %v12055_v1 = vpop.eup %12054 }
 0xcd3   :  { %v12057_v7 = vpop.eup %12056  ;;  %v10867_v62 = vmul.f32 0.6931472, %v12055_v1  ;;  %v20070_v1 = vld [vmem:[#allocation81_spill] sm:$0xff]  ;;  %v10968_v47 = vrot.slane %v11138_v53, %v19301_v22 }
 0xcd4   :  { %v10839_v34 = vpop.xlane.xlu0 %10838  ;;  %v12059_v32 = vpop.eup %12058  ;;  %v10863_v46 = vmul.f32 0.6931472, %v12057_v7  ;;  %v10932_v7 = vrot.slane %v11130_v61, %v19301_v22 }
 0xcd5   :  { %12062 = vlog2.f32 %v10839_v34  ;;  %v10865_v15 = vmul.f32 0.6931472, %v12059_v32  ;;  %v10885_v6 = vadd.f32 %v10867_v62, %v20067_v54  ;;  %v10928_v32 = vsel %vm1210_vm7, %v10927_v35, %v10923_v19 }
 0xcd6   :  { %v10883_v4 = vadd.f32 %v10863_v46, %v20068_v2  ;;  %v10937_v18 = vsel %vm1210_vm7, %v10936_v17, %v10932_v7  ;;  %v10964_v46 = vsel %vm1210_vm7, %v10963_v13, %v10959_v42  ;;  %v1295_v54 = vmul.f32 0.0625, %v20072_v41 }
 0xcd7   :  { %v10884_v33 = vadd.f32 %v10865_v15, %v20069_v8  ;;  %v11141_v5 = vadd.f32 -2.7725887, %v10885_v6  ;;  %v10992_v24 = vsel %vm1275_vm8, %v10937_v18, %v10928_v32 }
 0xcd8   :  { %v11139_v34 = vadd.f32 -2.7725887, %v10883_v4  ;;  %v10993_v31 = vsel %vm1277_vm9, %v10946_v55, %v10992_v24 }
 0xcd9   :  { %v11140_v63 = vadd.f32 -2.7725887, %v10884_v33  ;;  %v10981_v10 = vrot.slane %v11141_v5, %v19293_v9  ;;  %v10994_v48 = vsel %vm1279_vm10, %v10955_v51, %v10993_v31 }
 0xcda   :  { %v10972_v16 = vrot.slane %v11139_v34, %v19293_v9  ;;  %v10995_v52 = vsel %vm1281_vm11, %v10964_v46, %v10994_v48 }
 0xcdb   :  { %v10977_v44 = vrot.slane %v11140_v63, %v19301_v22 }
 0xcdc   :  { %v10973_v0 = vsel %vm1210_vm7, %v10972_v16, %v10968_v47 }
 0xcdd   :  { %v10982_v20 = vsel %vm1210_vm7, %v10981_v10, %v10977_v44  ;;  %v10996_v30 = vsel %vm1283_vm12, %v10973_v0, %v10995_v52 }
 0xcde   :  { %v12061_v45 = vpop.eup %12060  ;;  %v10997_v3 = vsel %vm1285_vm13, %v10982_v20, %v10996_v30 }
 0xcdf   :  { %v10869_v59 = vmul.f32 0.6931472, %v12061_v45 }
 0xce1   :  { %v10886_v21 = vadd.f32 %v10869_v59, %v20070_v1 }
 0xce2   :  { %v12063_v36 = vpop.eup %12062 }
 0xce3   :  { %v10871_v38 = vmul.f32 0.6931472, %v12063_v36  ;;  %v11142_v62 = vadd.f32 -2.7725887, %v10886_v21 }
 0xce5   :  { %v10887_v14 = vadd.f32 %v10871_v38, %v20071_v12  ;;  %v10986_v37 = vrot.slane %v11142_v62, %v19301_v22 }
 0xce7   :  { %v11143_v50 = vadd.f32 -2.7725887, %v10887_v14 }
 0xce9   :  { %v10990_v15 = vrot.slane %v11143_v50, %v19293_v9  ;;  %v20073_v9 = vld [vmem:[#allocation4_spill] sm:$0xff] }
 0xceb   :  { %v10991_v23 = vsel %vm1210_vm7, %v10990_v15, %v10986_v37 }
 0xcec   :  { %v10998_v60 = vsel %vm1287_vm14, %v10991_v23, %v10997_v3 }
 0xced   :  { %v11000_v56 = vsel %vm1290_vm6, %v10998_v60, 0.0 }
 0xcee   :  { %11001 = vadd.xlane.f32.xlu1 %v11000_v56 }
 0xd77   :  { %v11002_v26 = vpop.xlane.xlu1 %11001 }
 0xd78   :  { %v11003_v49 = vmul.f32 0.0625, %v11002_v26 }
 0xd7a   :  { %v11004_v22 = vsub.f32 0.0, %v11003_v49 }
 0xd7c   :  { %v11005_v6 = vsub.f32 %v11004_v22, %v1295_v54 }
 0xd7e   :  { %v11011_v39 = vmul.f32 %v20073_v9, %v11005_v6 }
 0xd80   :  { %v11012_v11 = vsel %vm34_vm2, %v11011_v39, 0.0 }
 0xd81   :  { %v11013_v2 = vrot.slane %v11012_v11, 4 }
 0xd83   :  { %v11014_v4 = vadd.f32 %v11013_v2, %v11012_v11 }
 0xd85   :  { %v11015_v45 = vrot.slane %v11014_v4, 2 }
 0xd87   :  { %v11016_v61 = vadd.f32 %v11015_v45, %v11014_v4 }
 0xd89   :  { %v11017_v58 = vrot.slane %v11016_v61, 1 }
 0xd8b   :  { %v11018_v57 = vadd.f32 %v11017_v58, %v11016_v61 }
 0xd8d   :  { %11020 = vst.msk [vmem:[%s18192_s9] sm:$0x1] %vm11019_vm15, %v11018_v57 }

</bundles_post_ra>
